<compile_context>
chip_gen: v6e
topology: v6e:2x2x1
jax: 0.10.0
libtpu: 0.0.40
codegen_flags: <defaults>
</compile_context>

<pallas_src>
import functools

import jax
import jax.numpy as jnp
from jax.experimental import pallas as pl
from jax.experimental.pallas import tpu as pltpu

EPS = 1e-5
LANE = 128
_VMEM = pl.BlockSpec(memory_space=pltpu.MemorySpace.VMEM)


def _round_up(x, m):
    return (x + m - 1) // m * m


def _pick_tile(m, cap):
    """Largest row tile <= cap that divides m and is a multiple of 8 (or m itself)."""
    if m <= cap:
        return m
    t = cap - (cap % 8)
    while t >= 8:
        if m % t == 0:
            return t
        t -= 8
    return m


# ----------------------------------------------------------------------------
# Pass 1: direct convolution (tap accumulation) + per-row channel statistics
# ----------------------------------------------------------------------------
def _conv_pass1_kernel(x_ref, w_ref, y_ref, sum_ref, sq_ref, acc_ref,
                       *, kh, kw, stride, n, ow, o_tot):
    dy = pl.program_id(1)                       # tap row (reduction axis)
    x = x_ref[...]                              # (n, Wpp, Cp)  bf16, one shifted input row
    cp = x.shape[-1]

    part = None
    for dx in range(kw):                        # KW taps unrolled, static slices
        seg = x[:, dx:dx + stride * ow, :]
        if stride > 1:
            # phase-select every stride-th column (relative to dx): no strided DMA needed
            seg = seg.reshape(n, ow, stride, cp)[:, :, 0, :]
        seg = seg.reshape(n * ow, cp)
        w_tap = w_ref[dy * kw + dx]             # (Cp, o_tot) resident weights, dyn. index
        d = jnp.dot(seg, w_tap, preferred_element_type=jnp.float32)
        part = d if part is None else part + d

    @pl.when(dy == 0)
    def _():
        acc_ref[...] = part

    @pl.when(dy > 0)
    def _():
        acc_ref[...] = acc_ref[...] + part

    @pl.when(dy == kh - 1)
    def _():
        acc = acc_ref[...]                      # f32 accumulator (pre bf16 cast)
        y_ref[...] = acc.reshape(n, ow, o_tot).astype(y_ref.dtype)
        s = jnp.sum(acc, axis=0, keepdims=True)
        q = jnp.sum(acc * acc, axis=0, keepdims=True)
        sum_ref[...] = jnp.broadcast_to(s, (8, o_tot))
        sq_ref[...] = jnp.broadcast_to(q, (8, o_tot))


def conv_pass1(x, w_taps, *, kh, kw, stride, pad):
    """x: [N, H, W, Cp] bf16 (lane-dense padded channels);
    w_taps: [KH*KW, Cp, O_tot] bf16.  Returns (y bf16, sums f32, sqs f32)."""
    N, H, W, Cp = x.shape
    O_tot = w_taps.shape[-1]
    OH = (H + 2 * pad - kh) // stride + 1
    OW = (W + 2 * pad - kw) // stride + 1
    # spatial zero-pad once (the only remaining XLA-side copy for a conv); the
    # extra (stride-1) right column only keeps the in-kernel reshape in bounds.
    xp = jnp.pad(x, ((0, 0), (pad, pad), (pad, pad + stride - 1), (0, 0)))
    Wpp = xp.shape[2]

    kern = functools.partial(_conv_pass1_kernel, kh=kh, kw=kw, stride=stride,
                             n=N, ow=OW, o_tot=O_tot)
    cost = pl.CostEstimate(
        flops=2 * N * OH * OW * kh * kw * Cp * O_tot,
        transcendentals=0,
        bytes_accessed=(kh * N * OH * Wpp * Cp * 2 + kh * kw * Cp * O_tot * 2
                        + N * OH * OW * O_tot * 2 + 2 * OH * 8 * O_tot * 4))

    return pl.pallas_call(
        kern,
        out_shape=(jax.ShapeDtypeStruct((N, OH, OW, O_tot), jnp.bfloat16),
                   jax.ShapeDtypeStruct((OH, 8, O_tot), jnp.float32),
                   jax.ShapeDtypeStruct((OH, 8, O_tot), jnp.float32)),
        grid_spec=pltpu.PrefetchScalarGridSpec(
            num_scalar_prefetch=0,
            grid=(OH, kh),
            in_specs=[
                # one shifted padded input row per (oh, dy): block size 1 along H
                # -> index_map can return the element row stride*oh + dy.
                pl.BlockSpec((N, None, Wpp, Cp),
                             lambda oh, dy: (0, stride * oh + dy, 0, 0)),
                # weights resident in VMEM for the whole kernel.
                pl.BlockSpec((kh * kw, Cp, O_tot), lambda oh, dy: (0, 0, 0)),
            ],
            out_specs=[
                pl.BlockSpec((N, None, OW, O_tot), lambda oh, dy: (0, oh, 0, 0)),
                pl.BlockSpec((None, 8, O_tot), lambda oh, dy: (oh, 0, 0)),
                pl.BlockSpec((None, 8, O_tot), lambda oh, dy: (oh, 0, 0)),
            ],
            scratch_shapes=[pltpu.VMEM((N * OW, O_tot), jnp.float32)]),
        compiler_params=pltpu.CompilerParams(
            dimension_semantics=("parallel", "arbitrary")),   # oh shards on v7x megacore
        cost_estimate=cost,
    )(xp, w_taps)


# ----------------------------------------------------------------------------
# Pass 2: BN normalize (batch statistics) + optional residual + ReLU, bf16 I/O
# ----------------------------------------------------------------------------
def _bn_act_kernel(*refs, has_res, relu):
    if has_res:
        y_ref, sc_ref, sh_ref, r_ref, o_ref = refs
    else:
        y_ref, sc_ref, sh_ref, o_ref = refs
        r_ref = None
    out = y_ref[...].astype(jnp.float32) * sc_ref[...] + sh_ref[...]
    if has_res:
        out = out + r_ref[...].astype(jnp.float32)
    if relu:
        out = jnp.maximum(out, 0.0)
    o_ref[...] = out.astype(o_ref.dtype)


def bn_act(y, scale, shift, *, lane_block=0, residual=None, relu=True):
    """y: [N,OH,OW,O_tot] bf16; scale/shift: (1,LANE) f32; residual bf16 or None.
    lane_block selects the 128-lane half of a fused 256-lane conv output."""
    N, OH, OW, O_tot = y.shape
    M = N * OH * OW
    y2 = y.reshape(M, O_tot)                    # metadata-only reshape
    tm = _pick_tile(M, 2048)
    grid = (M // tm,)
    has_res = residual is not None

    inputs = [y2, scale, shift]
    in_specs = [pl.BlockSpec((tm, LANE), lambda i: (i, lane_block)),
                pl.BlockSpec((1, LANE), lambda i: (0, 0)),
                pl.BlockSpec((1, LANE), lambda i: (0, 0))]
    if has_res:
        inputs.append(residual.reshape(M, LANE))
        in_specs.append(pl.BlockSpec((tm, LANE), lambda i: (i, 0)))

    kern = functools.partial(_bn_act_kernel, has_res=has_res, relu=relu)
    out = pl.pallas_call(
        kern,
        out_shape=jax.ShapeDtypeStruct((M, LANE), jnp.bfloat16),
        grid_spec=pltpu.PrefetchScalarGridSpec(
            num_scalar_prefetch=0, grid=grid,
            in_specs=in_specs,
            out_specs=pl.BlockSpec((tm, LANE), lambda i: (i, 0))),
        compiler_params=pltpu.CompilerParams(dimension_semantics=("parallel",)),
        cost_estimate=pl.CostEstimate(
            flops=(3 + int(has_res) + int(relu)) * M * LANE,
            transcendentals=0,
            bytes_accessed=(2 + int(has_res)) * M * LANE * 2 + 2 * LANE * 4),
    )(*inputs)
    return out.reshape(N, OH, OW, LANE)


def _bn_scale_shift(sums, sqs, gamma, beta, count, lane0, width):
    """Tiny XLA-side reduction of per-row stats -> per-channel scale/shift (f32)."""
    s = sums[:, 0, lane0:lane0 + width].sum(axis=0)
    q = sqs[:, 0, lane0:lane0 + width].sum(axis=0)
    mean = s / count
    var = jnp.maximum(q / count - mean * mean, 0.0)     # biased var (PyTorch BN training)
    g = jnp.pad(gamma, (0, width - gamma.shape[0]))     # zero-pad -> padded lanes stay 0
    b = jnp.pad(beta, (0, width - beta.shape[0]))
    scale = g * jax.lax.rsqrt(var + EPS)
    shift = b - mean * scale
    return (scale.reshape(1, width).astype(jnp.float32),
            shift.reshape(1, width).astype(jnp.float32))


# ----------------------------------------------------------------------------
# MaxPool: running-max tap accumulation (no staged (k*k, M, C) array)
# ----------------------------------------------------------------------------
def _maxpool_kernel(x_ref, o_ref, *, kw, stride, n, ow):
    dy = pl.program_id(1)
    x = x_ref[...]                              # (n, Wpp, C) bf16
    c = x.shape[-1]
    cur = None
    for dx in range(kw):
        seg = x[:, dx:dx + stride * ow, :]
        if stride > 1:
            seg = seg.reshape(n, ow, stride, c)[:, :, 0, :]
        else:
            seg = seg.reshape(n, ow, c)
        cur = seg if cur is None else jnp.maximum(cur, seg)

    @pl.when(dy == 0)
    def _():
        o_ref[...] = cur

    @pl.when(dy > 0)
    def _():
        o_ref[...] = jnp.maximum(o_ref[...], cur)


def maxpool(x, k=3, stride=2, pad=1):
    N, H, W, C = x.shape
    OH = (H + 2 * pad - k) // stride + 1
    OW = (W + 2 * pad - k) // stride + 1
    # zero padding is equivalent to -inf padding here: inputs are post-ReLU (>=0).
    xp = jnp.pad(x, ((0, 0), (pad, pad), (pad, pad + stride - 1), (0, 0)))
    Wpp = xp.shape[2]
    kern = functools.partial(_maxpool_kernel, kw=k, stride=stride, n=N, ow=OW)
    return pl.pallas_call(
        kern,
        out_shape=jax.ShapeDtypeStruct((N, OH, OW, C), x.dtype),
        grid_spec=pltpu.PrefetchScalarGridSpec(
            num_scalar_prefetch=0,
            grid=(OH, k),
            in_specs=[pl.BlockSpec((N, None, Wpp, C),
                                   lambda oh, dy: (0, stride * oh + dy, 0, 0))],
            out_specs=pl.BlockSpec((N, None, OW, C), lambda oh, dy: (0, oh, 0, 0))),
        compiler_params=pltpu.CompilerParams(
            dimension_semantics=("parallel", "arbitrary")),
    )(xp)


# ----------------------------------------------------------------------------
# Global average pool + FC (bf16 MXU dot, classes padded to 128 lanes)
# ----------------------------------------------------------------------------
def _avgpool_fc_kernel(x_ref, w_ref, b_ref, o_ref, *, inv_hw):
    pooled = jnp.sum(x_ref[...].astype(jnp.float32), axis=1) * inv_hw     # (N, C)
    o_ref[...] = jnp.dot(pooled.astype(jnp.bfloat16), w_ref[...],
                         preferred_element_type=jnp.float32) + b_ref[...]


def avgpool_fc(x, w, b):
    N, H, W, C = x.shape
    in_c, nc = w.shape
    wp = jnp.pad(w, ((0, C - in_c), (0, LANE - nc))).astype(jnp.bfloat16)
    bp = jnp.pad(b, (0, LANE - nc)).reshape(1, LANE).astype(jnp.float32)
    kern = functools.partial(_avgpool_fc_kernel, inv_hw=1.0 / float(H * W))
    out = pl.pallas_call(
        kern,
        out_shape=jax.ShapeDtypeStruct((N, LANE), jnp.float32),
        in_specs=[_VMEM, _VMEM, _VMEM],
        out_specs=_VMEM,
    )(x.reshape(N, H * W, C), wp, bp)
    return out[:, :nc]


# ----------------------------------------------------------------------------
# Weight packing (tap-major, channel padded, bf16)
# ----------------------------------------------------------------------------
def _pack_conv_weights(w_oihw, cin_pad, cout_pad):
    O, I, KH, KW = w_oihw.shape
    w = jnp.transpose(w_oihw, (2, 3, 1, 0))                 # (KH, KW, I, O)
    w = jnp.pad(w, ((0, 0), (0, 0), (0, cin_pad - I), (0, cout_pad - O)))
    return w.reshape(KH * KW, cin_pad, cout_pad).astype(jnp.bfloat16)


def _pack_fused_weights(w3x3_oihw, w1x1_oihw, cin_pad):
    """Fuse conv1 (3x3, pad=1) and downsample (1x1, pad=0) along output lanes:
    the 1x1 conv is exactly the center tap of the padded 3x3 grid."""
    w1 = _pack_conv_weights(w3x3_oihw, cin_pad, LANE)       # (9, cin_pad, 128)
    Od, Id, _, _ = w1x1_oihw.shape
    wd = jnp.transpose(w1x1_oihw, (2, 3, 1, 0)).reshape(Id, Od)
    wd = jnp.pad(wd, ((0, cin_pad - Id), (0, LANE - Od)))
    down = jnp.zeros((9, cin_pad, LANE), jnp.float32).at[4].set(wd)   # tap (1,1)
    return jnp.concatenate([w1, down.astype(jnp.bfloat16)], axis=-1)  # (9, cin_pad, 256)


# ----------------------------------------------------------------------------
# ResNet assembly (BasicBlock)
# ----------------------------------------------------------------------------
def basic_block(x, p):
    s = p['stride']
    cin_pad = x.shape[-1]
    has_down = 'down_w' in p

    if has_down:
        w1 = _pack_fused_weights(p['conv1_w'], p['down_w'], cin_pad)   # 256-lane GEMM
    else:
        w1 = _pack_conv_weights(p['conv1_w'], cin_pad, LANE)
    y1, s1, q1 = conv_pass1(x, w1, kh=3, kw=3, stride=s, pad=1)
    N, OH, OW, _ = y1.shape
    count = N * OH * OW

    sc1, sh1 = _bn_scale_shift(s1, q1, p['bn1_g'], p['bn1_b'], count, 0, LANE)
    out1 = bn_act(y1, sc1, sh1, lane_block=0, relu=True)

    if has_down:
        scd, shd = _bn_scale_shift(s1, q1, p['dbn_g'], p['dbn_b'], count, LANE, LANE)
        identity = bn_act(y1, scd, shd, lane_block=1, relu=False)
    else:
        identity = x

    w2 = _pack_conv_weights(p['conv2_w'], LANE, LANE)
    y2, s2, q2 = conv_pass1(out1, w2, kh=3, kw=3, stride=1, pad=1)
    sc2, sh2 = _bn_scale_shift(s2, q2, p['bn2_g'], p['bn2_b'], count, 0, LANE)
    return bn_act(y2, sc2, sh2, lane_block=0, residual=identity, relu=True)


def resnet_forward(params, x_nchw):
    x = jnp.transpose(x_nchw, (0, 2, 3, 1)).astype(jnp.bfloat16)   # NCHW -> NHWC bf16
    cin = x.shape[-1]
    cin_pad = _round_up(cin, 8)
    x = jnp.pad(x, ((0, 0), (0, 0), (0, 0), (0, cin_pad - cin)))

    # Stem: 7x7 / s2 / p3 + BN + ReLU  (output channels lane-padded to 128)
    w = _pack_conv_weights(params['stem_w'], cin_pad, LANE)
    y, s, q = conv_pass1(x, w, kh=7, kw=7, stride=2, pad=3)
    N, OH, OW, _ = y.shape
    sc, sh = _bn_scale_shift(s, q, params['stem_g'], params['stem_b'], N * OH * OW, 0, LANE)
    x = bn_act(y, sc, sh, relu=True)

    x = maxpool(x, 3, 2, 1)

    # Activations stay in the lane-dense padded [N, H, W, 128] bf16 layout.
    for layer in params['blocks']:
        for bp in layer:
            x = basic_block(x, bp)

    # TODO(synk): for large configs (c0=64, 224x224) add OW / output-lane tiling
    # in conv_pass1 to respect v7x's 64 MiB VMEM; not needed at these shapes.
    return avgpool_fc(x, params['fc_w'], params['fc_b'])


# ----------------------------------------------------------------------------
# Deterministic parameter construction
# ----------------------------------------------------------------------------
def _conv_init(key, o, i, kh, kw):
    fan_in = i * kh * kw
    std = (2.0 / fan_in) ** 0.5
    return jax.random.normal(key, (o, i, kh, kw), jnp.float32) * std


def make_params(key, layers=(1, 1, 1, 1), num_classes=10, c0=8):
    keys = iter(jax.random.split(key, 64))
    params = {
        'stem_w': _conv_init(next(keys), c0, 3, 7, 7),
        'stem_g': jnp.ones((c0,), jnp.float32),
        'stem_b': jnp.zeros((c0,), jnp.float32),
    }
    in_c = c0
    blocks = []
    for li, (nb, mult) in enumerate(zip(layers, (1, 2, 4, 8))):
        out_c = c0 * mult
        first_stride = 1 if li == 0 else 2
        layer_blocks = []
        for bi in range(nb):
            s = first_stride if bi == 0 else 1
            bp = {
                'stride': s,
                'conv1_w': _conv_init(next(keys), out_c, in_c, 3, 3),
                'bn1_g': jnp.ones((out_c,), jnp.float32),
                'bn1_b': jnp.zeros((out_c,), jnp.float32),
                'conv2_w': _conv_init(next(keys), out_c, out_c, 3, 3),
                'bn2_g': jnp.ones((out_c,), jnp.float32),
                'bn2_b': jnp.zeros((out_c,), jnp.float32),
            }
            if s != 1 or in_c != out_c:
                bp['down_w'] = _conv_init(next(keys), out_c, in_c, 1, 1)
                bp['dbn_g'] = jnp.ones((out_c,), jnp.float32)
                bp['dbn_b'] = jnp.zeros((out_c,), jnp.float32)
            layer_blocks.append(bp)
            in_c = out_c
        blocks.append(layer_blocks)
    params['blocks'] = blocks
    params['fc_w'] = jax.random.normal(next(keys), (in_c, num_classes),
                                       jnp.float32) * (1.0 / in_c ** 0.5)
    params['fc_b'] = jnp.zeros((num_classes,), jnp.float32)
    return params


# ----------------------------------------------------------------------------
if __name__ == "__main__":
    key = jax.random.PRNGKey(0)
    pkey, xkey = jax.random.split(key)

    params = make_params(pkey, layers=(1, 1, 1, 1), num_classes=10, c0=8)
    x = jax.random.normal(xkey, (2, 3, 32, 32), jnp.float32)   # NCHW like PyTorch

    fwd = jax.jit(lambda inp: resnet_forward(params, inp))
    logits = jax.block_until_ready(fwd(x))

    assert logits.shape == (2, 10), logits.shape
    assert bool(jnp.all(jnp.isfinite(logits)))
    print("KERNEL_OK")
</pallas_src>

<mosaic_0001>
module attributes {stable_mosaic.version = 11 : i64} {
  func.func @_conv_pass1_kernel(%arg0: i32, %arg1: i32, %arg2: memref<2x1x39x8xbf16, #tpu.memory_space<vmem>>, %arg3: memref<49x8x128xbf16, #tpu.memory_space<vmem>>, %arg4: memref<2x1x16x128xbf16, #tpu.memory_space<vmem>>, %arg5: memref<1x8x128xf32, #tpu.memory_space<vmem>>, %arg6: memref<1x8x128xf32, #tpu.memory_space<vmem>>, %arg7: memref<32x128xf32, #tpu.memory_space<vmem>>) attributes {dimension_semantics = [#tpu.dimension_semantics<parallel>, #tpu.dimension_semantics<arbitrary>], iteration_bounds = array<i64: 16, 7>, scalar_prefetch = 0 : i64, scratch_operands = 1 : i64, tpu.core_type = #tpu.core_type<tc>, window_params = [{transform_indices = @transform_0, window_bounds = array<i64: 2, 1, 39, 8>}, {pipeline_mode = #tpu.pipeline_mode<synchronous>, transform_indices = @transform_1, window_bounds = array<i64: 49, 8, 128>}, {transform_indices = @transform_2, window_bounds = array<i64: 2, 1, 16, 128>}, {transform_indices = @transform_3, window_bounds = array<i64: 1, 8, 128>}, {transform_indices = @transform_4, window_bounds = array<i64: 1, 8, 128>}]} {
    %c0 = arith.constant 0 : index
    %c0_0 = arith.constant 0 : index
    %c0_1 = arith.constant 0 : index
    %c0_2 = arith.constant 0 : index
    %0 = vector.load %arg2[%c0, %c0_0, %c0_1, %c0_2] : memref<2x1x39x8xbf16, #tpu.memory_space<vmem>>, vector<2x1x39x8xbf16>
    %1 = vector.shape_cast %0 : vector<2x1x39x8xbf16> to vector<2x39x8xbf16>
    %2 = vector.extract_strided_slice %1 {offsets = [0, 0, 0], sizes = [2, 32, 8], strides = [1, 1, 1]} : vector<2x39x8xbf16> to vector<2x32x8xbf16>
    %3 = vector.shape_cast %2 : vector<2x32x8xbf16> to vector<2x16x2x8xbf16>
    %4 = vector.extract_strided_slice %3 {offsets = [0, 0, 0, 0], sizes = [2, 16, 1, 8], strides = [1, 1, 1, 1]} : vector<2x16x2x8xbf16> to vector<2x16x1x8xbf16>
    %5 = vector.shape_cast %4 : vector<2x16x1x8xbf16> to vector<2x16x8xbf16>
    %6 = vector.shape_cast %5 : vector<2x16x8xbf16> to vector<32x8xbf16>
    %c7_i32 = arith.constant 7 : i32
    %7 = arith.muli %arg1, %c7_i32 : i32
    %c0_i32 = arith.constant 0 : i32
    %8 = arith.addi %7, %c0_i32 : i32
    %9 = arith.index_cast %8 : i32 to index
    %c0_3 = arith.constant 0 : index
    %c0_4 = arith.constant 0 : index
    %10 = vector.load %arg3[%9, %c0_3, %c0_4] : memref<49x8x128xbf16, #tpu.memory_space<vmem>>, vector<1x8x128xbf16>
    %11 = vector.shape_cast %10 : vector<1x8x128xbf16> to vector<8x128xbf16>
    %cst = arith.constant dense<0.000000e+00> : vector<32x128xf32>
    %12 = tpu.matmul %6, %11, %cst {dimension_numbers = #tpu.dot_dimension_numbers<[1], [0], [0], [1], [0, 0, 1, 1], [], []>} : vector<32x8xbf16>, vector<8x128xbf16>, vector<32x128xf32> -> vector<32x128xf32>
    %13 = vector.extract_strided_slice %1 {offsets = [0, 1, 0], sizes = [2, 32, 8], strides = [1, 1, 1]} : vector<2x39x8xbf16> to vector<2x32x8xbf16>
    %14 = vector.shape_cast %13 : vector<2x32x8xbf16> to vector<2x16x2x8xbf16>
    %15 = vector.extract_strided_slice %14 {offsets = [0, 0, 0, 0], sizes = [2, 16, 1, 8], strides = [1, 1, 1, 1]} : vector<2x16x2x8xbf16> to vector<2x16x1x8xbf16>
    %16 = vector.shape_cast %15 : vector<2x16x1x8xbf16> to vector<2x16x8xbf16>
    %17 = vector.shape_cast %16 : vector<2x16x8xbf16> to vector<32x8xbf16>
    %c7_i32_5 = arith.constant 7 : i32
    %18 = arith.muli %arg1, %c7_i32_5 : i32
    %c1_i32 = arith.constant 1 : i32
    %19 = arith.addi %18, %c1_i32 : i32
    %20 = arith.index_cast %19 : i32 to index
    %c0_6 = arith.constant 0 : index
    %c0_7 = arith.constant 0 : index
    %21 = vector.load %arg3[%20, %c0_6, %c0_7] : memref<49x8x128xbf16, #tpu.memory_space<vmem>>, vector<1x8x128xbf16>
    %22 = vector.shape_cast %21 : vector<1x8x128xbf16> to vector<8x128xbf16>
    %cst_8 = arith.constant dense<0.000000e+00> : vector<32x128xf32>
    %23 = tpu.matmul %17, %22, %cst_8 {dimension_numbers = #tpu.dot_dimension_numbers<[1], [0], [0], [1], [0, 0, 1, 1], [], []>} : vector<32x8xbf16>, vector<8x128xbf16>, vector<32x128xf32> -> vector<32x128xf32>
    %24 = arith.addf %12, %23 : vector<32x128xf32>
    %25 = vector.extract_strided_slice %1 {offsets = [0, 2, 0], sizes = [2, 32, 8], strides = [1, 1, 1]} : vector<2x39x8xbf16> to vector<2x32x8xbf16>
    %26 = vector.shape_cast %25 : vector<2x32x8xbf16> to vector<2x16x2x8xbf16>
    %27 = vector.extract_strided_slice %26 {offsets = [0, 0, 0, 0], sizes = [2, 16, 1, 8], strides = [1, 1, 1, 1]} : vector<2x16x2x8xbf16> to vector<2x16x1x8xbf16>
    %28 = vector.shape_cast %27 : vector<2x16x1x8xbf16> to vector<2x16x8xbf16>
    %29 = vector.shape_cast %28 : vector<2x16x8xbf16> to vector<32x8xbf16>
    %c7_i32_9 = arith.constant 7 : i32
    %30 = arith.muli %arg1, %c7_i32_9 : i32
    %c2_i32 = arith.constant 2 : i32
    %31 = arith.addi %30, %c2_i32 : i32
    %32 = arith.index_cast %31 : i32 to index
    %c0_10 = arith.constant 0 : index
    %c0_11 = arith.constant 0 : index
    %33 = vector.load %arg3[%32, %c0_10, %c0_11] : memref<49x8x128xbf16, #tpu.memory_space<vmem>>, vector<1x8x128xbf16>
    %34 = vector.shape_cast %33 : vector<1x8x128xbf16> to vector<8x128xbf16>
    %cst_12 = arith.constant dense<0.000000e+00> : vector<32x128xf32>
    %35 = tpu.matmul %29, %34, %cst_12 {dimension_numbers = #tpu.dot_dimension_numbers<[1], [0], [0], [1], [0, 0, 1, 1], [], []>} : vector<32x8xbf16>, vector<8x128xbf16>, vector<32x128xf32> -> vector<32x128xf32>
    %36 = arith.addf %24, %35 : vector<32x128xf32>
    %37 = vector.extract_strided_slice %1 {offsets = [0, 3, 0], sizes = [2, 32, 8], strides = [1, 1, 1]} : vector<2x39x8xbf16> to vector<2x32x8xbf16>
    %38 = vector.shape_cast %37 : vector<2x32x8xbf16> to vector<2x16x2x8xbf16>
    %39 = vector.extract_strided_slice %38 {offsets = [0, 0, 0, 0], sizes = [2, 16, 1, 8], strides = [1, 1, 1, 1]} : vector<2x16x2x8xbf16> to vector<2x16x1x8xbf16>
    %40 = vector.shape_cast %39 : vector<2x16x1x8xbf16> to vector<2x16x8xbf16>
    %41 = vector.shape_cast %40 : vector<2x16x8xbf16> to vector<32x8xbf16>
    %c7_i32_13 = arith.constant 7 : i32
    %42 = arith.muli %arg1, %c7_i32_13 : i32
    %c3_i32 = arith.constant 3 : i32
    %43 = arith.addi %42, %c3_i32 : i32
    %44 = arith.index_cast %43 : i32 to index
    %c0_14 = arith.constant 0 : index
    %c0_15 = arith.constant 0 : index
    %45 = vector.load %arg3[%44, %c0_14, %c0_15] : memref<49x8x128xbf16, #tpu.memory_space<vmem>>, vector<1x8x128xbf16>
    %46 = vector.shape_cast %45 : vector<1x8x128xbf16> to vector<8x128xbf16>
    %cst_16 = arith.constant dense<0.000000e+00> : vector<32x128xf32>
    %47 = tpu.matmul %41, %46, %cst_16 {dimension_numbers = #tpu.dot_dimension_numbers<[1], [0], [0], [1], [0, 0, 1, 1], [], []>} : vector<32x8xbf16>, vector<8x128xbf16>, vector<32x128xf32> -> vector<32x128xf32>
    %48 = arith.addf %36, %47 : vector<32x128xf32>
    %49 = vector.extract_strided_slice %1 {offsets = [0, 4, 0], sizes = [2, 32, 8], strides = [1, 1, 1]} : vector<2x39x8xbf16> to vector<2x32x8xbf16>
    %50 = vector.shape_cast %49 : vector<2x32x8xbf16> to vector<2x16x2x8xbf16>
    %51 = vector.extract_strided_slice %50 {offsets = [0, 0, 0, 0], sizes = [2, 16, 1, 8], strides = [1, 1, 1, 1]} : vector<2x16x2x8xbf16> to vector<2x16x1x8xbf16>
    %52 = vector.shape_cast %51 : vector<2x16x1x8xbf16> to vector<2x16x8xbf16>
    %53 = vector.shape_cast %52 : vector<2x16x8xbf16> to vector<32x8xbf16>
    %c7_i32_17 = arith.constant 7 : i32
    %54 = arith.muli %arg1, %c7_i32_17 : i32
    %c4_i32 = arith.constant 4 : i32
    %55 = arith.addi %54, %c4_i32 : i32
    %56 = arith.index_cast %55 : i32 to index
    %c0_18 = arith.constant 0 : index
    %c0_19 = arith.constant 0 : index
    %57 = vector.load %arg3[%56, %c0_18, %c0_19] : memref<49x8x128xbf16, #tpu.memory_space<vmem>>, vector<1x8x128xbf16>
    %58 = vector.shape_cast %57 : vector<1x8x128xbf16> to vector<8x128xbf16>
    %cst_20 = arith.constant dense<0.000000e+00> : vector<32x128xf32>
    %59 = tpu.matmul %53, %58, %cst_20 {dimension_numbers = #tpu.dot_dimension_numbers<[1], [0], [0], [1], [0, 0, 1, 1], [], []>} : vector<32x8xbf16>, vector<8x128xbf16>, vector<32x128xf32> -> vector<32x128xf32>
    %60 = arith.addf %48, %59 : vector<32x128xf32>
    %61 = vector.extract_strided_slice %1 {offsets = [0, 5, 0], sizes = [2, 32, 8], strides = [1, 1, 1]} : vector<2x39x8xbf16> to vector<2x32x8xbf16>
    %62 = vector.shape_cast %61 : vector<2x32x8xbf16> to vector<2x16x2x8xbf16>
    %63 = vector.extract_strided_slice %62 {offsets = [0, 0, 0, 0], sizes = [2, 16, 1, 8], strides = [1, 1, 1, 1]} : vector<2x16x2x8xbf16> to vector<2x16x1x8xbf16>
    %64 = vector.shape_cast %63 : vector<2x16x1x8xbf16> to vector<2x16x8xbf16>
    %65 = vector.shape_cast %64 : vector<2x16x8xbf16> to vector<32x8xbf16>
    %c7_i32_21 = arith.constant 7 : i32
    %66 = arith.muli %arg1, %c7_i32_21 : i32
    %c5_i32 = arith.constant 5 : i32
    %67 = arith.addi %66, %c5_i32 : i32
    %68 = arith.index_cast %67 : i32 to index
    %c0_22 = arith.constant 0 : index
    %c0_23 = arith.constant 0 : index
    %69 = vector.load %arg3[%68, %c0_22, %c0_23] : memref<49x8x128xbf16, #tpu.memory_space<vmem>>, vector<1x8x128xbf16>
    %70 = vector.shape_cast %69 : vector<1x8x128xbf16> to vector<8x128xbf16>
    %cst_24 = arith.constant dense<0.000000e+00> : vector<32x128xf32>
    %71 = tpu.matmul %65, %70, %cst_24 {dimension_numbers = #tpu.dot_dimension_numbers<[1], [0], [0], [1], [0, 0, 1, 1], [], []>} : vector<32x8xbf16>, vector<8x128xbf16>, vector<32x128xf32> -> vector<32x128xf32>
    %72 = arith.addf %60, %71 : vector<32x128xf32>
    %73 = vector.extract_strided_slice %1 {offsets = [0, 6, 0], sizes = [2, 32, 8], strides = [1, 1, 1]} : vector<2x39x8xbf16> to vector<2x32x8xbf16>
    %74 = vector.shape_cast %73 : vector<2x32x8xbf16> to vector<2x16x2x8xbf16>
    %75 = vector.extract_strided_slice %74 {offsets = [0, 0, 0, 0], sizes = [2, 16, 1, 8], strides = [1, 1, 1, 1]} : vector<2x16x2x8xbf16> to vector<2x16x1x8xbf16>
    %76 = vector.shape_cast %75 : vector<2x16x1x8xbf16> to vector<2x16x8xbf16>
    %77 = vector.shape_cast %76 : vector<2x16x8xbf16> to vector<32x8xbf16>
    %c7_i32_25 = arith.constant 7 : i32
    %78 = arith.muli %arg1, %c7_i32_25 : i32
    %c6_i32 = arith.constant 6 : i32
    %79 = arith.addi %78, %c6_i32 : i32
    %80 = arith.index_cast %79 : i32 to index
    %c0_26 = arith.constant 0 : index
    %c0_27 = arith.constant 0 : index
    %81 = vector.load %arg3[%80, %c0_26, %c0_27] : memref<49x8x128xbf16, #tpu.memory_space<vmem>>, vector<1x8x128xbf16>
    %82 = vector.shape_cast %81 : vector<1x8x128xbf16> to vector<8x128xbf16>
    %cst_28 = arith.constant dense<0.000000e+00> : vector<32x128xf32>
    %83 = tpu.matmul %77, %82, %cst_28 {dimension_numbers = #tpu.dot_dimension_numbers<[1], [0], [0], [1], [0, 0, 1, 1], [], []>} : vector<32x8xbf16>, vector<8x128xbf16>, vector<32x128xf32> -> vector<32x128xf32>
    %84 = arith.addf %72, %83 : vector<32x128xf32>
    %c0_i32_29 = arith.constant 0 : i32
    %85 = arith.cmpi eq, %arg1, %c0_i32_29 : i32
    %86 = arith.extui %85 : i1 to i32
    %c0_i32_30 = arith.constant 0 : i32
    %87 = arith.cmpi ne, %86, %c0_i32_30 : i32
    scf.if %87 {
      %c0_35 = arith.constant 0 : index
      %c0_36 = arith.constant 0 : index
      %94 = vector.load %arg7[%c0_35, %c0_36] : memref<32x128xf32, #tpu.memory_space<vmem>>, vector<32x128xf32>
      tpu.vector_store %arg7[%c0_35, %c0_36], %84 {strides = array<i32>} : memref<32x128xf32, #tpu.memory_space<vmem>>, vector<32x128xf32>,
    } else {
    }
    %c0_i32_31 = arith.constant 0 : i32
    %88 = arith.cmpi sgt, %arg1, %c0_i32_31 : i32
    %89 = arith.extui %88 : i1 to i32
    %c0_i32_32 = arith.constant 0 : i32
    %90 = arith.cmpi ne, %89, %c0_i32_32 : i32
    scf.if %90 {
      %c0_35 = arith.constant 0 : index
      %c0_36 = arith.constant 0 : index
      %94 = vector.load %arg7[%c0_35, %c0_36] : memref<32x128xf32, #tpu.memory_space<vmem>>, vector<32x128xf32>
      %95 = arith.addf %94, %84 : vector<32x128xf32>
      %c0_37 = arith.constant 0 : index
      %c0_38 = arith.constant 0 : index
      %96 = vector.load %arg7[%c0_37, %c0_38] : memref<32x128xf32, #tpu.memory_space<vmem>>, vector<32x128xf32>
      tpu.vector_store %arg7[%c0_37, %c0_38], %95 {strides = array<i32>} : memref<32x128xf32, #tpu.memory_space<vmem>>, vector<32x128xf32>,
    } else {
    }
    %c6_i32_33 = arith.constant 6 : i32
    %91 = arith.cmpi eq, %arg1, %c6_i32_33 : i32
    %92 = arith.extui %91 : i1 to i32
    %c0_i32_34 = arith.constant 0 : i32
    %93 = arith.cmpi ne, %92, %c0_i32_34 : i32
    scf.if %93 {
      %c0_35 = arith.constant 0 : index
      %c0_36 = arith.constant 0 : index
      %94 = vector.load %arg7[%c0_35, %c0_36] : memref<32x128xf32, #tpu.memory_space<vmem>>, vector<32x128xf32>
      %95 = vector.shape_cast %94 : vector<32x128xf32> to vector<2x16x128xf32>
      %96 = arith.truncf %95 : vector<2x16x128xf32> to vector<2x16x128xbf16>
      %c0_37 = arith.constant 0 : index
      %c0_38 = arith.constant 0 : index
      %c0_39 = arith.constant 0 : index
      %c0_40 = arith.constant 0 : index
      %97 = vector.load %arg4[%c0_37, %c0_38, %c0_39, %c0_40] : memref<2x1x16x128xbf16, #tpu.memory_space<vmem>>, vector<2x1x16x128xbf16>
      %98 = vector.shape_cast %97 : vector<2x1x16x128xbf16> to vector<2x16x128xbf16>
      %99 = vector.shape_cast %96 : vector<2x16x128xbf16> to vector<2x1x16x128xbf16>
      tpu.vector_store %arg4[%c0_37, %c0_38, %c0_39, %c0_40], %99 {strides = array<i32>} : memref<2x1x16x128xbf16, #tpu.memory_space<vmem>>, vector<2x1x16x128xbf16>,
      %cst_41 = arith.constant dense<0.000000e+00> : vector<128xf32>
      %100 = vector.multi_reduction <add>, %94, %cst_41 [0] : vector<32x128xf32> to vector<128xf32>
      %101 = vector.shape_cast %100 : vector<128xf32> to vector<1x128xf32>
      %102 = arith.mulf %94, %94 : vector<32x128xf32>
      %cst_42 = arith.constant dense<0.000000e+00> : vector<128xf32>
      %103 = vector.multi_reduction <add>, %102, %cst_42 [0] : vector<32x128xf32> to vector<128xf32>
      %104 = vector.shape_cast %103 : vector<128xf32> to vector<1x128xf32>
      %105 = vector.shape_cast %101 : vector<1x128xf32> to vector<1x128xf32>
      %106 = vector.broadcast %105 : vector<1x128xf32> to vector<8x128xf32>
      %c0_43 = arith.constant 0 : index
      %c0_44 = arith.constant 0 : index
      %c0_45 = arith.constant 0 : index
      %107 = vector.load %arg5[%c0_43, %c0_44, %c0_45] : memref<1x8x128xf32, #tpu.memory_space<vmem>>, vector<1x8x128xf32>
      %108 = vector.shape_cast %107 : vector<1x8x128xf32> to vector<8x128xf32>
      %109 = vector.shape_cast %106 : vector<8x128xf32> to vector<1x8x128xf32>
      tpu.vector_store %arg5[%c0_43, %c0_44, %c0_45], %109 {strides = array<i32>} : memref<1x8x128xf32, #tpu.memory_space<vmem>>, vector<1x8x128xf32>,
      %110 = vector.shape_cast %104 : vector<1x128xf32> to vector<1x128xf32>
      %111 = vector.broadcast %110 : vector<1x128xf32> to vector<8x128xf32>
      %c0_46 = arith.constant 0 : index
      %c0_47 = arith.constant 0 : index
      %c0_48 = arith.constant 0 : index
      %112 = vector.load %arg6[%c0_46, %c0_47, %c0_48] : memref<1x8x128xf32, #tpu.memory_space<vmem>>, vector<1x8x128xf32>
      %113 = vector.shape_cast %112 : vector<1x8x128xf32> to vector<8x128xf32>
      %114 = vector.shape_cast %111 : vector<8x128xf32> to vector<1x8x128xf32>
      tpu.vector_store %arg6[%c0_46, %c0_47, %c0_48], %114 {strides = array<i32>} : memref<1x8x128xf32, #tpu.memory_space<vmem>>, vector<1x8x128xf32>,
    } else {
    }
    return
  }
  func.func @transform_0(%arg0: i32, %arg1: i32) -> (i32, i32, i32, i32) {
    %c2_i32 = arith.constant 2 : i32
    %0 = arith.muli %c2_i32, %arg0 : i32
    %1 = arith.addi %0, %arg1 : i32
    %c0_i32 = arith.constant 0 : i32
    %c0_i32_0 = arith.constant 0 : i32
    %c0_i32_1 = arith.constant 0 : i32
    %c0_i32_2 = arith.constant 0 : i32
    return %c0_i32, %1, %c0_i32_0, %c0_i32_1 : i32, i32, i32, i32
  }
  func.func @transform_1(%arg0: i32, %arg1: i32) -> (i32, i32, i32) {
    %c0_i32 = arith.constant 0 : i32
    %c0_i32_0 = arith.constant 0 : i32
    %c0_i32_1 = arith.constant 0 : i32
    %c0_i32_2 = arith.constant 0 : i32
    return %c0_i32, %c0_i32_0, %c0_i32_1 : i32, i32, i32
  }
  func.func @transform_2(%arg0: i32, %arg1: i32) -> (i32, i32, i32, i32) {
    %c0_i32 = arith.constant 0 : i32
    %c0_i32_0 = arith.constant 0 : i32
    %c0_i32_1 = arith.constant 0 : i32
    %c0_i32_2 = arith.constant 0 : i32
    return %c0_i32, %arg0, %c0_i32_0, %c0_i32_1 : i32, i32, i32, i32
  }
  func.func @transform_3(%arg0: i32, %arg1: i32) -> (i32, i32, i32) {
    %c0_i32 = arith.constant 0 : i32
    %c0_i32_0 = arith.constant 0 : i32
    %c0_i32_1 = arith.constant 0 : i32
    return %arg0, %c0_i32, %c0_i32_0 : i32, i32, i32
  }
  func.func @transform_4(%arg0: i32, %arg1: i32) -> (i32, i32, i32) {
    %c0_i32 = arith.constant 0 : i32
    %c0_i32_0 = arith.constant 0 : i32
    %c0_i32_1 = arith.constant 0 : i32
    return %arg0, %c0_i32, %c0_i32_0 : i32, i32, i32
  }
}

module attributes {stable_mosaic.version = 11 : i64} {
  func.func @_bn_act_kernel(%arg0: i32, %arg1: memref<512x128xbf16, #tpu.memory_space<vmem>>, %arg2: memref<1x128xf32, #tpu.memory_space<vmem>>, %arg3: memref<1x128xf32, #tpu.memory_space<vmem>>, %arg4: memref<512x128xbf16, #tpu.memory_space<vmem>>) attributes {dimension_semantics = [#tpu.dimension_semantics<parallel>], iteration_bounds = array<i64: 1>, scalar_prefetch = 0 : i64, scratch_operands = 0 : i64, tpu.core_type = #tpu.core_type<tc>, window_params = [{transform_indices = @transform_0, window_bounds = array<i64: 512, 128>}, {pipeline_mode = #tpu.pipeline_mode<synchronous>, transform_indices = @transform_1, window_bounds = array<i64: 1, 128>}, {pipeline_mode = #tpu.pipeline_mode<synchronous>, transform_indices = @transform_2, window_bounds = array<i64: 1, 128>}, {transform_indices = @transform_3, window_bounds = array<i64: 512, 128>}]} {
    %c0 = arith.constant 0 : index
    %c0_0 = arith.constant 0 : index
    %0 = vector.load %arg1[%c0, %c0_0] : memref<512x128xbf16, #tpu.memory_space<vmem>>, vector<512x128xbf16>
    %1 = arith.extf %0 : vector<512x128xbf16> to vector<512x128xf32>
    %c0_1 = arith.constant 0 : index
    %c0_2 = arith.constant 0 : index
    %2 = vector.load %arg2[%c0_1, %c0_2] : memref<1x128xf32, #tpu.memory_space<vmem>>, vector<1x128xf32>
    %3 = vector.broadcast %2 : vector<1x128xf32> to vector<512x128xf32>
    %4 = arith.mulf %1, %3 : vector<512x128xf32>
    %c0_3 = arith.constant 0 : index
    %c0_4 = arith.constant 0 : index
    %5 = vector.load %arg3[%c0_3, %c0_4] : memref<1x128xf32, #tpu.memory_space<vmem>>, vector<1x128xf32>
    %6 = vector.broadcast %5 : vector<1x128xf32> to vector<512x128xf32>
    %7 = arith.addf %4, %6 : vector<512x128xf32>
    %cst = arith.constant 0.000000e+00 : f32
    %8 = vector.broadcast %cst : f32 to vector<512x128xf32>
    %9 = arith.maximumf %7, %8 : vector<512x128xf32>
    %10 = arith.truncf %9 : vector<512x128xf32> to vector<512x128xbf16>
    %c0_5 = arith.constant 0 : index
    %c0_6 = arith.constant 0 : index
    %11 = vector.load %arg4[%c0_5, %c0_6] : memref<512x128xbf16, #tpu.memory_space<vmem>>, vector<512x128xbf16>
    tpu.vector_store %arg4[%c0_5, %c0_6], %10 {strides = array<i32>} : memref<512x128xbf16, #tpu.memory_space<vmem>>, vector<512x128xbf16>,
    return
  }
  func.func @transform_0(%arg0: i32) -> (i32, i32) {
    %c0_i32 = arith.constant 0 : i32
    %c0_i32_0 = arith.constant 0 : i32
    return %arg0, %c0_i32 : i32, i32
  }
  func.func @transform_1(%arg0: i32) -> (i32, i32) {
    %c0_i32 = arith.constant 0 : i32
    %c0_i32_0 = arith.constant 0 : i32
    %c0_i32_1 = arith.constant 0 : i32
    return %c0_i32, %c0_i32_0 : i32, i32
  }
  func.func @transform_2(%arg0: i32) -> (i32, i32) {
    %c0_i32 = arith.constant 0 : i32
    %c0_i32_0 = arith.constant 0 : i32
    %c0_i32_1 = arith.constant 0 : i32
    return %c0_i32, %c0_i32_0 : i32, i32
  }
  func.func @transform_3(%arg0: i32) -> (i32, i32) {
    %c0_i32 = arith.constant 0 : i32
    %c0_i32_0 = arith.constant 0 : i32
    return %arg0, %c0_i32 : i32, i32
  }
}

module attributes {stable_mosaic.version = 11 : i64} {
  func.func @_maxpool_kernel(%arg0: i32, %arg1: i32, %arg2: memref<2x1x19x128xbf16, #tpu.memory_space<vmem>>, %arg3: memref<2x1x8x128xbf16, #tpu.memory_space<vmem>>) attributes {dimension_semantics = [#tpu.dimension_semantics<parallel>, #tpu.dimension_semantics<arbitrary>], iteration_bounds = array<i64: 8, 3>, scalar_prefetch = 0 : i64, scratch_operands = 0 : i64, tpu.core_type = #tpu.core_type<tc>, window_params = [{transform_indices = @transform_0, window_bounds = array<i64: 2, 1, 19, 128>}, {transform_indices = @transform_1, window_bounds = array<i64: 2, 1, 8, 128>}]} {
    %c0 = arith.constant 0 : index
    %c0_0 = arith.constant 0 : index
    %c0_1 = arith.constant 0 : index
    %c0_2 = arith.constant 0 : index
    %0 = vector.load %arg2[%c0, %c0_0, %c0_1, %c0_2] : memref<2x1x19x128xbf16, #tpu.memory_space<vmem>>, vector<2x1x19x128xbf16>
    %1 = vector.shape_cast %0 : vector<2x1x19x128xbf16> to vector<2x19x128xbf16>
    %2 = vector.extract_strided_slice %1 {offsets = [0, 0, 0], sizes = [2, 16, 128], strides = [1, 1, 1]} : vector<2x19x128xbf16> to vector<2x16x128xbf16>
    %3 = vector.shape_cast %2 : vector<2x16x128xbf16> to vector<2x8x2x128xbf16>
    %4 = vector.extract_strided_slice %3 {offsets = [0, 0, 0, 0], sizes = [2, 8, 1, 128], strides = [1, 1, 1, 1]} : vector<2x8x2x128xbf16> to vector<2x8x1x128xbf16>
    %5 = vector.shape_cast %4 : vector<2x8x1x128xbf16> to vector<2x8x128xbf16>
    %6 = vector.extract_strided_slice %1 {offsets = [0, 1, 0], sizes = [2, 16, 128], strides = [1, 1, 1]} : vector<2x19x128xbf16> to vector<2x16x128xbf16>
    %7 = vector.shape_cast %6 : vector<2x16x128xbf16> to vector<2x8x2x128xbf16>
    %8 = vector.extract_strided_slice %7 {offsets = [0, 0, 0, 0], sizes = [2, 8, 1, 128], strides = [1, 1, 1, 1]} : vector<2x8x2x128xbf16> to vector<2x8x1x128xbf16>
    %9 = vector.shape_cast %8 : vector<2x8x1x128xbf16> to vector<2x8x128xbf16>
    %10 = arith.maximumf %5, %9 : vector<2x8x128xbf16>
    %11 = vector.extract_strided_slice %1 {offsets = [0, 2, 0], sizes = [2, 16, 128], strides = [1, 1, 1]} : vector<2x19x128xbf16> to vector<2x16x128xbf16>
    %12 = vector.shape_cast %11 : vector<2x16x128xbf16> to vector<2x8x2x128xbf16>
    %13 = vector.extract_strided_slice %12 {offsets = [0, 0, 0, 0], sizes = [2, 8, 1, 128], strides = [1, 1, 1, 1]} : vector<2x8x2x128xbf16> to vector<2x8x1x128xbf16>
    %14 = vector.shape_cast %13 : vector<2x8x1x128xbf16> to vector<2x8x128xbf16>
    %15 = arith.maximumf %10, %14 : vector<2x8x128xbf16>
    %c0_i32 = arith.constant 0 : i32
    %16 = arith.cmpi eq, %arg1, %c0_i32 : i32
    %17 = arith.extui %16 : i1 to i32
    %c0_i32_3 = arith.constant 0 : i32
    %18 = arith.cmpi ne, %17, %c0_i32_3 : i32
    scf.if %18 {
      %c0_6 = arith.constant 0 : index
      %c0_7 = arith.constant 0 : index
      %c0_8 = arith.constant 0 : index
      %c0_9 = arith.constant 0 : index
      %22 = vector.load %arg3[%c0_6, %c0_7, %c0_8, %c0_9] : memref<2x1x8x128xbf16, #tpu.memory_space<vmem>>, vector<2x1x8x128xbf16>
      %23 = vector.shape_cast %22 : vector<2x1x8x128xbf16> to vector<2x8x128xbf16>
      %24 = vector.shape_cast %15 : vector<2x8x128xbf16> to vector<2x1x8x128xbf16>
      tpu.vector_store %arg3[%c0_6, %c0_7, %c0_8, %c0_9], %24 {strides = array<i32>} : memref<2x1x8x128xbf16, #tpu.memory_space<vmem>>, vector<2x1x8x128xbf16>,
    } else {
    }
    %c0_i32_4 = arith.constant 0 : i32
    %19 = arith.cmpi sgt, %arg1, %c0_i32_4 : i32
    %20 = arith.extui %19 : i1 to i32
    %c0_i32_5 = arith.constant 0 : i32
    %21 = arith.cmpi ne, %20, %c0_i32_5 : i32
    scf.if %21 {
      %c0_6 = arith.constant 0 : index
      %c0_7 = arith.constant 0 : index
      %c0_8 = arith.constant 0 : index
      %c0_9 = arith.constant 0 : index
      %22 = vector.load %arg3[%c0_6, %c0_7, %c0_8, %c0_9] : memref<2x1x8x128xbf16, #tpu.memory_space<vmem>>, vector<2x1x8x128xbf16>
      %23 = vector.shape_cast %22 : vector<2x1x8x128xbf16> to vector<2x8x128xbf16>
      %24 = arith.maximumf %23, %15 : vector<2x8x128xbf16>
      %c0_10 = arith.constant 0 : index
      %c0_11 = arith.constant 0 : index
      %c0_12 = arith.constant 0 : index
      %c0_13 = arith.constant 0 : index
      %25 = vector.load %arg3[%c0_10, %c0_11, %c0_12, %c0_13] : memref<2x1x8x128xbf16, #tpu.memory_space<vmem>>, vector<2x1x8x128xbf16>
      %26 = vector.shape_cast %25 : vector<2x1x8x128xbf16> to vector<2x8x128xbf16>
      %27 = vector.shape_cast %24 : vector<2x8x128xbf16> to vector<2x1x8x128xbf16>
      tpu.vector_store %arg3[%c0_10, %c0_11, %c0_12, %c0_13], %27 {strides = array<i32>} : memref<2x1x8x128xbf16, #tpu.memory_space<vmem>>, vector<2x1x8x128xbf16>,
    } else {
    }
    return
  }
  func.func @transform_0(%arg0: i32, %arg1: i32) -> (i32, i32, i32, i32) {
    %c2_i32 = arith.constant 2 : i32
    %0 = arith.muli %c2_i32, %arg0 : i32
    %1 = arith.addi %0, %arg1 : i32
    %c0_i32 = arith.constant 0 : i32
    %c0_i32_0 = arith.constant 0 : i32
    %c0_i32_1 = arith.constant 0 : i32
    %c0_i32_2 = arith.constant 0 : i32
    return %c0_i32, %1, %c0_i32_0, %c0_i32_1 : i32, i32, i32, i32
  }
  func.func @transform_1(%arg0: i32, %arg1: i32) -> (i32, i32, i32, i32) {
    %c0_i32 = arith.constant 0 : i32
    %c0_i32_0 = arith.constant 0 : i32
    %c0_i32_1 = arith.constant 0 : i32
    %c0_i32_2 = arith.constant 0 : i32
    return %c0_i32, %arg0, %c0_i32_0, %c0_i32_1 : i32, i32, i32, i32
  }
}

module attributes {stable_mosaic.version = 11 : i64} {
  func.func @_conv_pass1_kernel(%arg0: i32, %arg1: i32, %arg2: memref<2x1x10x128xbf16, #tpu.memory_space<vmem>>, %arg3: memref<9x128x128xbf16, #tpu.memory_space<vmem>>, %arg4: memref<2x1x8x128xbf16, #tpu.memory_space<vmem>>, %arg5: memref<1x8x128xf32, #tpu.memory_space<vmem>>, %arg6: memref<1x8x128xf32, #tpu.memory_space<vmem>>, %arg7: memref<16x128xf32, #tpu.memory_space<vmem>>) attributes {dimension_semantics = [#tpu.dimension_semantics<parallel>, #tpu.dimension_semantics<arbitrary>], iteration_bounds = array<i64: 8, 3>, scalar_prefetch = 0 : i64, scratch_operands = 1 : i64, tpu.core_type = #tpu.core_type<tc>, window_params = [{transform_indices = @transform_0, window_bounds = array<i64: 2, 1, 10, 128>}, {pipeline_mode = #tpu.pipeline_mode<synchronous>, transform_indices = @transform_1, window_bounds = array<i64: 9, 128, 128>}, {transform_indices = @transform_2, window_bounds = array<i64: 2, 1, 8, 128>}, {transform_indices = @transform_3, window_bounds = array<i64: 1, 8, 128>}, {transform_indices = @transform_4, window_bounds = array<i64: 1, 8, 128>}]} {
    %c0 = arith.constant 0 : index
    %c0_0 = arith.constant 0 : index
    %c0_1 = arith.constant 0 : index
    %c0_2 = arith.constant 0 : index
    %0 = vector.load %arg2[%c0, %c0_0, %c0_1, %c0_2] : memref<2x1x10x128xbf16, #tpu.memory_space<vmem>>, vector<2x1x10x128xbf16>
    %1 = vector.shape_cast %0 : vector<2x1x10x128xbf16> to vector<2x10x128xbf16>
    %2 = vector.extract_strided_slice %1 {offsets = [0, 0, 0], sizes = [2, 8, 128], strides = [1, 1, 1]} : vector<2x10x128xbf16> to vector<2x8x128xbf16>
    %3 = vector.shape_cast %2 : vector<2x8x128xbf16> to vector<16x128xbf16>
    %c3_i32 = arith.constant 3 : i32
    %4 = arith.muli %arg1, %c3_i32 : i32
    %c0_i32 = arith.constant 0 : i32
    %5 = arith.addi %4, %c0_i32 : i32
    %6 = arith.index_cast %5 : i32 to index
    %c0_3 = arith.constant 0 : index
    %c0_4 = arith.constant 0 : index
    %7 = vector.load %arg3[%6, %c0_3, %c0_4] : memref<9x128x128xbf16, #tpu.memory_space<vmem>>, vector<1x128x128xbf16>
    %8 = vector.shape_cast %7 : vector<1x128x128xbf16> to vector<128x128xbf16>
    %cst = arith.constant dense<0.000000e+00> : vector<16x128xf32>
    %9 = tpu.matmul %3, %8, %cst {dimension_numbers = #tpu.dot_dimension_numbers<[1], [0], [0], [1], [0, 0, 1, 1], [], []>} : vector<16x128xbf16>, vector<128x128xbf16>, vector<16x128xf32> -> vector<16x128xf32>
    %10 = vector.extract_strided_slice %1 {offsets = [0, 1, 0], sizes = [2, 8, 128], strides = [1, 1, 1]} : vector<2x10x128xbf16> to vector<2x8x128xbf16>
    %11 = vector.shape_cast %10 : vector<2x8x128xbf16> to vector<16x128xbf16>
    %c3_i32_5 = arith.constant 3 : i32
    %12 = arith.muli %arg1, %c3_i32_5 : i32
    %c1_i32 = arith.constant 1 : i32
    %13 = arith.addi %12, %c1_i32 : i32
    %14 = arith.index_cast %13 : i32 to index
    %c0_6 = arith.constant 0 : index
    %c0_7 = arith.constant 0 : index
    %15 = vector.load %arg3[%14, %c0_6, %c0_7] : memref<9x128x128xbf16, #tpu.memory_space<vmem>>, vector<1x128x128xbf16>
    %16 = vector.shape_cast %15 : vector<1x128x128xbf16> to vector<128x128xbf16>
    %cst_8 = arith.constant dense<0.000000e+00> : vector<16x128xf32>
    %17 = tpu.matmul %11, %16, %cst_8 {dimension_numbers = #tpu.dot_dimension_numbers<[1], [0], [0], [1], [0, 0, 1, 1], [], []>} : vector<16x128xbf16>, vector<128x128xbf16>, vector<16x128xf32> -> vector<16x128xf32>
    %18 = arith.addf %9, %17 : vector<16x128xf32>
    %19 = vector.extract_strided_slice %1 {offsets = [0, 2, 0], sizes = [2, 8, 128], strides = [1, 1, 1]} : vector<2x10x128xbf16> to vector<2x8x128xbf16>
    %20 = vector.shape_cast %19 : vector<2x8x128xbf16> to vector<16x128xbf16>
    %c3_i32_9 = arith.constant 3 : i32
    %21 = arith.muli %arg1, %c3_i32_9 : i32
    %c2_i32 = arith.constant 2 : i32
    %22 = arith.addi %21, %c2_i32 : i32
    %23 = arith.index_cast %22 : i32 to index
    %c0_10 = arith.constant 0 : index
    %c0_11 = arith.constant 0 : index
    %24 = vector.load %arg3[%23, %c0_10, %c0_11] : memref<9x128x128xbf16, #tpu.memory_space<vmem>>, vector<1x128x128xbf16>
    %25 = vector.shape_cast %24 : vector<1x128x128xbf16> to vector<128x128xbf16>
    %cst_12 = arith.constant dense<0.000000e+00> : vector<16x128xf32>
    %26 = tpu.matmul %20, %25, %cst_12 {dimension_numbers = #tpu.dot_dimension_numbers<[1], [0], [0], [1], [0, 0, 1, 1], [], []>} : vector<16x128xbf16>, vector<128x128xbf16>, vector<16x128xf32> -> vector<16x128xf32>
    %27 = arith.addf %18, %26 : vector<16x128xf32>
    %c0_i32_13 = arith.constant 0 : i32
    %28 = arith.cmpi eq, %arg1, %c0_i32_13 : i32
    %29 = arith.extui %28 : i1 to i32
    %c0_i32_14 = arith.constant 0 : i32
    %30 = arith.cmpi ne, %29, %c0_i32_14 : i32
    scf.if %30 {
      %c0_19 = arith.constant 0 : index
      %c0_20 = arith.constant 0 : index
      %37 = vector.load %arg7[%c0_19, %c0_20] : memref<16x128xf32, #tpu.memory_space<vmem>>, vector<16x128xf32>
      tpu.vector_store %arg7[%c0_19, %c0_20], %27 {strides = array<i32>} : memref<16x128xf32, #tpu.memory_space<vmem>>, vector<16x128xf32>,
    } else {
    }
    %c0_i32_15 = arith.constant 0 : i32
    %31 = arith.cmpi sgt, %arg1, %c0_i32_15 : i32
    %32 = arith.extui %31 : i1 to i32
    %c0_i32_16 = arith.constant 0 : i32
    %33 = arith.cmpi ne, %32, %c0_i32_16 : i32
    scf.if %33 {
      %c0_19 = arith.constant 0 : index
      %c0_20 = arith.constant 0 : index
      %37 = vector.load %arg7[%c0_19, %c0_20] : memref<16x128xf32, #tpu.memory_space<vmem>>, vector<16x128xf32>
      %38 = arith.addf %37, %27 : vector<16x128xf32>
      %c0_21 = arith.constant 0 : index
      %c0_22 = arith.constant 0 : index
      %39 = vector.load %arg7[%c0_21, %c0_22] : memref<16x128xf32, #tpu.memory_space<vmem>>, vector<16x128xf32>
      tpu.vector_store %arg7[%c0_21, %c0_22], %38 {strides = array<i32>} : memref<16x128xf32, #tpu.memory_space<vmem>>, vector<16x128xf32>,
    } else {
    }
    %c2_i32_17 = arith.constant 2 : i32
    %34 = arith.cmpi eq, %arg1, %c2_i32_17 : i32
    %35 = arith.extui %34 : i1 to i32
    %c0_i32_18 = arith.constant 0 : i32
    %36 = arith.cmpi ne, %35, %c0_i32_18 : i32
    scf.if %36 {
      %c0_19 = arith.constant 0 : index
      %c0_20 = arith.constant 0 : index
      %37 = vector.load %arg7[%c0_19, %c0_20] : memref<16x128xf32, #tpu.memory_space<vmem>>, vector<16x128xf32>
      %38 = vector.shape_cast %37 : vector<16x128xf32> to vector<2x8x128xf32>
      %39 = arith.truncf %38 : vector<2x8x128xf32> to vector<2x8x128xbf16>
      %c0_21 = arith.constant 0 : index
      %c0_22 = arith.constant 0 : index
      %c0_23 = arith.constant 0 : index
      %c0_24 = arith.constant 0 : index
      %40 = vector.load %arg4[%c0_21, %c0_22, %c0_23, %c0_24] : memref<2x1x8x128xbf16, #tpu.memory_space<vmem>>, vector<2x1x8x128xbf16>
      %41 = vector.shape_cast %40 : vector<2x1x8x128xbf16> to vector<2x8x128xbf16>
      %42 = vector.shape_cast %39 : vector<2x8x128xbf16> to vector<2x1x8x128xbf16>
      tpu.vector_store %arg4[%c0_21, %c0_22, %c0_23, %c0_24], %42 {strides = array<i32>} : memref<2x1x8x128xbf16, #tpu.memory_space<vmem>>, vector<2x1x8x128xbf16>,
      %cst_25 = arith.constant dense<0.000000e+00> : vector<128xf32>
      %43 = vector.multi_reduction <add>, %37, %cst_25 [0] : vector<16x128xf32> to vector<128xf32>
      %44 = vector.shape_cast %43 : vector<128xf32> to vector<1x128xf32>
      %45 = arith.mulf %37, %37 : vector<16x128xf32>
      %cst_26 = arith.constant dense<0.000000e+00> : vector<128xf32>
      %46 = vector.multi_reduction <add>, %45, %cst_26 [0] : vector<16x128xf32> to vector<128xf32>
      %47 = vector.shape_cast %46 : vector<128xf32> to vector<1x128xf32>
      %48 = vector.shape_cast %44 : vector<1x128xf32> to vector<1x128xf32>
      %49 = vector.broadcast %48 : vector<1x128xf32> to vector<8x128xf32>
      %c0_27 = arith.constant 0 : index
      %c0_28 = arith.constant 0 : index
      %c0_29 = arith.constant 0 : index
      %50 = vector.load %arg5[%c0_27, %c0_28, %c0_29] : memref<1x8x128xf32, #tpu.memory_space<vmem>>, vector<1x8x128xf32>
      %51 = vector.shape_cast %50 : vector<1x8x128xf32> to vector<8x128xf32>
      %52 = vector.shape_cast %49 : vector<8x128xf32> to vector<1x8x128xf32>
      tpu.vector_store %arg5[%c0_27, %c0_28, %c0_29], %52 {strides = array<i32>} : memref<1x8x128xf32, #tpu.memory_space<vmem>>, vector<1x8x128xf32>,
      %53 = vector.shape_cast %47 : vector<1x128xf32> to vector<1x128xf32>
      %54 = vector.broadcast %53 : vector<1x128xf32> to vector<8x128xf32>
      %c0_30 = arith.constant 0 : index
      %c0_31 = arith.constant 0 : index
      %c0_32 = arith.constant 0 : index
      %55 = vector.load %arg6[%c0_30, %c0_31, %c0_32] : memref<1x8x128xf32, #tpu.memory_space<vmem>>, vector<1x8x128xf32>
      %56 = vector.shape_cast %55 : vector<1x8x128xf32> to vector<8x128xf32>
      %57 = vector.shape_cast %54 : vector<8x128xf32> to vector<1x8x128xf32>
      tpu.vector_store %arg6[%c0_30, %c0_31, %c0_32], %57 {strides = array<i32>} : memref<1x8x128xf32, #tpu.memory_space<vmem>>, vector<1x8x128xf32>,
    } else {
    }
    return
  }
  func.func @transform_0(%arg0: i32, %arg1: i32) -> (i32, i32, i32, i32) {
    %c1_i32 = arith.constant 1 : i32
    %0 = arith.muli %c1_i32, %arg0 : i32
    %1 = arith.addi %0, %arg1 : i32
    %c0_i32 = arith.constant 0 : i32
    %c0_i32_0 = arith.constant 0 : i32
    %c0_i32_1 = arith.constant 0 : i32
    %c0_i32_2 = arith.constant 0 : i32
    return %c0_i32, %1, %c0_i32_0, %c0_i32_1 : i32, i32, i32, i32
  }
  func.func @transform_1(%arg0: i32, %arg1: i32) -> (i32, i32, i32) {
    %c0_i32 = arith.constant 0 : i32
    %c0_i32_0 = arith.constant 0 : i32
    %c0_i32_1 = arith.constant 0 : i32
    %c0_i32_2 = arith.constant 0 : i32
    return %c0_i32, %c0_i32_0, %c0_i32_1 : i32, i32, i32
  }
  func.func @transform_2(%arg0: i32, %arg1: i32) -> (i32, i32, i32, i32) {
    %c0_i32 = arith.constant 0 : i32
    %c0_i32_0 = arith.constant 0 : i32
    %c0_i32_1 = arith.constant 0 : i32
    %c0_i32_2 = arith.constant 0 : i32
    return %c0_i32, %arg0, %c0_i32_0, %c0_i32_1 : i32, i32, i32, i32
  }
  func.func @transform_3(%arg0: i32, %arg1: i32) -> (i32, i32, i32) {
    %c0_i32 = arith.constant 0 : i32
    %c0_i32_0 = arith.constant 0 : i32
    %c0_i32_1 = arith.constant 0 : i32
    return %arg0, %c0_i32, %c0_i32_0 : i32, i32, i32
  }
  func.func @transform_4(%arg0: i32, %arg1: i32) -> (i32, i32, i32) {
    %c0_i32 = arith.constant 0 : i32
    %c0_i32_0 = arith.constant 0 : i32
    %c0_i32_1 = arith.constant 0 : i32
    return %arg0, %c0_i32, %c0_i32_0 : i32, i32, i32
  }
}

module attributes {stable_mosaic.version = 11 : i64} {
  func.func @_bn_act_kernel(%arg0: i32, %arg1: memref<128x128xbf16, #tpu.memory_space<vmem>>, %arg2: memref<1x128xf32, #tpu.memory_space<vmem>>, %arg3: memref<1x128xf32, #tpu.memory_space<vmem>>, %arg4: memref<128x128xbf16, #tpu.memory_space<vmem>>) attributes {dimension_semantics = [#tpu.dimension_semantics<parallel>], iteration_bounds = array<i64: 1>, scalar_prefetch = 0 : i64, scratch_operands = 0 : i64, tpu.core_type = #tpu.core_type<tc>, window_params = [{transform_indices = @transform_0, window_bounds = array<i64: 128, 128>}, {pipeline_mode = #tpu.pipeline_mode<synchronous>, transform_indices = @transform_1, window_bounds = array<i64: 1, 128>}, {pipeline_mode = #tpu.pipeline_mode<synchronous>, transform_indices = @transform_2, window_bounds = array<i64: 1, 128>}, {transform_indices = @transform_3, window_bounds = array<i64: 128, 128>}]} {
    %c0 = arith.constant 0 : index
    %c0_0 = arith.constant 0 : index
    %0 = vector.load %arg1[%c0, %c0_0] : memref<128x128xbf16, #tpu.memory_space<vmem>>, vector<128x128xbf16>
    %1 = arith.extf %0 : vector<128x128xbf16> to vector<128x128xf32>
    %c0_1 = arith.constant 0 : index
    %c0_2 = arith.constant 0 : index
    %2 = vector.load %arg2[%c0_1, %c0_2] : memref<1x128xf32, #tpu.memory_space<vmem>>, vector<1x128xf32>
    %3 = vector.broadcast %2 : vector<1x128xf32> to vector<128x128xf32>
    %4 = arith.mulf %1, %3 : vector<128x128xf32>
    %c0_3 = arith.constant 0 : index
    %c0_4 = arith.constant 0 : index
    %5 = vector.load %arg3[%c0_3, %c0_4] : memref<1x128xf32, #tpu.memory_space<vmem>>, vector<1x128xf32>
    %6 = vector.broadcast %5 : vector<1x128xf32> to vector<128x128xf32>
    %7 = arith.addf %4, %6 : vector<128x128xf32>
    %cst = arith.constant 0.000000e+00 : f32
    %8 = vector.broadcast %cst : f32 to vector<128x128xf32>
    %9 = arith.maximumf %7, %8 : vector<128x128xf32>
    %10 = arith.truncf %9 : vector<128x128xf32> to vector<128x128xbf16>
    %c0_5 = arith.constant 0 : index
    %c0_6 = arith.constant 0 : index
    %11 = vector.load %arg4[%c0_5, %c0_6] : memref<128x128xbf16, #tpu.memory_space<vmem>>, vector<128x128xbf16>
    tpu.vector_store %arg4[%c0_5, %c0_6], %10 {strides = array<i32>} : memref<128x128xbf16, #tpu.memory_space<vmem>>, vector<128x128xbf16>,
    return
  }
  func.func @transform_0(%arg0: i32) -> (i32, i32) {
    %c0_i32 = arith.constant 0 : i32
    %c0_i32_0 = arith.constant 0 : i32
    return %arg0, %c0_i32 : i32, i32
  }
  func.func @transform_1(%arg0: i32) -> (i32, i32) {
    %c0_i32 = arith.constant 0 : i32
    %c0_i32_0 = arith.constant 0 : i32
    %c0_i32_1 = arith.constant 0 : i32
    return %c0_i32, %c0_i32_0 : i32, i32
  }
  func.func @transform_2(%arg0: i32) -> (i32, i32) {
    %c0_i32 = arith.constant 0 : i32
    %c0_i32_0 = arith.constant 0 : i32
    %c0_i32_1 = arith.constant 0 : i32
    return %c0_i32, %c0_i32_0 : i32, i32
  }
  func.func @transform_3(%arg0: i32) -> (i32, i32) {
    %c0_i32 = arith.constant 0 : i32
    %c0_i32_0 = arith.constant 0 : i32
    return %arg0, %c0_i32 : i32, i32
  }
}

module attributes {stable_mosaic.version = 11 : i64} {
  func.func @_bn_act_kernel(%arg0: i32, %arg1: memref<128x128xbf16, #tpu.memory_space<vmem>>, %arg2: memref<1x128xf32, #tpu.memory_space<vmem>>, %arg3: memref<1x128xf32, #tpu.memory_space<vmem>>, %arg4: memref<128x128xbf16, #tpu.memory_space<vmem>>, %arg5: memref<128x128xbf16, #tpu.memory_space<vmem>>) attributes {dimension_semantics = [#tpu.dimension_semantics<parallel>], iteration_bounds = array<i64: 1>, scalar_prefetch = 0 : i64, scratch_operands = 0 : i64, tpu.core_type = #tpu.core_type<tc>, window_params = [{transform_indices = @transform_0, window_bounds = array<i64: 128, 128>}, {pipeline_mode = #tpu.pipeline_mode<synchronous>, transform_indices = @transform_1, window_bounds = array<i64: 1, 128>}, {pipeline_mode = #tpu.pipeline_mode<synchronous>, transform_indices = @transform_2, window_bounds = array<i64: 1, 128>}, {transform_indices = @transform_3, window_bounds = array<i64: 128, 128>}, {transform_indices = @transform_4, window_bounds = array<i64: 128, 128>}]} {
    %c0 = arith.constant 0 : index
    %c0_0 = arith.constant 0 : index
    %0 = vector.load %arg1[%c0, %c0_0] : memref<128x128xbf16, #tpu.memory_space<vmem>>, vector<128x128xbf16>
    %1 = arith.extf %0 : vector<128x128xbf16> to vector<128x128xf32>
    %c0_1 = arith.constant 0 : index
    %c0_2 = arith.constant 0 : index
    %2 = vector.load %arg2[%c0_1, %c0_2] : memref<1x128xf32, #tpu.memory_space<vmem>>, vector<1x128xf32>
    %3 = vector.broadcast %2 : vector<1x128xf32> to vector<128x128xf32>
    %4 = arith.mulf %1, %3 : vector<128x128xf32>
    %c0_3 = arith.constant 0 : index
    %c0_4 = arith.constant 0 : index
    %5 = vector.load %arg3[%c0_3, %c0_4] : memref<1x128xf32, #tpu.memory_space<vmem>>, vector<1x128xf32>
    %6 = vector.broadcast %5 : vector<1x128xf32> to vector<128x128xf32>
    %7 = arith.addf %4, %6 : vector<128x128xf32>
    %c0_5 = arith.constant 0 : index
    %c0_6 = arith.constant 0 : index
    %8 = vector.load %arg4[%c0_5, %c0_6] : memref<128x128xbf16, #tpu.memory_space<vmem>>, vector<128x128xbf16>
    %9 = arith.extf %8 : vector<128x128xbf16> to vector<128x128xf32>
    %10 = arith.addf %7, %9 : vector<128x128xf32>
    %cst = arith.constant 0.000000e+00 : f32
    %11 = vector.broadcast %cst : f32 to vector<128x128xf32>
    %12 = arith.maximumf %10, %11 : vector<128x128xf32>
    %13 = arith.truncf %12 : vector<128x128xf32> to vector<128x128xbf16>
    %c0_7 = arith.constant 0 : index
    %c0_8 = arith.constant 0 : index
    %14 = vector.load %arg5[%c0_7, %c0_8] : memref<128x128xbf16, #tpu.memory_space<vmem>>, vector<128x128xbf16>
    tpu.vector_store %arg5[%c0_7, %c0_8], %13 {strides = array<i32>} : memref<128x128xbf16, #tpu.memory_space<vmem>>, vector<128x128xbf16>,
    return
  }
  func.func @transform_0(%arg0: i32) -> (i32, i32) {
    %c0_i32 = arith.constant 0 : i32
    %c0_i32_0 = arith.constant 0 : i32
    return %arg0, %c0_i32 : i32, i32
  }
  func.func @transform_1(%arg0: i32) -> (i32, i32) {
    %c0_i32 = arith.constant 0 : i32
    %c0_i32_0 = arith.constant 0 : i32
    %c0_i32_1 = arith.constant 0 : i32
    return %c0_i32, %c0_i32_0 : i32, i32
  }
  func.func @transform_2(%arg0: i32) -> (i32, i32) {
    %c0_i32 = arith.constant 0 : i32
    %c0_i32_0 = arith.constant 0 : i32
    %c0_i32_1 = arith.constant 0 : i32
    return %c0_i32, %c0_i32_0 : i32, i32
  }
  func.func @transform_3(%arg0: i32) -> (i32, i32) {
    %c0_i32 = arith.constant 0 : i32
    %c0_i32_0 = arith.constant 0 : i32
    return %arg0, %c0_i32 : i32, i32
  }
  func.func @transform_4(%arg0: i32) -> (i32, i32) {
    %c0_i32 = arith.constant 0 : i32
    %c0_i32_0 = arith.constant 0 : i32
    return %arg0, %c0_i32 : i32, i32
  }
}

module attributes {stable_mosaic.version = 11 : i64} {
  func.func @_conv_pass1_kernel(%arg0: i32, %arg1: i32, %arg2: memref<2x1x11x128xbf16, #tpu.memory_space<vmem>>, %arg3: memref<9x128x256xbf16, #tpu.memory_space<vmem>>, %arg4: memref<2x1x4x256xbf16, #tpu.memory_space<vmem>>, %arg5: memref<1x8x256xf32, #tpu.memory_space<vmem>>, %arg6: memref<1x8x256xf32, #tpu.memory_space<vmem>>, %arg7: memref<8x256xf32, #tpu.memory_space<vmem>>) attributes {dimension_semantics = [#tpu.dimension_semantics<parallel>, #tpu.dimension_semantics<arbitrary>], iteration_bounds = array<i64: 4, 3>, scalar_prefetch = 0 : i64, scratch_operands = 1 : i64, tpu.core_type = #tpu.core_type<tc>, window_params = [{transform_indices = @transform_0, window_bounds = array<i64: 2, 1, 11, 128>}, {pipeline_mode = #tpu.pipeline_mode<synchronous>, transform_indices = @transform_1, window_bounds = array<i64: 9, 128, 256>}, {transform_indices = @transform_2, window_bounds = array<i64: 2, 1, 4, 256>}, {transform_indices = @transform_3, window_bounds = array<i64: 1, 8, 256>}, {transform_indices = @transform_4, window_bounds = array<i64: 1, 8, 256>}]} {
    %c0 = arith.constant 0 : index
    %c0_0 = arith.constant 0 : index
    %c0_1 = arith.constant 0 : index
    %c0_2 = arith.constant 0 : index
    %0 = vector.load %arg2[%c0, %c0_0, %c0_1, %c0_2] : memref<2x1x11x128xbf16, #tpu.memory_space<vmem>>, vector<2x1x11x128xbf16>
    %1 = vector.shape_cast %0 : vector<2x1x11x128xbf16> to vector<2x11x128xbf16>
    %2 = vector.extract_strided_slice %1 {offsets = [0, 0, 0], sizes = [2, 8, 128], strides = [1, 1, 1]} : vector<2x11x128xbf16> to vector<2x8x128xbf16>
    %3 = vector.shape_cast %2 : vector<2x8x128xbf16> to vector<2x4x2x128xbf16>
    %4 = vector.extract_strided_slice %3 {offsets = [0, 0, 0, 0], sizes = [2, 4, 1, 128], strides = [1, 1, 1, 1]} : vector<2x4x2x128xbf16> to vector<2x4x1x128xbf16>
    %5 = vector.shape_cast %4 : vector<2x4x1x128xbf16> to vector<2x4x128xbf16>
    %6 = vector.shape_cast %5 : vector<2x4x128xbf16> to vector<8x128xbf16>
    %c3_i32 = arith.constant 3 : i32
    %7 = arith.muli %arg1, %c3_i32 : i32
    %c0_i32 = arith.constant 0 : i32
    %8 = arith.addi %7, %c0_i32 : i32
    %9 = arith.index_cast %8 : i32 to index
    %c0_3 = arith.constant 0 : index
    %c0_4 = arith.constant 0 : index
    %10 = vector.load %arg3[%9, %c0_3, %c0_4] : memref<9x128x256xbf16, #tpu.memory_space<vmem>>, vector<1x128x256xbf16>
    %11 = vector.shape_cast %10 : vector<1x128x256xbf16> to vector<128x256xbf16>
    %cst = arith.constant dense<0.000000e+00> : vector<8x256xf32>
    %12 = tpu.matmul %6, %11, %cst {dimension_numbers = #tpu.dot_dimension_numbers<[1], [0], [0], [1], [0, 0, 1, 1], [], []>} : vector<8x128xbf16>, vector<128x256xbf16>, vector<8x256xf32> -> vector<8x256xf32>
    %13 = vector.extract_strided_slice %1 {offsets = [0, 1, 0], sizes = [2, 8, 128], strides = [1, 1, 1]} : vector<2x11x128xbf16> to vector<2x8x128xbf16>
    %14 = vector.shape_cast %13 : vector<2x8x128xbf16> to vector<2x4x2x128xbf16>
    %15 = vector.extract_strided_slice %14 {offsets = [0, 0, 0, 0], sizes = [2, 4, 1, 128], strides = [1, 1, 1, 1]} : vector<2x4x2x128xbf16> to vector<2x4x1x128xbf16>
    %16 = vector.shape_cast %15 : vector<2x4x1x128xbf16> to vector<2x4x128xbf16>
    %17 = vector.shape_cast %16 : vector<2x4x128xbf16> to vector<8x128xbf16>
    %c3_i32_5 = arith.constant 3 : i32
    %18 = arith.muli %arg1, %c3_i32_5 : i32
    %c1_i32 = arith.constant 1 : i32
    %19 = arith.addi %18, %c1_i32 : i32
    %20 = arith.index_cast %19 : i32 to index
    %c0_6 = arith.constant 0 : index
    %c0_7 = arith.constant 0 : index
    %21 = vector.load %arg3[%20, %c0_6, %c0_7] : memref<9x128x256xbf16, #tpu.memory_space<vmem>>, vector<1x128x256xbf16>
    %22 = vector.shape_cast %21 : vector<1x128x256xbf16> to vector<128x256xbf16>
    %cst_8 = arith.constant dense<0.000000e+00> : vector<8x256xf32>
    %23 = tpu.matmul %17, %22, %cst_8 {dimension_numbers = #tpu.dot_dimension_numbers<[1], [0], [0], [1], [0, 0, 1, 1], [], []>} : vector<8x128xbf16>, vector<128x256xbf16>, vector<8x256xf32> -> vector<8x256xf32>
    %24 = arith.addf %12, %23 : vector<8x256xf32>
    %25 = vector.extract_strided_slice %1 {offsets = [0, 2, 0], sizes = [2, 8, 128], strides = [1, 1, 1]} : vector<2x11x128xbf16> to vector<2x8x128xbf16>
    %26 = vector.shape_cast %25 : vector<2x8x128xbf16> to vector<2x4x2x128xbf16>
    %27 = vector.extract_strided_slice %26 {offsets = [0, 0, 0, 0], sizes = [2, 4, 1, 128], strides = [1, 1, 1, 1]} : vector<2x4x2x128xbf16> to vector<2x4x1x128xbf16>
    %28 = vector.shape_cast %27 : vector<2x4x1x128xbf16> to vector<2x4x128xbf16>
    %29 = vector.shape_cast %28 : vector<2x4x128xbf16> to vector<8x128xbf16>
    %c3_i32_9 = arith.constant 3 : i32
    %30 = arith.muli %arg1, %c3_i32_9 : i32
    %c2_i32 = arith.constant 2 : i32
    %31 = arith.addi %30, %c2_i32 : i32
    %32 = arith.index_cast %31 : i32 to index
    %c0_10 = arith.constant 0 : index
    %c0_11 = arith.constant 0 : index
    %33 = vector.load %arg3[%32, %c0_10, %c0_11] : memref<9x128x256xbf16, #tpu.memory_space<vmem>>, vector<1x128x256xbf16>
    %34 = vector.shape_cast %33 : vector<1x128x256xbf16> to vector<128x256xbf16>
    %cst_12 = arith.constant dense<0.000000e+00> : vector<8x256xf32>
    %35 = tpu.matmul %29, %34, %cst_12 {dimension_numbers = #tpu.dot_dimension_numbers<[1], [0], [0], [1], [0, 0, 1, 1], [], []>} : vector<8x128xbf16>, vector<128x256xbf16>, vector<8x256xf32> -> vector<8x256xf32>
    %36 = arith.addf %24, %35 : vector<8x256xf32>
    %c0_i32_13 = arith.constant 0 : i32
    %37 = arith.cmpi eq, %arg1, %c0_i32_13 : i32
    %38 = arith.extui %37 : i1 to i32
    %c0_i32_14 = arith.constant 0 : i32
    %39 = arith.cmpi ne, %38, %c0_i32_14 : i32
    scf.if %39 {
      %c0_19 = arith.constant 0 : index
      %c0_20 = arith.constant 0 : index
      %46 = vector.load %arg7[%c0_19, %c0_20] : memref<8x256xf32, #tpu.memory_space<vmem>>, vector<8x256xf32>
      tpu.vector_store %arg7[%c0_19, %c0_20], %36 {strides = array<i32>} : memref<8x256xf32, #tpu.memory_space<vmem>>, vector<8x256xf32>,
    } else {
    }
    %c0_i32_15 = arith.constant 0 : i32
    %40 = arith.cmpi sgt, %arg1, %c0_i32_15 : i32
    %41 = arith.extui %40 : i1 to i32
    %c0_i32_16 = arith.constant 0 : i32
    %42 = arith.cmpi ne, %41, %c0_i32_16 : i32
    scf.if %42 {
      %c0_19 = arith.constant 0 : index
      %c0_20 = arith.constant 0 : index
      %46 = vector.load %arg7[%c0_19, %c0_20] : memref<8x256xf32, #tpu.memory_space<vmem>>, vector<8x256xf32>
      %47 = arith.addf %46, %36 : vector<8x256xf32>
      %c0_21 = arith.constant 0 : index
      %c0_22 = arith.constant 0 : index
      %48 = vector.load %arg7[%c0_21, %c0_22] : memref<8x256xf32, #tpu.memory_space<vmem>>, vector<8x256xf32>
      tpu.vector_store %arg7[%c0_21, %c0_22], %47 {strides = array<i32>} : memref<8x256xf32, #tpu.memory_space<vmem>>, vector<8x256xf32>,
    } else {
    }
    %c2_i32_17 = arith.constant 2 : i32
    %43 = arith.cmpi eq, %arg1, %c2_i32_17 : i32
    %44 = arith.extui %43 : i1 to i32
    %c0_i32_18 = arith.constant 0 : i32
    %45 = arith.cmpi ne, %44, %c0_i32_18 : i32
    scf.if %45 {
      %c0_19 = arith.constant 0 : index
      %c0_20 = arith.constant 0 : index
      %46 = vector.load %arg7[%c0_19, %c0_20] : memref<8x256xf32, #tpu.memory_space<vmem>>, vector<8x256xf32>
      %47 = vector.shape_cast %46 : vector<8x256xf32> to vector<2x4x256xf32>
      %48 = arith.truncf %47 : vector<2x4x256xf32> to vector<2x4x256xbf16>
      %c0_21 = arith.constant 0 : index
      %c0_22 = arith.constant 0 : index
      %c0_23 = arith.constant 0 : index
      %c0_24 = arith.constant 0 : index
      %49 = vector.load %arg4[%c0_21, %c0_22, %c0_23, %c0_24] : memref<2x1x4x256xbf16, #tpu.memory_space<vmem>>, vector<2x1x4x256xbf16>
      %50 = vector.shape_cast %49 : vector<2x1x4x256xbf16> to vector<2x4x256xbf16>
      %51 = vector.shape_cast %48 : vector<2x4x256xbf16> to vector<2x1x4x256xbf16>
      tpu.vector_store %arg4[%c0_21, %c0_22, %c0_23, %c0_24], %51 {strides = array<i32>} : memref<2x1x4x256xbf16, #tpu.memory_space<vmem>>, vector<2x1x4x256xbf16>,
      %cst_25 = arith.constant dense<0.000000e+00> : vector<256xf32>
      %52 = vector.multi_reduction <add>, %46, %cst_25 [0] : vector<8x256xf32> to vector<256xf32>
      %53 = vector.shape_cast %52 : vector<256xf32> to vector<1x256xf32>
      %54 = arith.mulf %46, %46 : vector<8x256xf32>
      %cst_26 = arith.constant dense<0.000000e+00> : vector<256xf32>
      %55 = vector.multi_reduction <add>, %54, %cst_26 [0] : vector<8x256xf32> to vector<256xf32>
      %56 = vector.shape_cast %55 : vector<256xf32> to vector<1x256xf32>
      %57 = vector.shape_cast %53 : vector<1x256xf32> to vector<1x256xf32>
      %58 = vector.broadcast %57 : vector<1x256xf32> to vector<8x256xf32>
      %c0_27 = arith.constant 0 : index
      %c0_28 = arith.constant 0 : index
      %c0_29 = arith.constant 0 : index
      %59 = vector.load %arg5[%c0_27, %c0_28, %c0_29] : memref<1x8x256xf32, #tpu.memory_space<vmem>>, vector<1x8x256xf32>
      %60 = vector.shape_cast %59 : vector<1x8x256xf32> to vector<8x256xf32>
      %61 = vector.shape_cast %58 : vector<8x256xf32> to vector<1x8x256xf32>
      tpu.vector_store %arg5[%c0_27, %c0_28, %c0_29], %61 {strides = array<i32>} : memref<1x8x256xf32, #tpu.memory_space<vmem>>, vector<1x8x256xf32>,
      %62 = vector.shape_cast %56 : vector<1x256xf32> to vector<1x256xf32>
      %63 = vector.broadcast %62 : vector<1x256xf32> to vector<8x256xf32>
      %c0_30 = arith.constant 0 : index
      %c0_31 = arith.constant 0 : index
      %c0_32 = arith.constant 0 : index
      %64 = vector.load %arg6[%c0_30, %c0_31, %c0_32] : memref<1x8x256xf32, #tpu.memory_space<vmem>>, vector<1x8x256xf32>
      %65 = vector.shape_cast %64 : vector<1x8x256xf32> to vector<8x256xf32>
      %66 = vector.shape_cast %63 : vector<8x256xf32> to vector<1x8x256xf32>
      tpu.vector_store %arg6[%c0_30, %c0_31, %c0_32], %66 {strides = array<i32>} : memref<1x8x256xf32, #tpu.memory_space<vmem>>, vector<1x8x256xf32>,
    } else {
    }
    return
  }
  func.func @transform_0(%arg0: i32, %arg1: i32) -> (i32, i32, i32, i32) {
    %c2_i32 = arith.constant 2 : i32
    %0 = arith.muli %c2_i32, %arg0 : i32
    %1 = arith.addi %0, %arg1 : i32
    %c0_i32 = arith.constant 0 : i32
    %c0_i32_0 = arith.constant 0 : i32
    %c0_i32_1 = arith.constant 0 : i32
    %c0_i32_2 = arith.constant 0 : i32
    return %c0_i32, %1, %c0_i32_0, %c0_i32_1 : i32, i32, i32, i32
  }
  func.func @transform_1(%arg0: i32, %arg1: i32) -> (i32, i32, i32) {
    %c0_i32 = arith.constant 0 : i32
    %c0_i32_0 = arith.constant 0 : i32
    %c0_i32_1 = arith.constant 0 : i32
    %c0_i32_2 = arith.constant 0 : i32
    return %c0_i32, %c0_i32_0, %c0_i32_1 : i32, i32, i32
  }
  func.func @transform_2(%arg0: i32, %arg1: i32) -> (i32, i32, i32, i32) {
    %c0_i32 = arith.constant 0 : i32
    %c0_i32_0 = arith.constant 0 : i32
    %c0_i32_1 = arith.constant 0 : i32
    %c0_i32_2 = arith.constant 0 : i32
    return %c0_i32, %arg0, %c0_i32_0, %c0_i32_1 : i32, i32, i32, i32
  }
  func.func @transform_3(%arg0: i32, %arg1: i32) -> (i32, i32, i32) {
    %c0_i32 = arith.constant 0 : i32
    %c0_i32_0 = arith.constant 0 : i32
    %c0_i32_1 = arith.constant 0 : i32
    return %arg0, %c0_i32, %c0_i32_0 : i32, i32, i32
  }
  func.func @transform_4(%arg0: i32, %arg1: i32) -> (i32, i32, i32) {
    %c0_i32 = arith.constant 0 : i32
    %c0_i32_0 = arith.constant 0 : i32
    %c0_i32_1 = arith.constant 0 : i32
    return %arg0, %c0_i32, %c0_i32_0 : i32, i32, i32
  }
}

module attributes {stable_mosaic.version = 11 : i64} {
  func.func @_bn_act_kernel(%arg0: i32, %arg1: memref<32x128xbf16, #tpu.memory_space<vmem>>, %arg2: memref<1x128xf32, #tpu.memory_space<vmem>>, %arg3: memref<1x128xf32, #tpu.memory_space<vmem>>, %arg4: memref<32x128xbf16, #tpu.memory_space<vmem>>) attributes {dimension_semantics = [#tpu.dimension_semantics<parallel>], iteration_bounds = array<i64: 1>, scalar_prefetch = 0 : i64, scratch_operands = 0 : i64, tpu.core_type = #tpu.core_type<tc>, window_params = [{transform_indices = @transform_0, window_bounds = array<i64: 32, 128>}, {pipeline_mode = #tpu.pipeline_mode<synchronous>, transform_indices = @transform_1, window_bounds = array<i64: 1, 128>}, {pipeline_mode = #tpu.pipeline_mode<synchronous>, transform_indices = @transform_2, window_bounds = array<i64: 1, 128>}, {transform_indices = @transform_3, window_bounds = array<i64: 32, 128>}]} {
    %c0 = arith.constant 0 : index
    %c0_0 = arith.constant 0 : index
    %0 = vector.load %arg1[%c0, %c0_0] : memref<32x128xbf16, #tpu.memory_space<vmem>>, vector<32x128xbf16>
    %1 = arith.extf %0 : vector<32x128xbf16> to vector<32x128xf32>
    %c0_1 = arith.constant 0 : index
    %c0_2 = arith.constant 0 : index
    %2 = vector.load %arg2[%c0_1, %c0_2] : memref<1x128xf32, #tpu.memory_space<vmem>>, vector<1x128xf32>
    %3 = vector.broadcast %2 : vector<1x128xf32> to vector<32x128xf32>
    %4 = arith.mulf %1, %3 : vector<32x128xf32>
    %c0_3 = arith.constant 0 : index
    %c0_4 = arith.constant 0 : index
    %5 = vector.load %arg3[%c0_3, %c0_4] : memref<1x128xf32, #tpu.memory_space<vmem>>, vector<1x128xf32>
    %6 = vector.broadcast %5 : vector<1x128xf32> to vector<32x128xf32>
    %7 = arith.addf %4, %6 : vector<32x128xf32>
    %cst = arith.constant 0.000000e+00 : f32
    %8 = vector.broadcast %cst : f32 to vector<32x128xf32>
    %9 = arith.maximumf %7, %8 : vector<32x128xf32>
    %10 = arith.truncf %9 : vector<32x128xf32> to vector<32x128xbf16>
    %c0_5 = arith.constant 0 : index
    %c0_6 = arith.constant 0 : index
    %11 = vector.load %arg4[%c0_5, %c0_6] : memref<32x128xbf16, #tpu.memory_space<vmem>>, vector<32x128xbf16>
    tpu.vector_store %arg4[%c0_5, %c0_6], %10 {strides = array<i32>} : memref<32x128xbf16, #tpu.memory_space<vmem>>, vector<32x128xbf16>,
    return
  }
  func.func @transform_0(%arg0: i32) -> (i32, i32) {
    %c0_i32 = arith.constant 0 : i32
    %c0_i32_0 = arith.constant 0 : i32
    return %arg0, %c0_i32 : i32, i32
  }
  func.func @transform_1(%arg0: i32) -> (i32, i32) {
    %c0_i32 = arith.constant 0 : i32
    %c0_i32_0 = arith.constant 0 : i32
    %c0_i32_1 = arith.constant 0 : i32
    return %c0_i32, %c0_i32_0 : i32, i32
  }
  func.func @transform_2(%arg0: i32) -> (i32, i32) {
    %c0_i32 = arith.constant 0 : i32
    %c0_i32_0 = arith.constant 0 : i32
    %c0_i32_1 = arith.constant 0 : i32
    return %c0_i32, %c0_i32_0 : i32, i32
  }
  func.func @transform_3(%arg0: i32) -> (i32, i32) {
    %c0_i32 = arith.constant 0 : i32
    %c0_i32_0 = arith.constant 0 : i32
    return %arg0, %c0_i32 : i32, i32
  }
}

module attributes {stable_mosaic.version = 11 : i64} {
  func.func @_conv_pass1_kernel(%arg0: i32, %arg1: i32, %arg2: memref<2x1x6x128xbf16, #tpu.memory_space<vmem>>, %arg3: memref<9x128x128xbf16, #tpu.memory_space<vmem>>, %arg4: memref<2x1x4x128xbf16, #tpu.memory_space<vmem>>, %arg5: memref<1x8x128xf32, #tpu.memory_space<vmem>>, %arg6: memref<1x8x128xf32, #tpu.memory_space<vmem>>, %arg7: memref<8x128xf32, #tpu.memory_space<vmem>>) attributes {dimension_semantics = [#tpu.dimension_semantics<parallel>, #tpu.dimension_semantics<arbitrary>], iteration_bounds = array<i64: 4, 3>, scalar_prefetch = 0 : i64, scratch_operands = 1 : i64, tpu.core_type = #tpu.core_type<tc>, window_params = [{transform_indices = @transform_0, window_bounds = array<i64: 2, 1, 6, 128>}, {pipeline_mode = #tpu.pipeline_mode<synchronous>, transform_indices = @transform_1, window_bounds = array<i64: 9, 128, 128>}, {transform_indices = @transform_2, window_bounds = array<i64: 2, 1, 4, 128>}, {transform_indices = @transform_3, window_bounds = array<i64: 1, 8, 128>}, {transform_indices = @transform_4, window_bounds = array<i64: 1, 8, 128>}]} {
    %c0 = arith.constant 0 : index
    %c0_0 = arith.constant 0 : index
    %c0_1 = arith.constant 0 : index
    %c0_2 = arith.constant 0 : index
    %0 = vector.load %arg2[%c0, %c0_0, %c0_1, %c0_2] : memref<2x1x6x128xbf16, #tpu.memory_space<vmem>>, vector<2x1x6x128xbf16>
    %1 = vector.shape_cast %0 : vector<2x1x6x128xbf16> to vector<2x6x128xbf16>
    %2 = vector.extract_strided_slice %1 {offsets = [0, 0, 0], sizes = [2, 4, 128], strides = [1, 1, 1]} : vector<2x6x128xbf16> to vector<2x4x128xbf16>
    %3 = vector.shape_cast %2 : vector<2x4x128xbf16> to vector<8x128xbf16>
    %c3_i32 = arith.constant 3 : i32
    %4 = arith.muli %arg1, %c3_i32 : i32
    %c0_i32 = arith.constant 0 : i32
    %5 = arith.addi %4, %c0_i32 : i32
    %6 = arith.index_cast %5 : i32 to index
    %c0_3 = arith.constant 0 : index
    %c0_4 = arith.constant 0 : index
    %7 = vector.load %arg3[%6, %c0_3, %c0_4] : memref<9x128x128xbf16, #tpu.memory_space<vmem>>, vector<1x128x128xbf16>
    %8 = vector.shape_cast %7 : vector<1x128x128xbf16> to vector<128x128xbf16>
    %cst = arith.constant dense<0.000000e+00> : vector<8x128xf32>
    %9 = tpu.matmul %3, %8, %cst {dimension_numbers = #tpu.dot_dimension_numbers<[1], [0], [0], [1], [0, 0, 1, 1], [], []>} : vector<8x128xbf16>, vector<128x128xbf16>, vector<8x128xf32> -> vector<8x128xf32>
    %10 = vector.extract_strided_slice %1 {offsets = [0, 1, 0], sizes = [2, 4, 128], strides = [1, 1, 1]} : vector<2x6x128xbf16> to vector<2x4x128xbf16>
    %11 = vector.shape_cast %10 : vector<2x4x128xbf16> to vector<8x128xbf16>
    %c3_i32_5 = arith.constant 3 : i32
    %12 = arith.muli %arg1, %c3_i32_5 : i32
    %c1_i32 = arith.constant 1 : i32
    %13 = arith.addi %12, %c1_i32 : i32
    %14 = arith.index_cast %13 : i32 to index
    %c0_6 = arith.constant 0 : index
    %c0_7 = arith.constant 0 : index
    %15 = vector.load %arg3[%14, %c0_6, %c0_7] : memref<9x128x128xbf16, #tpu.memory_space<vmem>>, vector<1x128x128xbf16>
    %16 = vector.shape_cast %15 : vector<1x128x128xbf16> to vector<128x128xbf16>
    %cst_8 = arith.constant dense<0.000000e+00> : vector<8x128xf32>
    %17 = tpu.matmul %11, %16, %cst_8 {dimension_numbers = #tpu.dot_dimension_numbers<[1], [0], [0], [1], [0, 0, 1, 1], [], []>} : vector<8x128xbf16>, vector<128x128xbf16>, vector<8x128xf32> -> vector<8x128xf32>
    %18 = arith.addf %9, %17 : vector<8x128xf32>
    %19 = vector.extract_strided_slice %1 {offsets = [0, 2, 0], sizes = [2, 4, 128], strides = [1, 1, 1]} : vector<2x6x128xbf16> to vector<2x4x128xbf16>
    %20 = vector.shape_cast %19 : vector<2x4x128xbf16> to vector<8x128xbf16>
    %c3_i32_9 = arith.constant 3 : i32
    %21 = arith.muli %arg1, %c3_i32_9 : i32
    %c2_i32 = arith.constant 2 : i32
    %22 = arith.addi %21, %c2_i32 : i32
    %23 = arith.index_cast %22 : i32 to index
    %c0_10 = arith.constant 0 : index
    %c0_11 = arith.constant 0 : index
    %24 = vector.load %arg3[%23, %c0_10, %c0_11] : memref<9x128x128xbf16, #tpu.memory_space<vmem>>, vector<1x128x128xbf16>
    %25 = vector.shape_cast %24 : vector<1x128x128xbf16> to vector<128x128xbf16>
    %cst_12 = arith.constant dense<0.000000e+00> : vector<8x128xf32>
    %26 = tpu.matmul %20, %25, %cst_12 {dimension_numbers = #tpu.dot_dimension_numbers<[1], [0], [0], [1], [0, 0, 1, 1], [], []>} : vector<8x128xbf16>, vector<128x128xbf16>, vector<8x128xf32> -> vector<8x128xf32>
    %27 = arith.addf %18, %26 : vector<8x128xf32>
    %c0_i32_13 = arith.constant 0 : i32
    %28 = arith.cmpi eq, %arg1, %c0_i32_13 : i32
    %29 = arith.extui %28 : i1 to i32
    %c0_i32_14 = arith.constant 0 : i32
    %30 = arith.cmpi ne, %29, %c0_i32_14 : i32
    scf.if %30 {
      %c0_19 = arith.constant 0 : index
      %c0_20 = arith.constant 0 : index
      %37 = vector.load %arg7[%c0_19, %c0_20] : memref<8x128xf32, #tpu.memory_space<vmem>>, vector<8x128xf32>
      tpu.vector_store %arg7[%c0_19, %c0_20], %27 {strides = array<i32>} : memref<8x128xf32, #tpu.memory_space<vmem>>, vector<8x128xf32>,
    } else {
    }
    %c0_i32_15 = arith.constant 0 : i32
    %31 = arith.cmpi sgt, %arg1, %c0_i32_15 : i32
    %32 = arith.extui %31 : i1 to i32
    %c0_i32_16 = arith.constant 0 : i32
    %33 = arith.cmpi ne, %32, %c0_i32_16 : i32
    scf.if %33 {
      %c0_19 = arith.constant 0 : index
      %c0_20 = arith.constant 0 : index
      %37 = vector.load %arg7[%c0_19, %c0_20] : memref<8x128xf32, #tpu.memory_space<vmem>>, vector<8x128xf32>
      %38 = arith.addf %37, %27 : vector<8x128xf32>
      %c0_21 = arith.constant 0 : index
      %c0_22 = arith.constant 0 : index
      %39 = vector.load %arg7[%c0_21, %c0_22] : memref<8x128xf32, #tpu.memory_space<vmem>>, vector<8x128xf32>
      tpu.vector_store %arg7[%c0_21, %c0_22], %38 {strides = array<i32>} : memref<8x128xf32, #tpu.memory_space<vmem>>, vector<8x128xf32>,
    } else {
    }
    %c2_i32_17 = arith.constant 2 : i32
    %34 = arith.cmpi eq, %arg1, %c2_i32_17 : i32
    %35 = arith.extui %34 : i1 to i32
    %c0_i32_18 = arith.constant 0 : i32
    %36 = arith.cmpi ne, %35, %c0_i32_18 : i32
    scf.if %36 {
      %c0_19 = arith.constant 0 : index
      %c0_20 = arith.constant 0 : index
      %37 = vector.load %arg7[%c0_19, %c0_20] : memref<8x128xf32, #tpu.memory_space<vmem>>, vector<8x128xf32>
      %38 = vector.shape_cast %37 : vector<8x128xf32> to vector<2x4x128xf32>
      %39 = arith.truncf %38 : vector<2x4x128xf32> to vector<2x4x128xbf16>
      %c0_21 = arith.constant 0 : index
      %c0_22 = arith.constant 0 : index
      %c0_23 = arith.constant 0 : index
      %c0_24 = arith.constant 0 : index
      %40 = vector.load %arg4[%c0_21, %c0_22, %c0_23, %c0_24] : memref<2x1x4x128xbf16, #tpu.memory_space<vmem>>, vector<2x1x4x128xbf16>
      %41 = vector.shape_cast %40 : vector<2x1x4x128xbf16> to vector<2x4x128xbf16>
      %42 = vector.shape_cast %39 : vector<2x4x128xbf16> to vector<2x1x4x128xbf16>
      tpu.vector_store %arg4[%c0_21, %c0_22, %c0_23, %c0_24], %42 {strides = array<i32>} : memref<2x1x4x128xbf16, #tpu.memory_space<vmem>>, vector<2x1x4x128xbf16>,
      %cst_25 = arith.constant dense<0.000000e+00> : vector<128xf32>
      %43 = vector.multi_reduction <add>, %37, %cst_25 [0] : vector<8x128xf32> to vector<128xf32>
      %44 = vector.shape_cast %43 : vector<128xf32> to vector<1x128xf32>
      %45 = arith.mulf %37, %37 : vector<8x128xf32>
      %cst_26 = arith.constant dense<0.000000e+00> : vector<128xf32>
      %46 = vector.multi_reduction <add>, %45, %cst_26 [0] : vector<8x128xf32> to vector<128xf32>
      %47 = vector.shape_cast %46 : vector<128xf32> to vector<1x128xf32>
      %48 = vector.shape_cast %44 : vector<1x128xf32> to vector<1x128xf32>
      %49 = vector.broadcast %48 : vector<1x128xf32> to vector<8x128xf32>
      %c0_27 = arith.constant 0 : index
      %c0_28 = arith.constant 0 : index
      %c0_29 = arith.constant 0 : index
      %50 = vector.load %arg5[%c0_27, %c0_28, %c0_29] : memref<1x8x128xf32, #tpu.memory_space<vmem>>, vector<1x8x128xf32>
      %51 = vector.shape_cast %50 : vector<1x8x128xf32> to vector<8x128xf32>
      %52 = vector.shape_cast %49 : vector<8x128xf32> to vector<1x8x128xf32>
      tpu.vector_store %arg5[%c0_27, %c0_28, %c0_29], %52 {strides = array<i32>} : memref<1x8x128xf32, #tpu.memory_space<vmem>>, vector<1x8x128xf32>,
      %53 = vector.shape_cast %47 : vector<1x128xf32> to vector<1x128xf32>
      %54 = vector.broadcast %53 : vector<1x128xf32> to vector<8x128xf32>
      %c0_30 = arith.constant 0 : index
      %c0_31 = arith.constant 0 : index
      %c0_32 = arith.constant 0 : index
      %55 = vector.load %arg6[%c0_30, %c0_31, %c0_32] : memref<1x8x128xf32, #tpu.memory_space<vmem>>, vector<1x8x128xf32>
      %56 = vector.shape_cast %55 : vector<1x8x128xf32> to vector<8x128xf32>
      %57 = vector.shape_cast %54 : vector<8x128xf32> to vector<1x8x128xf32>
      tpu.vector_store %arg6[%c0_30, %c0_31, %c0_32], %57 {strides = array<i32>} : memref<1x8x128xf32, #tpu.memory_space<vmem>>, vector<1x8x128xf32>,
    } else {
    }
    return
  }
  func.func @transform_0(%arg0: i32, %arg1: i32) -> (i32, i32, i32, i32) {
    %c1_i32 = arith.constant 1 : i32
    %0 = arith.muli %c1_i32, %arg0 : i32
    %1 = arith.addi %0, %arg1 : i32
    %c0_i32 = arith.constant 0 : i32
    %c0_i32_0 = arith.constant 0 : i32
    %c0_i32_1 = arith.constant 0 : i32
    %c0_i32_2 = arith.constant 0 : i32
    return %c0_i32, %1, %c0_i32_0, %c0_i32_1 : i32, i32, i32, i32
  }
  func.func @transform_1(%arg0: i32, %arg1: i32) -> (i32, i32, i32) {
    %c0_i32 = arith.constant 0 : i32
    %c0_i32_0 = arith.constant 0 : i32
    %c0_i32_1 = arith.constant 0 : i32
    %c0_i32_2 = arith.constant 0 : i32
    return %c0_i32, %c0_i32_0, %c0_i32_1 : i32, i32, i32
  }
  func.func @transform_2(%arg0: i32, %arg1: i32) -> (i32, i32, i32, i32) {
    %c0_i32 = arith.constant 0 : i32
    %c0_i32_0 = arith.constant 0 : i32
    %c0_i32_1 = arith.constant 0 : i32
    %c0_i32_2 = arith.constant 0 : i32
    return %c0_i32, %arg0, %c0_i32_0, %c0_i32_1 : i32, i32, i32, i32
  }
  func.func @transform_3(%arg0: i32, %arg1: i32) -> (i32, i32, i32) {
    %c0_i32 = arith.constant 0 : i32
    %c0_i32_0 = arith.constant 0 : i32
    %c0_i32_1 = arith.constant 0 : i32
    return %arg0, %c0_i32, %c0_i32_0 : i32, i32, i32
  }
  func.func @transform_4(%arg0: i32, %arg1: i32) -> (i32, i32, i32) {
    %c0_i32 = arith.constant 0 : i32
    %c0_i32_0 = arith.constant 0 : i32
    %c0_i32_1 = arith.constant 0 : i32
    return %arg0, %c0_i32, %c0_i32_0 : i32, i32, i32
  }
}

module attributes {stable_mosaic.version = 11 : i64} {
  func.func @_bn_act_kernel(%arg0: i32, %arg1: memref<32x128xbf16, #tpu.memory_space<vmem>>, %arg2: memref<1x128xf32, #tpu.memory_space<vmem>>, %arg3: memref<1x128xf32, #tpu.memory_space<vmem>>, %arg4: memref<32x128xbf16, #tpu.memory_space<vmem>>, %arg5: memref<32x128xbf16, #tpu.memory_space<vmem>>) attributes {dimension_semantics = [#tpu.dimension_semantics<parallel>], iteration_bounds = array<i64: 1>, scalar_prefetch = 0 : i64, scratch_operands = 0 : i64, tpu.core_type = #tpu.core_type<tc>, window_params = [{transform_indices = @transform_0, window_bounds = array<i64: 32, 128>}, {pipeline_mode = #tpu.pipeline_mode<synchronous>, transform_indices = @transform_1, window_bounds = array<i64: 1, 128>}, {pipeline_mode = #tpu.pipeline_mode<synchronous>, transform_indices = @transform_2, window_bounds = array<i64: 1, 128>}, {transform_indices = @transform_3, window_bounds = array<i64: 32, 128>}, {transform_indices = @transform_4, window_bounds = array<i64: 32, 128>}]} {
    %c0 = arith.constant 0 : index
    %c0_0 = arith.constant 0 : index
    %0 = vector.load %arg1[%c0, %c0_0] : memref<32x128xbf16, #tpu.memory_space<vmem>>, vector<32x128xbf16>
    %1 = arith.extf %0 : vector<32x128xbf16> to vector<32x128xf32>
    %c0_1 = arith.constant 0 : index
    %c0_2 = arith.constant 0 : index
    %2 = vector.load %arg2[%c0_1, %c0_2] : memref<1x128xf32, #tpu.memory_space<vmem>>, vector<1x128xf32>
    %3 = vector.broadcast %2 : vector<1x128xf32> to vector<32x128xf32>
    %4 = arith.mulf %1, %3 : vector<32x128xf32>
    %c0_3 = arith.constant 0 : index
    %c0_4 = arith.constant 0 : index
    %5 = vector.load %arg3[%c0_3, %c0_4] : memref<1x128xf32, #tpu.memory_space<vmem>>, vector<1x128xf32>
    %6 = vector.broadcast %5 : vector<1x128xf32> to vector<32x128xf32>
    %7 = arith.addf %4, %6 : vector<32x128xf32>
    %c0_5 = arith.constant 0 : index
    %c0_6 = arith.constant 0 : index
    %8 = vector.load %arg4[%c0_5, %c0_6] : memref<32x128xbf16, #tpu.memory_space<vmem>>, vector<32x128xbf16>
    %9 = arith.extf %8 : vector<32x128xbf16> to vector<32x128xf32>
    %10 = arith.addf %7, %9 : vector<32x128xf32>
    %cst = arith.constant 0.000000e+00 : f32
    %11 = vector.broadcast %cst : f32 to vector<32x128xf32>
    %12 = arith.maximumf %10, %11 : vector<32x128xf32>
    %13 = arith.truncf %12 : vector<32x128xf32> to vector<32x128xbf16>
    %c0_7 = arith.constant 0 : index
    %c0_8 = arith.constant 0 : index
    %14 = vector.load %arg5[%c0_7, %c0_8] : memref<32x128xbf16, #tpu.memory_space<vmem>>, vector<32x128xbf16>
    tpu.vector_store %arg5[%c0_7, %c0_8], %13 {strides = array<i32>} : memref<32x128xbf16, #tpu.memory_space<vmem>>, vector<32x128xbf16>,
    return
  }
  func.func @transform_0(%arg0: i32) -> (i32, i32) {
    %c0_i32 = arith.constant 0 : i32
    %c0_i32_0 = arith.constant 0 : i32
    return %arg0, %c0_i32 : i32, i32
  }
  func.func @transform_1(%arg0: i32) -> (i32, i32) {
    %c0_i32 = arith.constant 0 : i32
    %c0_i32_0 = arith.constant 0 : i32
    %c0_i32_1 = arith.constant 0 : i32
    return %c0_i32, %c0_i32_0 : i32, i32
  }
  func.func @transform_2(%arg0: i32) -> (i32, i32) {
    %c0_i32 = arith.constant 0 : i32
    %c0_i32_0 = arith.constant 0 : i32
    %c0_i32_1 = arith.constant 0 : i32
    return %c0_i32, %c0_i32_0 : i32, i32
  }
  func.func @transform_3(%arg0: i32) -> (i32, i32) {
    %c0_i32 = arith.constant 0 : i32
    %c0_i32_0 = arith.constant 0 : i32
    return %arg0, %c0_i32 : i32, i32
  }
  func.func @transform_4(%arg0: i32) -> (i32, i32) {
    %c0_i32 = arith.constant 0 : i32
    %c0_i32_0 = arith.constant 0 : i32
    return %arg0, %c0_i32 : i32, i32
  }
}

module attributes {stable_mosaic.version = 11 : i64} {
  func.func @_bn_act_kernel(%arg0: i32, %arg1: memref<32x128xbf16, #tpu.memory_space<vmem>>, %arg2: memref<1x128xf32, #tpu.memory_space<vmem>>, %arg3: memref<1x128xf32, #tpu.memory_space<vmem>>, %arg4: memref<32x128xbf16, #tpu.memory_space<vmem>>) attributes {dimension_semantics = [#tpu.dimension_semantics<parallel>], iteration_bounds = array<i64: 1>, scalar_prefetch = 0 : i64, scratch_operands = 0 : i64, tpu.core_type = #tpu.core_type<tc>, window_params = [{transform_indices = @transform_0, window_bounds = array<i64: 32, 128>}, {pipeline_mode = #tpu.pipeline_mode<synchronous>, transform_indices = @transform_1, window_bounds = array<i64: 1, 128>}, {pipeline_mode = #tpu.pipeline_mode<synchronous>, transform_indices = @transform_2, window_bounds = array<i64: 1, 128>}, {transform_indices = @transform_3, window_bounds = array<i64: 32, 128>}]} {
    %c0 = arith.constant 0 : index
    %c0_0 = arith.constant 0 : index
    %0 = vector.load %arg1[%c0, %c0_0] : memref<32x128xbf16, #tpu.memory_space<vmem>>, vector<32x128xbf16>
    %1 = arith.extf %0 : vector<32x128xbf16> to vector<32x128xf32>
    %c0_1 = arith.constant 0 : index
    %c0_2 = arith.constant 0 : index
    %2 = vector.load %arg2[%c0_1, %c0_2] : memref<1x128xf32, #tpu.memory_space<vmem>>, vector<1x128xf32>
    %3 = vector.broadcast %2 : vector<1x128xf32> to vector<32x128xf32>
    %4 = arith.mulf %1, %3 : vector<32x128xf32>
    %c0_3 = arith.constant 0 : index
    %c0_4 = arith.constant 0 : index
    %5 = vector.load %arg3[%c0_3, %c0_4] : memref<1x128xf32, #tpu.memory_space<vmem>>, vector<1x128xf32>
    %6 = vector.broadcast %5 : vector<1x128xf32> to vector<32x128xf32>
    %7 = arith.addf %4, %6 : vector<32x128xf32>
    %8 = arith.truncf %7 : vector<32x128xf32> to vector<32x128xbf16>
    %c0_5 = arith.constant 0 : index
    %c0_6 = arith.constant 0 : index
    %9 = vector.load %arg4[%c0_5, %c0_6] : memref<32x128xbf16, #tpu.memory_space<vmem>>, vector<32x128xbf16>
    tpu.vector_store %arg4[%c0_5, %c0_6], %8 {strides = array<i32>} : memref<32x128xbf16, #tpu.memory_space<vmem>>, vector<32x128xbf16>,
    return
  }
  func.func @transform_0(%arg0: i32) -> (i32, i32) {
    %c1_i32 = arith.constant 1 : i32
    %c0_i32 = arith.constant 0 : i32
    return %arg0, %c1_i32 : i32, i32
  }
  func.func @transform_1(%arg0: i32) -> (i32, i32) {
    %c0_i32 = arith.constant 0 : i32
    %c0_i32_0 = arith.constant 0 : i32
    %c0_i32_1 = arith.constant 0 : i32
    return %c0_i32, %c0_i32_0 : i32, i32
  }
  func.func @transform_2(%arg0: i32) -> (i32, i32) {
    %c0_i32 = arith.constant 0 : i32
    %c0_i32_0 = arith.constant 0 : i32
    %c0_i32_1 = arith.constant 0 : i32
    return %c0_i32, %c0_i32_0 : i32, i32
  }
  func.func @transform_3(%arg0: i32) -> (i32, i32) {
    %c0_i32 = arith.constant 0 : i32
    %c0_i32_0 = arith.constant 0 : i32
    return %arg0, %c0_i32 : i32, i32
  }
}

module attributes {stable_mosaic.version = 11 : i64} {
  func.func @_conv_pass1_kernel(%arg0: i32, %arg1: i32, %arg2: memref<2x1x7x128xbf16, #tpu.memory_space<vmem>>, %arg3: memref<9x128x256xbf16, #tpu.memory_space<vmem>>, %arg4: memref<2x1x2x256xbf16, #tpu.memory_space<vmem>>, %arg5: memref<1x8x256xf32, #tpu.memory_space<vmem>>, %arg6: memref<1x8x256xf32, #tpu.memory_space<vmem>>, %arg7: memref<4x256xf32, #tpu.memory_space<vmem>>) attributes {dimension_semantics = [#tpu.dimension_semantics<parallel>, #tpu.dimension_semantics<arbitrary>], iteration_bounds = array<i64: 2, 3>, scalar_prefetch = 0 : i64, scratch_operands = 1 : i64, tpu.core_type = #tpu.core_type<tc>, window_params = [{transform_indices = @transform_0, window_bounds = array<i64: 2, 1, 7, 128>}, {pipeline_mode = #tpu.pipeline_mode<synchronous>, transform_indices = @transform_1, window_bounds = array<i64: 9, 128, 256>}, {transform_indices = @transform_2, window_bounds = array<i64: 2, 1, 2, 256>}, {transform_indices = @transform_3, window_bounds = array<i64: 1, 8, 256>}, {transform_indices = @transform_4, window_bounds = array<i64: 1, 8, 256>}]} {
    %c0 = arith.constant 0 : index
    %c0_0 = arith.constant 0 : index
    %c0_1 = arith.constant 0 : index
    %c0_2 = arith.constant 0 : index
    %0 = vector.load %arg2[%c0, %c0_0, %c0_1, %c0_2] : memref<2x1x7x128xbf16, #tpu.memory_space<vmem>>, vector<2x1x7x128xbf16>
    %1 = vector.shape_cast %0 : vector<2x1x7x128xbf16> to vector<2x7x128xbf16>
    %2 = vector.extract_strided_slice %1 {offsets = [0, 0, 0], sizes = [2, 4, 128], strides = [1, 1, 1]} : vector<2x7x128xbf16> to vector<2x4x128xbf16>
    %3 = vector.shape_cast %2 : vector<2x4x128xbf16> to vector<2x2x2x128xbf16>
    %4 = vector.extract_strided_slice %3 {offsets = [0, 0, 0, 0], sizes = [2, 2, 1, 128], strides = [1, 1, 1, 1]} : vector<2x2x2x128xbf16> to vector<2x2x1x128xbf16>
    %5 = vector.shape_cast %4 : vector<2x2x1x128xbf16> to vector<2x2x128xbf16>
    %6 = vector.shape_cast %5 : vector<2x2x128xbf16> to vector<4x128xbf16>
    %c3_i32 = arith.constant 3 : i32
    %7 = arith.muli %arg1, %c3_i32 : i32
    %c0_i32 = arith.constant 0 : i32
    %8 = arith.addi %7, %c0_i32 : i32
    %9 = arith.index_cast %8 : i32 to index
    %c0_3 = arith.constant 0 : index
    %c0_4 = arith.constant 0 : index
    %10 = vector.load %arg3[%9, %c0_3, %c0_4] : memref<9x128x256xbf16, #tpu.memory_space<vmem>>, vector<1x128x256xbf16>
    %11 = vector.shape_cast %10 : vector<1x128x256xbf16> to vector<128x256xbf16>
    %cst = arith.constant dense<0.000000e+00> : vector<4x256xf32>
    %12 = tpu.matmul %6, %11, %cst {dimension_numbers = #tpu.dot_dimension_numbers<[1], [0], [0], [1], [0, 0, 1, 1], [], []>} : vector<4x128xbf16>, vector<128x256xbf16>, vector<4x256xf32> -> vector<4x256xf32>
    %13 = vector.extract_strided_slice %1 {offsets = [0, 1, 0], sizes = [2, 4, 128], strides = [1, 1, 1]} : vector<2x7x128xbf16> to vector<2x4x128xbf16>
    %14 = vector.shape_cast %13 : vector<2x4x128xbf16> to vector<2x2x2x128xbf16>
    %15 = vector.extract_strided_slice %14 {offsets = [0, 0, 0, 0], sizes = [2, 2, 1, 128], strides = [1, 1, 1, 1]} : vector<2x2x2x128xbf16> to vector<2x2x1x128xbf16>
    %16 = vector.shape_cast %15 : vector<2x2x1x128xbf16> to vector<2x2x128xbf16>
    %17 = vector.shape_cast %16 : vector<2x2x128xbf16> to vector<4x128xbf16>
    %c3_i32_5 = arith.constant 3 : i32
    %18 = arith.muli %arg1, %c3_i32_5 : i32
    %c1_i32 = arith.constant 1 : i32
    %19 = arith.addi %18, %c1_i32 : i32
    %20 = arith.index_cast %19 : i32 to index
    %c0_6 = arith.constant 0 : index
    %c0_7 = arith.constant 0 : index
    %21 = vector.load %arg3[%20, %c0_6, %c0_7] : memref<9x128x256xbf16, #tpu.memory_space<vmem>>, vector<1x128x256xbf16>
    %22 = vector.shape_cast %21 : vector<1x128x256xbf16> to vector<128x256xbf16>
    %cst_8 = arith.constant dense<0.000000e+00> : vector<4x256xf32>
    %23 = tpu.matmul %17, %22, %cst_8 {dimension_numbers = #tpu.dot_dimension_numbers<[1], [0], [0], [1], [0, 0, 1, 1], [], []>} : vector<4x128xbf16>, vector<128x256xbf16>, vector<4x256xf32> -> vector<4x256xf32>
    %24 = arith.addf %12, %23 : vector<4x256xf32>
    %25 = vector.extract_strided_slice %1 {offsets = [0, 2, 0], sizes = [2, 4, 128], strides = [1, 1, 1]} : vector<2x7x128xbf16> to vector<2x4x128xbf16>
    %26 = vector.shape_cast %25 : vector<2x4x128xbf16> to vector<2x2x2x128xbf16>
    %27 = vector.extract_strided_slice %26 {offsets = [0, 0, 0, 0], sizes = [2, 2, 1, 128], strides = [1, 1, 1, 1]} : vector<2x2x2x128xbf16> to vector<2x2x1x128xbf16>
    %28 = vector.shape_cast %27 : vector<2x2x1x128xbf16> to vector<2x2x128xbf16>
    %29 = vector.shape_cast %28 : vector<2x2x128xbf16> to vector<4x128xbf16>
    %c3_i32_9 = arith.constant 3 : i32
    %30 = arith.muli %arg1, %c3_i32_9 : i32
    %c2_i32 = arith.constant 2 : i32
    %31 = arith.addi %30, %c2_i32 : i32
    %32 = arith.index_cast %31 : i32 to index
    %c0_10 = arith.constant 0 : index
    %c0_11 = arith.constant 0 : index
    %33 = vector.load %arg3[%32, %c0_10, %c0_11] : memref<9x128x256xbf16, #tpu.memory_space<vmem>>, vector<1x128x256xbf16>
    %34 = vector.shape_cast %33 : vector<1x128x256xbf16> to vector<128x256xbf16>
    %cst_12 = arith.constant dense<0.000000e+00> : vector<4x256xf32>
    %35 = tpu.matmul %29, %34, %cst_12 {dimension_numbers = #tpu.dot_dimension_numbers<[1], [0], [0], [1], [0, 0, 1, 1], [], []>} : vector<4x128xbf16>, vector<128x256xbf16>, vector<4x256xf32> -> vector<4x256xf32>
    %36 = arith.addf %24, %35 : vector<4x256xf32>
    %c0_i32_13 = arith.constant 0 : i32
    %37 = arith.cmpi eq, %arg1, %c0_i32_13 : i32
    %38 = arith.extui %37 : i1 to i32
    %c0_i32_14 = arith.constant 0 : i32
    %39 = arith.cmpi ne, %38, %c0_i32_14 : i32
    scf.if %39 {
      %c0_19 = arith.constant 0 : index
      %c0_20 = arith.constant 0 : index
      %46 = vector.load %arg7[%c0_19, %c0_20] : memref<4x256xf32, #tpu.memory_space<vmem>>, vector<4x256xf32>
      tpu.vector_store %arg7[%c0_19, %c0_20], %36 {strides = array<i32>} : memref<4x256xf32, #tpu.memory_space<vmem>>, vector<4x256xf32>,
    } else {
    }
    %c0_i32_15 = arith.constant 0 : i32
    %40 = arith.cmpi sgt, %arg1, %c0_i32_15 : i32
    %41 = arith.extui %40 : i1 to i32
    %c0_i32_16 = arith.constant 0 : i32
    %42 = arith.cmpi ne, %41, %c0_i32_16 : i32
    scf.if %42 {
      %c0_19 = arith.constant 0 : index
      %c0_20 = arith.constant 0 : index
      %46 = vector.load %arg7[%c0_19, %c0_20] : memref<4x256xf32, #tpu.memory_space<vmem>>, vector<4x256xf32>
      %47 = arith.addf %46, %36 : vector<4x256xf32>
      %c0_21 = arith.constant 0 : index
      %c0_22 = arith.constant 0 : index
      %48 = vector.load %arg7[%c0_21, %c0_22] : memref<4x256xf32, #tpu.memory_space<vmem>>, vector<4x256xf32>
      tpu.vector_store %arg7[%c0_21, %c0_22], %47 {strides = array<i32>} : memref<4x256xf32, #tpu.memory_space<vmem>>, vector<4x256xf32>,
    } else {
    }
    %c2_i32_17 = arith.constant 2 : i32
    %43 = arith.cmpi eq, %arg1, %c2_i32_17 : i32
    %44 = arith.extui %43 : i1 to i32
    %c0_i32_18 = arith.constant 0 : i32
    %45 = arith.cmpi ne, %44, %c0_i32_18 : i32
    scf.if %45 {
      %c0_19 = arith.constant 0 : index
      %c0_20 = arith.constant 0 : index
      %46 = vector.load %arg7[%c0_19, %c0_20] : memref<4x256xf32, #tpu.memory_space<vmem>>, vector<4x256xf32>
      %47 = vector.shape_cast %46 : vector<4x256xf32> to vector<2x2x256xf32>
      %48 = arith.truncf %47 : vector<2x2x256xf32> to vector<2x2x256xbf16>
      %c0_21 = arith.constant 0 : index
      %c0_22 = arith.constant 0 : index
      %c0_23 = arith.constant 0 : index
      %c0_24 = arith.constant 0 : index
      %49 = vector.load %arg4[%c0_21, %c0_22, %c0_23, %c0_24] : memref<2x1x2x256xbf16, #tpu.memory_space<vmem>>, vector<2x1x2x256xbf16>
      %50 = vector.shape_cast %49 : vector<2x1x2x256xbf16> to vector<2x2x256xbf16>
      %51 = vector.shape_cast %48 : vector<2x2x256xbf16> to vector<2x1x2x256xbf16>
      tpu.vector_store %arg4[%c0_21, %c0_22, %c0_23, %c0_24], %51 {strides = array<i32>} : memref<2x1x2x256xbf16, #tpu.memory_space<vmem>>, vector<2x1x2x256xbf16>,
      %cst_25 = arith.constant dense<0.000000e+00> : vector<256xf32>
      %52 = vector.multi_reduction <add>, %46, %cst_25 [0] : vector<4x256xf32> to vector<256xf32>
      %53 = vector.shape_cast %52 : vector<256xf32> to vector<1x256xf32>
      %54 = arith.mulf %46, %46 : vector<4x256xf32>
      %cst_26 = arith.constant dense<0.000000e+00> : vector<256xf32>
      %55 = vector.multi_reduction <add>, %54, %cst_26 [0] : vector<4x256xf32> to vector<256xf32>
      %56 = vector.shape_cast %55 : vector<256xf32> to vector<1x256xf32>
      %57 = vector.shape_cast %53 : vector<1x256xf32> to vector<1x256xf32>
      %58 = vector.broadcast %57 : vector<1x256xf32> to vector<8x256xf32>
      %c0_27 = arith.constant 0 : index
      %c0_28 = arith.constant 0 : index
      %c0_29 = arith.constant 0 : index
      %59 = vector.load %arg5[%c0_27, %c0_28, %c0_29] : memref<1x8x256xf32, #tpu.memory_space<vmem>>, vector<1x8x256xf32>
      %60 = vector.shape_cast %59 : vector<1x8x256xf32> to vector<8x256xf32>
      %61 = vector.shape_cast %58 : vector<8x256xf32> to vector<1x8x256xf32>
      tpu.vector_store %arg5[%c0_27, %c0_28, %c0_29], %61 {strides = array<i32>} : memref<1x8x256xf32, #tpu.memory_space<vmem>>, vector<1x8x256xf32>,
      %62 = vector.shape_cast %56 : vector<1x256xf32> to vector<1x256xf32>
      %63 = vector.broadcast %62 : vector<1x256xf32> to vector<8x256xf32>
      %c0_30 = arith.constant 0 : index
      %c0_31 = arith.constant 0 : index
      %c0_32 = arith.constant 0 : index
      %64 = vector.load %arg6[%c0_30, %c0_31, %c0_32] : memref<1x8x256xf32, #tpu.memory_space<vmem>>, vector<1x8x256xf32>
      %65 = vector.shape_cast %64 : vector<1x8x256xf32> to vector<8x256xf32>
      %66 = vector.shape_cast %63 : vector<8x256xf32> to vector<1x8x256xf32>
      tpu.vector_store %arg6[%c0_30, %c0_31, %c0_32], %66 {strides = array<i32>} : memref<1x8x256xf32, #tpu.memory_space<vmem>>, vector<1x8x256xf32>,
    } else {
    }
    return
  }
  func.func @transform_0(%arg0: i32, %arg1: i32) -> (i32, i32, i32, i32) {
    %c2_i32 = arith.constant 2 : i32
    %0 = arith.muli %c2_i32, %arg0 : i32
    %1 = arith.addi %0, %arg1 : i32
    %c0_i32 = arith.constant 0 : i32
    %c0_i32_0 = arith.constant 0 : i32
    %c0_i32_1 = arith.constant 0 : i32
    %c0_i32_2 = arith.constant 0 : i32
    return %c0_i32, %1, %c0_i32_0, %c0_i32_1 : i32, i32, i32, i32
  }
  func.func @transform_1(%arg0: i32, %arg1: i32) -> (i32, i32, i32) {
    %c0_i32 = arith.constant 0 : i32
    %c0_i32_0 = arith.constant 0 : i32
    %c0_i32_1 = arith.constant 0 : i32
    %c0_i32_2 = arith.constant 0 : i32
    return %c0_i32, %c0_i32_0, %c0_i32_1 : i32, i32, i32
  }
  func.func @transform_2(%arg0: i32, %arg1: i32) -> (i32, i32, i32, i32) {
    %c0_i32 = arith.constant 0 : i32
    %c0_i32_0 = arith.constant 0 : i32
    %c0_i32_1 = arith.constant 0 : i32
    %c0_i32_2 = arith.constant 0 : i32
    return %c0_i32, %arg0, %c0_i32_0, %c0_i32_1 : i32, i32, i32, i32
  }
  func.func @transform_3(%arg0: i32, %arg1: i32) -> (i32, i32, i32) {
    %c0_i32 = arith.constant 0 : i32
    %c0_i32_0 = arith.constant 0 : i32
    %c0_i32_1 = arith.constant 0 : i32
    return %arg0, %c0_i32, %c0_i32_0 : i32, i32, i32
  }
  func.func @transform_4(%arg0: i32, %arg1: i32) -> (i32, i32, i32) {
    %c0_i32 = arith.constant 0 : i32
    %c0_i32_0 = arith.constant 0 : i32
    %c0_i32_1 = arith.constant 0 : i32
    return %arg0, %c0_i32, %c0_i32_0 : i32, i32, i32
  }
}

module attributes {stable_mosaic.version = 11 : i64} {
  func.func @_bn_act_kernel(%arg0: i32, %arg1: memref<8x128xbf16, #tpu.memory_space<vmem>>, %arg2: memref<1x128xf32, #tpu.memory_space<vmem>>, %arg3: memref<1x128xf32, #tpu.memory_space<vmem>>, %arg4: memref<8x128xbf16, #tpu.memory_space<vmem>>) attributes {dimension_semantics = [#tpu.dimension_semantics<parallel>], iteration_bounds = array<i64: 1>, scalar_prefetch = 0 : i64, scratch_operands = 0 : i64, tpu.core_type = #tpu.core_type<tc>, window_params = [{transform_indices = @transform_0, window_bounds = array<i64: 8, 128>}, {pipeline_mode = #tpu.pipeline_mode<synchronous>, transform_indices = @transform_1, window_bounds = array<i64: 1, 128>}, {pipeline_mode = #tpu.pipeline_mode<synchronous>, transform_indices = @transform_2, window_bounds = array<i64: 1, 128>}, {transform_indices = @transform_3, window_bounds = array<i64: 8, 128>}]} {
    %c0 = arith.constant 0 : index
    %c0_0 = arith.constant 0 : index
    %0 = vector.load %arg1[%c0, %c0_0] : memref<8x128xbf16, #tpu.memory_space<vmem>>, vector<8x128xbf16>
    %1 = arith.extf %0 : vector<8x128xbf16> to vector<8x128xf32>
    %c0_1 = arith.constant 0 : index
    %c0_2 = arith.constant 0 : index
    %2 = vector.load %arg2[%c0_1, %c0_2] : memref<1x128xf32, #tpu.memory_space<vmem>>, vector<1x128xf32>
    %3 = vector.broadcast %2 : vector<1x128xf32> to vector<8x128xf32>
    %4 = arith.mulf %1, %3 : vector<8x128xf32>
    %c0_3 = arith.constant 0 : index
    %c0_4 = arith.constant 0 : index
    %5 = vector.load %arg3[%c0_3, %c0_4] : memref<1x128xf32, #tpu.memory_space<vmem>>, vector<1x128xf32>
    %6 = vector.broadcast %5 : vector<1x128xf32> to vector<8x128xf32>
    %7 = arith.addf %4, %6 : vector<8x128xf32>
    %cst = arith.constant 0.000000e+00 : f32
    %8 = vector.broadcast %cst : f32 to vector<8x128xf32>
    %9 = arith.maximumf %7, %8 : vector<8x128xf32>
    %10 = arith.truncf %9 : vector<8x128xf32> to vector<8x128xbf16>
    %c0_5 = arith.constant 0 : index
    %c0_6 = arith.constant 0 : index
    %11 = vector.load %arg4[%c0_5, %c0_6] : memref<8x128xbf16, #tpu.memory_space<vmem>>, vector<8x128xbf16>
    tpu.vector_store %arg4[%c0_5, %c0_6], %10 {strides = array<i32>} : memref<8x128xbf16, #tpu.memory_space<vmem>>, vector<8x128xbf16>,
    return
  }
  func.func @transform_0(%arg0: i32) -> (i32, i32) {
    %c0_i32 = arith.constant 0 : i32
    %c0_i32_0 = arith.constant 0 : i32
    return %arg0, %c0_i32 : i32, i32
  }
  func.func @transform_1(%arg0: i32) -> (i32, i32) {
    %c0_i32 = arith.constant 0 : i32
    %c0_i32_0 = arith.constant 0 : i32
    %c0_i32_1 = arith.constant 0 : i32
    return %c0_i32, %c0_i32_0 : i32, i32
  }
  func.func @transform_2(%arg0: i32) -> (i32, i32) {
    %c0_i32 = arith.constant 0 : i32
    %c0_i32_0 = arith.constant 0 : i32
    %c0_i32_1 = arith.constant 0 : i32
    return %c0_i32, %c0_i32_0 : i32, i32
  }
  func.func @transform_3(%arg0: i32) -> (i32, i32) {
    %c0_i32 = arith.constant 0 : i32
    %c0_i32_0 = arith.constant 0 : i32
    return %arg0, %c0_i32 : i32, i32
  }
}

module attributes {stable_mosaic.version = 11 : i64} {
  func.func @_bn_act_kernel(%arg0: i32, %arg1: memref<8x128xbf16, #tpu.memory_space<vmem>>, %arg2: memref<1x128xf32, #tpu.memory_space<vmem>>, %arg3: memref<1x128xf32, #tpu.memory_space<vmem>>, %arg4: memref<8x128xbf16, #tpu.memory_space<vmem>>) attributes {dimension_semantics = [#tpu.dimension_semantics<parallel>], iteration_bounds = array<i64: 1>, scalar_prefetch = 0 : i64, scratch_operands = 0 : i64, tpu.core_type = #tpu.core_type<tc>, window_params = [{transform_indices = @transform_0, window_bounds = array<i64: 8, 128>}, {pipeline_mode = #tpu.pipeline_mode<synchronous>, transform_indices = @transform_1, window_bounds = array<i64: 1, 128>}, {pipeline_mode = #tpu.pipeline_mode<synchronous>, transform_indices = @transform_2, window_bounds = array<i64: 1, 128>}, {transform_indices = @transform_3, window_bounds = array<i64: 8, 128>}]} {
    %c0 = arith.constant 0 : index
    %c0_0 = arith.constant 0 : index
    %0 = vector.load %arg1[%c0, %c0_0] : memref<8x128xbf16, #tpu.memory_space<vmem>>, vector<8x128xbf16>
    %1 = arith.extf %0 : vector<8x128xbf16> to vector<8x128xf32>
    %c0_1 = arith.constant 0 : index
    %c0_2 = arith.constant 0 : index
    %2 = vector.load %arg2[%c0_1, %c0_2] : memref<1x128xf32, #tpu.memory_space<vmem>>, vector<1x128xf32>
    %3 = vector.broadcast %2 : vector<1x128xf32> to vector<8x128xf32>
    %4 = arith.mulf %1, %3 : vector<8x128xf32>
    %c0_3 = arith.constant 0 : index
    %c0_4 = arith.constant 0 : index
    %5 = vector.load %arg3[%c0_3, %c0_4] : memref<1x128xf32, #tpu.memory_space<vmem>>, vector<1x128xf32>
    %6 = vector.broadcast %5 : vector<1x128xf32> to vector<8x128xf32>
    %7 = arith.addf %4, %6 : vector<8x128xf32>
    %8 = arith.truncf %7 : vector<8x128xf32> to vector<8x128xbf16>
    %c0_5 = arith.constant 0 : index
    %c0_6 = arith.constant 0 : index
    %9 = vector.load %arg4[%c0_5, %c0_6] : memref<8x128xbf16, #tpu.memory_space<vmem>>, vector<8x128xbf16>
    tpu.vector_store %arg4[%c0_5, %c0_6], %8 {strides = array<i32>} : memref<8x128xbf16, #tpu.memory_space<vmem>>, vector<8x128xbf16>,
    return
  }
  func.func @transform_0(%arg0: i32) -> (i32, i32) {
    %c1_i32 = arith.constant 1 : i32
    %c0_i32 = arith.constant 0 : i32
    return %arg0, %c1_i32 : i32, i32
  }
  func.func @transform_1(%arg0: i32) -> (i32, i32) {
    %c0_i32 = arith.constant 0 : i32
    %c0_i32_0 = arith.constant 0 : i32
    %c0_i32_1 = arith.constant 0 : i32
    return %c0_i32, %c0_i32_0 : i32, i32
  }
  func.func @transform_2(%arg0: i32) -> (i32, i32) {
    %c0_i32 = arith.constant 0 : i32
    %c0_i32_0 = arith.constant 0 : i32
    %c0_i32_1 = arith.constant 0 : i32
    return %c0_i32, %c0_i32_0 : i32, i32
  }
  func.func @transform_3(%arg0: i32) -> (i32, i32) {
    %c0_i32 = arith.constant 0 : i32
    %c0_i32_0 = arith.constant 0 : i32
    return %arg0, %c0_i32 : i32, i32
  }
}

module attributes {stable_mosaic.version = 11 : i64} {
  func.func @_conv_pass1_kernel(%arg0: i32, %arg1: i32, %arg2: memref<2x1x4x128xbf16, #tpu.memory_space<vmem>>, %arg3: memref<9x128x128xbf16, #tpu.memory_space<vmem>>, %arg4: memref<2x1x2x128xbf16, #tpu.memory_space<vmem>>, %arg5: memref<1x8x128xf32, #tpu.memory_space<vmem>>, %arg6: memref<1x8x128xf32, #tpu.memory_space<vmem>>, %arg7: memref<4x128xf32, #tpu.memory_space<vmem>>) attributes {dimension_semantics = [#tpu.dimension_semantics<parallel>, #tpu.dimension_semantics<arbitrary>], iteration_bounds = array<i64: 2, 3>, scalar_prefetch = 0 : i64, scratch_operands = 1 : i64, tpu.core_type = #tpu.core_type<tc>, window_params = [{transform_indices = @transform_0, window_bounds = array<i64: 2, 1, 4, 128>}, {pipeline_mode = #tpu.pipeline_mode<synchronous>, transform_indices = @transform_1, window_bounds = array<i64: 9, 128, 128>}, {transform_indices = @transform_2, window_bounds = array<i64: 2, 1, 2, 128>}, {transform_indices = @transform_3, window_bounds = array<i64: 1, 8, 128>}, {transform_indices = @transform_4, window_bounds = array<i64: 1, 8, 128>}]} {
    %c0 = arith.constant 0 : index
    %c0_0 = arith.constant 0 : index
    %c0_1 = arith.constant 0 : index
    %c0_2 = arith.constant 0 : index
    %0 = vector.load %arg2[%c0, %c0_0, %c0_1, %c0_2] : memref<2x1x4x128xbf16, #tpu.memory_space<vmem>>, vector<2x1x4x128xbf16>
    %1 = vector.shape_cast %0 : vector<2x1x4x128xbf16> to vector<2x4x128xbf16>
    %2 = vector.extract_strided_slice %1 {offsets = [0, 0, 0], sizes = [2, 2, 128], strides = [1, 1, 1]} : vector<2x4x128xbf16> to vector<2x2x128xbf16>
    %3 = vector.shape_cast %2 : vector<2x2x128xbf16> to vector<4x128xbf16>
    %c3_i32 = arith.constant 3 : i32
    %4 = arith.muli %arg1, %c3_i32 : i32
    %c0_i32 = arith.constant 0 : i32
    %5 = arith.addi %4, %c0_i32 : i32
    %6 = arith.index_cast %5 : i32 to index
    %c0_3 = arith.constant 0 : index
    %c0_4 = arith.constant 0 : index
    %7 = vector.load %arg3[%6, %c0_3, %c0_4] : memref<9x128x128xbf16, #tpu.memory_space<vmem>>, vector<1x128x128xbf16>
    %8 = vector.shape_cast %7 : vector<1x128x128xbf16> to vector<128x128xbf16>
    %cst = arith.constant dense<0.000000e+00> : vector<4x128xf32>
    %9 = tpu.matmul %3, %8, %cst {dimension_numbers = #tpu.dot_dimension_numbers<[1], [0], [0], [1], [0, 0, 1, 1], [], []>} : vector<4x128xbf16>, vector<128x128xbf16>, vector<4x128xf32> -> vector<4x128xf32>
    %10 = vector.extract_strided_slice %1 {offsets = [0, 1, 0], sizes = [2, 2, 128], strides = [1, 1, 1]} : vector<2x4x128xbf16> to vector<2x2x128xbf16>
    %11 = vector.shape_cast %10 : vector<2x2x128xbf16> to vector<4x128xbf16>
    %c3_i32_5 = arith.constant 3 : i32
    %12 = arith.muli %arg1, %c3_i32_5 : i32
    %c1_i32 = arith.constant 1 : i32
    %13 = arith.addi %12, %c1_i32 : i32
    %14 = arith.index_cast %13 : i32 to index
    %c0_6 = arith.constant 0 : index
    %c0_7 = arith.constant 0 : index
    %15 = vector.load %arg3[%14, %c0_6, %c0_7] : memref<9x128x128xbf16, #tpu.memory_space<vmem>>, vector<1x128x128xbf16>
    %16 = vector.shape_cast %15 : vector<1x128x128xbf16> to vector<128x128xbf16>
    %cst_8 = arith.constant dense<0.000000e+00> : vector<4x128xf32>
    %17 = tpu.matmul %11, %16, %cst_8 {dimension_numbers = #tpu.dot_dimension_numbers<[1], [0], [0], [1], [0, 0, 1, 1], [], []>} : vector<4x128xbf16>, vector<128x128xbf16>, vector<4x128xf32> -> vector<4x128xf32>
    %18 = arith.addf %9, %17 : vector<4x128xf32>
    %19 = vector.extract_strided_slice %1 {offsets = [0, 2, 0], sizes = [2, 2, 128], strides = [1, 1, 1]} : vector<2x4x128xbf16> to vector<2x2x128xbf16>
    %20 = vector.shape_cast %19 : vector<2x2x128xbf16> to vector<4x128xbf16>
    %c3_i32_9 = arith.constant 3 : i32
    %21 = arith.muli %arg1, %c3_i32_9 : i32
    %c2_i32 = arith.constant 2 : i32
    %22 = arith.addi %21, %c2_i32 : i32
    %23 = arith.index_cast %22 : i32 to index
    %c0_10 = arith.constant 0 : index
    %c0_11 = arith.constant 0 : index
    %24 = vector.load %arg3[%23, %c0_10, %c0_11] : memref<9x128x128xbf16, #tpu.memory_space<vmem>>, vector<1x128x128xbf16>
    %25 = vector.shape_cast %24 : vector<1x128x128xbf16> to vector<128x128xbf16>
    %cst_12 = arith.constant dense<0.000000e+00> : vector<4x128xf32>
    %26 = tpu.matmul %20, %25, %cst_12 {dimension_numbers = #tpu.dot_dimension_numbers<[1], [0], [0], [1], [0, 0, 1, 1], [], []>} : vector<4x128xbf16>, vector<128x128xbf16>, vector<4x128xf32> -> vector<4x128xf32>
    %27 = arith.addf %18, %26 : vector<4x128xf32>
    %c0_i32_13 = arith.constant 0 : i32
    %28 = arith.cmpi eq, %arg1, %c0_i32_13 : i32
    %29 = arith.extui %28 : i1 to i32
    %c0_i32_14 = arith.constant 0 : i32
    %30 = arith.cmpi ne, %29, %c0_i32_14 : i32
    scf.if %30 {
      %c0_19 = arith.constant 0 : index
      %c0_20 = arith.constant 0 : index
      %37 = vector.load %arg7[%c0_19, %c0_20] : memref<4x128xf32, #tpu.memory_space<vmem>>, vector<4x128xf32>
      tpu.vector_store %arg7[%c0_19, %c0_20], %27 {strides = array<i32>} : memref<4x128xf32, #tpu.memory_space<vmem>>, vector<4x128xf32>,
    } else {
    }
    %c0_i32_15 = arith.constant 0 : i32
    %31 = arith.cmpi sgt, %arg1, %c0_i32_15 : i32
    %32 = arith.extui %31 : i1 to i32
    %c0_i32_16 = arith.constant 0 : i32
    %33 = arith.cmpi ne, %32, %c0_i32_16 : i32
    scf.if %33 {
      %c0_19 = arith.constant 0 : index
      %c0_20 = arith.constant 0 : index
      %37 = vector.load %arg7[%c0_19, %c0_20] : memref<4x128xf32, #tpu.memory_space<vmem>>, vector<4x128xf32>
      %38 = arith.addf %37, %27 : vector<4x128xf32>
      %c0_21 = arith.constant 0 : index
      %c0_22 = arith.constant 0 : index
      %39 = vector.load %arg7[%c0_21, %c0_22] : memref<4x128xf32, #tpu.memory_space<vmem>>, vector<4x128xf32>
      tpu.vector_store %arg7[%c0_21, %c0_22], %38 {strides = array<i32>} : memref<4x128xf32, #tpu.memory_space<vmem>>, vector<4x128xf32>,
    } else {
    }
    %c2_i32_17 = arith.constant 2 : i32
    %34 = arith.cmpi eq, %arg1, %c2_i32_17 : i32
    %35 = arith.extui %34 : i1 to i32
    %c0_i32_18 = arith.constant 0 : i32
    %36 = arith.cmpi ne, %35, %c0_i32_18 : i32
    scf.if %36 {
      %c0_19 = arith.constant 0 : index
      %c0_20 = arith.constant 0 : index
      %37 = vector.load %arg7[%c0_19, %c0_20] : memref<4x128xf32, #tpu.memory_space<vmem>>, vector<4x128xf32>
      %38 = vector.shape_cast %37 : vector<4x128xf32> to vector<2x2x128xf32>
      %39 = arith.truncf %38 : vector<2x2x128xf32> to vector<2x2x128xbf16>
      %c0_21 = arith.constant 0 : index
      %c0_22 = arith.constant 0 : index
      %c0_23 = arith.constant 0 : index
      %c0_24 = arith.constant 0 : index
      %40 = vector.load %arg4[%c0_21, %c0_22, %c0_23, %c0_24] : memref<2x1x2x128xbf16, #tpu.memory_space<vmem>>, vector<2x1x2x128xbf16>
      %41 = vector.shape_cast %40 : vector<2x1x2x128xbf16> to vector<2x2x128xbf16>
      %42 = vector.shape_cast %39 : vector<2x2x128xbf16> to vector<2x1x2x128xbf16>
      tpu.vector_store %arg4[%c0_21, %c0_22, %c0_23, %c0_24], %42 {strides = array<i32>} : memref<2x1x2x128xbf16, #tpu.memory_space<vmem>>, vector<2x1x2x128xbf16>,
      %cst_25 = arith.constant dense<0.000000e+00> : vector<128xf32>
      %43 = vector.multi_reduction <add>, %37, %cst_25 [0] : vector<4x128xf32> to vector<128xf32>
      %44 = vector.shape_cast %43 : vector<128xf32> to vector<1x128xf32>
      %45 = arith.mulf %37, %37 : vector<4x128xf32>
      %cst_26 = arith.constant dense<0.000000e+00> : vector<128xf32>
      %46 = vector.multi_reduction <add>, %45, %cst_26 [0] : vector<4x128xf32> to vector<128xf32>
      %47 = vector.shape_cast %46 : vector<128xf32> to vector<1x128xf32>
      %48 = vector.shape_cast %44 : vector<1x128xf32> to vector<1x128xf32>
      %49 = vector.broadcast %48 : vector<1x128xf32> to vector<8x128xf32>
      %c0_27 = arith.constant 0 : index
      %c0_28 = arith.constant 0 : index
      %c0_29 = arith.constant 0 : index
      %50 = vector.load %arg5[%c0_27, %c0_28, %c0_29] : memref<1x8x128xf32, #tpu.memory_space<vmem>>, vector<1x8x128xf32>
      %51 = vector.shape_cast %50 : vector<1x8x128xf32> to vector<8x128xf32>
      %52 = vector.shape_cast %49 : vector<8x128xf32> to vector<1x8x128xf32>
      tpu.vector_store %arg5[%c0_27, %c0_28, %c0_29], %52 {strides = array<i32>} : memref<1x8x128xf32, #tpu.memory_space<vmem>>, vector<1x8x128xf32>,
      %53 = vector.shape_cast %47 : vector<1x128xf32> to vector<1x128xf32>
      %54 = vector.broadcast %53 : vector<1x128xf32> to vector<8x128xf32>
      %c0_30 = arith.constant 0 : index
      %c0_31 = arith.constant 0 : index
      %c0_32 = arith.constant 0 : index
      %55 = vector.load %arg6[%c0_30, %c0_31, %c0_32] : memref<1x8x128xf32, #tpu.memory_space<vmem>>, vector<1x8x128xf32>
      %56 = vector.shape_cast %55 : vector<1x8x128xf32> to vector<8x128xf32>
      %57 = vector.shape_cast %54 : vector<8x128xf32> to vector<1x8x128xf32>
      tpu.vector_store %arg6[%c0_30, %c0_31, %c0_32], %57 {strides = array<i32>} : memref<1x8x128xf32, #tpu.memory_space<vmem>>, vector<1x8x128xf32>,
    } else {
    }
    return
  }
  func.func @transform_0(%arg0: i32, %arg1: i32) -> (i32, i32, i32, i32) {
    %c1_i32 = arith.constant 1 : i32
    %0 = arith.muli %c1_i32, %arg0 : i32
    %1 = arith.addi %0, %arg1 : i32
    %c0_i32 = arith.constant 0 : i32
    %c0_i32_0 = arith.constant 0 : i32
    %c0_i32_1 = arith.constant 0 : i32
    %c0_i32_2 = arith.constant 0 : i32
    return %c0_i32, %1, %c0_i32_0, %c0_i32_1 : i32, i32, i32, i32
  }
  func.func @transform_1(%arg0: i32, %arg1: i32) -> (i32, i32, i32) {
    %c0_i32 = arith.constant 0 : i32
    %c0_i32_0 = arith.constant 0 : i32
    %c0_i32_1 = arith.constant 0 : i32
    %c0_i32_2 = arith.constant 0 : i32
    return %c0_i32, %c0_i32_0, %c0_i32_1 : i32, i32, i32
  }
  func.func @transform_2(%arg0: i32, %arg1: i32) -> (i32, i32, i32, i32) {
    %c0_i32 = arith.constant 0 : i32
    %c0_i32_0 = arith.constant 0 : i32
    %c0_i32_1 = arith.constant 0 : i32
    %c0_i32_2 = arith.constant 0 : i32
    return %c0_i32, %arg0, %c0_i32_0, %c0_i32_1 : i32, i32, i32, i32
  }
  func.func @transform_3(%arg0: i32, %arg1: i32) -> (i32, i32, i32) {
    %c0_i32 = arith.constant 0 : i32
    %c0_i32_0 = arith.constant 0 : i32
    %c0_i32_1 = arith.constant 0 : i32
    return %arg0, %c0_i32, %c0_i32_0 : i32, i32, i32
  }
  func.func @transform_4(%arg0: i32, %arg1: i32) -> (i32, i32, i32) {
    %c0_i32 = arith.constant 0 : i32
    %c0_i32_0 = arith.constant 0 : i32
    %c0_i32_1 = arith.constant 0 : i32
    return %arg0, %c0_i32, %c0_i32_0 : i32, i32, i32
  }
}

module attributes {stable_mosaic.version = 11 : i64} {
  func.func @_bn_act_kernel(%arg0: i32, %arg1: memref<8x128xbf16, #tpu.memory_space<vmem>>, %arg2: memref<1x128xf32, #tpu.memory_space<vmem>>, %arg3: memref<1x128xf32, #tpu.memory_space<vmem>>, %arg4: memref<8x128xbf16, #tpu.memory_space<vmem>>, %arg5: memref<8x128xbf16, #tpu.memory_space<vmem>>) attributes {dimension_semantics = [#tpu.dimension_semantics<parallel>], iteration_bounds = array<i64: 1>, scalar_prefetch = 0 : i64, scratch_operands = 0 : i64, tpu.core_type = #tpu.core_type<tc>, window_params = [{transform_indices = @transform_0, window_bounds = array<i64: 8, 128>}, {pipeline_mode = #tpu.pipeline_mode<synchronous>, transform_indices = @transform_1, window_bounds = array<i64: 1, 128>}, {pipeline_mode = #tpu.pipeline_mode<synchronous>, transform_indices = @transform_2, window_bounds = array<i64: 1, 128>}, {transform_indices = @transform_3, window_bounds = array<i64: 8, 128>}, {transform_indices = @transform_4, window_bounds = array<i64: 8, 128>}]} {
    %c0 = arith.constant 0 : index
    %c0_0 = arith.constant 0 : index
    %0 = vector.load %arg1[%c0, %c0_0] : memref<8x128xbf16, #tpu.memory_space<vmem>>, vector<8x128xbf16>
    %1 = arith.extf %0 : vector<8x128xbf16> to vector<8x128xf32>
    %c0_1 = arith.constant 0 : index
    %c0_2 = arith.constant 0 : index
    %2 = vector.load %arg2[%c0_1, %c0_2] : memref<1x128xf32, #tpu.memory_space<vmem>>, vector<1x128xf32>
    %3 = vector.broadcast %2 : vector<1x128xf32> to vector<8x128xf32>
    %4 = arith.mulf %1, %3 : vector<8x128xf32>
    %c0_3 = arith.constant 0 : index
    %c0_4 = arith.constant 0 : index
    %5 = vector.load %arg3[%c0_3, %c0_4] : memref<1x128xf32, #tpu.memory_space<vmem>>, vector<1x128xf32>
    %6 = vector.broadcast %5 : vector<1x128xf32> to vector<8x128xf32>
    %7 = arith.addf %4, %6 : vector<8x128xf32>
    %c0_5 = arith.constant 0 : index
    %c0_6 = arith.constant 0 : index
    %8 = vector.load %arg4[%c0_5, %c0_6] : memref<8x128xbf16, #tpu.memory_space<vmem>>, vector<8x128xbf16>
    %9 = arith.extf %8 : vector<8x128xbf16> to vector<8x128xf32>
    %10 = arith.addf %7, %9 : vector<8x128xf32>
    %cst = arith.constant 0.000000e+00 : f32
    %11 = vector.broadcast %cst : f32 to vector<8x128xf32>
    %12 = arith.maximumf %10, %11 : vector<8x128xf32>
    %13 = arith.truncf %12 : vector<8x128xf32> to vector<8x128xbf16>
    %c0_7 = arith.constant 0 : index
    %c0_8 = arith.constant 0 : index
    %14 = vector.load %arg5[%c0_7, %c0_8] : memref<8x128xbf16, #tpu.memory_space<vmem>>, vector<8x128xbf16>
    tpu.vector_store %arg5[%c0_7, %c0_8], %13 {strides = array<i32>} : memref<8x128xbf16, #tpu.memory_space<vmem>>, vector<8x128xbf16>,
    return
  }
  func.func @transform_0(%arg0: i32) -> (i32, i32) {
    %c0_i32 = arith.constant 0 : i32
    %c0_i32_0 = arith.constant 0 : i32
    return %arg0, %c0_i32 : i32, i32
  }
  func.func @transform_1(%arg0: i32) -> (i32, i32) {
    %c0_i32 = arith.constant 0 : i32
    %c0_i32_0 = arith.constant 0 : i32
    %c0_i32_1 = arith.constant 0 : i32
    return %c0_i32, %c0_i32_0 : i32, i32
  }
  func.func @transform_2(%arg0: i32) -> (i32, i32) {
    %c0_i32 = arith.constant 0 : i32
    %c0_i32_0 = arith.constant 0 : i32
    %c0_i32_1 = arith.constant 0 : i32
    return %c0_i32, %c0_i32_0 : i32, i32
  }
  func.func @transform_3(%arg0: i32) -> (i32, i32) {
    %c0_i32 = arith.constant 0 : i32
    %c0_i32_0 = arith.constant 0 : i32
    return %arg0, %c0_i32 : i32, i32
  }
  func.func @transform_4(%arg0: i32) -> (i32, i32) {
    %c0_i32 = arith.constant 0 : i32
    %c0_i32_0 = arith.constant 0 : i32
    return %arg0, %c0_i32 : i32, i32
  }
}

module attributes {stable_mosaic.version = 11 : i64} {
  func.func @_conv_pass1_kernel(%arg0: i32, %arg1: i32, %arg2: memref<2x1x5x128xbf16, #tpu.memory_space<vmem>>, %arg3: memref<9x128x256xbf16, #tpu.memory_space<vmem>>, %arg4: memref<2x1x1x256xbf16, #tpu.memory_space<vmem>>, %arg5: memref<1x8x256xf32, #tpu.memory_space<vmem>>, %arg6: memref<1x8x256xf32, #tpu.memory_space<vmem>>, %arg7: memref<2x256xf32, #tpu.memory_space<vmem>>) attributes {dimension_semantics = [#tpu.dimension_semantics<parallel>, #tpu.dimension_semantics<arbitrary>], iteration_bounds = array<i64: 1, 3>, scalar_prefetch = 0 : i64, scratch_operands = 1 : i64, tpu.core_type = #tpu.core_type<tc>, window_params = [{transform_indices = @transform_0, window_bounds = array<i64: 2, 1, 5, 128>}, {pipeline_mode = #tpu.pipeline_mode<synchronous>, transform_indices = @transform_1, window_bounds = array<i64: 9, 128, 256>}, {transform_indices = @transform_2, window_bounds = array<i64: 2, 1, 1, 256>}, {transform_indices = @transform_3, window_bounds = array<i64: 1, 8, 256>}, {transform_indices = @transform_4, window_bounds = array<i64: 1, 8, 256>}]} {
    %c0 = arith.constant 0 : index
    %c0_0 = arith.constant 0 : index
    %c0_1 = arith.constant 0 : index
    %c0_2 = arith.constant 0 : index
    %0 = vector.load %arg2[%c0, %c0_0, %c0_1, %c0_2] : memref<2x1x5x128xbf16, #tpu.memory_space<vmem>>, vector<2x1x5x128xbf16>
    %1 = vector.shape_cast %0 : vector<2x1x5x128xbf16> to vector<2x5x128xbf16>
    %2 = vector.extract_strided_slice %1 {offsets = [0, 0, 0], sizes = [2, 2, 128], strides = [1, 1, 1]} : vector<2x5x128xbf16> to vector<2x2x128xbf16>
    %3 = vector.shape_cast %2 : vector<2x2x128xbf16> to vector<2x1x2x128xbf16>
    %4 = vector.extract_strided_slice %3 {offsets = [0, 0, 0, 0], sizes = [2, 1, 1, 128], strides = [1, 1, 1, 1]} : vector<2x1x2x128xbf16> to vector<2x1x1x128xbf16>
    %5 = vector.shape_cast %4 : vector<2x1x1x128xbf16> to vector<2x1x128xbf16>
    %6 = vector.shape_cast %5 : vector<2x1x128xbf16> to vector<2x128xbf16>
    %c3_i32 = arith.constant 3 : i32
    %7 = arith.muli %arg1, %c3_i32 : i32
    %c0_i32 = arith.constant 0 : i32
    %8 = arith.addi %7, %c0_i32 : i32
    %9 = arith.index_cast %8 : i32 to index
    %c0_3 = arith.constant 0 : index
    %c0_4 = arith.constant 0 : index
    %10 = vector.load %arg3[%9, %c0_3, %c0_4] : memref<9x128x256xbf16, #tpu.memory_space<vmem>>, vector<1x128x256xbf16>
    %11 = vector.shape_cast %10 : vector<1x128x256xbf16> to vector<128x256xbf16>
    %cst = arith.constant dense<0.000000e+00> : vector<2x256xf32>
    %12 = tpu.matmul %6, %11, %cst {dimension_numbers = #tpu.dot_dimension_numbers<[1], [0], [0], [1], [0, 0, 1, 1], [], []>} : vector<2x128xbf16>, vector<128x256xbf16>, vector<2x256xf32> -> vector<2x256xf32>
    %13 = vector.extract_strided_slice %1 {offsets = [0, 1, 0], sizes = [2, 2, 128], strides = [1, 1, 1]} : vector<2x5x128xbf16> to vector<2x2x128xbf16>
    %14 = vector.shape_cast %13 : vector<2x2x128xbf16> to vector<2x1x2x128xbf16>
    %15 = vector.extract_strided_slice %14 {offsets = [0, 0, 0, 0], sizes = [2, 1, 1, 128], strides = [1, 1, 1, 1]} : vector<2x1x2x128xbf16> to vector<2x1x1x128xbf16>
    %16 = vector.shape_cast %15 : vector<2x1x1x128xbf16> to vector<2x1x128xbf16>
    %17 = vector.shape_cast %16 : vector<2x1x128xbf16> to vector<2x128xbf16>
    %c3_i32_5 = arith.constant 3 : i32
    %18 = arith.muli %arg1, %c3_i32_5 : i32
    %c1_i32 = arith.constant 1 : i32
    %19 = arith.addi %18, %c1_i32 : i32
    %20 = arith.index_cast %19 : i32 to index
    %c0_6 = arith.constant 0 : index
    %c0_7 = arith.constant 0 : index
    %21 = vector.load %arg3[%20, %c0_6, %c0_7] : memref<9x128x256xbf16, #tpu.memory_space<vmem>>, vector<1x128x256xbf16>
    %22 = vector.shape_cast %21 : vector<1x128x256xbf16> to vector<128x256xbf16>
    %cst_8 = arith.constant dense<0.000000e+00> : vector<2x256xf32>
    %23 = tpu.matmul %17, %22, %cst_8 {dimension_numbers = #tpu.dot_dimension_numbers<[1], [0], [0], [1], [0, 0, 1, 1], [], []>} : vector<2x128xbf16>, vector<128x256xbf16>, vector<2x256xf32> -> vector<2x256xf32>
    %24 = arith.addf %12, %23 : vector<2x256xf32>
    %25 = vector.extract_strided_slice %1 {offsets = [0, 2, 0], sizes = [2, 2, 128], strides = [1, 1, 1]} : vector<2x5x128xbf16> to vector<2x2x128xbf16>
    %26 = vector.shape_cast %25 : vector<2x2x128xbf16> to vector<2x1x2x128xbf16>
    %27 = vector.extract_strided_slice %26 {offsets = [0, 0, 0, 0], sizes = [2, 1, 1, 128], strides = [1, 1, 1, 1]} : vector<2x1x2x128xbf16> to vector<2x1x1x128xbf16>
    %28 = vector.shape_cast %27 : vector<2x1x1x128xbf16> to vector<2x1x128xbf16>
    %29 = vector.shape_cast %28 : vector<2x1x128xbf16> to vector<2x128xbf16>
    %c3_i32_9 = arith.constant 3 : i32
    %30 = arith.muli %arg1, %c3_i32_9 : i32
    %c2_i32 = arith.constant 2 : i32
    %31 = arith.addi %30, %c2_i32 : i32
    %32 = arith.index_cast %31 : i32 to index
    %c0_10 = arith.constant 0 : index
    %c0_11 = arith.constant 0 : index
    %33 = vector.load %arg3[%32, %c0_10, %c0_11] : memref<9x128x256xbf16, #tpu.memory_space<vmem>>, vector<1x128x256xbf16>
    %34 = vector.shape_cast %33 : vector<1x128x256xbf16> to vector<128x256xbf16>
    %cst_12 = arith.constant dense<0.000000e+00> : vector<2x256xf32>
    %35 = tpu.matmul %29, %34, %cst_12 {dimension_numbers = #tpu.dot_dimension_numbers<[1], [0], [0], [1], [0, 0, 1, 1], [], []>} : vector<2x128xbf16>, vector<128x256xbf16>, vector<2x256xf32> -> vector<2x256xf32>
    %36 = arith.addf %24, %35 : vector<2x256xf32>
    %c0_i32_13 = arith.constant 0 : i32
    %37 = arith.cmpi eq, %arg1, %c0_i32_13 : i32
    %38 = arith.extui %37 : i1 to i32
    %c0_i32_14 = arith.constant 0 : i32
    %39 = arith.cmpi ne, %38, %c0_i32_14 : i32
    scf.if %39 {
      %c0_19 = arith.constant 0 : index
      %c0_20 = arith.constant 0 : index
      %46 = vector.load %arg7[%c0_19, %c0_20] : memref<2x256xf32, #tpu.memory_space<vmem>>, vector<2x256xf32>
      tpu.vector_store %arg7[%c0_19, %c0_20], %36 {strides = array<i32>} : memref<2x256xf32, #tpu.memory_space<vmem>>, vector<2x256xf32>,
    } else {
    }
    %c0_i32_15 = arith.constant 0 : i32
    %40 = arith.cmpi sgt, %arg1, %c0_i32_15 : i32
    %41 = arith.extui %40 : i1 to i32
    %c0_i32_16 = arith.constant 0 : i32
    %42 = arith.cmpi ne, %41, %c0_i32_16 : i32
    scf.if %42 {
      %c0_19 = arith.constant 0 : index
      %c0_20 = arith.constant 0 : index
      %46 = vector.load %arg7[%c0_19, %c0_20] : memref<2x256xf32, #tpu.memory_space<vmem>>, vector<2x256xf32>
      %47 = arith.addf %46, %36 : vector<2x256xf32>
      %c0_21 = arith.constant 0 : index
      %c0_22 = arith.constant 0 : index
      %48 = vector.load %arg7[%c0_21, %c0_22] : memref<2x256xf32, #tpu.memory_space<vmem>>, vector<2x256xf32>
      tpu.vector_store %arg7[%c0_21, %c0_22], %47 {strides = array<i32>} : memref<2x256xf32, #tpu.memory_space<vmem>>, vector<2x256xf32>,
    } else {
    }
    %c2_i32_17 = arith.constant 2 : i32
    %43 = arith.cmpi eq, %arg1, %c2_i32_17 : i32
    %44 = arith.extui %43 : i1 to i32
    %c0_i32_18 = arith.constant 0 : i32
    %45 = arith.cmpi ne, %44, %c0_i32_18 : i32
    scf.if %45 {
      %c0_19 = arith.constant 0 : index
      %c0_20 = arith.constant 0 : index
      %46 = vector.load %arg7[%c0_19, %c0_20] : memref<2x256xf32, #tpu.memory_space<vmem>>, vector<2x256xf32>
      %47 = vector.shape_cast %46 : vector<2x256xf32> to vector<2x1x256xf32>
      %48 = arith.truncf %47 : vector<2x1x256xf32> to vector<2x1x256xbf16>
      %c0_21 = arith.constant 0 : index
      %c0_22 = arith.constant 0 : index
      %c0_23 = arith.constant 0 : index
      %c0_24 = arith.constant 0 : index
      %49 = vector.load %arg4[%c0_21, %c0_22, %c0_23, %c0_24] : memref<2x1x1x256xbf16, #tpu.memory_space<vmem>>, vector<2x1x1x256xbf16>
      %50 = vector.shape_cast %49 : vector<2x1x1x256xbf16> to vector<2x1x256xbf16>
      %51 = vector.shape_cast %48 : vector<2x1x256xbf16> to vector<2x1x1x256xbf16>
      tpu.vector_store %arg4[%c0_21, %c0_22, %c0_23, %c0_24], %51 {strides = array<i32>} : memref<2x1x1x256xbf16, #tpu.memory_space<vmem>>, vector<2x1x1x256xbf16>,
      %cst_25 = arith.constant dense<0.000000e+00> : vector<256xf32>
      %52 = vector.multi_reduction <add>, %46, %cst_25 [0] : vector<2x256xf32> to vector<256xf32>
      %53 = vector.shape_cast %52 : vector<256xf32> to vector<1x256xf32>
      %54 = arith.mulf %46, %46 : vector<2x256xf32>
      %cst_26 = arith.constant dense<0.000000e+00> : vector<256xf32>
      %55 = vector.multi_reduction <add>, %54, %cst_26 [0] : vector<2x256xf32> to vector<256xf32>
      %56 = vector.shape_cast %55 : vector<256xf32> to vector<1x256xf32>
      %57 = vector.shape_cast %53 : vector<1x256xf32> to vector<1x256xf32>
      %58 = vector.broadcast %57 : vector<1x256xf32> to vector<8x256xf32>
      %c0_27 = arith.constant 0 : index
      %c0_28 = arith.constant 0 : index
      %c0_29 = arith.constant 0 : index
      %59 = vector.load %arg5[%c0_27, %c0_28, %c0_29] : memref<1x8x256xf32, #tpu.memory_space<vmem>>, vector<1x8x256xf32>
      %60 = vector.shape_cast %59 : vector<1x8x256xf32> to vector<8x256xf32>
      %61 = vector.shape_cast %58 : vector<8x256xf32> to vector<1x8x256xf32>
      tpu.vector_store %arg5[%c0_27, %c0_28, %c0_29], %61 {strides = array<i32>} : memref<1x8x256xf32, #tpu.memory_space<vmem>>, vector<1x8x256xf32>,
      %62 = vector.shape_cast %56 : vector<1x256xf32> to vector<1x256xf32>
      %63 = vector.broadcast %62 : vector<1x256xf32> to vector<8x256xf32>
      %c0_30 = arith.constant 0 : index
      %c0_31 = arith.constant 0 : index
      %c0_32 = arith.constant 0 : index
      %64 = vector.load %arg6[%c0_30, %c0_31, %c0_32] : memref<1x8x256xf32, #tpu.memory_space<vmem>>, vector<1x8x256xf32>
      %65 = vector.shape_cast %64 : vector<1x8x256xf32> to vector<8x256xf32>
      %66 = vector.shape_cast %63 : vector<8x256xf32> to vector<1x8x256xf32>
      tpu.vector_store %arg6[%c0_30, %c0_31, %c0_32], %66 {strides = array<i32>} : memref<1x8x256xf32, #tpu.memory_space<vmem>>, vector<1x8x256xf32>,
    } else {
    }
    return
  }
  func.func @transform_0(%arg0: i32, %arg1: i32) -> (i32, i32, i32, i32) {
    %c2_i32 = arith.constant 2 : i32
    %0 = arith.muli %c2_i32, %arg0 : i32
    %1 = arith.addi %0, %arg1 : i32
    %c0_i32 = arith.constant 0 : i32
    %c0_i32_0 = arith.constant 0 : i32
    %c0_i32_1 = arith.constant 0 : i32
    %c0_i32_2 = arith.constant 0 : i32
    return %c0_i32, %1, %c0_i32_0, %c0_i32_1 : i32, i32, i32, i32
  }
  func.func @transform_1(%arg0: i32, %arg1: i32) -> (i32, i32, i32) {
    %c0_i32 = arith.constant 0 : i32
    %c0_i32_0 = arith.constant 0 : i32
    %c0_i32_1 = arith.constant 0 : i32
    %c0_i32_2 = arith.constant 0 : i32
    return %c0_i32, %c0_i32_0, %c0_i32_1 : i32, i32, i32
  }
  func.func @transform_2(%arg0: i32, %arg1: i32) -> (i32, i32, i32, i32) {
    %c0_i32 = arith.constant 0 : i32
    %c0_i32_0 = arith.constant 0 : i32
    %c0_i32_1 = arith.constant 0 : i32
    %c0_i32_2 = arith.constant 0 : i32
    return %c0_i32, %arg0, %c0_i32_0, %c0_i32_1 : i32, i32, i32, i32
  }
  func.func @transform_3(%arg0: i32, %arg1: i32) -> (i32, i32, i32) {
    %c0_i32 = arith.constant 0 : i32
    %c0_i32_0 = arith.constant 0 : i32
    %c0_i32_1 = arith.constant 0 : i32
    return %arg0, %c0_i32, %c0_i32_0 : i32, i32, i32
  }
  func.func @transform_4(%arg0: i32, %arg1: i32) -> (i32, i32, i32) {
    %c0_i32 = arith.constant 0 : i32
    %c0_i32_0 = arith.constant 0 : i32
    %c0_i32_1 = arith.constant 0 : i32
    return %arg0, %c0_i32, %c0_i32_0 : i32, i32, i32
  }
}

module attributes {stable_mosaic.version = 11 : i64} {
  func.func @_bn_act_kernel(%arg0: i32, %arg1: memref<2x128xbf16, #tpu.memory_space<vmem>>, %arg2: memref<1x128xf32, #tpu.memory_space<vmem>>, %arg3: memref<1x128xf32, #tpu.memory_space<vmem>>, %arg4: memref<2x128xbf16, #tpu.memory_space<vmem>>) attributes {dimension_semantics = [#tpu.dimension_semantics<parallel>], iteration_bounds = array<i64: 1>, scalar_prefetch = 0 : i64, scratch_operands = 0 : i64, tpu.core_type = #tpu.core_type<tc>, window_params = [{transform_indices = @transform_0, window_bounds = array<i64: 2, 128>}, {pipeline_mode = #tpu.pipeline_mode<synchronous>, transform_indices = @transform_1, window_bounds = array<i64: 1, 128>}, {pipeline_mode = #tpu.pipeline_mode<synchronous>, transform_indices = @transform_2, window_bounds = array<i64: 1, 128>}, {transform_indices = @transform_3, window_bounds = array<i64: 2, 128>}]} {
    %c0 = arith.constant 0 : index
    %c0_0 = arith.constant 0 : index
    %0 = vector.load %arg1[%c0, %c0_0] : memref<2x128xbf16, #tpu.memory_space<vmem>>, vector<2x128xbf16>
    %1 = arith.extf %0 : vector<2x128xbf16> to vector<2x128xf32>
    %c0_1 = arith.constant 0 : index
    %c0_2 = arith.constant 0 : index
    %2 = vector.load %arg2[%c0_1, %c0_2] : memref<1x128xf32, #tpu.memory_space<vmem>>, vector<1x128xf32>
    %3 = vector.broadcast %2 : vector<1x128xf32> to vector<2x128xf32>
    %4 = arith.mulf %1, %3 : vector<2x128xf32>
    %c0_3 = arith.constant 0 : index
    %c0_4 = arith.constant 0 : index
    %5 = vector.load %arg3[%c0_3, %c0_4] : memref<1x128xf32, #tpu.memory_space<vmem>>, vector<1x128xf32>
    %6 = vector.broadcast %5 : vector<1x128xf32> to vector<2x128xf32>
    %7 = arith.addf %4, %6 : vector<2x128xf32>
    %cst = arith.constant 0.000000e+00 : f32
    %8 = vector.broadcast %cst : f32 to vector<2x128xf32>
    %9 = arith.maximumf %7, %8 : vector<2x128xf32>
    %10 = arith.truncf %9 : vector<2x128xf32> to vector<2x128xbf16>
    %c0_5 = arith.constant 0 : index
    %c0_6 = arith.constant 0 : index
    %11 = vector.load %arg4[%c0_5, %c0_6] : memref<2x128xbf16, #tpu.memory_space<vmem>>, vector<2x128xbf16>
    tpu.vector_store %arg4[%c0_5, %c0_6], %10 {strides = array<i32>} : memref<2x128xbf16, #tpu.memory_space<vmem>>, vector<2x128xbf16>,
    return
  }
  func.func @transform_0(%arg0: i32) -> (i32, i32) {
    %c0_i32 = arith.constant 0 : i32
    %c0_i32_0 = arith.constant 0 : i32
    return %arg0, %c0_i32 : i32, i32
  }
  func.func @transform_1(%arg0: i32) -> (i32, i32) {
    %c0_i32 = arith.constant 0 : i32
    %c0_i32_0 = arith.constant 0 : i32
    %c0_i32_1 = arith.constant 0 : i32
    return %c0_i32, %c0_i32_0 : i32, i32
  }
  func.func @transform_2(%arg0: i32) -> (i32, i32) {
    %c0_i32 = arith.constant 0 : i32
    %c0_i32_0 = arith.constant 0 : i32
    %c0_i32_1 = arith.constant 0 : i32
    return %c0_i32, %c0_i32_0 : i32, i32
  }
  func.func @transform_3(%arg0: i32) -> (i32, i32) {
    %c0_i32 = arith.constant 0 : i32
    %c0_i32_0 = arith.constant 0 : i32
    return %arg0, %c0_i32 : i32, i32
  }
}

module attributes {stable_mosaic.version = 11 : i64} {
  func.func @_bn_act_kernel(%arg0: i32, %arg1: memref<2x128xbf16, #tpu.memory_space<vmem>>, %arg2: memref<1x128xf32, #tpu.memory_space<vmem>>, %arg3: memref<1x128xf32, #tpu.memory_space<vmem>>, %arg4: memref<2x128xbf16, #tpu.memory_space<vmem>>) attributes {dimension_semantics = [#tpu.dimension_semantics<parallel>], iteration_bounds = array<i64: 1>, scalar_prefetch = 0 : i64, scratch_operands = 0 : i64, tpu.core_type = #tpu.core_type<tc>, window_params = [{transform_indices = @transform_0, window_bounds = array<i64: 2, 128>}, {pipeline_mode = #tpu.pipeline_mode<synchronous>, transform_indices = @transform_1, window_bounds = array<i64: 1, 128>}, {pipeline_mode = #tpu.pipeline_mode<synchronous>, transform_indices = @transform_2, window_bounds = array<i64: 1, 128>}, {transform_indices = @transform_3, window_bounds = array<i64: 2, 128>}]} {
    %c0 = arith.constant 0 : index
    %c0_0 = arith.constant 0 : index
    %0 = vector.load %arg1[%c0, %c0_0] : memref<2x128xbf16, #tpu.memory_space<vmem>>, vector<2x128xbf16>
    %1 = arith.extf %0 : vector<2x128xbf16> to vector<2x128xf32>
    %c0_1 = arith.constant 0 : index
    %c0_2 = arith.constant 0 : index
    %2 = vector.load %arg2[%c0_1, %c0_2] : memref<1x128xf32, #tpu.memory_space<vmem>>, vector<1x128xf32>
    %3 = vector.broadcast %2 : vector<1x128xf32> to vector<2x128xf32>
    %4 = arith.mulf %1, %3 : vector<2x128xf32>
    %c0_3 = arith.constant 0 : index
    %c0_4 = arith.constant 0 : index
    %5 = vector.load %arg3[%c0_3, %c0_4] : memref<1x128xf32, #tpu.memory_space<vmem>>, vector<1x128xf32>
    %6 = vector.broadcast %5 : vector<1x128xf32> to vector<2x128xf32>
    %7 = arith.addf %4, %6 : vector<2x128xf32>
    %8 = arith.truncf %7 : vector<2x128xf32> to vector<2x128xbf16>
    %c0_5 = arith.constant 0 : index
    %c0_6 = arith.constant 0 : index
    %9 = vector.load %arg4[%c0_5, %c0_6] : memref<2x128xbf16, #tpu.memory_space<vmem>>, vector<2x128xbf16>
    tpu.vector_store %arg4[%c0_5, %c0_6], %8 {strides = array<i32>} : memref<2x128xbf16, #tpu.memory_space<vmem>>, vector<2x128xbf16>,
    return
  }
  func.func @transform_0(%arg0: i32) -> (i32, i32) {
    %c1_i32 = arith.constant 1 : i32
    %c0_i32 = arith.constant 0 : i32
    return %arg0, %c1_i32 : i32, i32
  }
  func.func @transform_1(%arg0: i32) -> (i32, i32) {
    %c0_i32 = arith.constant 0 : i32
    %c0_i32_0 = arith.constant 0 : i32
    %c0_i32_1 = arith.constant 0 : i32
    return %c0_i32, %c0_i32_0 : i32, i32
  }
  func.func @transform_2(%arg0: i32) -> (i32, i32) {
    %c0_i32 = arith.constant 0 : i32
    %c0_i32_0 = arith.constant 0 : i32
    %c0_i32_1 = arith.constant 0 : i32
    return %c0_i32, %c0_i32_0 : i32, i32
  }
  func.func @transform_3(%arg0: i32) -> (i32, i32) {
    %c0_i32 = arith.constant 0 : i32
    %c0_i32_0 = arith.constant 0 : i32
    return %arg0, %c0_i32 : i32, i32
  }
}

module attributes {stable_mosaic.version = 11 : i64} {
  func.func @_conv_pass1_kernel(%arg0: i32, %arg1: i32, %arg2: memref<2x1x3x128xbf16, #tpu.memory_space<vmem>>, %arg3: memref<9x128x128xbf16, #tpu.memory_space<vmem>>, %arg4: memref<2x1x1x128xbf16, #tpu.memory_space<vmem>>, %arg5: memref<1x8x128xf32, #tpu.memory_space<vmem>>, %arg6: memref<1x8x128xf32, #tpu.memory_space<vmem>>, %arg7: memref<2x128xf32, #tpu.memory_space<vmem>>) attributes {dimension_semantics = [#tpu.dimension_semantics<parallel>, #tpu.dimension_semantics<arbitrary>], iteration_bounds = array<i64: 1, 3>, scalar_prefetch = 0 : i64, scratch_operands = 1 : i64, tpu.core_type = #tpu.core_type<tc>, window_params = [{transform_indices = @transform_0, window_bounds = array<i64: 2, 1, 3, 128>}, {pipeline_mode = #tpu.pipeline_mode<synchronous>, transform_indices = @transform_1, window_bounds = array<i64: 9, 128, 128>}, {transform_indices = @transform_2, window_bounds = array<i64: 2, 1, 1, 128>}, {transform_indices = @transform_3, window_bounds = array<i64: 1, 8, 128>}, {transform_indices = @transform_4, window_bounds = array<i64: 1, 8, 128>}]} {
    %c0 = arith.constant 0 : index
    %c0_0 = arith.constant 0 : index
    %c0_1 = arith.constant 0 : index
    %c0_2 = arith.constant 0 : index
    %0 = vector.load %arg2[%c0, %c0_0, %c0_1, %c0_2] : memref<2x1x3x128xbf16, #tpu.memory_space<vmem>>, vector<2x1x3x128xbf16>
    %1 = vector.shape_cast %0 : vector<2x1x3x128xbf16> to vector<2x3x128xbf16>
    %2 = vector.extract_strided_slice %1 {offsets = [0, 0, 0], sizes = [2, 1, 128], strides = [1, 1, 1]} : vector<2x3x128xbf16> to vector<2x1x128xbf16>
    %3 = vector.shape_cast %2 : vector<2x1x128xbf16> to vector<2x128xbf16>
    %c3_i32 = arith.constant 3 : i32
    %4 = arith.muli %arg1, %c3_i32 : i32
    %c0_i32 = arith.constant 0 : i32
    %5 = arith.addi %4, %c0_i32 : i32
    %6 = arith.index_cast %5 : i32 to index
    %c0_3 = arith.constant 0 : index
    %c0_4 = arith.constant 0 : index
    %7 = vector.load %arg3[%6, %c0_3, %c0_4] : memref<9x128x128xbf16, #tpu.memory_space<vmem>>, vector<1x128x128xbf16>
    %8 = vector.shape_cast %7 : vector<1x128x128xbf16> to vector<128x128xbf16>
    %cst = arith.constant dense<0.000000e+00> : vector<2x128xf32>
    %9 = tpu.matmul %3, %8, %cst {dimension_numbers = #tpu.dot_dimension_numbers<[1], [0], [0], [1], [0, 0, 1, 1], [], []>} : vector<2x128xbf16>, vector<128x128xbf16>, vector<2x128xf32> -> vector<2x128xf32>
    %10 = vector.extract_strided_slice %1 {offsets = [0, 1, 0], sizes = [2, 1, 128], strides = [1, 1, 1]} : vector<2x3x128xbf16> to vector<2x1x128xbf16>
    %11 = vector.shape_cast %10 : vector<2x1x128xbf16> to vector<2x128xbf16>
    %c3_i32_5 = arith.constant 3 : i32
    %12 = arith.muli %arg1, %c3_i32_5 : i32
    %c1_i32 = arith.constant 1 : i32
    %13 = arith.addi %12, %c1_i32 : i32
    %14 = arith.index_cast %13 : i32 to index
    %c0_6 = arith.constant 0 : index
    %c0_7 = arith.constant 0 : index
    %15 = vector.load %arg3[%14, %c0_6, %c0_7] : memref<9x128x128xbf16, #tpu.memory_space<vmem>>, vector<1x128x128xbf16>
    %16 = vector.shape_cast %15 : vector<1x128x128xbf16> to vector<128x128xbf16>
    %cst_8 = arith.constant dense<0.000000e+00> : vector<2x128xf32>
    %17 = tpu.matmul %11, %16, %cst_8 {dimension_numbers = #tpu.dot_dimension_numbers<[1], [0], [0], [1], [0, 0, 1, 1], [], []>} : vector<2x128xbf16>, vector<128x128xbf16>, vector<2x128xf32> -> vector<2x128xf32>
    %18 = arith.addf %9, %17 : vector<2x128xf32>
    %19 = vector.extract_strided_slice %1 {offsets = [0, 2, 0], sizes = [2, 1, 128], strides = [1, 1, 1]} : vector<2x3x128xbf16> to vector<2x1x128xbf16>
    %20 = vector.shape_cast %19 : vector<2x1x128xbf16> to vector<2x128xbf16>
    %c3_i32_9 = arith.constant 3 : i32
    %21 = arith.muli %arg1, %c3_i32_9 : i32
    %c2_i32 = arith.constant 2 : i32
    %22 = arith.addi %21, %c2_i32 : i32
    %23 = arith.index_cast %22 : i32 to index
    %c0_10 = arith.constant 0 : index
    %c0_11 = arith.constant 0 : index
    %24 = vector.load %arg3[%23, %c0_10, %c0_11] : memref<9x128x128xbf16, #tpu.memory_space<vmem>>, vector<1x128x128xbf16>
    %25 = vector.shape_cast %24 : vector<1x128x128xbf16> to vector<128x128xbf16>
    %cst_12 = arith.constant dense<0.000000e+00> : vector<2x128xf32>
    %26 = tpu.matmul %20, %25, %cst_12 {dimension_numbers = #tpu.dot_dimension_numbers<[1], [0], [0], [1], [0, 0, 1, 1], [], []>} : vector<2x128xbf16>, vector<128x128xbf16>, vector<2x128xf32> -> vector<2x128xf32>
    %27 = arith.addf %18, %26 : vector<2x128xf32>
    %c0_i32_13 = arith.constant 0 : i32
    %28 = arith.cmpi eq, %arg1, %c0_i32_13 : i32
    %29 = arith.extui %28 : i1 to i32
    %c0_i32_14 = arith.constant 0 : i32
    %30 = arith.cmpi ne, %29, %c0_i32_14 : i32
    scf.if %30 {
      %c0_19 = arith.constant 0 : index
      %c0_20 = arith.constant 0 : index
      %37 = vector.load %arg7[%c0_19, %c0_20] : memref<2x128xf32, #tpu.memory_space<vmem>>, vector<2x128xf32>
      tpu.vector_store %arg7[%c0_19, %c0_20], %27 {strides = array<i32>} : memref<2x128xf32, #tpu.memory_space<vmem>>, vector<2x128xf32>,
    } else {
    }
    %c0_i32_15 = arith.constant 0 : i32
    %31 = arith.cmpi sgt, %arg1, %c0_i32_15 : i32
    %32 = arith.extui %31 : i1 to i32
    %c0_i32_16 = arith.constant 0 : i32
    %33 = arith.cmpi ne, %32, %c0_i32_16 : i32
    scf.if %33 {
      %c0_19 = arith.constant 0 : index
      %c0_20 = arith.constant 0 : index
      %37 = vector.load %arg7[%c0_19, %c0_20] : memref<2x128xf32, #tpu.memory_space<vmem>>, vector<2x128xf32>
      %38 = arith.addf %37, %27 : vector<2x128xf32>
      %c0_21 = arith.constant 0 : index
      %c0_22 = arith.constant 0 : index
      %39 = vector.load %arg7[%c0_21, %c0_22] : memref<2x128xf32, #tpu.memory_space<vmem>>, vector<2x128xf32>
      tpu.vector_store %arg7[%c0_21, %c0_22], %38 {strides = array<i32>} : memref<2x128xf32, #tpu.memory_space<vmem>>, vector<2x128xf32>,
    } else {
    }
    %c2_i32_17 = arith.constant 2 : i32
    %34 = arith.cmpi eq, %arg1, %c2_i32_17 : i32
    %35 = arith.extui %34 : i1 to i32
    %c0_i32_18 = arith.constant 0 : i32
    %36 = arith.cmpi ne, %35, %c0_i32_18 : i32
    scf.if %36 {
      %c0_19 = arith.constant 0 : index
      %c0_20 = arith.constant 0 : index
      %37 = vector.load %arg7[%c0_19, %c0_20] : memref<2x128xf32, #tpu.memory_space<vmem>>, vector<2x128xf32>
      %38 = vector.shape_cast %37 : vector<2x128xf32> to vector<2x1x128xf32>
      %39 = arith.truncf %38 : vector<2x1x128xf32> to vector<2x1x128xbf16>
      %c0_21 = arith.constant 0 : index
      %c0_22 = arith.constant 0 : index
      %c0_23 = arith.constant 0 : index
      %c0_24 = arith.constant 0 : index
      %40 = vector.load %arg4[%c0_21, %c0_22, %c0_23, %c0_24] : memref<2x1x1x128xbf16, #tpu.memory_space<vmem>>, vector<2x1x1x128xbf16>
      %41 = vector.shape_cast %40 : vector<2x1x1x128xbf16> to vector<2x1x128xbf16>
      %42 = vector.shape_cast %39 : vector<2x1x128xbf16> to vector<2x1x1x128xbf16>
      tpu.vector_store %arg4[%c0_21, %c0_22, %c0_23, %c0_24], %42 {strides = array<i32>} : memref<2x1x1x128xbf16, #tpu.memory_space<vmem>>, vector<2x1x1x128xbf16>,
      %cst_25 = arith.constant dense<0.000000e+00> : vector<128xf32>
      %43 = vector.multi_reduction <add>, %37, %cst_25 [0] : vector<2x128xf32> to vector<128xf32>
      %44 = vector.shape_cast %43 : vector<128xf32> to vector<1x128xf32>
      %45 = arith.mulf %37, %37 : vector<2x128xf32>
      %cst_26 = arith.constant dense<0.000000e+00> : vector<128xf32>
      %46 = vector.multi_reduction <add>, %45, %cst_26 [0] : vector<2x128xf32> to vector<128xf32>
      %47 = vector.shape_cast %46 : vector<128xf32> to vector<1x128xf32>
      %48 = vector.shape_cast %44 : vector<1x128xf32> to vector<1x128xf32>
      %49 = vector.broadcast %48 : vector<1x128xf32> to vector<8x128xf32>
      %c0_27 = arith.constant 0 : index
      %c0_28 = arith.constant 0 : index
      %c0_29 = arith.constant 0 : index
      %50 = vector.load %arg5[%c0_27, %c0_28, %c0_29] : memref<1x8x128xf32, #tpu.memory_space<vmem>>, vector<1x8x128xf32>
      %51 = vector.shape_cast %50 : vector<1x8x128xf32> to vector<8x128xf32>
      %52 = vector.shape_cast %49 : vector<8x128xf32> to vector<1x8x128xf32>
      tpu.vector_store %arg5[%c0_27, %c0_28, %c0_29], %52 {strides = array<i32>} : memref<1x8x128xf32, #tpu.memory_space<vmem>>, vector<1x8x128xf32>,
      %53 = vector.shape_cast %47 : vector<1x128xf32> to vector<1x128xf32>
      %54 = vector.broadcast %53 : vector<1x128xf32> to vector<8x128xf32>
      %c0_30 = arith.constant 0 : index
      %c0_31 = arith.constant 0 : index
      %c0_32 = arith.constant 0 : index
      %55 = vector.load %arg6[%c0_30, %c0_31, %c0_32] : memref<1x8x128xf32, #tpu.memory_space<vmem>>, vector<1x8x128xf32>
      %56 = vector.shape_cast %55 : vector<1x8x128xf32> to vector<8x128xf32>
      %57 = vector.shape_cast %54 : vector<8x128xf32> to vector<1x8x128xf32>
      tpu.vector_store %arg6[%c0_30, %c0_31, %c0_32], %57 {strides = array<i32>} : memref<1x8x128xf32, #tpu.memory_space<vmem>>, vector<1x8x128xf32>,
    } else {
    }
    return
  }
  func.func @transform_0(%arg0: i32, %arg1: i32) -> (i32, i32, i32, i32) {
    %c1_i32 = arith.constant 1 : i32
    %0 = arith.muli %c1_i32, %arg0 : i32
    %1 = arith.addi %0, %arg1 : i32
    %c0_i32 = arith.constant 0 : i32
    %c0_i32_0 = arith.constant 0 : i32
    %c0_i32_1 = arith.constant 0 : i32
    %c0_i32_2 = arith.constant 0 : i32
    return %c0_i32, %1, %c0_i32_0, %c0_i32_1 : i32, i32, i32, i32
  }
  func.func @transform_1(%arg0: i32, %arg1: i32) -> (i32, i32, i32) {
    %c0_i32 = arith.constant 0 : i32
    %c0_i32_0 = arith.constant 0 : i32
    %c0_i32_1 = arith.constant 0 : i32
    %c0_i32_2 = arith.constant 0 : i32
    return %c0_i32, %c0_i32_0, %c0_i32_1 : i32, i32, i32
  }
  func.func @transform_2(%arg0: i32, %arg1: i32) -> (i32, i32, i32, i32) {
    %c0_i32 = arith.constant 0 : i32
    %c0_i32_0 = arith.constant 0 : i32
    %c0_i32_1 = arith.constant 0 : i32
    %c0_i32_2 = arith.constant 0 : i32
    return %c0_i32, %arg0, %c0_i32_0, %c0_i32_1 : i32, i32, i32, i32
  }
  func.func @transform_3(%arg0: i32, %arg1: i32) -> (i32, i32, i32) {
    %c0_i32 = arith.constant 0 : i32
    %c0_i32_0 = arith.constant 0 : i32
    %c0_i32_1 = arith.constant 0 : i32
    return %arg0, %c0_i32, %c0_i32_0 : i32, i32, i32
  }
  func.func @transform_4(%arg0: i32, %arg1: i32) -> (i32, i32, i32) {
    %c0_i32 = arith.constant 0 : i32
    %c0_i32_0 = arith.constant 0 : i32
    %c0_i32_1 = arith.constant 0 : i32
    return %arg0, %c0_i32, %c0_i32_0 : i32, i32, i32
  }
}

module attributes {stable_mosaic.version = 11 : i64} {
  func.func @_bn_act_kernel(%arg0: i32, %arg1: memref<2x128xbf16, #tpu.memory_space<vmem>>, %arg2: memref<1x128xf32, #tpu.memory_space<vmem>>, %arg3: memref<1x128xf32, #tpu.memory_space<vmem>>, %arg4: memref<2x128xbf16, #tpu.memory_space<vmem>>, %arg5: memref<2x128xbf16, #tpu.memory_space<vmem>>) attributes {dimension_semantics = [#tpu.dimension_semantics<parallel>], iteration_bounds = array<i64: 1>, scalar_prefetch = 0 : i64, scratch_operands = 0 : i64, tpu.core_type = #tpu.core_type<tc>, window_params = [{transform_indices = @transform_0, window_bounds = array<i64: 2, 128>}, {pipeline_mode = #tpu.pipeline_mode<synchronous>, transform_indices = @transform_1, window_bounds = array<i64: 1, 128>}, {pipeline_mode = #tpu.pipeline_mode<synchronous>, transform_indices = @transform_2, window_bounds = array<i64: 1, 128>}, {transform_indices = @transform_3, window_bounds = array<i64: 2, 128>}, {transform_indices = @transform_4, window_bounds = array<i64: 2, 128>}]} {
    %c0 = arith.constant 0 : index
    %c0_0 = arith.constant 0 : index
    %0 = vector.load %arg1[%c0, %c0_0] : memref<2x128xbf16, #tpu.memory_space<vmem>>, vector<2x128xbf16>
    %1 = arith.extf %0 : vector<2x128xbf16> to vector<2x128xf32>
    %c0_1 = arith.constant 0 : index
    %c0_2 = arith.constant 0 : index
    %2 = vector.load %arg2[%c0_1, %c0_2] : memref<1x128xf32, #tpu.memory_space<vmem>>, vector<1x128xf32>
    %3 = vector.broadcast %2 : vector<1x128xf32> to vector<2x128xf32>
    %4 = arith.mulf %1, %3 : vector<2x128xf32>
    %c0_3 = arith.constant 0 : index
    %c0_4 = arith.constant 0 : index
    %5 = vector.load %arg3[%c0_3, %c0_4] : memref<1x128xf32, #tpu.memory_space<vmem>>, vector<1x128xf32>
    %6 = vector.broadcast %5 : vector<1x128xf32> to vector<2x128xf32>
    %7 = arith.addf %4, %6 : vector<2x128xf32>
    %c0_5 = arith.constant 0 : index
    %c0_6 = arith.constant 0 : index
    %8 = vector.load %arg4[%c0_5, %c0_6] : memref<2x128xbf16, #tpu.memory_space<vmem>>, vector<2x128xbf16>
    %9 = arith.extf %8 : vector<2x128xbf16> to vector<2x128xf32>
    %10 = arith.addf %7, %9 : vector<2x128xf32>
    %cst = arith.constant 0.000000e+00 : f32
    %11 = vector.broadcast %cst : f32 to vector<2x128xf32>
    %12 = arith.maximumf %10, %11 : vector<2x128xf32>
    %13 = arith.truncf %12 : vector<2x128xf32> to vector<2x128xbf16>
    %c0_7 = arith.constant 0 : index
    %c0_8 = arith.constant 0 : index
    %14 = vector.load %arg5[%c0_7, %c0_8] : memref<2x128xbf16, #tpu.memory_space<vmem>>, vector<2x128xbf16>
    tpu.vector_store %arg5[%c0_7, %c0_8], %13 {strides = array<i32>} : memref<2x128xbf16, #tpu.memory_space<vmem>>, vector<2x128xbf16>,
    return
  }
  func.func @transform_0(%arg0: i32) -> (i32, i32) {
    %c0_i32 = arith.constant 0 : i32
    %c0_i32_0 = arith.constant 0 : i32
    return %arg0, %c0_i32 : i32, i32
  }
  func.func @transform_1(%arg0: i32) -> (i32, i32) {
    %c0_i32 = arith.constant 0 : i32
    %c0_i32_0 = arith.constant 0 : i32
    %c0_i32_1 = arith.constant 0 : i32
    return %c0_i32, %c0_i32_0 : i32, i32
  }
  func.func @transform_2(%arg0: i32) -> (i32, i32) {
    %c0_i32 = arith.constant 0 : i32
    %c0_i32_0 = arith.constant 0 : i32
    %c0_i32_1 = arith.constant 0 : i32
    return %c0_i32, %c0_i32_0 : i32, i32
  }
  func.func @transform_3(%arg0: i32) -> (i32, i32) {
    %c0_i32 = arith.constant 0 : i32
    %c0_i32_0 = arith.constant 0 : i32
    return %arg0, %c0_i32 : i32, i32
  }
  func.func @transform_4(%arg0: i32) -> (i32, i32) {
    %c0_i32 = arith.constant 0 : i32
    %c0_i32_0 = arith.constant 0 : i32
    return %arg0, %c0_i32 : i32, i32
  }
}

module attributes {stable_mosaic.version = 11 : i64} {
  func.func @_avgpool_fc_kernel(%arg0: memref<2x1x128xbf16, #tpu.memory_space<vmem>>, %arg1: memref<128x128xbf16, #tpu.memory_space<vmem>>, %arg2: memref<1x128xf32, #tpu.memory_space<vmem>>, %arg3: memref<2x128xf32, #tpu.memory_space<vmem>>) attributes {dimension_semantics = [], scalar_prefetch = 0 : i64, scratch_operands = 0 : i64, tpu.core_type = #tpu.core_type<tc>} {
    %c0 = arith.constant 0 : index
    %c0_0 = arith.constant 0 : index
    %c0_1 = arith.constant 0 : index
    %0 = vector.load %arg0[%c0, %c0_0, %c0_1] : memref<2x1x128xbf16, #tpu.memory_space<vmem>>, vector<2x1x128xbf16>
    %1 = arith.extf %0 : vector<2x1x128xbf16> to vector<2x1x128xf32>
    %cst = arith.constant dense<0.000000e+00> : vector<2x128xf32>
    %2 = vector.multi_reduction <add>, %1, %cst [1] : vector<2x1x128xf32> to vector<2x128xf32>
    %cst_2 = arith.constant 1.000000e+00 : f32
    %3 = vector.broadcast %cst_2 : f32 to vector<2x128xf32>
    %4 = arith.mulf %2, %3 : vector<2x128xf32>
    %5 = arith.truncf %4 : vector<2x128xf32> to vector<2x128xbf16>
    %c0_3 = arith.constant 0 : index
    %c0_4 = arith.constant 0 : index
    %6 = vector.load %arg1[%c0_3, %c0_4] : memref<128x128xbf16, #tpu.memory_space<vmem>>, vector<128x128xbf16>
    %cst_5 = arith.constant dense<0.000000e+00> : vector<2x128xf32>
    %7 = tpu.matmul %5, %6, %cst_5 {dimension_numbers = #tpu.dot_dimension_numbers<[1], [0], [0], [1], [0, 0, 1, 1], [], []>} : vector<2x128xbf16>, vector<128x128xbf16>, vector<2x128xf32> -> vector<2x128xf32>
    %c0_6 = arith.constant 0 : index
    %c0_7 = arith.constant 0 : index
    %8 = vector.load %arg2[%c0_6, %c0_7] : memref<1x128xf32, #tpu.memory_space<vmem>>, vector<1x128xf32>
    %9 = vector.broadcast %8 : vector<1x128xf32> to vector<2x128xf32>
    %10 = arith.addf %7, %9 : vector<2x128xf32>
    %c0_8 = arith.constant 0 : index
    %c0_9 = arith.constant 0 : index
    %11 = vector.load %arg3[%c0_8, %c0_9] : memref<2x128xf32, #tpu.memory_space<vmem>>, vector<2x128xf32>
    tpu.vector_store %arg3[%c0_8, %c0_9], %10 {strides = array<i32>} : memref<2x128xf32, #tpu.memory_space<vmem>>, vector<2x128xf32>,
    return
  }
}

</mosaic_0001>

<bundles_post_ra>
// kernel: _lambda_.24
= control target key start
LH: loop header
LB: loop body
LE: loop exit
PB: predicated region body
PF: predicated region fallthrough
CT: control target
= control target key end

     0   :  { %s1502_s0 = inlined_call_operand.vmem [shape: bf16[512,128], index: 0, kind: input, shape index: {}]   ;;  %s1503_s1 = inlined_call_operand.vmem [shape: f32[1,128], index: 1, kind: input, shape index: {}]   ;;  %s1504_s2 = inlined_call_operand.vmem [shape: f32[1,128], index: 2, kind: input, shape index: {}]   ;;  %s1505_s3 = inlined_call_operand.vmem [shape: bf16[512,128], index: 3, kind: output, shape index: {}]  }
   0x1   :  { %v803_v0 = vld [vmem:[%s1502_s0] sm:$0xff]   ;;  %v1090_v4 = vld [vmem:[%s1502_s0 + $0x8] sm:$0xff]   ;;  %v1091_v5 = vld [vmem:[%s1502_s0 + $0x10] sm:$0xff]  }
   0x2   :  { %v1178_v1 = vld [vmem:[%s1503_s1] ss:$0 sm:$0xff]  ;;  %v804_v2 = vunpack.c.l.bf16 %v803_v0  ;;  %v805_v3 = vunpack.c.h.bf16 %v803_v0  ;;  %v1092_v6 = vld [vmem:[%s1502_s0 + $0x18] sm:$0xff]   ;;  %v808_v8 = vunpack.c.l.bf16 %v1090_v4  ;;  %v809_v9 = vunpack.c.h.bf16 %v1090_v4  ;;  %v1094_v33 = vld [vmem:[%s1502_s0 + $0x28] sm:$0xff]  }
   0x3   :  { %v1192_v7 = vld [vmem:[%s1504_s2] ss:$0 sm:$0xff]  ;;  %v812_v10 = vunpack.c.l.bf16 %v1091_v5  ;;  %v813_v11 = vunpack.c.h.bf16 %v1091_v5  ;;  %v816_v14 = vunpack.c.l.bf16 %v1092_v6  ;;  %v817_v15 = vunpack.c.h.bf16 %v1092_v6  ;;  %v1095_v38 = vld [vmem:[%s1502_s0 + $0x30] sm:$0xff]   ;;  %v1096_v43 = vld [vmem:[%s1502_s0 + $0x38] sm:$0xff]  }
   0x4   :  { %v149_v12 = vmul.f32 %v804_v2, %v1178_v1  ;;  %v150_v13 = vmul.f32 %v805_v3, %v1178_v1  ;;  %v151_v16 = vmul.f32 %v808_v8, %v1178_v1  ;;  %v152_v17 = vmul.f32 %v809_v9, %v1178_v1  ;;  %v1093_v28 = vld [vmem:[%s1502_s0 + $0x20] sm:$0xff]  }
   0x5   :  { %v153_v18 = vmul.f32 %v812_v10, %v1178_v1  ;;  %v154_v19 = vmul.f32 %v813_v11, %v1178_v1  ;;  %v155_v22 = vmul.f32 %v816_v14, %v1178_v1  ;;  %v156_v23 = vmul.f32 %v817_v15, %v1178_v1  ;;  %v1097_v0 = vld [vmem:[%s1502_s0 + $0x40] sm:$0xff]   ;;  %v1098_v11 = vld [vmem:[%s1502_s0 + $0x48] sm:$0xff]  }
   0x6   :  { %v220_v20 = vadd.f32 %v1192_v7, %v149_v12  ;;  %v221_v21 = vadd.f32 %v1192_v7, %v150_v13  ;;  %v222_v24 = vadd.f32 %v1192_v7, %v151_v16  ;;  %v223_v25 = vadd.f32 %v1192_v7, %v152_v17  ;;  %v1099_v16 = vld [vmem:[%s1502_s0 + $0x50] sm:$0xff]  }
   0x7   :  { %v224_v26 = vadd.f32 %v1192_v7, %v153_v18  ;;  %v225_v27 = vadd.f32 %v1192_v7, %v154_v19  ;;  %v226_v31 = vadd.f32 %v1192_v7, %v155_v22  ;;  %v227_v32 = vadd.f32 %v1192_v7, %v156_v23 }
   0x8   :  { %v284_v29 = vmax.f32 %v220_v20, 0.0  ;;  %v285_v30 = vmax.f32 %v221_v21, 0.0  ;;  %v286_v34 = vmax.f32 %v222_v24, 0.0  ;;  %v287_v35 = vmax.f32 %v223_v25, 0.0  ;;  %v1100_v25 = vld [vmem:[%s1502_s0 + $0x58] sm:$0xff]  }
   0x9   :  { %v288_v36 = vmax.f32 %v224_v26, 0.0  ;;  %v289_v37 = vmax.f32 %v225_v27, 0.0  ;;  %v290_v40 = vmax.f32 %v226_v31, 0.0  ;;  %v291_v41 = vmax.f32 %v227_v32, 0.0 }
   0xa   :  { %v933_v39 = vpack.c.bf16 %v285_v30, %v284_v29  ;;  %v820_v42 = vunpack.c.l.bf16 %v1093_v28  ;;  %v938_v44 = vpack.c.bf16 %v287_v35, %v286_v34  ;;  %v821_v46 = vunpack.c.h.bf16 %v1093_v28 }
   0xb   :  { %v943_v45 = vpack.c.bf16 %v289_v37, %v288_v36  ;;  %v824_v47 = vunpack.c.l.bf16 %v1094_v33  ;;  %v948_v48 = vpack.c.bf16 %v291_v41, %v290_v40  ;;  %v825_v50 = vunpack.c.h.bf16 %v1094_v33 }
   0xc   :  { %934 = vst [vmem:[%s1505_s3] sm:$0xff] %v933_v39   ;;  %v157_v49 = vmul.f32 %v820_v42, %v1178_v1  ;;  %v828_v51 = vunpack.c.l.bf16 %v1095_v38  ;;  %1121 = vst [vmem:[%s1505_s3 + $0x8] sm:$0xff] %v938_v44   ;;  %v158_v52 = vmul.f32 %v821_v46, %v1178_v1  ;;  %v829_v54 = vunpack.c.h.bf16 %v1095_v38  ;;  %v1101_v38 = vld [vmem:[%s1502_s0 + $0x60] sm:$0xff]  }
   0xd   :  { %1122 = vst [vmem:[%s1505_s3 + $0x10] sm:$0xff] %v943_v45   ;;  %v159_v53 = vmul.f32 %v824_v47, %v1178_v1  ;;  %v832_v55 = vunpack.c.l.bf16 %v1096_v43  ;;  %1123 = vst [vmem:[%s1505_s3 + $0x18] sm:$0xff] %v948_v48   ;;  %v160_v57 = vmul.f32 %v825_v50, %v1178_v1  ;;  %v833_v59 = vunpack.c.h.bf16 %v1096_v43 }
   0xe   :  { %v228_v56 = vadd.f32 %v1192_v7, %v157_v49  ;;  %v161_v58 = vmul.f32 %v828_v51, %v1178_v1  ;;  %v229_v60 = vadd.f32 %v1192_v7, %v158_v52  ;;  %v162_v62 = vmul.f32 %v829_v54, %v1178_v1  ;;  %v1102_v51 = vld [vmem:[%s1502_s0 + $0x68] sm:$0xff]  }
   0xf   :  { %v230_v61 = vadd.f32 %v1192_v7, %v159_v53  ;;  %v163_v63 = vmul.f32 %v832_v55, %v1178_v1  ;;  %v231_v3 = vadd.f32 %v1192_v7, %v160_v57  ;;  %v164_v5 = vmul.f32 %v833_v59, %v1178_v1 }
  0x10   :  { %v292_v2 = vmax.f32 %v228_v56, 0.0  ;;  %v232_v4 = vadd.f32 %v1192_v7, %v161_v58  ;;  %v293_v6 = vmax.f32 %v229_v60, 0.0  ;;  %v233_v9 = vadd.f32 %v1192_v7, %v162_v62  ;;  %v1103_v60 = vld [vmem:[%s1502_s0 + $0x70] sm:$0xff]  }
  0x11   :  { %v294_v8 = vmax.f32 %v230_v61, 0.0  ;;  %v234_v10 = vadd.f32 %v1192_v7, %v163_v63  ;;  %v295_v12 = vmax.f32 %v231_v3, 0.0  ;;  %v235_v14 = vadd.f32 %v1192_v7, %v164_v5 }
  0x12   :  { %v296_v13 = vmax.f32 %v232_v4, 0.0  ;;  %v836_v15 = vunpack.c.l.bf16 %v1097_v0  ;;  %v953_v17 = vpack.c.bf16 %v293_v6, %v292_v2  ;;  %v297_v18 = vmax.f32 %v233_v9, 0.0  ;;  %v1104_v2 = vld [vmem:[%s1502_s0 + $0x78] sm:$0xff]  }
  0x13   :  { %v298_v19 = vmax.f32 %v234_v10, 0.0  ;;  %v837_v20 = vunpack.c.h.bf16 %v1097_v0  ;;  %v958_v21 = vpack.c.bf16 %v295_v12, %v294_v8  ;;  %v299_v22 = vmax.f32 %v235_v14, 0.0  ;;  %v1105_v12 = vld [vmem:[%s1502_s0 + $0x80] sm:$0xff]  }
  0x14   :  { %v165_v23 = vmul.f32 %v836_v15, %v1178_v1  ;;  %v840_v24 = vunpack.c.l.bf16 %v1098_v11  ;;  %1124 = vst [vmem:[%s1505_s3 + $0x20] sm:$0xff] %v953_v17   ;;  %v963_v26 = vpack.c.bf16 %v297_v18, %v296_v13  ;;  %v841_v28 = vunpack.c.h.bf16 %v1098_v11 }
  0x15   :  { %v166_v27 = vmul.f32 %v837_v20, %v1178_v1  ;;  %v844_v29 = vunpack.c.l.bf16 %v1099_v16  ;;  %1125 = vst [vmem:[%s1505_s3 + $0x28] sm:$0xff] %v958_v21   ;;  %v968_v30 = vpack.c.bf16 %v299_v22, %v298_v19  ;;  %v845_v33 = vunpack.c.h.bf16 %v1099_v16 }
  0x16   :  { %v236_v31 = vadd.f32 %v1192_v7, %v165_v23  ;;  %v167_v32 = vmul.f32 %v840_v24, %v1178_v1  ;;  %1126 = vst [vmem:[%s1505_s3 + $0x30] sm:$0xff] %v963_v26   ;;  %v168_v35 = vmul.f32 %v841_v28, %v1178_v1  ;;  %v848_v37 = vunpack.c.l.bf16 %v1100_v25 }
  0x17   :  { %v237_v34 = vadd.f32 %v1192_v7, %v166_v27  ;;  %v169_v36 = vmul.f32 %v844_v29, %v1178_v1  ;;  %1127 = vst [vmem:[%s1505_s3 + $0x38] sm:$0xff] %v968_v30   ;;  %v170_v41 = vmul.f32 %v845_v33, %v1178_v1  ;;  %v849_v42 = vunpack.c.h.bf16 %v1100_v25  ;;  %v1106_v29 = vld [vmem:[%s1502_s0 + $0x88] sm:$0xff]  }
  0x18   :  { %v300_v39 = vmax.f32 %v236_v31, 0.0  ;;  %v238_v40 = vadd.f32 %v1192_v7, %v167_v32  ;;  %v239_v44 = vadd.f32 %v1192_v7, %v168_v35  ;;  %v171_v46 = vmul.f32 %v848_v37, %v1178_v1 }
  0x19   :  { %v301_v43 = vmax.f32 %v237_v34, 0.0  ;;  %v240_v45 = vadd.f32 %v1192_v7, %v169_v36  ;;  %v241_v48 = vadd.f32 %v1192_v7, %v170_v41  ;;  %v172_v49 = vmul.f32 %v849_v42, %v1178_v1  ;;  %v1107_v34 = vld [vmem:[%s1502_s0 + $0x90] sm:$0xff]  }
  0x1a   :  { %v302_v47 = vmax.f32 %v238_v40, 0.0  ;;  %v852_v50 = vunpack.c.l.bf16 %v1101_v38  ;;  %v303_v53 = vmax.f32 %v239_v44, 0.0  ;;  %v242_v55 = vadd.f32 %v1192_v7, %v171_v46 }
  0x1b   :  { %v973_v52 = vpack.c.bf16 %v301_v43, %v300_v39  ;;  %v304_v54 = vmax.f32 %v240_v45, 0.0  ;;  %v305_v56 = vmax.f32 %v241_v48, 0.0  ;;  %v243_v57 = vadd.f32 %v1192_v7, %v172_v49  ;;  %v1108_v43 = vld [vmem:[%s1502_s0 + $0x98] sm:$0xff]  }
  0x1c   :  { %v853_v58 = vunpack.c.h.bf16 %v1101_v38  ;;  %v173_v59 = vmul.f32 %v852_v50, %v1178_v1  ;;  %v978_v61 = vpack.c.bf16 %v303_v53, %v302_v47  ;;  %v306_v62 = vmax.f32 %v242_v55, 0.0 }
  0x1d   :  { %1128 = vst [vmem:[%s1505_s3 + $0x40] sm:$0xff] %v973_v52   ;;  %v856_v63 = vunpack.c.l.bf16 %v1102_v51  ;;  %v857_v0 = vunpack.c.h.bf16 %v1102_v51  ;;  %v983_v3 = vpack.c.bf16 %v305_v56, %v304_v54  ;;  %v307_v4 = vmax.f32 %v243_v57, 0.0  ;;  %v1109_v56 = vld [vmem:[%s1502_s0 + $0xa0] sm:$0xff]  }
  0x1e   :  { %v174_v5 = vmul.f32 %v853_v58, %v1178_v1  ;;  %v244_v6 = vadd.f32 %v1192_v7, %v173_v59  ;;  %1129 = vst [vmem:[%s1505_s3 + $0x48] sm:$0xff] %v978_v61   ;;  %v860_v10 = vunpack.c.l.bf16 %v1103_v60  ;;  %v861_v11 = vunpack.c.h.bf16 %v1103_v60 }
  0x1f   :  { %v175_v8 = vmul.f32 %v856_v63, %v1178_v1  ;;  %v176_v9 = vmul.f32 %v857_v0, %v1178_v1  ;;  %1130 = vst [vmem:[%s1505_s3 + $0x50] sm:$0xff] %v983_v3   ;;  %v988_v13 = vpack.c.bf16 %v307_v4, %v306_v62  ;;  %v864_v16 = vunpack.c.l.bf16 %v1104_v2 }
  0x20   :  { %v245_v14 = vadd.f32 %v1192_v7, %v174_v5  ;;  %v308_v15 = vmax.f32 %v244_v6, 0.0  ;;  %v177_v19 = vmul.f32 %v860_v10, %v1178_v1  ;;  %v178_v20 = vmul.f32 %v861_v11, %v1178_v1 }
  0x21   :  { %v246_v17 = vadd.f32 %v1192_v7, %v175_v8  ;;  %v247_v18 = vadd.f32 %v1192_v7, %v176_v9  ;;  %1131 = vst [vmem:[%s1505_s3 + $0x58] sm:$0xff] %v988_v13   ;;  %v865_v22 = vunpack.c.h.bf16 %v1104_v2  ;;  %v179_v23 = vmul.f32 %v864_v16, %v1178_v1  ;;  %v1110_v2 = vld [vmem:[%s1502_s0 + $0xa8] sm:$0xff]   ;;  %v1111_v16 = vld [vmem:[%s1502_s0 + $0xb0] sm:$0xff]  }
  0x22   :  { %v309_v21 = vmax.f32 %v245_v14, 0.0  ;;  %v868_v24 = vunpack.c.l.bf16 %v1105_v12  ;;  %v248_v27 = vadd.f32 %v1192_v7, %v177_v19  ;;  %v249_v28 = vadd.f32 %v1192_v7, %v178_v20 }
  0x23   :  { %v310_v25 = vmax.f32 %v246_v17, 0.0  ;;  %v311_v26 = vmax.f32 %v247_v18, 0.0  ;;  %v180_v31 = vmul.f32 %v865_v22, %v1178_v1  ;;  %v250_v32 = vadd.f32 %v1192_v7, %v179_v23 }
  0x24   :  { %v993_v30 = vpack.c.bf16 %v309_v21, %v308_v15  ;;  %v869_v33 = vunpack.c.h.bf16 %v1105_v12  ;;  %v312_v36 = vmax.f32 %v248_v27, 0.0  ;;  %v313_v37 = vmax.f32 %v249_v28, 0.0  ;;  %v1112_v21 = vld [vmem:[%s1502_s0 + $0xb8] sm:$0xff]  }
  0x25   :  { %v998_v35 = vpack.c.bf16 %v311_v26, %v310_v25  ;;  %v181_v38 = vmul.f32 %v868_v24, %v1178_v1  ;;  %v251_v39 = vadd.f32 %v1192_v7, %v180_v31  ;;  %v314_v40 = vmax.f32 %v250_v32, 0.0 }
  0x26   :  { %1132 = vst [vmem:[%s1505_s3 + $0x60] sm:$0xff] %v993_v30   ;;  %v182_v41 = vmul.f32 %v869_v33, %v1178_v1  ;;  %v872_v42 = vunpack.c.l.bf16 %v1106_v29  ;;  %v1003_v44 = vpack.c.bf16 %v313_v37, %v312_v36  ;;  %v873_v46 = vunpack.c.h.bf16 %v1106_v29 }
  0x27   :  { %1133 = vst [vmem:[%s1505_s3 + $0x68] sm:$0xff] %v998_v35   ;;  %v252_v45 = vadd.f32 %v1192_v7, %v181_v38  ;;  %v876_v47 = vunpack.c.l.bf16 %v1107_v34  ;;  %v315_v48 = vmax.f32 %v251_v39, 0.0  ;;  %v877_v51 = vunpack.c.h.bf16 %v1107_v34  ;;  %v1113_v34 = vld [vmem:[%s1502_s0 + $0xc0] sm:$0xff]  }
  0x28   :  { %v253_v49 = vadd.f32 %v1192_v7, %v182_v41  ;;  %v183_v50 = vmul.f32 %v872_v42, %v1178_v1  ;;  %1134 = vst [vmem:[%s1505_s3 + $0x70] sm:$0xff] %v1003_v44   ;;  %v184_v53 = vmul.f32 %v873_v46, %v1178_v1  ;;  %v880_v55 = vunpack.c.l.bf16 %v1108_v43 }
  0x29   :  { %v316_v52 = vmax.f32 %v252_v45, 0.0  ;;  %v185_v54 = vmul.f32 %v876_v47, %v1178_v1  ;;  %v1008_v57 = vpack.c.bf16 %v315_v48, %v314_v40  ;;  %v186_v60 = vmul.f32 %v877_v51, %v1178_v1  ;;  %v1114_v47 = vld [vmem:[%s1502_s0 + $0xc8] sm:$0xff]  }
  0x2a   :  { %v317_v58 = vmax.f32 %v253_v49, 0.0  ;;  %v254_v59 = vadd.f32 %v1192_v7, %v183_v50  ;;  %v255_v61 = vadd.f32 %v1192_v7, %v184_v53  ;;  %v881_v63 = vunpack.c.h.bf16 %v1108_v43 }
  0x2b   :  { %v256_v62 = vadd.f32 %v1192_v7, %v185_v54  ;;  %v187_v0 = vmul.f32 %v880_v55, %v1178_v1  ;;  %1135 = vst [vmem:[%s1505_s3 + $0x78] sm:$0xff] %v1008_v57   ;;  %v257_v5 = vadd.f32 %v1192_v7, %v186_v60  ;;  %v884_v6 = vunpack.c.l.bf16 %v1109_v56 }
  0x2c   :  { %v1013_v3 = vpack.c.bf16 %v317_v58, %v316_v52  ;;  %v318_v4 = vmax.f32 %v254_v59, 0.0  ;;  %v319_v8 = vmax.f32 %v255_v61, 0.0  ;;  %v188_v10 = vmul.f32 %v881_v63, %v1178_v1  ;;  %v1115_v52 = vld [vmem:[%s1502_s0 + $0xd0] sm:$0xff]   ;;  %v1116_v61 = vld [vmem:[%s1502_s0 + $0xd8] sm:$0xff]  }
  0x2d   :  { %v320_v9 = vmax.f32 %v256_v62, 0.0  ;;  %v258_v11 = vadd.f32 %v1192_v7, %v187_v0  ;;  %v321_v12 = vmax.f32 %v257_v5, 0.0  ;;  %v885_v13 = vunpack.c.h.bf16 %v1109_v56 }
  0x2e   :  { %1136 = vst [vmem:[%s1505_s3 + $0x80] sm:$0xff] %v1013_v3   ;;  %v189_v14 = vmul.f32 %v884_v6, %v1178_v1  ;;  %v888_v15 = vunpack.c.l.bf16 %v1110_v2  ;;  %v1018_v17 = vpack.c.bf16 %v319_v8, %v318_v4  ;;  %v259_v18 = vadd.f32 %v1192_v7, %v188_v10 }
  0x2f   :  { %v322_v19 = vmax.f32 %v258_v11, 0.0  ;;  %v889_v20 = vunpack.c.h.bf16 %v1110_v2  ;;  %v1023_v22 = vpack.c.bf16 %v321_v12, %v320_v9  ;;  %v190_v23 = vmul.f32 %v885_v13, %v1178_v1  ;;  %v1117_v12 = vld [vmem:[%s1502_s0 + $0xe0] sm:$0xff]  }
  0x30   :  { %v260_v24 = vadd.f32 %v1192_v7, %v189_v14  ;;  %v191_v25 = vmul.f32 %v888_v15, %v1178_v1  ;;  %1137 = vst [vmem:[%s1505_s3 + $0x88] sm:$0xff] %v1018_v17   ;;  %v323_v26 = vmax.f32 %v259_v18, 0.0  ;;  %v892_v28 = vunpack.c.l.bf16 %v1111_v16 }
  0x31   :  { %v192_v27 = vmul.f32 %v889_v20, %v1178_v1  ;;  %v893_v29 = vunpack.c.h.bf16 %v1111_v16  ;;  %1138 = vst [vmem:[%s1505_s3 + $0x90] sm:$0xff] %v1023_v22   ;;  %v261_v30 = vadd.f32 %v1192_v7, %v190_v23  ;;  %v896_v33 = vunpack.c.l.bf16 %v1112_v21 }
  0x32   :  { %v324_v31 = vmax.f32 %v260_v24, 0.0  ;;  %v262_v32 = vadd.f32 %v1192_v7, %v191_v25  ;;  %v1028_v35 = vpack.c.bf16 %v323_v26, %v322_v19  ;;  %v193_v37 = vmul.f32 %v892_v28, %v1178_v1 }
  0x33   :  { %v263_v36 = vadd.f32 %v1192_v7, %v192_v27  ;;  %v194_v38 = vmul.f32 %v893_v29, %v1178_v1  ;;  %v325_v39 = vmax.f32 %v261_v30, 0.0  ;;  %v897_v41 = vunpack.c.h.bf16 %v1112_v21  ;;  %v1118_v21 = vld [vmem:[%s1502_s0 + $0xe8] sm:$0xff]  }
  0x34   :  { %v326_v40 = vmax.f32 %v262_v32, 0.0  ;;  %v195_v42 = vmul.f32 %v896_v33, %v1178_v1  ;;  %1139 = vst [vmem:[%s1505_s3 + $0x98] sm:$0xff] %v1028_v35   ;;  %v264_v44 = vadd.f32 %v1192_v7, %v193_v37  ;;  %v900_v46 = vunpack.c.l.bf16 %v1113_v34 }
  0x35   :  { %v327_v43 = vmax.f32 %v263_v36, 0.0  ;;  %v265_v45 = vadd.f32 %v1192_v7, %v194_v38  ;;  %v1033_v48 = vpack.c.bf16 %v325_v39, %v324_v31  ;;  %v196_v49 = vmul.f32 %v897_v41, %v1178_v1  ;;  %v1120_v39 = vld [vmem:[%s1502_s0 + $0xf8] sm:$0xff]  }
  0x36   :  { %v266_v50 = vadd.f32 %v1192_v7, %v195_v42  ;;  %v901_v51 = vunpack.c.h.bf16 %v1113_v34  ;;  %v328_v54 = vmax.f32 %v264_v44, 0.0  ;;  %v197_v56 = vmul.f32 %v900_v46, %v1178_v1  ;;  %v1119_v34 = vld [vmem:[%s1502_s0 + $0xf0] sm:$0xff]  }
  0x37   :  { %v1038_v53 = vpack.c.bf16 %v327_v43, %v326_v40  ;;  %v329_v55 = vmax.f32 %v265_v45, 0.0  ;;  %1140 = vst [vmem:[%s1505_s3 + $0xa0] sm:$0xff] %v1033_v48   ;;  %v267_v57 = vadd.f32 %v1192_v7, %v196_v49  ;;  %v904_v60 = vunpack.c.l.bf16 %v1114_v47 }
  0x38   :  { %v330_v58 = vmax.f32 %v266_v50, 0.0  ;;  %v198_v59 = vmul.f32 %v901_v51, %v1178_v1  ;;  %v268_v63 = vadd.f32 %v1192_v7, %v197_v56  ;;  %v905_v0 = vunpack.c.h.bf16 %v1114_v47 }
  0x39   :  { %1141 = vst [vmem:[%s1505_s3 + $0xa8] sm:$0xff] %v1038_v53   ;;  %v1043_v62 = vpack.c.bf16 %v329_v55, %v328_v54  ;;  %v908_v2 = vunpack.c.l.bf16 %v1115_v52  ;;  %v331_v3 = vmax.f32 %v267_v57, 0.0  ;;  %v199_v5 = vmul.f32 %v904_v60, %v1178_v1 }
  0x3a   :  { %v269_v4 = vadd.f32 %v1192_v7, %v198_v59  ;;  %v909_v6 = vunpack.c.h.bf16 %v1115_v52  ;;  %v332_v8 = vmax.f32 %v268_v63, 0.0  ;;  %v200_v9 = vmul.f32 %v905_v0, %v1178_v1 }
  0x3b   :  { %1142 = vst [vmem:[%s1505_s3 + $0xb0] sm:$0xff] %v1043_v62   ;;  %v201_v10 = vmul.f32 %v908_v2, %v1178_v1  ;;  %v912_v11 = vunpack.c.l.bf16 %v1116_v61  ;;  %v1048_v13 = vpack.c.bf16 %v331_v3, %v330_v58  ;;  %v270_v15 = vadd.f32 %v1192_v7, %v199_v5 }
  0x3c   :  { %v333_v14 = vmax.f32 %v269_v4, 0.0  ;;  %v202_v16 = vmul.f32 %v909_v6, %v1178_v1  ;;  %v271_v17 = vadd.f32 %v1192_v7, %v200_v9  ;;  %v913_v19 = vunpack.c.h.bf16 %v1116_v61 }
  0x3d   :  { %v272_v18 = vadd.f32 %v1192_v7, %v201_v10  ;;  %v203_v20 = vmul.f32 %v912_v11, %v1178_v1  ;;  %1143 = vst [vmem:[%s1505_s3 + $0xb8] sm:$0xff] %v1048_v13   ;;  %v334_v23 = vmax.f32 %v270_v15, 0.0  ;;  %v916_v25 = vunpack.c.l.bf16 %v1117_v12 }
  0x3e   :  { %v1053_v22 = vpack.c.bf16 %v333_v14, %v332_v8  ;;  %v273_v24 = vadd.f32 %v1192_v7, %v202_v16  ;;  %v335_v26 = vmax.f32 %v271_v17, 0.0  ;;  %v204_v28 = vmul.f32 %v913_v19, %v1178_v1 }
  0x3f   :  { %v336_v27 = vmax.f32 %v272_v18, 0.0  ;;  %v274_v29 = vadd.f32 %v1192_v7, %v203_v20  ;;  %v917_v31 = vunpack.c.h.bf16 %v1117_v12  ;;  %v205_v32 = vmul.f32 %v916_v25, %v1178_v1 }
  0x40   :  { %1144 = vst [vmem:[%s1505_s3 + $0xc0] sm:$0xff] %v1053_v22   ;;  %v337_v30 = vmax.f32 %v273_v24, 0.0  ;;  %v920_v33 = vunpack.c.l.bf16 %v1118_v21  ;;  %v1058_v35 = vpack.c.bf16 %v335_v26, %v334_v23  ;;  %v275_v36 = vadd.f32 %v1192_v7, %v204_v28 }
  0x41   :  { %v338_v37 = vmax.f32 %v274_v29, 0.0  ;;  %v921_v38 = vunpack.c.h.bf16 %v1118_v21  ;;  %v206_v41 = vmul.f32 %v917_v31, %v1178_v1  ;;  %v276_v42 = vadd.f32 %v1192_v7, %v205_v32 }
  0x42   :  { %v1063_v40 = vpack.c.bf16 %v337_v30, %v336_v27  ;;  %v207_v43 = vmul.f32 %v920_v33, %v1178_v1  ;;  %1145 = vst [vmem:[%s1505_s3 + $0xc8] sm:$0xff] %v1058_v35   ;;  %v339_v44 = vmax.f32 %v275_v36, 0.0  ;;  %v924_v46 = vunpack.c.l.bf16 %v1119_v34 }
  0x43   :  { %v208_v45 = vmul.f32 %v921_v38, %v1178_v1  ;;  %v925_v47 = vunpack.c.h.bf16 %v1119_v34  ;;  %v277_v48 = vadd.f32 %v1192_v7, %v206_v41  ;;  %v340_v49 = vmax.f32 %v276_v42, 0.0 }
  0x44   :  { %1146 = vst [vmem:[%s1505_s3 + $0xd0] sm:$0xff] %v1063_v40   ;;  %v278_v50 = vadd.f32 %v1192_v7, %v207_v43  ;;  %v928_v51 = vunpack.c.l.bf16 %v1120_v39  ;;  %v1068_v52 = vpack.c.bf16 %v339_v44, %v338_v37  ;;  %v209_v54 = vmul.f32 %v924_v46, %v1178_v1 }
  0x45   :  { %v279_v53 = vadd.f32 %v1192_v7, %v208_v45  ;;  %v210_v55 = vmul.f32 %v925_v47, %v1178_v1  ;;  %v341_v56 = vmax.f32 %v277_v48, 0.0  ;;  %v929_v58 = vunpack.c.h.bf16 %v1120_v39 }
  0x46   :  { %v342_v57 = vmax.f32 %v278_v50, 0.0  ;;  %v211_v59 = vmul.f32 %v928_v51, %v1178_v1  ;;  %1147 = vst [vmem:[%s1505_s3 + $0xd8] sm:$0xff] %v1068_v52   ;;  %v280_v61 = vadd.f32 %v1192_v7, %v209_v54 }
  0x47   :  { %v343_v60 = vmax.f32 %v279_v53, 0.0  ;;  %v281_v62 = vadd.f32 %v1192_v7, %v210_v55  ;;  %v1073_v63 = vpack.c.bf16 %v341_v56, %v340_v49  ;;  %v212_v0 = vmul.f32 %v929_v58, %v1178_v1 }
  0x48   :  { %v282_v2 = vadd.f32 %v1192_v7, %v211_v59  ;;  %v344_v4 = vmax.f32 %v280_v61, 0.0 }
  0x49   :  { %v1078_v3 = vpack.c.bf16 %v343_v60, %v342_v57  ;;  %v345_v5 = vmax.f32 %v281_v62, 0.0  ;;  %1148 = vst [vmem:[%s1505_s3 + $0xe0] sm:$0xff] %v1073_v63   ;;  %v283_v6 = vadd.f32 %v1192_v7, %v212_v0 }
  0x4a   :  { %v346_v8 = vmax.f32 %v282_v2, 0.0 }
  0x4b   :  { %1149 = vst [vmem:[%s1505_s3 + $0xe8] sm:$0xff] %v1078_v3   ;;  %v1083_v9 = vpack.c.bf16 %v345_v5, %v344_v4  ;;  %v347_v10 = vmax.f32 %v283_v6, 0.0 }
  0x4d   :  { %1150 = vst [vmem:[%s1505_s3 + $0xf0] sm:$0xff] %v1083_v9   ;;  %v1088_v1 = vpack.c.bf16 %v347_v10, %v346_v8 }
  0x4f   :  { %1151 = vst [vmem:[%s1505_s3 + $0xf8] sm:$0xff] %v1088_v1  }

// kernel: _lambda_.25
= control target key start
LH: loop header
LB: loop body
LE: loop exit
PB: predicated region body
PF: predicated region fallthrough
CT: control target
= control target key end

     0   :  { %s1479_s6 = smov 0   ;;  %s1481_s7 = smov 0   ;;  %s1899_s0 = inlined_call_operand.vmem [shape: bf16[2,18,19,128], index: 0, kind: input, shape index: {}]   ;;  %s1900_s1 = inlined_call_operand.vmem [shape: bf16[2,8,8,128], index: 1, kind: output, shape index: {}]  }
   0x1   :  { %s1483_s8 = smov 0   ;;  %s1485_s9 = smov 0  }
   0x2   :  { %s1487_s10 = smov 0   ;;  %s1489_s11 = smov 0  }
   0x3   :  { %s1491_s12 = smov 0   ;;  %s1493_s13 = smov 0  }
   0x4   :  { %s1495_s14 = smov 0  }
   0x5 LB: > { %s1272_s15 = sadd.s32 4294967295, %s1464_s14   ;;  %s20_s16 = sadd.s32 1, %s1456_s12  ;;  %s1464_s14 = sphi %s1495_s14, %s11_s14   ;;  %s1460_s13 = sphi %s1493_s13, %s1913_s13   ;;  %s1456_s12 = sphi %s1491_s12, %s1912_s12   ;;  %s1452_s11 = sphi %s1489_s11, %s1911_s11   ;;  %s1448_s10 = sphi %s1487_s10, %s1910_s10   ;;  %s1444_s9 = sphi %s1485_s9, %s1909_s9   ;;  %s1440_s8 = sphi %s1483_s8, %s1908_s8   ;;  %s1436_s7 = sphi %s1481_s7, %s1907_s7   ;;  %s1432_s6 = sphi %s1479_s6, %s1906_s6  }
   0x6   : > { %p21_p0 = scmp.ge.s32.totalorder %s20_s16, 3  ;;  %s23_s17 = sadd.s32 1, %s1460_s13 }
   0x7   : > { %s1274_s18 = sshll.u32 %s1460_s13, 1  ;;  %s34_s19 = sadd.s32 1, %s1444_s9 }
   0x8   : > { %s1915_s16 = smov (%p21_p0, %s20_s16), 0  ;;  %s1917_s17 = smov (!%p21_p0, %s23_s17), %s1460_s13 }
   0x9   : > { %s28_s20 = sadd.s32 %s1456_s12, %s1274_s18  ;;  %p41_p1 = scmp.ne.s32.totalorder %s1444_s9, %s1440_s8 }
   0xa   : > { %p25_p2 = scmp.ge.s32.totalorder %s1917_s17, 8  ;;  %p42_p3 = scmp.eq.s32.totalorder %s1464_s14, 0 }
   0xb   : > { %s60_s21 = sadd.s32 1, %s1436_s7  ;;  %p70_p4 = scmp.ne.s32.totalorder %s1436_s7, %s1432_s6 }
   0xc   : > { %s1919_s17 = smov (%p25_p2, %s1917_s17), 0  ;;  %p43_p5 = por %p42_p3, %p41_p1 }
   0xd   : > { %p71_p6 = scmp.eq.s32.totalorder %s1272_s15, 23  ;;  %s1275_s22 = sshll.u32 %s1919_s17, 1 }
   0xe   : > { %s57_s23 = ssub.s32 %s1460_s13, %s1919_s17  ;;  %s30_s24 = sadd.s32 %s1275_s22, %s1915_s16 }
   0xf   : > { %p58_p7 = scmp.eq.s32.totalorder %s57_s23, 0  ;;  %s31_s25 = ssub.s32 %s28_s20, %s30_s24 }
  0x10   : > { %p1545_p8 = por %p71_p6, %p70_p4  ;;  %p32_p9 = scmp.eq.s32.totalorder %s31_s25, 0 }
  0x11   : > { %s1550_s27 = scalar_select %p58_p7, %s1436_s7, %s60_s21  }
  0x12   : > { %s1553_s28 = scalar_select %p32_p9, %s1444_s9, %s34_s19  }
  0x13   : > { %p1277_p10 = scmp.ge.s32.totalorder %s1464_s14, 24 }
  0x15   : > { %93 = sbr.rel (%p1277_p10) target bundleno = 33 (0x21), region = 16 }
  0x1a   : > { %96 = sbr.rel (!%p43_p5) target bundleno = 33 (0x21), region = 20  ;;  %s98_s29 = sand.u32 (%p43_p5), 1, %s1444_s9  }
  0x1b   : > { %s1317_s30 = smul.u32 (%p43_p5), 12, %s28_s20 }
  0x1c   : > { %s1316_s2 = smul.u32 (%p43_p5), 24, %s98_s29 }
  0x1d   : > { %s105_s5 = scalar_lea.vmem (%p43_p5), %s1899_s0, %s1317_s30 }
  0x1e   : > { %v122_v0 = vld [vmem:[%s105_s5] sm:$0xff] (%p43_p5)   ;;  %v126_v1 = vld [vmem:[%s105_s5 + $0x8] sm:$0xf] (%p43_p5)  ;;  %v128_v2 = vld [vmem:[%s105_s5 + $0xd8] sm:$0xff] (%p43_p5)   ;;  %s100_s15 = scalar_lea.vmem (%p43_p5), [#allocation2], %s1316_s2 }
  0x1f   : > { %123 = vst [vmem:[%s100_s15] sm:$0xff] %v122_v0   ;;  %127 = vst [vmem:[%s100_s15 + $0x8] sm:$0xf] %v126_v1  ;;  %v132_v3 = vld [vmem:[%s105_s5 + $0xe0] sm:$0xf] }
  0x20   : > { %129 = vst [vmem:[%s100_s15 + $0xc] sm:$0xff] %v128_v2   ;;  %133 = vst [vmem:[%s100_s15 + $0x14] sm:$0xf] %v132_v3 }
  0x21 PF: > { %p1280_p11 = scmp.ge.s32.totalorder %s1464_s14, 1  ;;  %p168_p12 = scmp.lt.s32.totalorder %s1464_s14, 25 }
  0x23   : > { %p169_p13 = pnand %p1280_p11, %p168_p12 }
  0x24   : > { %s175_s18 = sand.u32 (!%p169_p13), 1, %s1440_s8   ;;  %s190_s19 = sand.u32 (!%p169_p13), 1, %s1432_s6  }
  0x25   : > { %172 = sbr.rel (%p169_p13) target bundleno = 159 (0x9f), region = 61  ;;  %s1564_s21 = sshll.u32 (!%p169_p13), %s190_s19, 3 }
  0x26   : > { %s1318_s20 = smul.u32 (!%p169_p13), 24, %s175_s18  ;;  %s1761_s6 = scalar_lea.vmem (!%p169_p13), [#allocation3], %s1564_s21 }
  0x27   : > { %p1304_p0 = scmp.ne.s32.totalorder (!%p169_p13), %s1448_s10, 0 }
  0x28   : > { %s177_s22 = scalar_lea.vmem (!%p169_p13), [#allocation2], %s1318_s20 }
  0x2a   : > { %v216_v4 = vlaneseq  ;;  %vm347_vm0 = vsmask.f32 256  ;;  %v1466_v5 = vmov 1966171168   ;;  %vm348_vm1 = vsmask.f32 1284 }
  0x2b   : > { %v214_v6 = vunpack.c.l.s4 %v1466_v5  ;;  %vm350_vm2 = vsmask.f32 2312  ;;  %vm349_vm3 = vmor %vm347_vm0, %vm348_vm1  ;;  %vm352_vm4 = vsmask.f32 3340  ;;  %vm354_vm5 = vsmask.f32 4368 }
  0x2c   : > { %v1566_v7 = vshrl.u32 %v216_v4, 7  ;;  %vm351_vm6 = vmor %vm349_vm3, %vm350_vm2  ;;  %vm356_vm7 = vsmask.f32 5396  ;;  %vm358_vm9 = vsmask.f32 6424 }
  0x2d   : > { %v215_v8 = vunpack.c.0.s8 %v214_v6  ;;  %v1282_v9 = vld.sshfl [vmem:[%s177_s22] sm:$0x33 pattern:$0x75316420]  ;;  %vm353_vm8 = vmor %vm351_vm6, %vm352_vm4  ;;  %vm360_vm13 = vsmask.f32 7452 }
  0x2e   : > { %v1283_v10 = vld.sshfl [vmem:[%s177_s22 + $0x4] sm:$0x33 pattern:$0x75316420]  ;;  %v212_v11 = vcombine.high %v1282_v9, %v1282_v9  ;;  %vm355_vm10 = vmor %vm353_vm8, %vm354_vm5 }
  0x2f   : > { %v218_v12 = vsub.s32 %v215_v8, %v1566_v7  ;;  %v1286_v13 = vld.sshfl [vmem:[%s177_s22 + $0x8] sm:$0x11 pattern:$0x75316420]  ;;  %v236_v14 = vcombine.high %v1283_v10, %v1283_v10  ;;  %vm357_vm11 = vmor %vm355_vm10, %vm356_vm7 }
  0x30   : > { %v1284_v15 = vld.sshfl [vmem:[%s177_s22 + $0xc] sm:$0x33 pattern:$0x75316420]  ;;  %vm1575_vm12 = vmor %vm357_vm11, %vm358_vm9 }
  0x31   : > { %v1569_v16 = vrot.slane %v1282_v9, %v218_v12  ;;  %v1571_v17 = vrot.slane %v212_v11, %v218_v12  ;;  %v1573_v18 = vrot.slane %v1283_v10, %v218_v12  ;;  %v1285_v20 = vld.sshfl [vmem:[%s177_s22 + $0x10] sm:$0x33 pattern:$0x75316420]  ;;  %v1579_v21 = vrot.slane %v236_v14, %v218_v12  ;;  %vm1612_vm14 = vmor %vm1575_vm12, %vm360_vm13 }
  0x32   : > { %v260_v22 = vcombine.high %v1284_v15, %v1284_v15  ;;  %v1581_v23 = vrot.slane %v1284_v15, %v218_v12  ;;  %v1583_v24 = vrot.slane %v1286_v13, %v218_v12  ;;  %v1287_v25 = vld.sshfl [vmem:[%s177_s22 + $0x14] sm:$0x11 pattern:$0x75316420]  ;;  %v284_v29 = vcombine.high %v1285_v20, %v1285_v20 }
  0x33   : > { %v1587_v26 = vcombine.high %v1569_v16, %v1569_v16  ;;  %v1591_v27 = vcombine.high %v1571_v17, %v1571_v17  ;;  %v1595_v28 = vcombine.high %v1573_v18, %v1573_v18  ;;  %v1599_v30 = vcombine.high %v1579_v21, %v1579_v21 }
  0x34   : > { %v1601_v31 = vrot.slane %v260_v22, %v218_v12  ;;  %v1605_v32 = vcombine.high %v1581_v23, %v1581_v23  ;;  %v1607_v33 = vrot.slane %v1285_v20, %v218_v12  ;;  %v1616_v35 = vrot.slane %v284_v29, %v218_v12 }
  0x35   : > { %v1618_v36 = vrot.slane %v1287_v25, %v218_v12  ;;  %v363_v37 = vshrl.u32 %v1569_v16, 16  ;;  %v368_v38 = vshll.u32 %v1571_v17, 16  ;;  %v371_v41 = vshrl.u32 %v1571_v17, 16 }
  0x36   : > { %v1624_v39 = vcombine.high %v1601_v31, %v1601_v31  ;;  %v1628_v40 = vcombine.high %v1607_v33, %v1607_v33  ;;  %v376_v42 = vshll.u32 %v1587_v26, 16  ;;  %v1634_v43 = vcombine.high %v1616_v35, %v1616_v35 }
  0x37   : > { %v370_v44 = vsel %vm1612_vm14, %v363_v37, %v368_v38  ;;  %v379_v45 = vshrl.u32 %v1587_v26, 16  ;;  %v384_v46 = vshll.u32 %v1591_v27, 16  ;;  %v387_v48 = vshrl.u32 %v1591_v27, 16 }
  0x38   : > { %v378_v47 = vsel %vm1612_vm14, %v371_v41, %v376_v42  ;;  %v392_v49 = vshll.u32 %v1573_v18, 16  ;;  %v395_v50 = vshrl.u32 %v1573_v18, 16  ;;  %v400_v52 = vshll.u32 %v1579_v21, 16 }
  0x39   : > { %v386_v51 = vsel %vm1612_vm14, %v379_v45, %v384_v46  ;;  %v403_v53 = vshrl.u32 %v1579_v21, 16  ;;  %v408_v54 = vshll.u32 %v1595_v28, 16  ;;  %v411_v56 = vshrl.u32 %v1595_v28, 16 }
  0x3a   : > { %v394_v55 = vsel %vm1612_vm14, %v387_v48, %v392_v49  ;;  %v416_v57 = vshll.u32 %v1599_v30, 16  ;;  %v419_v58 = vshrl.u32 %v1599_v30, 16  ;;  %v402_v59 = vsel %vm1612_vm14, %v395_v50, %v400_v52 }
  0x3b   : > { %v410_v60 = vsel %vm1612_vm14, %v403_v53, %v408_v54  ;;  %v424_v61 = vshll.u32 %v1583_v24, 16  ;;  %v428_v62 = vshrl.u32 %v1581_v23, 16  ;;  %v433_v0 = vshll.u32 %v1601_v31, 16 }
  0x3c   : > { %v418_v63 = vsel %vm1612_vm14, %v411_v56, %v416_v57  ;;  %v436_v1 = vshrl.u32 %v1601_v31, 16  ;;  %v441_v2 = vshll.u32 %v1605_v32, 16  ;;  %v444_v4 = vshrl.u32 %v1605_v32, 16 }
  0x3d   : > { %v426_v3 = vsel %vm1612_vm14, %v419_v58, %v424_v61  ;;  %v449_v5 = vshll.u32 %v1624_v39, 16  ;;  %v452_v6 = vshrl.u32 %v1624_v39, 16  ;;  %v435_v8 = vsel %vm1612_vm14, %v428_v62, %v433_v0 }
  0x3e   : > { %v443_v9 = vsel %vm1612_vm14, %v436_v1, %v441_v2  ;;  %v457_v10 = vshll.u32 %v1607_v33, 16  ;;  %v460_v11 = vshrl.u32 %v1607_v33, 16  ;;  %v465_v13 = vshll.u32 %v1616_v35, 16 }
  0x3f   : > { %v451_v12 = vsel %vm1612_vm14, %v444_v4, %v449_v5  ;;  %v468_v14 = vshrl.u32 %v1616_v35, 16  ;;  %v473_v15 = vshll.u32 %v1628_v40, 16  ;;  %v476_v20 = vshrl.u32 %v1628_v40, 16 }
  0x40   : > { %v459_v19 = vsel %vm1612_vm14, %v452_v6, %v457_v10  ;;  %v481_v22 = vshll.u32 %v1634_v43, 16  ;;  %v484_v25 = vshrl.u32 %v1634_v43, 16  ;;  %v467_v29 = vsel %vm1612_vm14, %v460_v11, %v465_v13 }
  0x41   : > { %v475_v37 = vsel %vm1612_vm14, %v468_v14, %v473_v15  ;;  %v489_v38 = vshll.u32 %v1618_v36, 16  ;;  %v508_v41 = vmax.bf16 %v370_v44, %v1569_v16  ;;  %v509_v45 = vmax.bf16 %v378_v47, %v1571_v17 }
  0x42   : > { %v483_v42 = vsel %vm1612_vm14, %v476_v20, %v481_v22  ;;  %v510_v46 = vmax.bf16 %v386_v51, %v1587_v26  ;;  %v511_v48 = vmax.bf16 %v394_v55, %v1591_v27  ;;  %v512_v50 = vmax.bf16 %v402_v59, %v1573_v18 }
  0x43   : > { %v491_v49 = vsel %vm1612_vm14, %v484_v25, %v489_v38  ;;  %v513_v52 = vmax.bf16 %v410_v60, %v1579_v21  ;;  %v514_v53 = vmax.bf16 %v418_v63, %v1595_v28  ;;  %v515_v16 = vmax.bf16 %v426_v3, %v1599_v30 }
  0x44   : > { %v516_v44 = vmax.bf16 %v435_v8, %v1581_v23  ;;  %v517_v54 = vmax.bf16 %v443_v9, %v1601_v31  ;;  %v518_v47 = vmax.bf16 %v451_v12, %v1605_v32  ;;  %v519_v51 = vmax.bf16 %v459_v19, %v1624_v39 }
  0x45   : > { %v520_v55 = vmax.bf16 %v467_v29, %v1607_v33  ;;  %v521_v34 = vmax.bf16 %v475_v37, %v1616_v35  ;;  %v522_v56 = vmax.bf16 %v483_v42, %v1628_v40  ;;  %v523_v57 = vmax.bf16 %v491_v49, %v1634_v43  ;;  %545 = sbr.rel (%p1304_p0) target bundleno = 108 (0x6c), region = 69 }
  0x46   : > { %v1713_v58 = vmax.bf16 %v508_v41, %v1571_v17  ;;  %v1716_v23 = vmax.bf16 %v509_v45, %v1587_v26  ;;  %v1719_v59 = vmax.bf16 %v510_v46, %v1591_v27  ;;  %v1722_v60 = vmax.bf16 %v511_v48, %v1573_v18 }
  0x47   : > { %v1725_v61 = vmax.bf16 %v512_v50, %v1579_v21  ;;  %v1728_v62 = vmax.bf16 %v513_v52, %v1595_v28  ;;  %v1731_v63 = vmax.bf16 %v514_v53, %v1599_v30  ;;  %v1734_v17 = vmax.bf16 %v515_v16, %v1583_v24 }
  0x48   : > { %v1737_v26 = vmax.bf16 %v516_v44, %v1601_v31  ;;  %v1740_v27 = vmax.bf16 %v517_v54, %v1605_v32  ;;  %v1743_v18 = vmax.bf16 %v518_v47, %v1624_v39  ;;  %v1746_v21 = vmax.bf16 %v519_v51, %v1607_v33 }
  0x49   : > { %v1749_v28 = vmax.bf16 %v520_v55, %v1616_v35  ;;  %v1752_v30 = vmax.bf16 %v521_v34, %v1628_v40  ;;  %v1755_v24 = vmax.bf16 %v522_v56, %v1634_v43  ;;  %v1758_v31 = vmax.bf16 %v523_v57, %v1618_v36 }
  0x4a   : > { %v1467_v32 = vmov 1935823168   ;;  %vm803_vm15 = vcmask 1041409   ;;  %vm806_vm0 = vcmask 1042434   ;;  %vm809_vm1 = vcmask 1043459  }
  0x4b   : > { %v563_v33 = vunpack.c.l.s4 %v1467_v32  ;;  %vm812_vm2 = vcmask 1044484   ;;  %vm815_vm3 = vcmask 1045509   ;;  %vm818_vm4 = vcmask 1046534  }
  0x4c   : > { %vm821_vm5 = vcmask 1047559  }
  0x4d   : > { %v564_v39 = vunpack.c.0.s8 %v563_v33 }
  0x4f   : > { %v1765_v35 = vsub.s32 %v564_v39, %v1566_v7 }
  0x51   : > { %v568_v40 = vrot.slane %v1713_v58, %v1765_v35  ;;  %v582_v36 = vrot.slane %v1716_v23, %v1765_v35  ;;  %v596_v43 = vrot.slane %v1719_v59, %v1765_v35  ;;  %v610_v0 = vrot.slane %v1722_v60, %v1765_v35 }
  0x52   : > { %v624_v1 = vrot.slane %v1725_v61, %v1765_v35  ;;  %v638_v2 = vrot.slane %v1728_v62, %v1765_v35  ;;  %v652_v3 = vrot.slane %v1731_v63, %v1765_v35  ;;  %v666_v4 = vrot.slane %v1734_v17, %v1765_v35 }
  0x53   : > { %v575_v5 = vrot.slane %v568_v40, %v1765_v35  ;;  %v589_v6 = vrot.slane %v582_v36, %v1765_v35  ;;  %v603_v8 = vrot.slane %v596_v43, %v1765_v35  ;;  %v617_v9 = vrot.slane %v610_v0, %v1765_v35 }
  0x54   : > { %v631_v10 = vrot.slane %v624_v1, %v1765_v35  ;;  %v645_v11 = vrot.slane %v638_v2, %v1765_v35  ;;  %v659_v12 = vrot.slane %v652_v3, %v1765_v35  ;;  %v673_v13 = vrot.slane %v666_v4, %v1765_v35 }
  0x55   : > { %v786_v14 = vunpack.c.l.b16 %v575_v5  ;;  %v787_v15 = vunpack.c.l.b16 %v589_v6  ;;  %v788_v19 = vunpack.c.l.b16 %v603_v8  ;;  %v789_v20 = vunpack.c.l.b16 %v617_v9 }
  0x56   : > { %v790_v22 = vunpack.c.l.b16 %v631_v10  ;;  %v791_v25 = vunpack.c.l.b16 %v645_v11  ;;  %v792_v29 = vunpack.c.l.b16 %v659_v12  ;;  %v793_v37 = vunpack.c.l.b16 %v673_v13 }
  0x57   : > { %v802_v38 = vrot.slane %v787_v15, 7  ;;  %v805_v41 = vrot.slane %v788_v19, 6  ;;  %v808_v42 = vrot.slane %v789_v20, 5  ;;  %v680_v45 = vrot.slane %v1737_v26, %v1765_v35 }
  0x58   : > { %v811_v46 = vrot.slane %v790_v22, 4  ;;  %v814_v48 = vrot.slane %v791_v25, 3  ;;  %v817_v49 = vrot.slane %v792_v29, 2  ;;  %v820_v50 = vrot.slane %v793_v37, 1 }
  0x59   : > { %v804_v52 = vsel %vm803_vm15, %v802_v38, %v786_v14  ;;  %v687_v53 = vrot.slane %v680_v45, %v1765_v35  ;;  %v694_v16 = vrot.slane %v1740_v27, %v1765_v35  ;;  %v708_v44 = vrot.slane %v1743_v18, %v1765_v35 }
  0x5a   : > { %v807_v54 = vsel %vm806_vm0, %v805_v41, %v804_v52  ;;  %v722_v47 = vrot.slane %v1746_v21, %v1765_v35  ;;  %v736_v51 = vrot.slane %v1749_v28, %v1765_v35  ;;  %v750_v55 = vrot.slane %v1752_v30, %v1765_v35 }
  0x5b   : > { %v810_v34 = vsel %vm809_vm1, %v808_v42, %v807_v54  ;;  %v701_v56 = vrot.slane %v694_v16, %v1765_v35  ;;  %v715_v57 = vrot.slane %v708_v44, %v1765_v35  ;;  %v764_v32 = vrot.slane %v1755_v24, %v1765_v35 }
  0x5c   : > { %v813_v33 = vsel %vm812_vm2, %v811_v46, %v810_v34  ;;  %v729_v39 = vrot.slane %v722_v47, %v1765_v35  ;;  %v743_v40 = vrot.slane %v736_v51, %v1765_v35  ;;  %v757_v36 = vrot.slane %v750_v55, %v1765_v35 }
  0x5d   : > { %v816_v43 = vsel %vm815_vm3, %v814_v48, %v813_v33  ;;  %v771_v0 = vrot.slane %v764_v32, %v1765_v35  ;;  %v778_v1 = vrot.slane %v1758_v31, %v1765_v35  ;;  %v794_v2 = vunpack.c.l.b16 %v687_v53 }
  0x5e   : > { %v819_v3 = vsel %vm818_vm4, %v817_v49, %v816_v43  ;;  %v795_v4 = vunpack.c.l.b16 %v701_v56  ;;  %v796_v5 = vunpack.c.l.b16 %v715_v57  ;;  %v797_v6 = vunpack.c.l.b16 %v729_v39 }
  0x5f   : > { %v822_v8 = vsel %vm821_vm5, %v820_v50, %v819_v3  ;;  %v785_v9 = vrot.slane %v778_v1, %v1765_v35  ;;  %v798_v10 = vunpack.c.l.b16 %v743_v40  ;;  %v799_v11 = vunpack.c.l.b16 %v757_v36 }
  0x60   : > { %v837_v12 = vpack.c.b16 %v822_v8, %v822_v8  ;;  %v800_v13 = vunpack.c.l.b16 %v771_v0  ;;  %v823_v14 = vrot.slane %v795_v4, 7  ;;  %v825_v15 = vrot.slane %v796_v5, 6 }
  0x61   : > { %v801_v19 = vunpack.c.l.b16 %v785_v9  ;;  %v827_v20 = vrot.slane %v797_v6, 5  ;;  %v829_v22 = vrot.slane %v798_v10, 4  ;;  %v831_v29 = vrot.slane %v799_v11, 3 }
  0x62   : > { %841 = vst [vmem:[%s1761_s6] sm:$0xf] %v837_v12  ;;  %v824_v25 = vsel %vm803_vm15, %v823_v14, %v794_v2  ;;  %v833_v38 = vrot.slane %v800_v13, 2 }
  0x63   : > { %v826_v37 = vsel %vm806_vm0, %v825_v15, %v824_v25  ;;  %v835_v35 = vrot.slane %v801_v19, 1 }
  0x64   : > { %v828_v41 = vsel %vm809_vm1, %v827_v20, %v826_v37 }
  0x65   : > { %v830_v42 = vsel %vm812_vm2, %v829_v22, %v828_v41 }
  0x66   : > { %v832_v45 = vsel %vm815_vm3, %v831_v29, %v830_v42 }
  0x67   : > { %v834_v46 = vsel %vm818_vm4, %v833_v38, %v832_v45 }
  0x68   : > { %v836_v48 = vsel %vm821_vm5, %v835_v35, %v834_v46 }
  0x69   : > { %v838_v49 = vpack.c.b16 %v836_v48, %v836_v48 }
  0x6b   : > { %842 = vst [vmem:[%s1761_s6 + $0x4] sm:$0xf] %v838_v49 }
  0x6c PF: > { %p1305_p1 = scmp.le.s32.totalorder %s1448_s10, 0 }
  0x6e   : > { %846 = sbr.rel (%p1305_p1) target bundleno = 151 (0x97), region = 73 }
  0x73   : > { %v1468_v50 = vmov 1935823168   ;;  %vm1106_vm6 = vcmask 1041409   ;;  %vm1109_vm7 = vcmask 1042434   ;;  %vm1112_vm8 = vcmask 1043459  }
  0x74   : > { %v866_v52 = vunpack.c.l.s4 %v1468_v50  ;;  %vm1115_vm9 = vcmask 1044484   ;;  %vm1118_vm10 = vcmask 1045509   ;;  %vm1121_vm11 = vcmask 1046534  }
  0x75   : > { %vm1124_vm12 = vcmask 1047559  }
  0x76   : > { %v867_v53 = vunpack.c.0.s8 %v866_v52 }
  0x78   : > { %v870_v16 = vsub.s32 %v867_v53, %v1566_v7 }
  0x7a   : > { %v871_v44 = vrot.slane %v1713_v58, %v870_v16  ;;  %v885_v54 = vrot.slane %v1716_v23, %v870_v16  ;;  %v899_v47 = vrot.slane %v1719_v59, %v870_v16  ;;  %v913_v51 = vrot.slane %v1722_v60, %v870_v16 }
  0x7b   : > { %v927_v55 = vrot.slane %v1725_v61, %v870_v16  ;;  %v941_v34 = vrot.slane %v1728_v62, %v870_v16  ;;  %v955_v32 = vrot.slane %v1731_v63, %v870_v16  ;;  %v969_v33 = vrot.slane %v1734_v17, %v870_v16 }
  0x7c   : > { %v878_v56 = vrot.slane %v871_v44, %v870_v16  ;;  %v892_v57 = vrot.slane %v885_v54, %v870_v16  ;;  %v906_v39 = vrot.slane %v899_v47, %v870_v16  ;;  %v920_v7 = vrot.slane %v913_v51, %v870_v16 }
  0x7d   : > { %v934_v40 = vrot.slane %v927_v55, %v870_v16  ;;  %v948_v58 = vrot.slane %v941_v34, %v870_v16  ;;  %v983_v23 = vrot.slane %v1737_v26, %v870_v16  ;;  %v997_v59 = vrot.slane %v1740_v27, %v870_v16 }
  0x7e   : > { %v1011_v60 = vrot.slane %v1743_v18, %v870_v16  ;;  %v1025_v61 = vrot.slane %v1746_v21, %v870_v16  ;;  %v1039_v62 = vrot.slane %v1749_v28, %v870_v16  ;;  %v1053_v63 = vrot.slane %v1752_v30, %v870_v16 }
  0x7f   : > { %v1067_v17 = vrot.slane %v1755_v24, %v870_v16  ;;  %v1081_v36 = vrot.slane %v1758_v31, %v870_v16  ;;  %v962_v43 = vrot.slane %v955_v32, %v870_v16  ;;  %v1004_v0 = vrot.slane %v997_v59, %v870_v16 }
  0x80   : > { %v1018_v1 = vrot.slane %v1011_v60, %v870_v16  ;;  %v1032_v26 = vrot.slane %v1025_v61, %v870_v16  ;;  %v976_v27 = vrot.slane %v969_v33, %v870_v16  ;;  %v990_v2 = vrot.slane %v983_v23, %v870_v16  ;;  %v847_v33 = vld [vmem:[%s1761_s6] sm:$0xf] }
  0x81   : > { %v1046_v18 = vrot.slane %v1039_v62, %v870_v16  ;;  %v1060_v3 = vrot.slane %v1053_v63, %v870_v16  ;;  %v1074_v21 = vrot.slane %v1067_v17, %v870_v16  ;;  %v1090_v4 = vunpack.c.l.b16 %v892_v57 }
  0x82   : > { %v1091_v28 = vunpack.c.l.b16 %v906_v39  ;;  %v1092_v5 = vunpack.c.l.b16 %v920_v7  ;;  %v1088_v30 = vrot.slane %v1081_v36, %v870_v16  ;;  %v1089_v24 = vunpack.c.l.b16 %v878_v56 }
  0x83   : > { %v1093_v6 = vunpack.c.l.b16 %v934_v40  ;;  %v1094_v31 = vunpack.c.l.b16 %v948_v58  ;;  %v1095_v8 = vunpack.c.l.b16 %v962_v43  ;;  %v1098_v9 = vunpack.c.l.b16 %v1004_v0  ;;  %v848_v40 = vld [vmem:[%s1761_s6 + $0x4] sm:$0xf] }
  0x84   : > { %v1099_v10 = vunpack.c.l.b16 %v1018_v1  ;;  %v1100_v11 = vunpack.c.l.b16 %v1032_v26  ;;  %v1096_v12 = vunpack.c.l.b16 %v976_v27  ;;  %v1097_v13 = vunpack.c.l.b16 %v990_v2 }
  0x85   : > { %v1101_v14 = vunpack.c.l.b16 %v1046_v18  ;;  %v1102_v15 = vunpack.c.l.b16 %v1060_v3  ;;  %v1103_v19 = vunpack.c.l.b16 %v1074_v21  ;;  %v1105_v20 = vrot.slane %v1090_v4, 7 }
  0x86   : > { %v1108_v22 = vrot.slane %v1091_v28, 6  ;;  %v1111_v25 = vrot.slane %v1092_v5, 5  ;;  %v1104_v29 = vunpack.c.l.b16 %v1088_v30  ;;  %v1114_v37 = vrot.slane %v1093_v6, 4 }
  0x87   : > { %v1117_v38 = vrot.slane %v1094_v31, 3  ;;  %v1126_v41 = vrot.slane %v1098_v9, 7  ;;  %v1107_v35 = vsel %vm1106_vm6, %v1105_v20, %v1089_v24  ;;  %v1128_v42 = vrot.slane %v1099_v10, 6 }
  0x88   : > { %v1130_v45 = vrot.slane %v1100_v11, 5  ;;  %v1132_v46 = vrot.slane %v1101_v14, 4  ;;  %v1110_v48 = vsel %vm1109_vm7, %v1108_v22, %v1107_v35  ;;  %v1120_v49 = vrot.slane %v1095_v8, 2 }
  0x89   : > { %v1127_v50 = vsel %vm1106_vm6, %v1126_v41, %v1097_v13  ;;  %v1134_v52 = vrot.slane %v1102_v15, 3  ;;  %v1113_v53 = vsel %vm1112_vm8, %v1111_v25, %v1110_v48  ;;  %v1123_v16 = vrot.slane %v1096_v12, 1 }
  0x8a   : > { %v1129_v44 = vsel %vm1109_vm7, %v1128_v42, %v1127_v50  ;;  %v1136_v54 = vrot.slane %v1103_v19, 2  ;;  %v1116_v47 = vsel %vm1115_vm9, %v1114_v37, %v1113_v53  ;;  %v1138_v55 = vrot.slane %v1104_v29, 1 }
  0x8b   : > { %v1131_v51 = vsel %vm1112_vm8, %v1130_v45, %v1129_v44  ;;  %v1119_v34 = vsel %vm1118_vm10, %v1117_v38, %v1116_v47 }
  0x8c   : > { %v1133_v56 = vsel %vm1115_vm9, %v1132_v46, %v1131_v51  ;;  %v1122_v57 = vsel %vm1121_vm11, %v1120_v49, %v1119_v34 }
  0x8d   : > { %v1135_v32 = vsel %vm1118_vm10, %v1134_v52, %v1133_v56  ;;  %v1125_v39 = vsel %vm1124_vm12, %v1123_v16, %v1122_v57 }
  0x8e   : > { %v1137_v7 = vsel %vm1121_vm11, %v1136_v54, %v1135_v32  ;;  %v1140_v23 = vpack.c.b16 %v1125_v39, %v1125_v39 }
  0x8f   : > { %v1139_v58 = vsel %vm1124_vm12, %v1138_v55, %v1137_v7 }
  0x90   : > { %v1141_v59 = vpack.c.b16 %v1139_v58, %v1139_v58  ;;  %v1144_v60 = vmax.bf16 %v1140_v23, %v847_v33 }
  0x92   : > { %v1145_v61 = vmax.bf16 %v1141_v59, %v848_v40 }
  0x94   : > { %v1315_v62 = vcombine.low %v1144_v60, %v1145_v61 }
  0x96   : > { %1314 = vst [vmem:[%s1761_s6] sm:$0xff] %v1315_v62  }
  0x97 PF: > { %1154 = sbr.rel (!%p1545_p8) target bundleno = 159 (0x9f), region = 77  ;;  %s1307_s8 = sshll.u32 (%p1545_p8), %s1452_s11, 2 }
  0x98   : > { %s1156_s24 = scalar_lea.vmem (%p1545_p8), %s1900_s1, %s1307_s8 }
  0x9d   : > { %v1173_v63 = vld [vmem:[%s1761_s6] sm:$0xf]  ;;  %v1175_v17 = vld [vmem:[%s1761_s6 + $0x4] sm:$0xf] }
  0x9e   : > { %1174 = vst [vmem:[%s1156_s24] sm:$0xf] %v1173_v63  ;;  %1176 = vst [vmem:[%s1156_s24 + $0x20] sm:$0xf] %v1175_v17 }
  0x9f PF: > { %s11_s14 = sadd.s32 1, %s1464_s14   ;;  %s1906_s6 = smov %s1436_s7 }
  0xa0   : > { %p8_p2 = scmp.ge.s32.totalorder %s11_s14, 26   ;;  %s1907_s7 = smov %s1550_s27 }
  0xa1   : > { %s1908_s8 = smov %s1444_s9  ;;  %s1909_s9 = smov %s1553_s28 }
  0xa2   : > { %s1910_s10 = smov %s1456_s12  ;;  %s1911_s11 = smov %s1460_s13 }
  0xa3   : > { %s1912_s12 = smov %s1915_s16  ;;  %s1913_s13 = smov %s1919_s17 }
  0xa4   :  { %10 = sbr.rel (!%p8_p2) target bundleno = 5 (0x5), region = 149 }

// kernel: _lambda_.26
= control target key start
LH: loop header
LB: loop body
LE: loop exit
PB: predicated region body
PF: predicated region fallthrough
CT: control target
= control target key end

     0   :  { %s1292_s15 = smov 0   ;;  %s1294_s16 = smov 0   ;;  %s1531_s0 = inlined_call_operand.vmem [shape: bf16[2,10,10,128], index: 0, kind: input, shape index: {}]   ;;  %s1532_s1 = inlined_call_operand.vmem [shape: bf16[9,128,128], index: 1, kind: input, shape index: {}]   ;;  %s1533_s2 = inlined_call_operand.vmem [shape: bf16[2,8,8,128], index: 2, kind: output, shape index: {0}]   ;;  %s1534_s3 = inlined_call_operand.vmem [shape: f32[8,8,128], index: 3, kind: output, shape index: {1}]   ;;  %s1535_s4 = inlined_call_operand.vmem [shape: f32[8,8,128], index: 4, kind: output, shape index: {2}]  }
   0x1   :  { %s1296_s17 = smov 0   ;;  %s1298_s18 = smov 0  }
   0x2   :  { %s1300_s19 = smov 0   ;;  %s1302_s20 = smov 0  }
   0x3   :  { %s1304_s21 = smov 0   ;;  %s1306_s22 = smov 0  }
   0x4   :  { %s1308_s23 = smov 0  }
   0x5 LB: > { %s24_s24 = sadd.s32 1, %s1255_s21  ;;  %s27_s25 = sadd.s32 1, %s1259_s22  ;;  %s1263_s23 = sphi %s1308_s23, %s15_s23   ;;  %s1259_s22 = sphi %s1306_s22, %s1547_s22   ;;  %s1255_s21 = sphi %s1304_s21, %s1546_s21   ;;  %s1251_s20 = sphi %s1302_s20, %s1545_s20   ;;  %s1247_s19 = sphi %s1300_s19, %s1544_s19   ;;  %s1243_s18 = sphi %s1298_s18, %s1543_s18   ;;  %s1239_s17 = sphi %s1296_s17, %s1542_s17   ;;  %s1235_s16 = sphi %s1294_s16, %s1541_s16   ;;  %s1231_s15 = sphi %s1292_s15, %s1540_s15  }
   0x6   : > { %p25_p0 = scmp.ge.s32.totalorder %s24_s24, 3  ;;  %s916_s26 = sadd.s32 4294967295, %s1263_s23  }
   0x7   : > { %s31_s27 = sadd.s32 %s1255_s21, %s1259_s22  ;;  %p43_p1 = scmp.ne.s32.totalorder %s1243_s18, %s1239_s17 }
   0x8   : > { %s1549_s24 = smov (%p25_p0, %s24_s24), 0  ;;  %s1551_s25 = smov (!%p25_p0, %s27_s25), %s1259_s22 }
   0x9   : > { %p44_p2 = scmp.eq.s32.totalorder %s1263_s23, 0  ;;  %p29_p3 = scmp.ge.s32.totalorder %s1551_s25, 8 }
   0xa   : > { %s36_s28 = sadd.s32 1, %s1243_s18  ;;  %p93_p5 = scmp.ne.s32.totalorder %s1235_s16, %s1231_s15 }
   0xb   : > { %p1349_p4 = por %p44_p2, %p43_p1  ;;  %s1553_s25 = smov (%p29_p3, %s1551_s25), 0 }
   0xc   : > { %s83_s30 = sadd.s32 1, %s1235_s16  ;;  %p94_p6 = scmp.eq.s32.totalorder %s916_s26, 23 }
   0xd   : > { %s32_s5 = sadd.s32 %s1553_s25, %s1549_s24  ;;  %s80_s6 = ssub.s32 %s1259_s22, %s1553_s25 }
   0xe   : > { %s33_s7 = ssub.s32 %s31_s27, %s32_s5  ;;  %p81_p7 = scmp.eq.s32.totalorder %s80_s6, 0 }
   0xf   : > { %p34_p8 = scmp.eq.s32.totalorder %s33_s7, 0  ;;  %p1362_p9 = por %p94_p6, %p93_p5 }
  0x10   : > { %s1367_s9 = scalar_select %p81_p7, %s1235_s16, %s83_s30  }
  0x11   : > { %s1370_s10 = scalar_select %p34_p8, %s1243_s18, %s36_s28  }
  0x12   : > { %p919_p10 = scmp.ge.s32.totalorder %s1263_s23, 24 }
  0x14   : > { %171 = sbr.rel (%p919_p10) target bundleno = 30 (0x1e), region = 20 }
  0x19   : > { %174 = sbr.rel (!%p1349_p4) target bundleno = 30 (0x1e), region = 24  ;;  %s176_s11 = sand.u32 (%p1349_p4), 1, %s1243_s18  }
  0x1a   : > { %s1000_s12 = sshll.u32 (%p1349_p4), %s31_s27, 3  ;;  %s920_s13 = sshll.u32 (%p1349_p4), %s176_s11, 4 }
  0x1b   : > { %s182_s5 = scalar_lea.vmem (%p1349_p4), %s1531_s0, %s1000_s12  ;;  %s178_s30 = scalar_lea.vmem (%p1349_p4), [#allocation3], %s920_s13 }
  0x1c   : > { %v199_v0 = vld [vmem:[%s182_s5] sm:$0xff] (%p1349_p4)   ;;  %v203_v1 = vld [vmem:[%s182_s5 + $0x50] sm:$0xff] (%p1349_p4)  }
  0x1d   : > { %200 = vst [vmem:[%s178_s30] sm:$0xff] (%p1349_p4), %v199_v0   ;;  %204 = vst [vmem:[%s178_s30 + $0x8] sm:$0xff] (%p1349_p4), %v203_v1  }
  0x1e PF: > { %p923_p11 = scmp.ge.s32.totalorder %s1263_s23, 1  ;;  %p237_p12 = scmp.lt.s32.totalorder %s1263_s23, 25 }
  0x20   : > { %p238_p13 = pnand %p923_p11, %p237_p12 }
  0x21   : > { %s261_s27 = sand.u32 (!%p238_p13), 1, %s1231_s15   ;;  %p277_p0 = scmp.lt.s32.totalorder (!%p238_p13), %s1251_s20, 7 }
  0x22   : > { %241 = sbr.rel (%p238_p13) target bundleno = 346 (0x15a), region = 65  ;;  %s1383_s28 = sshll.u32 (!%p238_p13), %s261_s27, 3 }
  0x23   : > { %s1001_s29 = smul.u32 (!%p238_p13), 192, %s1247_s19  ;;  %s1488_s7 = scalar_lea.vmem (!%p238_p13), [#allocation4], %s1383_s28 }
  0x24   : > { %p993_p1 = scmp.ne.s32.totalorder (!%p238_p13), %s1247_s19, 0 }
  0x25   : > { %s1396_s15 = scalar_lea.vmem (!%p238_p13), %s1532_s1, %s1001_s29  ;;  %s244_s29 = sand.u32 (!%p238_p13), 1, %s1239_s17  }
  0x27   : > { %v1265_v2 = vmov 0.0   ;;  %vm1266_vm0 = vmmov 0   ;;  %s278_s6 = scalar_select %p277_p0, %s1251_s20, 7  ;;  %v1168_v3 = vld [vmem:[%s1396_s15 + $0x78] sm:$0xff]   ;;  %v1170_v5 = vld [vmem:[%s1396_s15 + $0x70] sm:$0xff]   ;;  %v1172_v7 = vld [vmem:[%s1396_s15 + $0x68] sm:$0xff]  }
  0x28   : > { %1034 = vmatprep.subr.bf16.mxu0 %v1265_v2  ;;  %1054 = vmatprep.subr.bf16.mxu1 %v1265_v2  ;;  %v1169_v4 = vld [vmem:[%s1396_s15 + $0x38] sm:$0xff]   ;;  %v1171_v6 = vld [vmem:[%s1396_s15 + $0x30] sm:$0xff]   ;;  %v1173_v8 = vld [vmem:[%s1396_s15 + $0x28] sm:$0xff]   ;;  %vm310_vm1 = vsmask.f32 3328  ;;  %vm551_vm4 = vcmask 1042432  }
  0x29   : > { %1050 = vmatprep.mubr.msk.bf16.mxu0 %vm1266_vm0, %v1265_v2  ;;  %1070 = vmatprep.mubr.msk.bf16.mxu1 %vm1266_vm0, %v1265_v2  ;;  %s926_s12 = sshll.u32 %s278_s6, 3  ;;  %v1174_v9 = vld [vmem:[%s1396_s15 + $0x60] sm:$0xff]   ;;  %s924_s6 = sshll.u32 %s244_s29, 4  ;;  %vm311_vm2 = vsmask.f32 7440  ;;  %v1176_v11 = vld [vmem:[%s1396_s15 + $0x58] sm:$0xff]  }
  0x2a   : > { %s1402_s26 = scalar_lea.vmem %s1534_s3, %s926_s12  ;;  %s1407_s27 = scalar_lea.vmem %s1535_s4, %s926_s12  ;;  %1035 = vmatpush3.bf16.msra.mxu0 %v1168_v3  ;;  %1055 = vmatpush3.bf16.msra.mxu1 %v1169_v4  ;;  %v1175_v10 = vld [vmem:[%s1396_s15 + $0x20] sm:$0xff]   ;;  %v1177_v12 = vld [vmem:[%s1396_s15 + $0x18] sm:$0xff]   ;;  %v1178_v20 = vld [vmem:[%s1396_s15 + $0x50] sm:$0xff]   ;;  %vm552_vm5 = vcmask 1046532  }
  0x2b   : > { %1036 = vmatprep.subr.bf16.mxu0 %v1265_v2  ;;  %1056 = vmatprep.subr.bf16.mxu1 %v1265_v2  ;;  %s246_s17 = scalar_lea.vmem [#allocation3], %s924_s6  ;;  %v1179_v24 = vld [vmem:[%s1396_s15 + $0x10] sm:$0xff]   ;;  %v1180_v28 = vld [vmem:[%s1396_s15 + $0x48] sm:$0xff]   ;;  %vm1448_vm3 = vmor %vm310_vm1, %vm311_vm2 }
  0x2c   : > { %v1427_v13 = vld [vmem:[%s246_s17] sm:$0xf]  ;;  %v1429_v14 = vld [vmem:[%s246_s17 + $0x4] sm:$0x1]  ;;  %v1431_v15 = vld [vmem:[%s246_s17 + $0x8] sm:$0xf] }
  0x2d   : > { %v1433_v16 = vld [vmem:[%s246_s17 + $0xc] sm:$0x1]  ;;  %v314_v17 = vshrl.u32 %v1427_v13, 16  ;;  %v317_v18 = vshll.u32 %v1427_v13, 16  ;;  %v328_v19 = vshrl.u32 %v1431_v15, 16  ;;  %v323_v21 = vshll.u32 %v1429_v14, 16  ;;  %vm553_vm6 = vmor %vm551_vm4, %vm552_vm5 }
  0x2e   : > { %1037 = vmatpush3.bf16.msra.mxu0 %v1170_v5  ;;  %1057 = vmatpush3.bf16.msra.mxu1 %v1171_v6  ;;  %v331_v22 = vshll.u32 %v1431_v15, 16  ;;  %v337_v23 = vshll.u32 %v1433_v16, 16  ;;  %v1181_v35 = vld [vmem:[%s1396_s15 + $0x8] sm:$0xff]   ;;  %v1182_v38 = vld [vmem:[%s1396_s15 + $0x40] sm:$0xff]   ;;  %v956_v43 = vcombine.low %v1427_v13, %v1431_v15  ;;  %v1185_v44 = vld [vmem:[%s1396_s15 + $0xb8] sm:$0xff]   ;;  %v556_v50 = vrot.slane %v1429_v14, 5 }
  0x2f   : > { %1038 = vmatprep.subr.bf16.mxu0 %v1265_v2  ;;  %1058 = vmatprep.subr.bf16.mxu1 %v1265_v2  ;;  %v316_v25 = vrot.slane %v314_v17, 4  ;;  %v319_v26 = vrot.slane %v317_v18, 5  ;;  %v330_v27 = vrot.slane %v328_v19, 4  ;;  %v325_v32 = vrot.slane %v323_v21, 5  ;;  %v1183_v41 = vld [vmem:[%s1396_s15] sm:$0xff]   ;;  %v1186_v45 = vld [vmem:[%s1396_s15 + $0xb0] sm:$0xff]  }
  0x30   : > { %v333_v29 = vrot.slane %v331_v22, 5  ;;  %v339_v34 = vrot.slane %v337_v23, 5  ;;  %v1187_v46 = vld [vmem:[%s1396_s15 + $0xa8] sm:$0xff]   ;;  %v1188_v47 = vld [vmem:[%s1396_s15 + $0xa0] sm:$0xff]   ;;  %v1189_v48 = vld [vmem:[%s1396_s15 + $0x98] sm:$0xff]   ;;  %v560_v51 = vrot.slane %v1433_v16, 5 }
  0x31   : > { %v320_v30 = vor.u32 %v319_v26, %v316_v25  ;;  %v1190_v49 = vld [vmem:[%s1396_s15 + $0x90] sm:$0xff]   ;;  %v1191_v52 = vld [vmem:[%s1396_s15 + $0x88] sm:$0xff]   ;;  %v965_v53 = vrot.slane %v1427_v13, 9  ;;  %v966_v54 = vrot.slane %v1431_v15, 9  ;;  %v1192_v55 = vld [vmem:[%s1396_s15 + $0x80] sm:$0xff]  }
  0x32   : > { %1039 = vmatpush3.bf16.msra.mxu0 %v1172_v7  ;;  %1059 = vmatpush3.bf16.msra.mxu1 %v1173_v8  ;;  %v334_v33 = vor.u32 %v333_v29, %v330_v27 }
  0x33   : > { %1040 = vmatprep.subr.bf16.mxu0 %v1265_v2  ;;  %1060 = vmatprep.subr.bf16.mxu1 %v1265_v2  ;;  %v321_v36 = vrot.slane %v320_v30, 4  ;;  %v557_v56 = vsel %vm553_vm6, %v965_v53, %v556_v50  ;;  %v561_v57 = vsel %vm553_vm6, %v966_v54, %v560_v51 }
  0x34   : > { %v335_v37 = vrot.slane %v334_v33, 4  ;;  %v984_v58 = vcombine.low %v557_v56, %v561_v57 }
  0x35   : > { %v326_v39 = vsel %vm1448_vm3, %v321_v36, %v325_v32 }
  0x36   : > { %1041 = vmatpush3.bf16.msra.mxu0 %v1174_v9  ;;  %1061 = vmatpush3.bf16.msra.mxu1 %v1175_v10  ;;  %v340_v40 = vsel %vm1448_vm3, %v335_v37, %v339_v34 }
  0x37   : > { %1042 = vmatprep.subr.bf16.mxu0 %v1265_v2  ;;  %1062 = vmatprep.subr.bf16.mxu1 %v1265_v2  ;;  %v947_v42 = vcombine.low %v326_v39, %v340_v40 }
  0x3a   : > { %1043 = vmatpush3.bf16.msra.mxu0 %v1176_v11  ;;  %1063 = vmatpush3.bf16.msra.mxu1 %v1177_v12 }
  0x3b   : > { %1044 = vmatprep.subr.bf16.mxu0 %v1265_v2  ;;  %1064 = vmatprep.subr.bf16.mxu1 %v1265_v2 }
  0x3e   : > { %1045 = vmatpush3.bf16.msra.mxu0 %v1178_v20  ;;  %1065 = vmatpush3.bf16.msra.mxu1 %v1179_v24 }
  0x3f   : > { %1046 = vmatprep.subr.bf16.mxu0 %v1265_v2  ;;  %1066 = vmatprep.subr.bf16.mxu1 %v1265_v2 }
  0x42   : > { %1047 = vmatpush3.bf16.msra.mxu0 %v1180_v28  ;;  %1067 = vmatpush3.bf16.msra.mxu1 %v1181_v35 }
  0x43   : > { %1048 = vmatprep.subr.bf16.mxu0 %v1265_v2  ;;  %1068 = vmatprep.subr.bf16.mxu1 %v1265_v2 }
  0x46   : > { %1049 = vmatpush3.bf16.msra.mxu0 %v1182_v38  ;;  %1069 = vmatpush3.bf16.msra.mxu1 %v1183_v41 }
  0x47   : > { %1074 = vmatprep.subr.bf16.mxu0 %v1265_v2 }
  0x49   : > { %1051 = vmatmul.mubr.bf16.vlgmr.msra.gmra.mxu0 %v947_v42  ;;  %1071 = vmatmul.mubr.bf16.vlgmr.msra.gmra.mxu1 %v956_v43 }
  0x4a   : > { %1075 = vmatpush3.bf16.msra.mxu0 %v1185_v44  ;;  %1090 = vmatprep.mubr.msk.bf16.mxu0 %vm1266_vm0, %v1265_v2 }
  0x4b   : > { %1076 = vmatprep.subr.bf16.mxu0 %v1265_v2 }
  0x4e   : > { %1077 = vmatpush3.bf16.msra.mxu0 %v1186_v45 }
  0x4f   : > { %1078 = vmatprep.subr.bf16.mxu0 %v1265_v2 }
  0x52   : > { %1079 = vmatpush3.bf16.msra.mxu0 %v1187_v46 }
  0x53   : > { %1080 = vmatprep.subr.bf16.mxu0 %v1265_v2 }
  0x56   : > { %1081 = vmatpush3.bf16.msra.mxu0 %v1188_v47 }
  0x57   : > { %1082 = vmatprep.subr.bf16.mxu0 %v1265_v2 }
  0x5a   : > { %1083 = vmatpush3.bf16.msra.mxu0 %v1189_v48 }
  0x5b   : > { %1084 = vmatprep.subr.bf16.mxu0 %v1265_v2 }
  0x5e   : > { %1085 = vmatpush3.bf16.msra.mxu0 %v1190_v49 }
  0x5f   : > { %1086 = vmatprep.subr.bf16.mxu0 %v1265_v2 }
  0x62   : > { %1087 = vmatpush3.bf16.msra.mxu0 %v1191_v52 }
  0x63   : > { %1088 = vmatprep.subr.bf16.mxu0 %v1265_v2 }
  0x66   : > { %1089 = vmatpush3.bf16.msra.mxu0 %v1192_v55 }
  0x69   : > { %1091 = vmatmul.mubr.bf16.vlgmr.msra.gmra.mxu0 %v984_v58 }
 0x109   : > { %v447_v59 = vpop.f32.mrf.mxu0  ;;  %v542_v60 = vpop.f32.mrf.mxu1 }
 0x10a   : > { %v543_v4 = vadd.f32 %v542_v60, %v447_v59 }
 0x10b   : > { %v1052_v61 = vpop.f32.mrf.mxu0  ;;  %v1072_v62 = vpop.f32.mrf.mxu1 }
 0x10d   : > { %v450_v63 = vpop.f32.mrf.mxu0  ;;  %v545_v0 = vpop.f32.mrf.mxu1 }
 0x10e   : > { %v546_v8 = vadd.f32 %v545_v0, %v450_v63 }
 0x10f   : > { %v1053_v1 = vpop.f32.mrf.mxu0  ;;  %v1073_v3 = vpop.f32.mrf.mxu1 }
 0x129   : > { %v668_v5 = vpop.f32.mrf.mxu0 }
 0x12a   : > { %v675_v6 = vadd.f32 %v668_v5, %v543_v4 }
 0x12b   : > { %v1092_v7 = vpop.f32.mrf.mxu0  ;;  %680 = sbr.rel (%p993_p1) target bundleno = 305 (0x131), region = 73 }
 0x12d   : > { %v671_v9 = vpop.f32.mrf.mxu0 }
 0x12e   : > { %v676_v10 = vadd.f32 %v671_v9, %v546_v8 }
 0x12f   : > { %v1093_v2 = vpop.f32.mrf.mxu0 }
 0x130   : > { %681 = vst [vmem:[#allocation2] sm:$0xff] %v675_v6  ;;  %682 = vst [vmem:[#allocation2 + $0x8] sm:$0xff] %v676_v10 }
 0x131 PF: > { %p994_p2 = scmp.le.s32.totalorder %s1247_s19, 0 }
 0x133   : > { %686 = sbr.rel (%p994_p2) target bundleno = 316 (0x13c), region = 77 }
 0x138   : > { %v687_v11 = vld [vmem:[#allocation2] sm:$0xff]  ;;  %v688_v12 = vld [vmem:[#allocation2 + $0x8] sm:$0xff] }
 0x139   : > { %v689_v13 = vadd.f32 %v687_v11, %v675_v6  ;;  %v690_v14 = vadd.f32 %v688_v12, %v676_v10 }
 0x13b   : > { %691 = vst [vmem:[#allocation2] sm:$0xff] %v689_v13  ;;  %692 = vst [vmem:[#allocation2 + $0x8] sm:$0xff] %v690_v14 }
 0x13c PF: > { %p995_p3 = scmp.ne.s32.totalorder %s1247_s19, 2 }
 0x13e   : > { %696 = sbr.rel (%p995_p3) target bundleno = 341 (0x155), region = 81 }
 0x143   : > { %v697_v15 = vld [vmem:[#allocation2] sm:$0xff]  ;;  %v698_v16 = vld [vmem:[#allocation2 + $0x8] sm:$0xff] }
 0x144   : > { %v1005_v17 = vpack.c.bf16 %v698_v16, %v697_v15  ;;  %v703_v18 = vadd.f32 %v698_v16, %v697_v15  ;;  %v710_v19 = vmul.f32 %v697_v15, %v697_v15  ;;  %v711_v20 = vmul.f32 %v698_v16, %v698_v16 }
 0x146   : > { %1006 = vst [vmem:[%s1488_s7] sm:$0xff] %v1005_v17   ;;  %v704_v21 = vrot.slane %v703_v18, 4  ;;  %v712_v22 = vadd.f32 %v711_v20, %v710_v19 }
 0x148   : > { %v705_v23 = vadd.f32 %v704_v21, %v703_v18  ;;  %v713_v24 = vrot.slane %v712_v22, 4 }
 0x14a   : > { %v706_v25 = vrot.slane %v705_v23, 2  ;;  %v714_v26 = vadd.f32 %v713_v24, %v712_v22 }
 0x14c   : > { %v707_v27 = vadd.f32 %v706_v25, %v705_v23  ;;  %v715_v28 = vrot.slane %v714_v26, 2 }
 0x14e   : > { %v708_v29 = vrot.slane %v707_v27, 1  ;;  %v716_v30 = vadd.f32 %v715_v28, %v714_v26 }
 0x150   : > { %v709_v31 = vadd.f32 %v708_v29, %v707_v27  ;;  %v717_v32 = vrot.slane %v716_v30, 1 }
 0x152   : > { %719 = vst [vmem:[%s1402_s26] sm:$0xff] %v709_v31  ;;  %v718_v33 = vadd.f32 %v717_v32, %v716_v30 }
 0x154   : > { %720 = vst [vmem:[%s1407_s27] sm:$0xff] %v718_v33 }
 0x155 PF: > { %735 = sbr.rel (!%p1362_p9) target bundleno = 346 (0x15a), region = 85  ;;  %s997_s19 = sshll.u32 (%p1362_p9), %s1251_s20, 2  ;;  %v754_v34 = vld [vmem:[%s1488_s7] sm:$0xf] (%p1362_p9)  ;;  %v756_v35 = vld [vmem:[%s1488_s7 + $0x4] sm:$0xf] (%p1362_p9) }
 0x156   : > { %s737_s15 = scalar_lea.vmem (%p1362_p9), %s1533_s2, %s997_s19 }
 0x157   : > { %755 = vst [vmem:[%s737_s15] sm:$0xf] (%p1362_p9), %v754_v34  ;;  %757 = vst [vmem:[%s737_s15 + $0x20] sm:$0xf] (%p1362_p9), %v756_v35 }
 0x15a PF: > { %s15_s23 = sadd.s32 1, %s1263_s23   ;;  %s1540_s15 = smov %s1235_s16 }
 0x15b   : > { %p12_p4 = scmp.ge.s32.totalorder %s15_s23, 26   ;;  %s1541_s16 = smov %s1367_s9 }
 0x15c   : > { %s1542_s17 = smov %s1243_s18  ;;  %s1543_s18 = smov %s1370_s10 }
 0x15d   : > { %s1544_s19 = smov %s1255_s21  ;;  %s1545_s20 = smov %s1259_s22 }
 0x15e   : > { %s1546_s21 = smov %s1549_s24  ;;  %s1547_s22 = smov %s1553_s25 }
 0x15f   :  { %14 = sbr.rel (!%p12_p4) target bundleno = 5 (0x5), region = 184 }

// kernel: _lambda_.27
= control target key start
LH: loop header
LB: loop body
LE: loop exit
PB: predicated region body
PF: predicated region fallthrough
CT: control target
= control target key end

     0   :  { %s422_s0 = inlined_call_operand.vmem [shape: bf16[128,128], index: 0, kind: input, shape index: {}]   ;;  %s423_s1 = inlined_call_operand.vmem [shape: f32[1,128], index: 1, kind: input, shape index: {}]   ;;  %s424_s2 = inlined_call_operand.vmem [shape: f32[1,128], index: 2, kind: input, shape index: {}]   ;;  %s425_s3 = inlined_call_operand.vmem [shape: bf16[128,128], index: 3, kind: output, shape index: {}]  }
   0x1   :  { %v227_v0 = vld [vmem:[%s422_s0] sm:$0xff]   ;;  %v298_v4 = vld [vmem:[%s422_s0 + $0x8] sm:$0xff]   ;;  %v299_v5 = vld [vmem:[%s422_s0 + $0x10] sm:$0xff]  }
   0x2   :  { %v338_v1 = vld [vmem:[%s423_s1] ss:$0 sm:$0xff]  ;;  %v228_v2 = vunpack.c.l.bf16 %v227_v0  ;;  %v229_v3 = vunpack.c.h.bf16 %v227_v0  ;;  %v300_v6 = vld [vmem:[%s422_s0 + $0x18] sm:$0xff]   ;;  %v232_v8 = vunpack.c.l.bf16 %v298_v4  ;;  %v233_v9 = vunpack.c.h.bf16 %v298_v4  ;;  %v302_v33 = vld [vmem:[%s422_s0 + $0x28] sm:$0xff]  }
   0x3   :  { %v352_v7 = vld [vmem:[%s424_s2] ss:$0 sm:$0xff]  ;;  %v236_v10 = vunpack.c.l.bf16 %v299_v5  ;;  %v237_v11 = vunpack.c.h.bf16 %v299_v5  ;;  %v240_v14 = vunpack.c.l.bf16 %v300_v6  ;;  %v241_v15 = vunpack.c.h.bf16 %v300_v6  ;;  %v303_v38 = vld [vmem:[%s422_s0 + $0x30] sm:$0xff]   ;;  %v304_v43 = vld [vmem:[%s422_s0 + $0x38] sm:$0xff]  }
   0x4   :  { %v53_v12 = vmul.f32 %v228_v2, %v338_v1  ;;  %v54_v13 = vmul.f32 %v229_v3, %v338_v1  ;;  %v55_v16 = vmul.f32 %v232_v8, %v338_v1  ;;  %v56_v17 = vmul.f32 %v233_v9, %v338_v1  ;;  %v301_v28 = vld [vmem:[%s422_s0 + $0x20] sm:$0xff]  }
   0x5   :  { %v57_v18 = vmul.f32 %v236_v10, %v338_v1  ;;  %v58_v19 = vmul.f32 %v237_v11, %v338_v1  ;;  %v59_v22 = vmul.f32 %v240_v14, %v338_v1  ;;  %v60_v23 = vmul.f32 %v241_v15, %v338_v1 }
   0x6   :  { %v76_v20 = vadd.f32 %v352_v7, %v53_v12  ;;  %v77_v21 = vadd.f32 %v352_v7, %v54_v13  ;;  %v78_v24 = vadd.f32 %v352_v7, %v55_v16  ;;  %v79_v25 = vadd.f32 %v352_v7, %v56_v17 }
   0x7   :  { %v80_v26 = vadd.f32 %v352_v7, %v57_v18  ;;  %v81_v27 = vadd.f32 %v352_v7, %v58_v19  ;;  %v82_v31 = vadd.f32 %v352_v7, %v59_v22  ;;  %v83_v32 = vadd.f32 %v352_v7, %v60_v23 }
   0x8   :  { %v92_v29 = vmax.f32 %v76_v20, 0.0  ;;  %v93_v30 = vmax.f32 %v77_v21, 0.0  ;;  %v94_v34 = vmax.f32 %v78_v24, 0.0  ;;  %v95_v35 = vmax.f32 %v79_v25, 0.0 }
   0x9   :  { %v96_v36 = vmax.f32 %v80_v26, 0.0  ;;  %v97_v37 = vmax.f32 %v81_v27, 0.0  ;;  %v98_v40 = vmax.f32 %v82_v31, 0.0  ;;  %v99_v41 = vmax.f32 %v83_v32, 0.0 }
   0xa   :  { %v261_v39 = vpack.c.bf16 %v93_v30, %v92_v29  ;;  %v244_v42 = vunpack.c.l.bf16 %v301_v28  ;;  %v266_v44 = vpack.c.bf16 %v95_v35, %v94_v34  ;;  %v245_v46 = vunpack.c.h.bf16 %v301_v28 }
   0xb   :  { %v271_v45 = vpack.c.bf16 %v97_v37, %v96_v36  ;;  %v248_v47 = vunpack.c.l.bf16 %v302_v33  ;;  %v276_v48 = vpack.c.bf16 %v99_v41, %v98_v40  ;;  %v249_v50 = vunpack.c.h.bf16 %v302_v33 }
   0xc   :  { %262 = vst [vmem:[%s425_s3] sm:$0xff] %v261_v39   ;;  %v61_v49 = vmul.f32 %v244_v42, %v338_v1  ;;  %v252_v51 = vunpack.c.l.bf16 %v303_v38  ;;  %305 = vst [vmem:[%s425_s3 + $0x8] sm:$0xff] %v266_v44   ;;  %v62_v52 = vmul.f32 %v245_v46, %v338_v1  ;;  %v253_v54 = vunpack.c.h.bf16 %v303_v38 }
   0xd   :  { %306 = vst [vmem:[%s425_s3 + $0x10] sm:$0xff] %v271_v45   ;;  %v63_v53 = vmul.f32 %v248_v47, %v338_v1  ;;  %v256_v55 = vunpack.c.l.bf16 %v304_v43  ;;  %307 = vst [vmem:[%s425_s3 + $0x18] sm:$0xff] %v276_v48   ;;  %v64_v57 = vmul.f32 %v249_v50, %v338_v1  ;;  %v257_v59 = vunpack.c.h.bf16 %v304_v43 }
   0xe   :  { %v84_v56 = vadd.f32 %v352_v7, %v61_v49  ;;  %v65_v58 = vmul.f32 %v252_v51, %v338_v1  ;;  %v85_v60 = vadd.f32 %v352_v7, %v62_v52  ;;  %v66_v62 = vmul.f32 %v253_v54, %v338_v1 }
   0xf   :  { %v86_v61 = vadd.f32 %v352_v7, %v63_v53  ;;  %v67_v63 = vmul.f32 %v256_v55, %v338_v1  ;;  %v87_v2 = vadd.f32 %v352_v7, %v64_v57  ;;  %v68_v4 = vmul.f32 %v257_v59, %v338_v1 }
  0x10   :  { %v100_v0 = vmax.f32 %v84_v56, 0.0  ;;  %v88_v3 = vadd.f32 %v352_v7, %v65_v58  ;;  %v101_v5 = vmax.f32 %v85_v60, 0.0  ;;  %v89_v8 = vadd.f32 %v352_v7, %v66_v62 }
  0x11   :  { %v102_v6 = vmax.f32 %v86_v61, 0.0  ;;  %v90_v9 = vadd.f32 %v352_v7, %v67_v63  ;;  %v103_v10 = vmax.f32 %v87_v2, 0.0  ;;  %v91_v12 = vadd.f32 %v352_v7, %v68_v4 }
  0x12   :  { %v104_v11 = vmax.f32 %v88_v3, 0.0  ;;  %v281_v13 = vpack.c.bf16 %v101_v5, %v100_v0  ;;  %v105_v14 = vmax.f32 %v89_v8, 0.0 }
  0x13   :  { %v106_v15 = vmax.f32 %v90_v9, 0.0  ;;  %v286_v16 = vpack.c.bf16 %v103_v10, %v102_v6  ;;  %v107_v17 = vmax.f32 %v91_v12, 0.0 }
  0x14   :  { %308 = vst [vmem:[%s425_s3 + $0x20] sm:$0xff] %v281_v13   ;;  %v291_v1 = vpack.c.bf16 %v105_v14, %v104_v11 }
  0x15   :  { %309 = vst [vmem:[%s425_s3 + $0x28] sm:$0xff] %v286_v16   ;;  %v296_v18 = vpack.c.bf16 %v107_v17, %v106_v15 }
  0x16   :  { %310 = vst [vmem:[%s425_s3 + $0x30] sm:$0xff] %v291_v1  }
  0x17   :  { %311 = vst [vmem:[%s425_s3 + $0x38] sm:$0xff] %v296_v18  }

// kernel: _lambda_.29
= control target key start
LH: loop header
LB: loop body
LE: loop exit
PB: predicated region body
PF: predicated region fallthrough
CT: control target
= control target key end

     0   :  { %s541_s0 = inlined_call_operand.vmem [shape: bf16[128,128], index: 0, kind: input, shape index: {}]   ;;  %s542_s1 = inlined_call_operand.vmem [shape: f32[1,128], index: 1, kind: input, shape index: {}]   ;;  %s543_s2 = inlined_call_operand.vmem [shape: f32[1,128], index: 2, kind: input, shape index: {}]   ;;  %s544_s3 = inlined_call_operand.vmem [shape: bf16[128,128], index: 3, kind: input, shape index: {}]   ;;  %s545_s4 = inlined_call_operand.vmem [shape: bf16[128,128], index: 4, kind: output, shape index: {}]  }
   0x1   :  { %v278_v0 = vld [vmem:[%s541_s0] sm:$0xff]   ;;  %v381_v5 = vld [vmem:[%s541_s0 + $0x8] sm:$0xff]   ;;  %v382_v12 = vld [vmem:[%s541_s0 + $0x10] sm:$0xff]  }
   0x2   :  { %v433_v1 = vld [vmem:[%s542_s1] ss:$0 sm:$0xff]  ;;  %v279_v2 = vunpack.c.l.bf16 %v278_v0  ;;  %v280_v3 = vunpack.c.h.bf16 %v278_v0  ;;  %v388_v6 = vld [vmem:[%s544_s3 + $0x8] sm:$0xff]   ;;  %v283_v10 = vunpack.c.l.bf16 %v381_v5  ;;  %v284_v11 = vunpack.c.h.bf16 %v381_v5  ;;  %v389_v13 = vld [vmem:[%s544_s3 + $0x10] sm:$0xff]  }
   0x3   :  { %v310_v4 = vld [vmem:[%s544_s3] sm:$0xff]   ;;  %v315_v16 = vunpack.c.l.bf16 %v388_v6  ;;  %v316_v17 = vunpack.c.h.bf16 %v388_v6  ;;  %v287_v20 = vunpack.c.l.bf16 %v382_v12  ;;  %v288_v21 = vunpack.c.h.bf16 %v382_v12  ;;  %v383_v22 = vld [vmem:[%s541_s0 + $0x18] sm:$0xff]   ;;  %v385_v54 = vld [vmem:[%s541_s0 + $0x28] sm:$0xff]  }
   0x4   :  { %v447_v7 = vld [vmem:[%s543_s2] ss:$0 sm:$0xff]  ;;  %v311_v8 = vunpack.c.l.bf16 %v310_v4  ;;  %v312_v9 = vunpack.c.h.bf16 %v310_v4  ;;  %v56_v14 = vmul.f32 %v279_v2, %v433_v1  ;;  %v57_v15 = vmul.f32 %v280_v3, %v433_v1  ;;  %v390_v39 = vld [vmem:[%s544_s3 + $0x18] sm:$0xff]   ;;  %v392_v63 = vld [vmem:[%s544_s3 + $0x28] sm:$0xff]  }
   0x5   :  { %v58_v18 = vmul.f32 %v283_v10, %v433_v1  ;;  %v59_v19 = vmul.f32 %v284_v11, %v433_v1  ;;  %v319_v25 = vunpack.c.l.bf16 %v389_v13  ;;  %v320_v26 = vunpack.c.h.bf16 %v389_v13  ;;  %v384_v48 = vld [vmem:[%s541_s0 + $0x20] sm:$0xff]   ;;  %v386_v5 = vld [vmem:[%s541_s0 + $0x30] sm:$0xff]  }
   0x6   :  { %v79_v23 = vadd.f32 %v447_v7, %v56_v14  ;;  %v80_v24 = vadd.f32 %v447_v7, %v57_v15  ;;  %v60_v29 = vmul.f32 %v287_v20, %v433_v1  ;;  %v61_v30 = vmul.f32 %v288_v21, %v433_v1  ;;  %v391_v49 = vld [vmem:[%s544_s3 + $0x20] sm:$0xff]   ;;  %v393_v11 = vld [vmem:[%s544_s3 + $0x30] sm:$0xff]   ;;  %v387_v20 = vld [vmem:[%s541_s0 + $0x38] sm:$0xff]  }
   0x7   :  { %v81_v27 = vadd.f32 %v447_v7, %v58_v18  ;;  %v82_v28 = vadd.f32 %v447_v7, %v59_v19  ;;  %v291_v33 = vunpack.c.l.bf16 %v383_v22  ;;  %v292_v34 = vunpack.c.h.bf16 %v383_v22 }
   0x8   :  { %v127_v31 = vadd.f32 %v311_v8, %v79_v23  ;;  %v128_v32 = vadd.f32 %v312_v9, %v80_v24  ;;  %v83_v37 = vadd.f32 %v447_v7, %v60_v29  ;;  %v84_v38 = vadd.f32 %v447_v7, %v61_v30 }
   0x9   :  { %v129_v35 = vadd.f32 %v315_v16, %v81_v27  ;;  %v130_v36 = vadd.f32 %v316_v17, %v82_v28  ;;  %v62_v42 = vmul.f32 %v291_v33, %v433_v1  ;;  %v63_v43 = vmul.f32 %v292_v34, %v433_v1  ;;  %v394_v33 = vld [vmem:[%s544_s3 + $0x38] sm:$0xff]  }
   0xa   :  { %v143_v40 = vmax.f32 %v127_v31, 0.0  ;;  %v144_v41 = vmax.f32 %v128_v32, 0.0  ;;  %v131_v46 = vadd.f32 %v319_v25, %v83_v37  ;;  %v132_v47 = vadd.f32 %v320_v26, %v84_v38 }
   0xb   :  { %v145_v44 = vmax.f32 %v129_v35, 0.0  ;;  %v146_v45 = vmax.f32 %v130_v36, 0.0  ;;  %v85_v51 = vadd.f32 %v447_v7, %v62_v42  ;;  %v86_v52 = vadd.f32 %v447_v7, %v63_v43 }
   0xc   :  { %v344_v50 = vpack.c.bf16 %v144_v41, %v143_v40  ;;  %v323_v53 = vunpack.c.l.bf16 %v390_v39  ;;  %v147_v56 = vmax.f32 %v131_v46, 0.0  ;;  %v148_v57 = vmax.f32 %v132_v47, 0.0 }
   0xd   :  { %v349_v55 = vpack.c.bf16 %v146_v45, %v145_v44  ;;  %v324_v58 = vunpack.c.h.bf16 %v390_v39  ;;  %v295_v60 = vunpack.c.l.bf16 %v384_v48  ;;  %v296_v61 = vunpack.c.h.bf16 %v384_v48 }
   0xe   :  { %345 = vst [vmem:[%s545_s4] sm:$0xff] %v344_v50   ;;  %v133_v59 = vadd.f32 %v323_v53, %v85_v51  ;;  %v327_v62 = vunpack.c.l.bf16 %v391_v49  ;;  %v354_v0 = vpack.c.bf16 %v148_v57, %v147_v56  ;;  %v328_v3 = vunpack.c.h.bf16 %v391_v49 }
   0xf   :  { %395 = vst [vmem:[%s545_s4 + $0x8] sm:$0xff] %v349_v55   ;;  %v134_v2 = vadd.f32 %v324_v58, %v86_v52  ;;  %v299_v4 = vunpack.c.l.bf16 %v385_v54  ;;  %v64_v8 = vmul.f32 %v295_v60, %v433_v1  ;;  %v65_v9 = vmul.f32 %v296_v61, %v433_v1 }
  0x10   :  { %v149_v6 = vmax.f32 %v133_v59, 0.0  ;;  %v300_v10 = vunpack.c.h.bf16 %v385_v54  ;;  %396 = vst [vmem:[%s545_s4 + $0x10] sm:$0xff] %v354_v0   ;;  %v331_v14 = vunpack.c.l.bf16 %v392_v63  ;;  %v332_v15 = vunpack.c.h.bf16 %v392_v63 }
  0x11   :  { %v150_v12 = vmax.f32 %v134_v2, 0.0  ;;  %v66_v13 = vmul.f32 %v299_v4, %v433_v1  ;;  %v87_v16 = vadd.f32 %v447_v7, %v64_v8  ;;  %v88_v17 = vadd.f32 %v447_v7, %v65_v9 }
  0x12   :  { %v67_v18 = vmul.f32 %v300_v10, %v433_v1  ;;  %v303_v19 = vunpack.c.l.bf16 %v386_v5  ;;  %v304_v23 = vunpack.c.h.bf16 %v386_v5  ;;  %v335_v24 = vunpack.c.l.bf16 %v393_v11 }
  0x13   :  { %v359_v21 = vpack.c.bf16 %v150_v12, %v149_v6  ;;  %v89_v22 = vadd.f32 %v447_v7, %v66_v13  ;;  %v135_v25 = vadd.f32 %v327_v62, %v87_v16  ;;  %v136_v26 = vadd.f32 %v328_v3, %v88_v17 }
  0x14   :  { %v90_v27 = vadd.f32 %v447_v7, %v67_v18  ;;  %v68_v28 = vmul.f32 %v303_v19, %v433_v1  ;;  %v69_v30 = vmul.f32 %v304_v23, %v433_v1  ;;  %v336_v31 = vunpack.c.h.bf16 %v393_v11 }
  0x15   :  { %397 = vst [vmem:[%s545_s4 + $0x18] sm:$0xff] %v359_v21   ;;  %v137_v29 = vadd.f32 %v331_v14, %v89_v22  ;;  %v307_v32 = vunpack.c.l.bf16 %v387_v20  ;;  %v151_v34 = vmax.f32 %v135_v25, 0.0  ;;  %v152_v35 = vmax.f32 %v136_v26, 0.0 }
  0x16   :  { %v138_v36 = vadd.f32 %v332_v15, %v90_v27  ;;  %v91_v37 = vadd.f32 %v447_v7, %v68_v28  ;;  %v92_v39 = vadd.f32 %v447_v7, %v69_v30  ;;  %v308_v40 = vunpack.c.h.bf16 %v387_v20 }
  0x17   :  { %v153_v38 = vmax.f32 %v137_v29, 0.0  ;;  %v70_v41 = vmul.f32 %v307_v32, %v433_v1  ;;  %v364_v42 = vpack.c.bf16 %v152_v35, %v151_v34  ;;  %v339_v45 = vunpack.c.l.bf16 %v394_v33 }
  0x18   :  { %v154_v43 = vmax.f32 %v138_v36, 0.0  ;;  %v139_v44 = vadd.f32 %v335_v24, %v91_v37  ;;  %v140_v46 = vadd.f32 %v336_v31, %v92_v39  ;;  %v71_v47 = vmul.f32 %v308_v40, %v433_v1 }
  0x19   :  { %v93_v48 = vadd.f32 %v447_v7, %v70_v41  ;;  %v340_v49 = vunpack.c.h.bf16 %v394_v33  ;;  %398 = vst [vmem:[%s545_s4 + $0x20] sm:$0xff] %v364_v42  }
  0x1a   :  { %v369_v50 = vpack.c.bf16 %v154_v43, %v153_v38  ;;  %v155_v51 = vmax.f32 %v139_v44, 0.0  ;;  %v156_v52 = vmax.f32 %v140_v46, 0.0  ;;  %v94_v53 = vadd.f32 %v447_v7, %v71_v47 }
  0x1b   :  { %v141_v54 = vadd.f32 %v339_v45, %v93_v48 }
  0x1c   :  { %399 = vst [vmem:[%s545_s4 + $0x28] sm:$0xff] %v369_v50   ;;  %v374_v55 = vpack.c.bf16 %v156_v52, %v155_v51  ;;  %v142_v56 = vadd.f32 %v340_v49, %v94_v53 }
  0x1d   :  { %v157_v1 = vmax.f32 %v141_v54, 0.0 }
  0x1e   :  { %400 = vst [vmem:[%s545_s4 + $0x30] sm:$0xff] %v374_v55   ;;  %v158_v57 = vmax.f32 %v142_v56, 0.0 }
  0x20   :  { %v379_v58 = vpack.c.bf16 %v158_v57, %v157_v1 }
  0x22   :  { %401 = vst [vmem:[%s545_s4 + $0x38] sm:$0xff] %v379_v58  }

// kernel: _lambda_.30
= control target key start
LH: loop header
LB: loop body
LE: loop exit
PB: predicated region body
PF: predicated region fallthrough
CT: control target
= control target key end

     0   :  { %s1879_s15 = smov 0   ;;  %s1881_s16 = smov 0   ;;  %s2242_s0 = inlined_call_operand.vmem [shape: bf16[2,10,11,128], index: 0, kind: input, shape index: {}]   ;;  %s2243_s1 = inlined_call_operand.vmem [shape: bf16[9,128,256], index: 1, kind: input, shape index: {}]   ;;  %s2244_s2 = inlined_call_operand.vmem [shape: bf16[2,4,4,256], index: 2, kind: output, shape index: {0}]   ;;  %s2245_s3 = inlined_call_operand.vmem [shape: f32[4,8,256], index: 3, kind: output, shape index: {1}]   ;;  %s2246_s4 = inlined_call_operand.vmem [shape: f32[4,8,256], index: 4, kind: output, shape index: {2}]  }
   0x1   :  { %s1883_s17 = smov 0   ;;  %s1885_s18 = smov 0  }
   0x2   :  { %s1887_s19 = smov 0   ;;  %s1889_s20 = smov 0  }
   0x3   :  { %s1891_s21 = smov 0   ;;  %s1893_s22 = smov 0  }
   0x4   :  { %s1895_s23 = smov 0  }
   0x5 LB: > { %s1500_s24 = sadd.s32 4294967295, %s1850_s23   ;;  %s24_s25 = sadd.s32 1, %s1842_s21  ;;  %s1850_s23 = sphi %s1895_s23, %s15_s23   ;;  %s1846_s22 = sphi %s1893_s22, %s2261_s22   ;;  %s1842_s21 = sphi %s1891_s21, %s2260_s21   ;;  %s1838_s20 = sphi %s1889_s20, %s2259_s20   ;;  %s1834_s19 = sphi %s1887_s19, %s2258_s19   ;;  %s1830_s18 = sphi %s1885_s18, %s2257_s18   ;;  %s1826_s17 = sphi %s1883_s17, %s2256_s17   ;;  %s1822_s16 = sphi %s1881_s16, %s2255_s16   ;;  %s1818_s15 = sphi %s1879_s15, %s2254_s15  }
   0x6   : > { %p25_p0 = scmp.ge.s32.totalorder %s24_s25, 3  ;;  %s27_s26 = sadd.s32 1, %s1846_s22 }
   0x7   : > { %s1502_s27 = sshll.u32 %s1846_s22, 1  ;;  %s38_s28 = sadd.s32 1, %s1830_s18 }
   0x8   : > { %s2263_s25 = smov (%p25_p0, %s24_s25), 0  ;;  %s2265_s26 = smov (!%p25_p0, %s27_s26), %s1846_s22 }
   0x9   : > { %s32_s29 = sadd.s32 %s1842_s21, %s1502_s27  ;;  %p45_p1 = scmp.ne.s32.totalorder %s1830_s18, %s1826_s17 }
   0xa   : > { %p29_p2 = scmp.ge.s32.totalorder %s2265_s26, 4  ;;  %p46_p3 = scmp.eq.s32.totalorder %s1850_s23, 0 }
   0xb   : > { %s85_s30 = sadd.s32 1, %s1822_s16  ;;  %p95_p4 = scmp.ne.s32.totalorder %s1822_s16, %s1818_s15 }
   0xc   : > { %s2267_s26 = smov (%p29_p2, %s2265_s26), 0  ;;  %p47_p5 = por %p46_p3, %p45_p1 }
   0xd   : > { %p96_p6 = scmp.eq.s32.totalorder %s1500_s24, 11  ;;  %s1503_s5 = sshll.u32 %s2267_s26, 1 }
   0xe   : > { %s82_s6 = ssub.s32 %s1846_s22, %s2267_s26  ;;  %s34_s7 = sadd.s32 %s1503_s5, %s2263_s25 }
   0xf   : > { %p83_p7 = scmp.eq.s32.totalorder %s82_s6, 0  ;;  %s35_s8 = ssub.s32 %s32_s29, %s34_s7 }
  0x10   : > { %p1945_p8 = por %p96_p6, %p95_p4  ;;  %p36_p9 = scmp.eq.s32.totalorder %s35_s8, 0 }
  0x11   : > { %s1950_s10 = scalar_select %p83_p7, %s1822_s16, %s85_s30  }
  0x12   : > { %s1953_s11 = scalar_select %p36_p9, %s1830_s18, %s38_s28  }
  0x13   : > { %p1505_p10 = scmp.ge.s32.totalorder %s1850_s23, 12 }
  0x15   : > { %173 = sbr.rel (%p1505_p10) target bundleno = 31 (0x1f), region = 20 }
  0x1a   : > { %176 = sbr.rel (!%p47_p5) target bundleno = 31 (0x1f), region = 24  ;;  %s178_s12 = sand.u32 (%p47_p5), 1, %s1830_s18  }
  0x1b   : > { %s1627_s13 = sshll.u32 (%p47_p5), %s32_s29, 3  ;;  %s1506_s14 = sshll.u32 (%p47_p5), %s178_s12, 4 }
  0x1c   : > { %s185_s5 = scalar_lea.vmem (%p47_p5), %s2242_s0, %s1627_s13  ;;  %s180_s6 = scalar_lea.vmem (%p47_p5), [#allocation3], %s1506_s14 }
  0x1d   : > { %v202_v0 = vld [vmem:[%s185_s5] sm:$0xff] (%p47_p5)   ;;  %v206_v1 = vld [vmem:[%s185_s5 + $0x50] sm:$0xff] (%p47_p5)  }
  0x1e   : > { %203 = vst [vmem:[%s180_s6] sm:$0xff] (%p47_p5), %v202_v0   ;;  %207 = vst [vmem:[%s180_s6 + $0x8] sm:$0xff] (%p47_p5), %v206_v1  }
  0x1f PF: > { %p1510_p11 = scmp.ge.s32.totalorder %s1850_s23, 1  ;;  %p240_p12 = scmp.lt.s32.totalorder %s1850_s23, 13 }
  0x21   : > { %p241_p13 = pnand %p1510_p11, %p240_p12 }
  0x22   : > { %s264_s28 = sand.u32 (!%p241_p13), 1, %s1818_s15   ;;  %p283_p0 = scmp.lt.s32.totalorder (!%p241_p13), %s1838_s20, 3 }
  0x23   : > { %244 = sbr.rel (%p241_p13) target bundleno = 354 (0x162), region = 65  ;;  %s1964_s29 = sshll.u32 (!%p241_p13), %s264_s28, 3 }
  0x24   : > { %s1630_s30 = smul.u32 (!%p241_p13), 384, %s1834_s19  ;;  %s2196_s8 = scalar_lea.vmem (!%p241_p13), [#allocation4], %s1964_s29 }
  0x25   : > { %p1613_p1 = scmp.ne.s32.totalorder (!%p241_p13), %s1834_s19, 0 }
  0x26   : > { %s1973_s13 = scalar_lea.vmem (!%p241_p13), %s2243_s1, %s1630_s30  ;;  %s247_s30 = sand.u32 (!%p241_p13), 1, %s1826_s17  }
  0x28   : > { %v1852_v2 = vmov 0   ;;  %s284_s7 = scalar_select %p283_p0, %s1838_s20, 3  ;;  %v1706_v3 = vld [vmem:[%s1973_s13 + $0xf4] ss:$8 sps:$4 sm:$0xff]   ;;  %v1710_v5 = vld [vmem:[%s1973_s13 + $0xf0] ss:$8 sps:$4 sm:$0xff]   ;;  %v311_v19 = vlaneseq }
  0x29   : > { %754 = vmatprep.mubr.bf16.mxu0 %v1852_v2  ;;  %1011 = vmatprep.mubr.bf16.mxu1 %v1852_v2  ;;  %v1708_v4 = vld [vmem:[%s1973_s13 + $0x74] ss:$8 sps:$4 sm:$0xff]   ;;  %v1711_v6 = vld [vmem:[%s1973_s13 + $0x70] ss:$8 sps:$4 sm:$0xff]   ;;  %v1712_v7 = vld [vmem:[%s1973_s13 + $0xe4] ss:$8 sps:$4 sm:$0xff]  }
  0x2a   : > { %s1628_s15 = sshll.u32 %s284_s7, 4  ;;  %722 = vmatprep.subr.bf16.mxu0 %v1706_v3  ;;  %979 = vmatprep.subr.bf16.mxu1 %v1708_v4  ;;  %v1714_v8 = vld [vmem:[%s1973_s13 + $0x64] ss:$8 sps:$4 sm:$0xff]   ;;  %v1716_v9 = vld [vmem:[%s1973_s13 + $0xe0] ss:$8 sps:$4 sm:$0xff]   ;;  %v312_v26 = vshrl.u32 %v311_v19, 7 }
  0x2b   : > { %s1979_s27 = scalar_lea.vmem %s2245_s3, %s1628_s15  ;;  %s1984_s28 = scalar_lea.vmem %s2246_s4, %s1628_s15  ;;  %723 = vmatpush1.bf16.msra.mxu0 %v1710_v5  ;;  %980 = vmatpush1.bf16.msra.mxu1 %v1711_v6  ;;  %v1717_v10 = vld [vmem:[%s1973_s13 + $0x60] ss:$8 sps:$4 sm:$0xff]   ;;  %vm398_vm0 = vsmask.f32 256  ;;  %v1718_v11 = vld [vmem:[%s1973_s13 + $0xd4] ss:$8 sps:$4 sm:$0xff]  }
  0x2c   : > { %724 = vmatprep.subr.bf16.mxu0 %v1712_v7  ;;  %981 = vmatprep.subr.bf16.mxu1 %v1714_v8  ;;  %vm399_vm1 = vsmask.f32 1284  ;;  %v1720_v12 = vld [vmem:[%s1973_s13 + $0x54] ss:$8 sps:$4 sm:$0xff]   ;;  %v1722_v13 = vld [vmem:[%s1973_s13 + $0xd0] ss:$8 sps:$4 sm:$0xff]  }
  0x2d   : > { %v1723_v14 = vld [vmem:[%s1973_s13 + $0x50] ss:$8 sps:$4 sm:$0xff]   ;;  %v1724_v15 = vld [vmem:[%s1973_s13 + $0xc4] ss:$8 sps:$4 sm:$0xff]   ;;  %v1853_v17 = vmov 1966171168   ;;  %vm2000_vm2 = vmor %vm398_vm0, %vm399_vm1 }
  0x2e   : > { %v1726_v16 = vld [vmem:[%s1973_s13 + $0x44] ss:$8 sps:$4 sm:$0xff]   ;;  %v309_v18 = vunpack.c.l.s4 %v1853_v17  ;;  %v1728_v21 = vld [vmem:[%s1973_s13 + $0xc0] ss:$8 sps:$4 sm:$0xff]   ;;  %vm401_vm3 = vsmask.f32 2312 }
  0x2f   : > { %725 = vmatpush1.bf16.msra.mxu0 %v1716_v9  ;;  %982 = vmatpush1.bf16.msra.mxu1 %v1717_v10  ;;  %v1729_v22 = vld [vmem:[%s1973_s13 + $0x40] ss:$8 sps:$4 sm:$0xff]   ;;  %v1730_v23 = vld [vmem:[%s1973_s13 + $0xb4] ss:$8 sps:$4 sm:$0xff]   ;;  %vm403_vm4 = vsmask.f32 3340  ;;  %vm402_vm5 = vmor %vm2000_vm2, %vm401_vm3 }
  0x30   : > { %726 = vmatprep.subr.bf16.mxu0 %v1718_v11  ;;  %983 = vmatprep.subr.bf16.mxu1 %v1720_v12  ;;  %v1732_v24 = vld [vmem:[%s1973_s13 + $0x34] ss:$8 sps:$4 sm:$0xff]   ;;  %v310_v25 = vunpack.c.0.s8 %v309_v18  ;;  %v1734_v27 = vld [vmem:[%s1973_s13 + $0xb0] ss:$8 sps:$4 sm:$0xff]   ;;  %s1511_s7 = sshll.u32 %s247_s30, 4  ;;  %vm404_vm7 = vmor %vm402_vm5, %vm403_vm4  ;;  %vm620_vm15 = vcmask 1041409  }
  0x31   : > { %v1735_v28 = vld [vmem:[%s1973_s13 + $0x30] ss:$8 sps:$4 sm:$0xff]   ;;  %v1736_v29 = vld [vmem:[%s1973_s13 + $0xa4] ss:$8 sps:$4 sm:$0xff]   ;;  %vm405_vm6 = vsmask.f32 4368 }
  0x32   : > { %v1738_v30 = vld [vmem:[%s1973_s13 + $0x24] ss:$8 sps:$4 sm:$0xff]   ;;  %v2016_v31 = vsub.s32 %v310_v25, %v312_v26  ;;  %vm407_vm8 = vsmask.f32 5396  ;;  %vm409_vm9 = vsmask.f32 6424  ;;  %vm406_vm11 = vmor %vm404_vm7, %vm405_vm6 }
  0x33   : > { %727 = vmatpush1.bf16.msra.mxu0 %v1722_v13  ;;  %984 = vmatpush1.bf16.msra.mxu1 %v1723_v14  ;;  %v1740_v32 = vld [vmem:[%s1973_s13 + $0xa0] ss:$8 sps:$4 sm:$0xff]   ;;  %vm411_vm10 = vsmask.f32 7452  ;;  %v1742_v34 = vld [vmem:[%s1973_s13 + $0x94] ss:$8 sps:$4 sm:$0xff]   ;;  %vm408_vm12 = vmor %vm406_vm11, %vm407_vm8 }
  0x34   : > { %728 = vmatprep.subr.bf16.mxu0 %v1724_v15  ;;  %985 = vmatprep.subr.bf16.mxu1 %v1726_v16  ;;  %v1741_v33 = vld [vmem:[%s1973_s13 + $0x20] ss:$8 sps:$4 sm:$0xff]   ;;  %v1744_v35 = vld [vmem:[%s1973_s13 + $0x14] ss:$8 sps:$4 sm:$0xff]   ;;  %s249_s17 = scalar_lea.vmem [#allocation3], %s1511_s7  ;;  %vm2033_vm13 = vmor %vm408_vm12, %vm409_vm9  ;;  %vm623_vm0 = vcmask 1042434  }
  0x35   : > { %v1517_v36 = vld.sshfl [vmem:[%s249_s17] sm:$0x33 pattern:$0x75316420]  ;;  %v1748_v50 = vld [vmem:[%s1973_s13 + $0x84] ss:$8 sps:$4 sm:$0xff]   ;;  %vm2066_vm14 = vmor %vm2033_vm13, %vm411_vm10 }
  0x36   : > { %v1746_v37 = vld [vmem:[%s1973_s13 + $0x90] ss:$8 sps:$4 sm:$0xff]   ;;  %v1521_v39 = vld.sshfl [vmem:[%s249_s17 + $0x4] sm:$0x11 pattern:$0x75316420]  ;;  %v307_v40 = vcombine.high %v1517_v36, %v1517_v36  ;;  %v2026_v41 = vrot.slane %v1517_v36, %v2016_v31 }
  0x37   : > { %729 = vmatpush1.bf16.msra.mxu0 %v1728_v21  ;;  %986 = vmatpush1.bf16.msra.mxu1 %v1729_v22  ;;  %v1747_v38 = vld [vmem:[%s1973_s13 + $0x10] ss:$8 sps:$4 sm:$0xff]   ;;  %v2030_v43 = vrot.slane %v1521_v39, %v2016_v31  ;;  %v1522_v45 = vld.sshfl [vmem:[%s249_s17 + $0xc] sm:$0x11 pattern:$0x75316420] }
  0x38   : > { %730 = vmatprep.subr.bf16.mxu0 %v1730_v23  ;;  %987 = vmatprep.subr.bf16.mxu1 %v1732_v24  ;;  %v1518_v42 = vld.sshfl [vmem:[%s249_s17 + $0x8] sm:$0x33 pattern:$0x75316420]  ;;  %v2038_v46 = vrot.slane %v307_v40, %v2016_v31  ;;  %v2042_v47 = vcombine.high %v2026_v41, %v2026_v41  ;;  %v414_v49 = vshrl.u32 %v2026_v41, 16  ;;  %v2051_v53 = vrot.slane %v1522_v45, %v2016_v31 }
  0x39   : > { %v331_v48 = vcombine.high %v1518_v42, %v1518_v42  ;;  %v1750_v51 = vld [vmem:[%s1973_s13 + $0x4] ss:$8 sps:$4 sm:$0xff]   ;;  %v2048_v52 = vrot.slane %v1518_v42, %v2016_v31  ;;  %v443_v54 = vshll.u32 %v2030_v43, 16  ;;  %v769_v55 = vrot.slane %v2026_v41, %v2016_v31  ;;  %v1752_v1 = vld [vmem:[%s1973_s13 + $0x80] ss:$8 sps:$4 sm:$0xff]  }
  0x3a   : > { %v2058_v56 = vcombine.high %v2038_v46, %v2038_v46  ;;  %v419_v59 = vshll.u32 %v2038_v46, 16  ;;  %v422_v60 = vshrl.u32 %v2038_v46, 16  ;;  %v427_v62 = vshll.u32 %v2042_v47, 16  ;;  %v1753_v3 = vld [vmem:[%s1973_s13] ss:$8 sps:$4 sm:$0xff]  }
  0x3b   : > { %731 = vmatpush1.bf16.msra.mxu0 %v1734_v27  ;;  %988 = vmatpush1.bf16.msra.mxu1 %v1735_v28  ;;  %v2061_v57 = vrot.slane %v331_v48, %v2016_v31  ;;  %v2074_v61 = vcombine.high %v2048_v52, %v2048_v52  ;;  %v430_v63 = vshrl.u32 %v2042_v47, 16  ;;  %v447_v0 = vshrl.u32 %v2048_v52, 16  ;;  %v1756_v12 = vld [vmem:[%s1973_s13 + $0x174] ss:$8 sps:$4 sm:$0xff]  }
  0x3c   : > { %732 = vmatprep.subr.bf16.mxu0 %v1736_v29  ;;  %989 = vmatprep.subr.bf16.mxu1 %v1738_v30  ;;  %v421_v5 = vsel %vm2066_vm14, %v414_v49, %v419_v59  ;;  %v435_v6 = vshll.u32 %v2058_v56, 16  ;;  %v438_v7 = vshrl.u32 %v2058_v56, 16  ;;  %v429_v8 = vsel %vm2066_vm14, %v422_v60, %v427_v62 }
  0x3d   : > { %v2083_v4 = vcombine.high %v2061_v57, %v2061_v57  ;;  %v452_v9 = vshll.u32 %v2061_v57, 16  ;;  %v455_v10 = vshrl.u32 %v2061_v57, 16  ;;  %v460_v11 = vshll.u32 %v2074_v61, 16 }
  0x3e   : > { %v437_v13 = vsel %vm2066_vm14, %v430_v63, %v435_v6  ;;  %v445_v14 = vsel %vm2066_vm14, %v438_v7, %v443_v54  ;;  %v463_v15 = vshrl.u32 %v2074_v61, 16  ;;  %v476_v20 = vshll.u32 %v2051_v53, 16 }
  0x3f   : > { %733 = vmatpush1.bf16.msra.mxu0 %v1740_v32  ;;  %990 = vmatpush1.bf16.msra.mxu1 %v1741_v33  ;;  %v468_v16 = vshll.u32 %v2083_v4, 16  ;;  %v454_v17 = vsel %vm2066_vm14, %v447_v0, %v452_v9  ;;  %v462_v18 = vsel %vm2066_vm14, %v455_v10, %v460_v11  ;;  %v471_v19 = vshrl.u32 %v2083_v4, 16 }
  0x40   : > { %734 = vmatprep.subr.bf16.mxu0 %v1742_v34  ;;  %991 = vmatprep.subr.bf16.mxu1 %v1744_v35  ;;  %vm626_vm1 = vcmask 1043459   ;;  %v505_v22 = vrot.slane %v421_v5, %v2016_v31  ;;  %v519_v23 = vrot.slane %v429_v8, %v2016_v31  ;;  %vm629_vm2 = vcmask 1044484  }
  0x41   : > { %v470_v21 = vsel %vm2066_vm14, %v463_v15, %v468_v16  ;;  %v478_v24 = vsel %vm2066_vm14, %v471_v19, %v476_v20  ;;  %v533_v25 = vrot.slane %v437_v13, %v2016_v31  ;;  %v547_v26 = vrot.slane %v445_v14, %v2016_v31 }
  0x42   : > { %v561_v27 = vrot.slane %v454_v17, %v2016_v31  ;;  %vm632_vm3 = vcmask 1045509   ;;  %v512_v28 = vrot.slane %v505_v22, %v2016_v31  ;;  %v526_v29 = vrot.slane %v519_v23, %v2016_v31 }
  0x43   : > { %735 = vmatpush1.bf16.msra.mxu0 %v1746_v37  ;;  %992 = vmatpush1.bf16.msra.mxu1 %v1747_v38  ;;  %v575_v30 = vrot.slane %v462_v18, %v2016_v31  ;;  %v589_v32 = vrot.slane %v470_v21, %v2016_v31  ;;  %vm635_vm4 = vcmask 1046534   ;;  %v540_v33 = vrot.slane %v533_v25, %v2016_v31  ;;  %v1754_v21 = vld [vmem:[%s1973_s13 + $0x170] ss:$8 sps:$4 sm:$0xff]  }
  0x44   : > { %736 = vmatprep.subr.bf16.mxu0 %v1748_v50  ;;  %993 = vmatprep.subr.bf16.mxu1 %v1750_v51  ;;  %v554_v34 = vrot.slane %v547_v26, %v2016_v31  ;;  %v568_v35 = vrot.slane %v561_v27, %v2016_v31  ;;  %v603_v36 = vrot.slane %v478_v24, %v2016_v31  ;;  %vm638_vm5 = vcmask 1047559  }
  0x45   : > { %v582_v37 = vrot.slane %v575_v30, %v2016_v31  ;;  %v596_v38 = vrot.slane %v589_v32, %v2016_v31  ;;  %v611_v39 = vunpack.c.l.b16 %v512_v28  ;;  %v612_v40 = vunpack.c.l.b16 %v526_v29 }
  0x46   : > { %v610_v42 = vrot.slane %v603_v36, %v2016_v31  ;;  %v613_v44 = vunpack.c.l.b16 %v540_v33  ;;  %v614_v45 = vunpack.c.l.b16 %v554_v34  ;;  %v615_v48 = vunpack.c.l.b16 %v568_v35  ;;  %v1757_v34 = vld [vmem:[%s1973_s13 + $0x160] ss:$8 sps:$4 sm:$0xff]  }
  0x47   : > { %737 = vmatpush1.bf16.msra.mxu0 %v1752_v1  ;;  %994 = vmatpush1.bf16.msra.mxu1 %v1753_v3  ;;  %v616_v49 = vunpack.c.l.b16 %v582_v37  ;;  %v617_v50 = vunpack.c.l.b16 %v596_v38  ;;  %v619_v51 = vrot.slane %v612_v40, 7  ;;  %v776_v54 = vrot.slane %v769_v55, %v2016_v31  ;;  %v1762_v37 = vld [vmem:[%s1973_s13 + $0x154] ss:$8 sps:$4 sm:$0xff]  }
  0x48   : > { %1166 = vmatprep.subr.bf16.mxu0 %v1756_v12  ;;  %v618_v58 = vunpack.c.l.b16 %v610_v42  ;;  %v622_v59 = vrot.slane %v613_v44, 6  ;;  %v625_v60 = vrot.slane %v614_v45, 5  ;;  %v628_v62 = vrot.slane %v615_v48, 4  ;;  %v1760_v48 = vld [vmem:[%s1973_s13 + $0x150] ss:$8 sps:$4 sm:$0xff]  }
  0x49   : > { %v621_v63 = vsel %vm620_vm15, %v619_v51, %v611_v39  ;;  %v631_v0 = vrot.slane %v616_v49, 3  ;;  %v634_v1 = vrot.slane %v617_v50, 2  ;;  %v783_v3 = vrot.slane %v2038_v46, %v2016_v31 }
  0x4a   : > { %v624_v5 = vsel %vm623_vm0, %v622_v59, %v621_v63  ;;  %v637_v6 = vrot.slane %v618_v58, 1  ;;  %v797_v7 = vrot.slane %v2042_v47, %v2016_v31  ;;  %v811_v41 = vrot.slane %v2058_v56, %v2016_v31 }
  0x4b   : > { %v627_v55 = vsel %vm626_vm1, %v625_v60, %v624_v5  ;;  %v790_v8 = vrot.slane %v783_v3, %v2016_v31  ;;  %v825_v9 = vrot.slane %v2048_v52, %v2016_v31  ;;  %v839_v10 = vrot.slane %v2061_v57, %v2016_v31  ;;  %v1763_v60 = vld [vmem:[%s1973_s13 + $0x140] ss:$8 sps:$4 sm:$0xff]   ;;  %v1766_v5 = vld [vmem:[%s1973_s13 + $0x130] ss:$8 sps:$4 sm:$0xff]  }
  0x4c   : > { %v630_v46 = vsel %vm629_vm2, %v628_v62, %v627_v55  ;;  %v804_v11 = vrot.slane %v797_v7, %v2016_v31  ;;  %v818_v47 = vrot.slane %v811_v41, %v2016_v31  ;;  %v853_v56 = vrot.slane %v2074_v61, %v2016_v31  ;;  %v1771_v41 = vld [vmem:[%s1973_s13 + $0x124] ss:$8 sps:$4 sm:$0xff]  }
  0x4d   : > { %v633_v12 = vsel %vm632_vm3, %v631_v0, %v630_v46  ;;  %v832_v13 = vrot.slane %v825_v9, %v2016_v31  ;;  %v846_v52 = vrot.slane %v839_v10, %v2016_v31  ;;  %v867_v57 = vrot.slane %v2083_v4, %v2016_v31  ;;  %v1759_v4 = vld [vmem:[%s1973_s13 + $0x164] ss:$8 sps:$4 sm:$0xff]   ;;  %v1768_v0 = vld [vmem:[%s1973_s13 + $0x134] ss:$8 sps:$4 sm:$0xff]  }
  0x4e   : > { %v636_v14 = vsel %vm635_vm4, %v634_v1, %v633_v12  ;;  %v860_v15 = vrot.slane %v853_v56, %v2016_v31  ;;  %v875_v16 = vunpack.c.l.b16 %v776_v54  ;;  %v876_v17 = vunpack.c.l.b16 %v790_v8  ;;  %v1769_v8 = vld [vmem:[%s1973_s13 + $0x120] ss:$8 sps:$4 sm:$0xff]   ;;  %v1774_v46 = vld [vmem:[%s1973_s13 + $0x114] ss:$8 sps:$4 sm:$0xff]   ;;  %v1777_v56 = vld [vmem:[%s1973_s13 + $0x104] ss:$8 sps:$4 sm:$0xff]  }
  0x4f   : > { %v639_v18 = vsel %vm638_vm5, %v637_v6, %v636_v14  ;;  %v874_v61 = vrot.slane %v867_v57, %v2016_v31  ;;  %v877_v19 = vunpack.c.l.b16 %v804_v11  ;;  %v878_v20 = vunpack.c.l.b16 %v818_v47  ;;  %v1772_v47 = vld [vmem:[%s1973_s13 + $0x110] ss:$8 sps:$4 sm:$0xff]  }
  0x50   : > { %v640_v22 = vpack.c.b16 %v639_v18, %v639_v18  ;;  %v879_v23 = vunpack.c.l.b16 %v832_v13  ;;  %v880_v24 = vunpack.c.l.b16 %v846_v52  ;;  %v881_v25 = vunpack.c.l.b16 %v860_v15  ;;  %v1775_v13 = vld [vmem:[%s1973_s13 + $0x100] ss:$8 sps:$4 sm:$0xff]  }
  0x51   : > { %v882_v26 = vunpack.c.l.b16 %v874_v61  ;;  %v883_v27 = vrot.slane %v876_v17, 7  ;;  %v885_v28 = vrot.slane %v877_v19, 6  ;;  %v887_v29 = vrot.slane %v878_v20, 5 }
  0x52   : > { %755 = vmatmul.mubr.bf16.vlgmr.msra.gmra.mxu0 %v640_v22  ;;  %v889_v30 = vrot.slane %v879_v23, 4  ;;  %v891_v33 = vrot.slane %v880_v24, 3  ;;  %v893_v36 = vrot.slane %v881_v25, 2  ;;  %v1046_v38 = vrot.slane %v2030_v43, %v2016_v31  ;;  %v1765_v43 = vld [vmem:[%s1973_s13 + $0x144] ss:$8 sps:$4 sm:$0xff]  }
  0x53   : > { %v884_v32 = vsel %vm620_vm15, %v883_v27, %v875_v16  ;;  %1167 = vmatpush1.bf16.msra.mxu0 %v1754_v21  ;;  %1198 = vmatprep.mubr.bf16.mxu0 %v1852_v2  ;;  %v895_v40 = vrot.slane %v882_v26, 1  ;;  %v1070_v42 = vrot.slane %v877_v19, 7  ;;  %v1072_v50 = vrot.slane %v878_v20, 6 }
  0x54   : > { %v886_v35 = vsel %vm623_vm0, %v885_v28, %v884_v32  ;;  %1168 = vmatprep.subr.bf16.mxu0 %v1759_v4  ;;  %v1053_v45 = vrot.slane %v1046_v38, %v2016_v31  ;;  %v1060_v62 = vrot.slane %v2051_v53, %v2016_v31  ;;  %v1076_v3 = vrot.slane %v880_v24, 4 }
  0x55   : > { %v888_v39 = vsel %vm626_vm1, %v887_v29, %v886_v35  ;;  %v1071_v58 = vsel %vm620_vm15, %v1070_v42, %v876_v17  ;;  %v1078_v53 = vrot.slane %v881_v25, 3  ;;  %v1080_v10 = vrot.slane %v882_v26, 2 }
  0x56   : > { %v890_v44 = vsel %vm629_vm2, %v889_v30, %v888_v39  ;;  %v1068_v51 = vunpack.c.l.b16 %v1053_v45  ;;  %v1073_v1 = vsel %vm623_vm0, %v1072_v50, %v1071_v58  ;;  %v1067_v6 = vrot.slane %v1060_v62, %v2016_v31 }
  0x57   : > { %v892_v2 = vsel %vm632_vm3, %v891_v33, %v890_v44  ;;  %1169 = vmatpush1.bf16.msra.mxu0 %v1757_v34 }
  0x58   : > { %v894_v49 = vsel %vm635_vm4, %v893_v36, %v892_v2  ;;  %1170 = vmatprep.subr.bf16.mxu0 %v1762_v37  ;;  %v1074_v63 = vrot.slane %v1068_v51, 5  ;;  %v1069_v9 = vunpack.c.l.b16 %v1067_v6 }
  0x59   : > { %v896_v54 = vsel %vm638_vm5, %v895_v40, %v894_v49 }
  0x5a   : > { %v897_v59 = vpack.c.b16 %v896_v54, %v896_v54  ;;  %v1075_v7 = vsel %vm626_vm1, %v1074_v63, %v1073_v1  ;;  %v1082_v31 = vrot.slane %v1069_v9, 1 }
  0x5b   : > { %1171 = vmatpush1.bf16.msra.mxu0 %v1760_v48  ;;  %v1077_v55 = vsel %vm629_vm2, %v1076_v3, %v1075_v7 }
  0x5c   : > { %1012 = vmatmul.mubr.bf16.vlgmr.msra.gmra.mxu1 %v897_v59  ;;  %1172 = vmatprep.subr.bf16.mxu0 %v1765_v43  ;;  %v1079_v11 = vsel %vm632_vm3, %v1078_v53, %v1077_v55 }
  0x5d   : > { %v1081_v12 = vsel %vm635_vm4, %v1080_v10, %v1079_v11 }
  0x5e   : > { %v1083_v52 = vsel %vm638_vm5, %v1082_v31, %v1081_v12 }
  0x5f   : > { %1173 = vmatpush1.bf16.msra.mxu0 %v1763_v60  ;;  %v1084_v57 = vpack.c.b16 %v1083_v52, %v1083_v52 }
  0x60   : > { %1174 = vmatprep.subr.bf16.mxu0 %v1768_v0 }
  0x63   : > { %1175 = vmatpush1.bf16.msra.mxu0 %v1766_v5 }
  0x64   : > { %1176 = vmatprep.subr.bf16.mxu0 %v1771_v41 }
  0x67   : > { %1177 = vmatpush1.bf16.msra.mxu0 %v1769_v8 }
  0x68   : > { %1178 = vmatprep.subr.bf16.mxu0 %v1774_v46 }
  0x6b   : > { %1179 = vmatpush1.bf16.msra.mxu0 %v1772_v47 }
  0x6c   : > { %1180 = vmatprep.subr.bf16.mxu0 %v1777_v56 }
  0x6f   : > { %1181 = vmatpush1.bf16.msra.mxu0 %v1775_v13 }
  0x72   : > { %1199 = vmatmul.mubr.bf16.vlgmr.msra.gmra.mxu0 %v1084_v57 }
 0x112   : > { %v756_v14 = vpop.f32.mrf.mxu0 }
 0x114   : > { %v758_v15 = vpop.f32.mrf.mxu0 }
 0x116   : > { %v760_v16 = vpop.f32.mrf.mxu0 }
 0x118   : > { %v761_v17 = vpop.f32.mrf.mxu0 }
 0x11c   : > { %v1013_v18 = vpop.f32.mrf.mxu1 }
 0x11d   : > { %v1014_v21 = vadd.f32 %v1013_v18, %v756_v14 }
 0x11e   : > { %v1015_v61 = vpop.f32.mrf.mxu1 }
 0x11f   : > { %v1016_v23 = vadd.f32 %v1015_v61, %v758_v15 }
 0x120   : > { %v1017_v19 = vpop.f32.mrf.mxu1 }
 0x122   : > { %v1018_v20 = vpop.f32.mrf.mxu1 }
 0x132   : > { %v1200_v22 = vpop.f32.mrf.mxu0 }
 0x133   : > { %v1207_v24 = vadd.f32 %v1200_v22, %v1014_v21 }
 0x134   : > { %v1202_v25 = vpop.f32.mrf.mxu0  ;;  %1212 = sbr.rel (%p1613_p1) target bundleno = 314 (0x13a), region = 73 }
 0x135   : > { %v1208_v4 = vadd.f32 %v1202_v25, %v1016_v23 }
 0x136   : > { %v1204_v26 = vpop.f32.mrf.mxu0 }
 0x138   : > { %v1205_v27 = vpop.f32.mrf.mxu0 }
 0x139   : > { %1213 = vst [vmem:[#allocation2] sm:$0xff] %v1207_v24  ;;  %1214 = vst [vmem:[#allocation2 + $0x8] sm:$0xff] %v1208_v4 }
 0x13a PF: > { %p1614_p2 = scmp.le.s32.totalorder %s1834_s19, 0 }
 0x13c   : > { %1218 = sbr.rel (%p1614_p2) target bundleno = 325 (0x145), region = 77 }
 0x141   : > { %v1219_v28 = vld [vmem:[#allocation2] sm:$0xff]  ;;  %v1220_v29 = vld [vmem:[#allocation2 + $0x8] sm:$0xff] }
 0x142   : > { %v1221_v30 = vadd.f32 %v1219_v28, %v1207_v24  ;;  %v1222_v32 = vadd.f32 %v1220_v29, %v1208_v4 }
 0x144   : > { %1223 = vst [vmem:[#allocation2] sm:$0xff] %v1221_v30  ;;  %1224 = vst [vmem:[#allocation2 + $0x8] sm:$0xff] %v1222_v32 }
 0x145 PF: > { %p1615_p3 = scmp.ne.s32.totalorder %s1834_s19, 2 }
 0x147   : > { %1228 = sbr.rel (%p1615_p3) target bundleno = 349 (0x15d), region = 81 }
 0x14c   : > { %v1229_v33 = vld [vmem:[#allocation2] sm:$0xff]  ;;  %v1230_v34 = vld [vmem:[#allocation2 + $0x8] sm:$0xff] }
 0x14d   : > { %v1233_v35 = vcombine.low %v1229_v33, %v1230_v34  ;;  %v1616_v36 = vcombine.low %v1230_v34, %v1230_v34  ;;  %v1234_v37 = vcombine.high %v1229_v33, %v1230_v34  ;;  %v1617_v38 = vcombine.high %v1230_v34, %v1230_v34 }
 0x14e   : > { %v1269_v39 = vrot.slane %v1229_v33, 4  ;;  %v1275_v40 = vrot.slane %v1230_v34, 4  ;;  %v1281_v42 = vmul.f32 %v1229_v33, %v1229_v33  ;;  %v1282_v44 = vmul.f32 %v1230_v34, %v1230_v34 }
 0x14f   : > { %v1618_v45 = vpack.c.bf16 %v1616_v36, %v1233_v35  ;;  %v1619_v2 = vpack.c.bf16 %v1617_v38, %v1234_v37 }
 0x150   : > { %v1270_v48 = vadd.f32 %v1269_v39, %v1229_v33  ;;  %v1276_v49 = vadd.f32 %v1275_v40, %v1230_v34  ;;  %v1283_v50 = vrot.slane %v1281_v42, 4  ;;  %v1289_v43 = vrot.slane %v1282_v44, 4 }
 0x151   : > { %1620 = vst.sshfl [vmem:[%s2196_s8] sm:$0x33 pattern:$0x76325410] %v1618_v45 }
 0x152   : > { %1621 = vst.sshfl [vmem:[%s2196_s8 + $0x4] sm:$0x33 pattern:$0x76325410] %v1619_v2  ;;  %v1271_v51 = vrot.slane %v1270_v48, 2  ;;  %v1277_v54 = vrot.slane %v1276_v49, 2  ;;  %v1284_v58 = vadd.f32 %v1283_v50, %v1281_v42  ;;  %v1290_v59 = vadd.f32 %v1289_v43, %v1282_v44 }
 0x154   : > { %v1272_v60 = vadd.f32 %v1271_v51, %v1270_v48  ;;  %v1278_v62 = vadd.f32 %v1277_v54, %v1276_v49  ;;  %v1285_v63 = vrot.slane %v1284_v58, 2  ;;  %v1291_v0 = vrot.slane %v1290_v59, 2 }
 0x156   : > { %v1273_v1 = vrot.slane %v1272_v60, 1  ;;  %v1279_v3 = vrot.slane %v1278_v62, 1  ;;  %v1286_v5 = vadd.f32 %v1285_v63, %v1284_v58  ;;  %v1292_v6 = vadd.f32 %v1291_v0, %v1290_v59 }
 0x158   : > { %v1274_v7 = vadd.f32 %v1273_v1, %v1272_v60  ;;  %v1280_v41 = vadd.f32 %v1279_v3, %v1278_v62  ;;  %v1287_v53 = vrot.slane %v1286_v5, 1  ;;  %v1293_v55 = vrot.slane %v1292_v6, 1 }
 0x15a   : > { %1295 = vst [vmem:[%s1979_s27] sm:$0xff] %v1274_v7  ;;  %1296 = vst [vmem:[%s1979_s27 + $0x8] sm:$0xff] %v1280_v41  ;;  %v1288_v8 = vadd.f32 %v1287_v53, %v1286_v5  ;;  %v1294_v9 = vadd.f32 %v1293_v55, %v1292_v6 }
 0x15c   : > { %1297 = vst [vmem:[%s1984_s28] sm:$0xff] %v1288_v8  ;;  %1298 = vst [vmem:[%s1984_s28 + $0x8] sm:$0xff] %v1294_v9 }
 0x15d PF: > { %1315 = sbr.rel (!%p1945_p8) target bundleno = 354 (0x162), region = 85  ;;  %s1631_s19 = sshll.u32 (%p1945_p8), %s1838_s20, 2  ;;  %v1335_v10 = vld [vmem:[%s2196_s8] sm:$0xf] (%p1945_p8)  ;;  %v1337_v46 = vld [vmem:[%s2196_s8 + $0x4] sm:$0xf] (%p1945_p8) }
 0x15e   : > { %s1318_s13 = scalar_lea.vmem (%p1945_p8), %s2244_s2, %s1631_s19 }
 0x15f   : > { %1336 = vst [vmem:[%s1318_s13] sm:$0xf] (%p1945_p8), %v1335_v10  ;;  %1338 = vst [vmem:[%s1318_s13 + $0x10] sm:$0xf] (%p1945_p8), %v1337_v46 }
 0x162 PF: > { %s15_s23 = sadd.s32 1, %s1850_s23   ;;  %s2254_s15 = smov %s1822_s16 }
 0x163   : > { %p12_p4 = scmp.ge.s32.totalorder %s15_s23, 14   ;;  %s2255_s16 = smov %s1950_s10 }
 0x164   : > { %s2256_s17 = smov %s1830_s18  ;;  %s2257_s18 = smov %s1953_s11 }
 0x165   : > { %s2258_s19 = smov %s1842_s21  ;;  %s2259_s20 = smov %s1846_s22 }
 0x166   : > { %s2260_s21 = smov %s2263_s25  ;;  %s2261_s22 = smov %s2267_s26 }
 0x167   :  { %14 = sbr.rel (!%p12_p4) target bundleno = 5 (0x5), region = 184 }

// kernel: _lambda_.23
= control target key start
LH: loop header
LB: loop body
LE: loop exit
PB: predicated region body
PF: predicated region fallthrough
CT: control target
= control target key end

     0   :  { %s3511_s15 = smov 0   ;;  %s3513_s16 = smov 0   ;;  %s4801_s0 = inlined_call_operand.vmem [shape: bf16[2,38,39,8], index: 0, kind: input, shape index: {}]   ;;  %s4802_s1 = inlined_call_operand.vmem [shape: bf16[49,8,128], index: 1, kind: input, shape index: {}]   ;;  %s4803_s2 = inlined_call_operand.vmem [shape: bf16[2,16,16,128], index: 2, kind: output, shape index: {0}]   ;;  %s4804_s3 = inlined_call_operand.vmem [shape: f32[16,8,128], index: 3, kind: output, shape index: {1}]   ;;  %s4805_s4 = inlined_call_operand.vmem [shape: f32[16,8,128], index: 4, kind: output, shape index: {2}]  }
   0x1   :  { %s3515_s17 = smov 0   ;;  %s3517_s18 = smov 0  }
   0x2   :  { %s3519_s19 = smov 0   ;;  %s3521_s20 = smov 0  }
   0x3   :  { %s3523_s21 = smov 0   ;;  %s3525_s22 = smov 0  }
   0x4   :  { %s3527_s23 = smov 0  }
   0x5 LB: > { %s3153_s24 = sadd.s32 4294967295, %s3483_s23   ;;  %s24_s25 = sadd.s32 1, %s3475_s21  ;;  %s3483_s23 = sphi %s3527_s23, %s15_s23   ;;  %s3479_s22 = sphi %s3525_s22, %s5014_s22   ;;  %s3475_s21 = sphi %s3523_s21, %s5013_s21   ;;  %s3471_s20 = sphi %s3521_s20, %s5012_s20   ;;  %s3467_s19 = sphi %s3519_s19, %s5011_s19   ;;  %s3463_s18 = sphi %s3517_s18, %s5010_s18   ;;  %s3459_s17 = sphi %s3515_s17, %s5009_s17   ;;  %s3455_s16 = sphi %s3513_s16, %s5008_s16   ;;  %s3451_s15 = sphi %s3511_s15, %s5007_s15  }
   0x6   : > { %p25_p0 = scmp.ge.s32.totalorder %s24_s25, 7  ;;  %s27_s26 = sadd.s32 1, %s3479_s22 }
   0x7   : > { %s3155_s27 = sshll.u32 %s3479_s22, 1  ;;  %s38_s28 = sadd.s32 1, %s3463_s18 }
   0x8   : > { %s5016_s25 = smov (%p25_p0, %s24_s25), 0  ;;  %s5018_s26 = smov (!%p25_p0, %s27_s26), %s3479_s22 }
   0x9   : > { %s32_s29 = sadd.s32 %s3475_s21, %s3155_s27  ;;  %p45_p1 = scmp.ne.s32.totalorder %s3463_s18, %s3459_s17 }
   0xa   : > { %p29_p2 = scmp.ge.s32.totalorder %s5018_s26, 16  ;;  %p46_p3 = scmp.eq.s32.totalorder %s3483_s23, 0 }
   0xb   : > { %s85_s30 = sadd.s32 1, %s3455_s16  ;;  %p95_p4 = scmp.ne.s32.totalorder %s3455_s16, %s3451_s15 }
   0xc   : > { %s5020_s26 = smov (%p29_p2, %s5018_s26), 0  ;;  %p47_p5 = por %p46_p3, %p45_p1 }
   0xd   : > { %p96_p6 = scmp.eq.s32.totalorder %s3153_s24, 111  ;;  %s3156_s5 = sshll.u32 %s5020_s26, 1 }
   0xe   : > { %s82_s6 = ssub.s32 %s3479_s22, %s5020_s26  ;;  %s34_s7 = sadd.s32 %s3156_s5, %s5016_s25 }
   0xf   : > { %p83_p7 = scmp.eq.s32.totalorder %s82_s6, 0  ;;  %s35_s8 = ssub.s32 %s32_s29, %s34_s7 }
  0x10   : > { %p3577_p8 = por %p96_p6, %p95_p4  ;;  %p36_p9 = scmp.eq.s32.totalorder %s35_s8, 0 }
  0x11   : > { %s3582_s10 = scalar_select %p83_p7, %s3455_s16, %s85_s30  }
  0x12   : > { %s3585_s11 = scalar_select %p36_p9, %s3463_s18, %s38_s28  }
  0x13   : > { %p3158_p10 = scmp.ge.s32.totalorder %s3483_s23, 112 }
  0x15   : > { %173 = sbr.rel (%p3158_p10) target bundleno = 34 (0x22), region = 20 }
  0x1a   : > { %176 = sbr.rel (!%p47_p5) target bundleno = 34 (0x22), region = 24  ;;  %s178_s12 = sand.u32 (%p47_p5), 1, %s3463_s18  }
  0x1b   : > { %s3338_s13 = smul.u32 (%p47_p5), 20, %s32_s29 }
  0x1c   : > { %s3337_s14 = smul.u32 (%p47_p5), 40, %s178_s12 }
  0x1d   : > { %s185_s5 = scalar_lea.vmem (%p47_p5), %s4801_s0, %s3338_s13 }
  0x1e   : > { %v202_v0 = vld [vmem:[%s185_s5] sm:$0xff] (%p47_p5)   ;;  %v206_v1 = vld [vmem:[%s185_s5 + $0x8] sm:$0xff] (%p47_p5)   ;;  %v210_v2 = vld [vmem:[%s185_s5 + $0x10] sm:$0xf] (%p47_p5)  ;;  %s180_s6 = scalar_lea.vmem (%p47_p5), [#allocation3], %s3337_s14 }
  0x1f   : > { %203 = vst [vmem:[%s180_s6] sm:$0xff] %v202_v0   ;;  %207 = vst [vmem:[%s180_s6 + $0x8] sm:$0xff] %v206_v1   ;;  %v212_v3 = vld [vmem:[%s185_s5 + $0x2f8] sm:$0xff]   ;;  %v216_v4 = vld [vmem:[%s185_s5 + $0x300] sm:$0xff]  }
  0x20   : > { %211 = vst [vmem:[%s180_s6 + $0x10] sm:$0xf] %v210_v2  ;;  %v220_v5 = vld [vmem:[%s185_s5 + $0x308] sm:$0xf]  ;;  %213 = vst [vmem:[%s180_s6 + $0x14] sm:$0xff] %v212_v3  }
  0x21   : > { %217 = vst [vmem:[%s180_s6 + $0x1c] sm:$0xff] %v216_v4   ;;  %221 = vst [vmem:[%s180_s6 + $0x24] sm:$0xf] %v220_v5 }
  0x22 PF: > { %p3161_p11 = scmp.ge.s32.totalorder %s3483_s23, 1  ;;  %p264_p12 = scmp.lt.s32.totalorder %s3483_s23, 113 }
  0x24   : > { %p265_p13 = pnand %p3161_p11, %p264_p12 }
  0x26   : > { %268 = sbr.rel (%p265_p13) target bundleno = 506 (0x1fa), region = 65 }
  0x2b   : > { %s288_s28 = sand.u32 1, %s3451_s15   ;;  %p305_p0 = scmp.lt.s32.totalorder %s3471_s20, 15  ;;  %v343_v6 = vlaneseq  ;;  %v3485_v7 = vmov 1966171168   ;;  %vm558_vm0 = vsmask.f32 256 }
  0x2c   : > { %s3596_s29 = sshll.u32 %s288_s28, 4  ;;  %s3250_s30 = smul.u32 28, %s3467_s19  ;;  %v341_v8 = vunpack.c.l.s4 %v3485_v7  ;;  %vm559_vm1 = vsmask.f32 1284  ;;  %vm561_vm3 = vsmask.f32 2312 }
  0x2d   : > { %s271_s7 = sand.u32 1, %s3459_s17   ;;  %v344_v9 = vshrl.u32 %v343_v6, 7  ;;  %vm560_vm2 = vmor %vm558_vm0, %vm559_vm1  ;;  %vm1387_vm4 = vcmask 1043456   ;;  %vm563_vm6 = vsmask.f32 3340  ;;  %vm1316_vm0 = vcmask 1041409  }
  0x2e   : > { %s306_s8 = scalar_select %p305_p0, %s3471_s20, 15  ;;  %v342_v10 = vunpack.c.0.s8 %v341_v8  ;;  %vm562_vm5 = vmor %vm560_vm2, %vm561_vm3  ;;  %vm565_vm7 = vsmask.f32 4368  ;;  %vm567_vm9 = vsmask.f32 5396  ;;  %vm1319_vm1 = vcmask 1042434  }
  0x2f   : > { %s3604_s13 = scalar_lea.vmem %s4802_s1, %s3250_s30  ;;  %s3339_s14 = smul.u32 40, %s271_s7  ;;  %vm564_vm8 = vmor %vm562_vm5, %vm563_vm6  ;;  %vm569_vm11 = vsmask.f32 6424  ;;  %vm571_vm13 = vsmask.f32 7452  ;;  %vm1322_vm2 = vcmask 1043459  }
  0x30   : > { %s3163_s17 = sshll.u32 %s306_s8, 3  ;;  %v3209_v11 = vld [vmem:[%s3604_s13 + $0x4] sm:$0xf]  ;;  %v527_v12 = vld [vmem:[%s3604_s13] sm:$0xf]  ;;  %v3608_v13 = vsub.s32 %v342_v10, %v344_v9  ;;  %vm566_vm10 = vmor %vm564_vm8, %vm565_vm7  ;;  %vm1325_vm3 = vcmask 1044484  }
  0x31   : > { %s3613_s5 = scalar_lea.vmem %s4804_s3, %s3163_s17  ;;  %s3618_s30 = scalar_lea.vmem %s4805_s4, %s3163_s17  ;;  %3330 = vmatprep.subr.msk.bf16.mxu0 %vm1387_vm4, %v3209_v11  ;;  %v1389_v14 = vsel %vm1387_vm4, %v3209_v11, 0  ;;  %3331 = vmatprep.subr.msk.bf16.mxu1 %vm1387_vm4, %v527_v12  ;;  %v1985_v15 = vsel %vm1387_vm4, %v527_v12, 0  ;;  %v3215_v16 = vld [vmem:[%s3604_s13 + $0x8] sm:$0xf]  ;;  %vm3629_vm12 = vmor %vm566_vm10, %vm567_vm9  ;;  %v3221_v22 = vld [vmem:[%s3604_s13 + $0xc] sm:$0xf] }
  0x32   : > { %3289 = vmatpush3.bf16.msra.mxu0 %v1389_v14  ;;  %3295 = vmatpush3.bf16.msra.mxu1 %v1985_v15  ;;  %s3625_s7 = scalar_lea.vmem [#allocation3], %s3339_s14  ;;  %v3644_v26 = vsel %vm1387_vm4, %v3215_v16, 0  ;;  %v3648_v27 = vsel %vm1387_vm4, %v3221_v22, 0  ;;  %vm570_vm14 = vmor %vm3629_vm12, %vm569_vm11  ;;  %vm1328_vm5 = vcmask 1045509   ;;  %vm1331_vm6 = vcmask 1046534   ;;  %s4757_s8 = scalar_lea.vmem [#allocation4], %s3596_s29 }
  0x33   : > { %v3165_v17 = vld.sshfl [vmem:[%s3625_s7] sm:$0x33 pattern:$0x75316420]  ;;  %3332 = vmatprep.subr.msk.bf16.mxu0 %vm1387_vm4, %v3215_v16  ;;  %3333 = vmatprep.subr.msk.bf16.mxu1 %vm1387_vm4, %v3221_v22  ;;  %vm3704_vm15 = vmor %vm570_vm14, %vm571_vm13  ;;  %vm1334_vm7 = vcmask 1047559   ;;  %vm1380_vm8 = vcmask 64512  }
  0x34   : > { %v3166_v19 = vld.sshfl [vmem:[%s3625_s7 + $0x4] sm:$0x33 pattern:$0x75316420]  ;;  %v339_v20 = vcombine.high %v3165_v17, %v3165_v17  ;;  %v3636_v21 = vrot.slane %v3165_v17, %v3608_v13  ;;  %p3238_p1 = scmp.ne.s32.totalorder %s3467_s19, 0 }
  0x35   : > { %v3167_v23 = vld.sshfl [vmem:[%s3625_s7 + $0x8] sm:$0x33 pattern:$0x75316420]  ;;  %v363_v24 = vcombine.high %v3166_v19, %v3166_v19  ;;  %v3641_v25 = vrot.slane %v3166_v19, %v3608_v13 }
  0x36   : > { %v3168_v28 = vld.sshfl [vmem:[%s3625_s7 + $0xc] sm:$0x33 pattern:$0x75316420]  ;;  %v3652_v29 = vrot.slane %v339_v20, %v3608_v13  ;;  %v3656_v30 = vcombine.high %v3636_v21, %v3636_v21  ;;  %v387_v31 = vcombine.high %v3167_v23, %v3167_v23  ;;  %v3659_v32 = vrot.slane %v3167_v23, %v3608_v13 }
  0x37   : > { %v3665_v33 = vld.sshfl [vmem:[%s3625_s7 + $0x10] sm:$0x33 pattern:$0x75316420]  ;;  %v3668_v34 = vrot.slane %v363_v24, %v3608_v13  ;;  %v3672_v35 = vcombine.high %v3641_v25, %v3641_v25  ;;  %v411_v36 = vcombine.high %v3168_v28, %v3168_v28  ;;  %v3675_v37 = vrot.slane %v3168_v28, %v3608_v13 }
  0x38   : > { %4889 = vst [vmem:[#allocation5_spill] sm:$0xff] %v3665_v33  ;;  %v3679_v38 = vcombine.high %v3652_v29, %v3652_v29  ;;  %v3682_v39 = vrot.slane %v387_v31, %v3608_v13  ;;  %v3686_v40 = vcombine.high %v3659_v32, %v3659_v32  ;;  %v3690_v41 = vrot.slane %v3665_v33, %v3608_v13 }
  0x39   : > { %v3694_v42 = vcombine.high %v3668_v34, %v3668_v34  ;;  %v3697_v43 = vrot.slane %v411_v36, %v3608_v13  ;;  %v3701_v44 = vcombine.high %v3675_v37, %v3675_v37  ;;  %v574_v46 = vshrl.u32 %v3636_v21, 16 }
  0x3a   : > { %4890 = vst [vmem:[#allocation6_spill] sm:$0xff] %v3690_v41  ;;  %v3711_v47 = vcombine.high %v3682_v39, %v3682_v39  ;;  %v579_v48 = vshll.u32 %v3652_v29, 16  ;;  %v582_v49 = vshrl.u32 %v3652_v29, 16  ;;  %v587_v50 = vshll.u32 %v3656_v30, 16 }
  0x3b   : > { %v3718_v51 = vcombine.high %v3697_v43, %v3697_v43  ;;  %v590_v52 = vshrl.u32 %v3656_v30, 16  ;;  %v595_v53 = vshll.u32 %v3679_v38, 16  ;;  %v598_v54 = vshrl.u32 %v3679_v38, 16 }
  0x3c   : > { %v581_v55 = vsel %vm3704_vm15, %v574_v46, %v579_v48  ;;  %v589_v56 = vsel %vm3704_vm15, %v582_v49, %v587_v50  ;;  %v603_v57 = vshll.u32 %v3641_v25, 16  ;;  %v606_v58 = vshrl.u32 %v3641_v25, 16 }
  0x3d   : > { %v597_v59 = vsel %vm3704_vm15, %v590_v52, %v595_v53  ;;  %v611_v60 = vshll.u32 %v3668_v34, 16  ;;  %v614_v61 = vshrl.u32 %v3668_v34, 16  ;;  %v619_v62 = vshll.u32 %v3672_v35, 16 }
  0x3e   : > { %v605_v63 = vsel %vm3704_vm15, %v598_v54, %v603_v57  ;;  %v622_v0 = vshrl.u32 %v3672_v35, 16  ;;  %v627_v1 = vshll.u32 %v3694_v42, 16  ;;  %v630_v2 = vshrl.u32 %v3694_v42, 16 }
  0x3f   : > { %v613_v3 = vsel %vm3704_vm15, %v606_v58, %v611_v60  ;;  %v621_v4 = vsel %vm3704_vm15, %v614_v61, %v619_v62  ;;  %v635_v5 = vshll.u32 %v3659_v32, 16  ;;  %v638_v6 = vshrl.u32 %v3659_v32, 16 }
  0x40   : > { %v629_v7 = vsel %vm3704_vm15, %v622_v0, %v627_v1  ;;  %v643_v8 = vshll.u32 %v3682_v39, 16  ;;  %v646_v9 = vshrl.u32 %v3682_v39, 16  ;;  %v651_v10 = vshll.u32 %v3686_v40, 16 }
  0x41   : > { %v637_v11 = vsel %vm3704_vm15, %v630_v2, %v635_v5  ;;  %v654_v12 = vshrl.u32 %v3686_v40, 16  ;;  %v659_v14 = vshll.u32 %v3711_v47, 16  ;;  %v662_v15 = vshrl.u32 %v3711_v47, 16 }
  0x42   : > { %v645_v16 = vsel %vm3704_vm15, %v638_v6, %v643_v8  ;;  %v653_v17 = vsel %vm3704_vm15, %v646_v9, %v651_v10  ;;  %v667_v18 = vshll.u32 %v3675_v37, 16  ;;  %v670_v19 = vshrl.u32 %v3675_v37, 16 }
  0x43   : > { %v661_v20 = vsel %vm3704_vm15, %v654_v12, %v659_v14  ;;  %v675_v22 = vshll.u32 %v3697_v43, 16  ;;  %v678_v23 = vshrl.u32 %v3697_v43, 16  ;;  %v683_v24 = vshll.u32 %v3701_v44, 16 }
  0x44   : > { %v669_v28 = vsel %vm3704_vm15, %v662_v15, %v667_v18  ;;  %v686_v31 = vshrl.u32 %v3701_v44, 16  ;;  %v691_v36 = vshll.u32 %v3718_v51, 16  ;;  %v694_v46 = vshrl.u32 %v3718_v51, 16 }
  0x45   : > { %v677_v48 = vsel %vm3704_vm15, %v670_v19, %v675_v22  ;;  %v685_v49 = vsel %vm3704_vm15, %v678_v23, %v683_v24  ;;  %v699_v50 = vshll.u32 %v3690_v41, 16  ;;  %v841_v52 = vrot.slane %v581_v55, %v3608_v13 }
  0x46   : > { %v693_v53 = vsel %vm3704_vm15, %v686_v31, %v691_v36  ;;  %v855_v54 = vrot.slane %v589_v56, %v3608_v13  ;;  %v869_v57 = vrot.slane %v597_v59, %v3608_v13  ;;  %v883_v58 = vrot.slane %v605_v63, %v3608_v13 }
  0x47   : > { %v701_v60 = vsel %vm3704_vm15, %v694_v46, %v699_v50  ;;  %v848_v61 = vrot.slane %v841_v52, %v3608_v13  ;;  %v897_v62 = vrot.slane %v613_v3, %v3608_v13  ;;  %v911_v0 = vrot.slane %v621_v4, %v3608_v13 }
  0x48   : > { %v3788_v55 = vrot.slane %v855_v54, %v3608_v13  ;;  %v876_v1 = vrot.slane %v869_v57, %v3608_v13  ;;  %v890_v56 = vrot.slane %v883_v58, %v3608_v13  ;;  %v925_v59 = vrot.slane %v629_v7, %v3608_v13 }
  0x49   : > { %v904_v63 = vrot.slane %v897_v62, %v3608_v13  ;;  %v918_v2 = vrot.slane %v911_v0, %v3608_v13  ;;  %v939_v5 = vrot.slane %v637_v11, %v3608_v13  ;;  %v953_v6 = vrot.slane %v645_v16, %v3608_v13 }
  0x4a   : > { %4893 = vst [vmem:[#allocation7_spill] sm:$0xff] %v3788_v55  ;;  %v932_v3 = vrot.slane %v925_v59, %v3608_v13  ;;  %v967_v4 = vrot.slane %v653_v17, %v3608_v13  ;;  %v981_v8 = vrot.slane %v661_v20, %v3608_v13  ;;  %v995_v9 = vrot.slane %v669_v28, %v3608_v13 }
  0x4b   : > { %v946_v7 = vrot.slane %v939_v5, %v3608_v13  ;;  %v960_v10 = vrot.slane %v953_v6, %v3608_v13  ;;  %v1009_v12 = vrot.slane %v677_v48, %v3608_v13  ;;  %v1023_v11 = vrot.slane %v685_v49, %v3608_v13 }
  0x4c   : > { %v974_v14 = vrot.slane %v967_v4, %v3608_v13  ;;  %v988_v15 = vrot.slane %v981_v8, %v3608_v13  ;;  %v1002_v16 = vrot.slane %v995_v9, %v3608_v13  ;;  %v1037_v17 = vrot.slane %v693_v53, %v3608_v13 }
  0x4d   : > { %v1016_v18 = vrot.slane %v1009_v12, %v3608_v13  ;;  %v1030_v19 = vrot.slane %v1023_v11, %v3608_v13  ;;  %v1051_v20 = vrot.slane %v701_v60, %v3608_v13  ;;  %v1283_v22 = vunpack.c.l.b16 %v848_v61 }
  0x4e   : > { %v1044_v23 = vrot.slane %v1037_v17, %v3608_v13  ;;  %v4806_v24 = vunpack.c.l.b16 %v3788_v55  ;;  %v3814_v28 = vunpack.c.l.b16 %v876_v1  ;;  %v3816_v31 = vunpack.c.l.b16 %v890_v56 }
  0x4f   : > { %v1058_v36 = vrot.slane %v1051_v20, %v3608_v13  ;;  %v3819_v46 = vunpack.c.l.b16 %v904_v63  ;;  %v3821_v48 = vunpack.c.l.b16 %v918_v2  ;;  %v3823_v49 = vunpack.c.l.b16 %v932_v3 }
  0x50   : > { %4894 = vst [vmem:[#allocation8_spill] sm:$0xff] %v3814_v28  ;;  %4895 = vst [vmem:[#allocation9_spill] sm:$0xff] %v3816_v31  ;;  %v3825_v50 = vunpack.c.l.b16 %v946_v7  ;;  %v3827_v52 = vunpack.c.l.b16 %v960_v10  ;;  %v3829_v53 = vunpack.c.l.b16 %v974_v14  ;;  %v3831_v54 = vunpack.c.l.b16 %v988_v15 }
  0x51   : > { %4896 = vst [vmem:[#allocation10_spill] sm:$0xff] %v3819_v46  ;;  %4897 = vst [vmem:[#allocation11_spill] sm:$0xff] %v3821_v48  ;;  %v3833_v57 = vunpack.c.l.b16 %v1002_v16  ;;  %v3835_v58 = vunpack.c.l.b16 %v1016_v18  ;;  %v3837_v60 = vunpack.c.l.b16 %v1030_v19  ;;  %v3839_v61 = vunpack.c.l.b16 %v1044_v23 }
  0x52   : > { %4898 = vst [vmem:[#allocation12_spill] sm:$0xff] %v3823_v49  ;;  %4899 = vst [vmem:[#allocation13_spill] sm:$0xff] %v3825_v50  ;;  %v3841_v62 = vunpack.c.l.b16 %v1058_v36  ;;  %v1315_v0 = vrot.slane %v4806_v24, 7  ;;  %v1318_v1 = vrot.slane %v3814_v28, 6  ;;  %v1321_v56 = vrot.slane %v3816_v31, 5 }
  0x53   : > { %4900 = vst [vmem:[#allocation14_spill] sm:$0xff] %v3827_v52  ;;  %4901 = vst [vmem:[#allocation15_spill] sm:$0xff] %v3829_v53  ;;  %v1324_v59 = vrot.slane %v3819_v46, 4  ;;  %v1327_v63 = vrot.slane %v3821_v48, 3  ;;  %v1330_v2 = vrot.slane %v3823_v49, 2  ;;  %v1333_v5 = vrot.slane %v3825_v50, 1 }
  0x54   : > { %4902 = vst [vmem:[#allocation16_spill] sm:$0xff] %v3831_v54  ;;  %4903 = vst [vmem:[#allocation17_spill] sm:$0xff] %v3833_v57  ;;  %v1317_v6 = vsel %vm1316_vm0, %v1315_v0, %v1283_v22  ;;  %v1336_v3 = vrot.slane %v3829_v53, 7  ;;  %v1338_v4 = vrot.slane %v3831_v54, 6  ;;  %v1340_v8 = vrot.slane %v3833_v57, 5 }
  0x55   : > { %4904 = vst [vmem:[#allocation18_spill] sm:$0xff] %v3835_v58  ;;  %4905 = vst [vmem:[#allocation19_spill] sm:$0xff] %v3837_v60  ;;  %v1320_v9 = vsel %vm1319_vm1, %v1318_v1, %v1317_v6  ;;  %v1342_v7 = vrot.slane %v3835_v58, 4  ;;  %v1344_v10 = vrot.slane %v3837_v60, 3  ;;  %v1346_v12 = vrot.slane %v3839_v61, 2 }
  0x56   : > { %4906 = vst [vmem:[#allocation20_spill] sm:$0xff] %v3839_v61  ;;  %4907 = vst [vmem:[#allocation21_spill] sm:$0xff] %v3841_v62  ;;  %v1323_v11 = vsel %vm1322_vm2, %v1321_v56, %v1320_v9  ;;  %v1337_v14 = vsel %vm1316_vm0, %v1336_v3, %v3827_v52  ;;  %v1348_v15 = vrot.slane %v3841_v62, 1 }
  0x57   : > { %v1326_v17 = vsel %vm1325_vm3, %v1324_v59, %v1323_v11  ;;  %v1339_v18 = vsel %vm1319_vm1, %v1338_v4, %v1337_v14 }
  0x58   : > { %v1329_v22 = vsel %vm1328_vm5, %v1327_v63, %v1326_v17  ;;  %v1341_v23 = vsel %vm1322_vm2, %v1340_v8, %v1339_v18  ;;  %v1502_v17 = vrot.slane %v3641_v25, %v3608_v13 }
  0x59   : > { %v1332_v1 = vsel %vm1331_vm6, %v1330_v2, %v1329_v22  ;;  %v1343_v56 = vsel %vm1325_vm3, %v1342_v7, %v1341_v23  ;;  %v1446_v2 = vrot.slane %v3636_v21, %v3608_v13  ;;  %v1460_v7 = vrot.slane %v3652_v29, %v3608_v13 }
  0x5a   : > { %v1335_v3 = vsel %vm1334_vm7, %v1333_v5, %v1332_v1  ;;  %v1345_v4 = vsel %vm1328_vm5, %v1344_v10, %v1343_v56  ;;  %v1474_v5 = vrot.slane %v3656_v30, %v3608_v13  ;;  %v1488_v10 = vrot.slane %v3679_v38, %v3608_v13 }
  0x5b   : > { %v1347_v9 = vsel %vm1331_vm6, %v1346_v12, %v1345_v4  ;;  %v1453_v18 = vrot.slane %v1446_v2, %v3608_v13  ;;  %v3895_v22 = vrot.slane %v1460_v7, %v3608_v13  ;;  %v1516_v21 = vrot.slane %v3668_v34, %v3608_v13 }
  0x5c   : > { %v1349_v14 = vsel %vm1334_vm7, %v1348_v15, %v1347_v9  ;;  %v1481_v29 = vrot.slane %v1474_v5, %v3608_v13  ;;  %v1495_v15 = vrot.slane %v1488_v10, %v3608_v13  ;;  %v1509_v30 = vrot.slane %v1502_v17, %v3608_v13 }
  0x5d   : > { %v1378_v12 = vpack.c.b16 %v1349_v14, %v1335_v3  ;;  %v1530_v38 = vrot.slane %v3672_v35, %v3608_v13  ;;  %v1523_v25 = vrot.slane %v1516_v21, %v3608_v13  ;;  %v1544_v23 = vrot.slane %v3694_v42, %v3608_v13 }
  0x5e   : > { %v1558_v1 = vrot.slane %v3659_v32, %v3608_v13  ;;  %v1572_v34 = vrot.slane %v3682_v39, %v3608_v13  ;;  %v1586_v3 = vrot.slane %v3686_v40, %v3608_v13  ;;  %v1600_v35 = vrot.slane %v3711_v47, %v3608_v13 }
  0x5f   : > { %3290 = vmatprep.mubr.msk.bf16.mxu0 %vm1380_vm8, %v1378_v12  ;;  %v1537_v56 = vrot.slane %v1530_v38, %v3608_v13  ;;  %v1614_v4 = vrot.slane %v3675_v37, %v3608_v13  ;;  %v1551_v9 = vrot.slane %v1544_v23, %v3608_v13  ;;  %v1628_v39 = vrot.slane %v3697_v43, %v3608_v13 }
  0x60   : > { %v1565_v42 = vrot.slane %v1558_v1, %v3608_v13  ;;  %v1579_v32 = vrot.slane %v1572_v34, %v3608_v13  ;;  %v1593_v2 = vrot.slane %v1586_v3, %v3608_v13  ;;  %v1607_v7 = vrot.slane %v1600_v35, %v3608_v13 }
  0x61   : > { %v1621_v40 = vrot.slane %v1614_v4, %v3608_v13  ;;  %v1642_v47 = vrot.slane %v3701_v44, %v3608_v13  ;;  %v1635_v37 = vrot.slane %v1628_v39, %v3608_v13  ;;  %v1656_v14 = vrot.slane %v3718_v51, %v3608_v13 }
  0x62   : > { %v1888_v5 = vunpack.c.l.b16 %v1453_v18  ;;  %v4807_v10 = vunpack.c.l.b16 %v3895_v22  ;;  %v3934_v43 = vunpack.c.l.b16 %v1481_v29  ;;  %v3936_v12 = vunpack.c.l.b16 %v1495_v15 }
  0x63   : > { %v1649_v17 = vrot.slane %v1642_v47, %v3608_v13  ;;  %v3938_v21 = vunpack.c.l.b16 %v1509_v30  ;;  %v1663_v38 = vrot.slane %v1656_v14, %v3608_v13  ;;  %v3941_v44 = vunpack.c.l.b16 %v1523_v25 }
  0x64   : > { %4908 = vst [vmem:[#allocation22_spill] sm:$0xff] %v3936_v12  ;;  %v3943_v23 = vunpack.c.l.b16 %v1537_v56  ;;  %v3945_v51 = vunpack.c.l.b16 %v1551_v9  ;;  %v3947_v18 = vunpack.c.l.b16 %v1565_v42  ;;  %v3949_v1 = vunpack.c.l.b16 %v1579_v32  ;;  %v3169_v56 = vld.sshfl [vmem:[%s3625_s7 + $0x14] sm:$0x33 pattern:$0x75316420] }
  0x65   : > { %v3951_v34 = vunpack.c.l.b16 %v1593_v2  ;;  %v3953_v29 = vunpack.c.l.b16 %v1607_v7  ;;  %v3955_v15 = vunpack.c.l.b16 %v1621_v40  ;;  %v3957_v30 = vunpack.c.l.b16 %v1635_v37  ;;  %v3170_v32 = vld.sshfl [vmem:[%s3625_s7 + $0x18] sm:$0x33 pattern:$0x75316420] }
  0x66   : > { %4909 = vst [vmem:[#allocation23_spill] sm:$0xff] %v3943_v23  ;;  %4910 = vst [vmem:[#allocation24_spill] sm:$0xff] %v3945_v51  ;;  %v3959_v3 = vunpack.c.l.b16 %v1649_v17  ;;  %v3961_v25 = vunpack.c.l.b16 %v1663_v38  ;;  %v1920_v35 = vrot.slane %v4807_v10, 7  ;;  %v1922_v4 = vrot.slane %v3934_v43, 6 }
  0x67   : > { %4911 = vst [vmem:[#allocation25_spill] sm:$0xff] %v3947_v18  ;;  %4912 = vst [vmem:[#allocation26_spill] sm:$0xff] %v3949_v1  ;;  %v1924_v9 = vrot.slane %v3936_v12, 5  ;;  %v1926_v42 = vrot.slane %v3938_v21, 4  ;;  %v1928_v39 = vrot.slane %v3941_v44, 3  ;;  %v1930_v2 = vrot.slane %v3943_v23, 2 }
  0x68   : > { %4913 = vst [vmem:[#allocation27_spill] sm:$0xff] %v3951_v34  ;;  %4914 = vst [vmem:[#allocation28_spill] sm:$0xff] %v3953_v29  ;;  %v1932_v7 = vrot.slane %v3945_v51, 1  ;;  %v1934_v40 = vrot.slane %v3949_v1, 7  ;;  %v1921_v47 = vsel %vm1316_vm0, %v1920_v35, %v1888_v5  ;;  %v1936_v37 = vrot.slane %v3951_v34, 6 }
  0x69   : > { %4915 = vst [vmem:[#allocation29_spill] sm:$0xff] %v3957_v30  ;;  %4916 = vst [vmem:[#allocation30_spill] sm:$0xff] %v3959_v3  ;;  %v1938_v14 = vrot.slane %v3953_v29, 5  ;;  %v1940_v17 = vrot.slane %v3955_v15, 4  ;;  %v1923_v38 = vsel %vm1319_vm1, %v1922_v4, %v1921_v47  ;;  %v1942_v8 = vrot.slane %v3957_v30, 3 }
  0x6a   : > { %4917 = vst [vmem:[#allocation31_spill] sm:$0xff] %v3961_v25  ;;  %v1935_v11 = vsel %vm1316_vm0, %v1934_v40, %v3947_v18  ;;  %v1944_v63 = vrot.slane %v3959_v3, 2  ;;  %v1925_v0 = vsel %vm1322_vm2, %v1924_v9, %v1923_v38  ;;  %v1946_v35 = vrot.slane %v3961_v25, 1 }
  0x6b   : > { %v1937_v5 = vsel %vm1319_vm1, %v1936_v37, %v1935_v11  ;;  %v435_v6 = vcombine.high %v3169_v56, %v3169_v56  ;;  %v1927_v36 = vsel %vm1325_vm3, %v1926_v42, %v1925_v0  ;;  %v3171_v4 = vld.sshfl [vmem:[%s3625_s7 + $0x1c] sm:$0x33 pattern:$0x75316420]  ;;  %v3990_v47 = vrot.slane %v3169_v56, %v3608_v13 }
  0x6c   : > { %v1939_v59 = vsel %vm1322_vm2, %v1938_v14, %v1937_v5  ;;  %v459_v40 = vcombine.high %v3170_v32, %v3170_v32  ;;  %v1929_v20 = vsel %vm1328_vm5, %v1928_v39, %v1927_v36  ;;  %v3172_v9 = vld.sshfl [vmem:[%s3625_s7 + $0x20] sm:$0x33 pattern:$0x75316420]  ;;  %v3999_v11 = vrot.slane %v3170_v32, %v3608_v13 }
  0x6d   : > { %v1941_v19 = vsel %vm1325_vm3, %v1940_v17, %v1939_v59  ;;  %v3996_v38 = vrot.slane %v435_v6, %v3608_v13  ;;  %v1931_v0 = vsel %vm1331_vm6, %v1930_v2, %v1929_v20  ;;  %v4004_v37 = vld.sshfl [vmem:[%s3625_s7 + $0x24] sm:$0x33 pattern:$0x75316420]  ;;  %v4008_v56 = vcombine.high %v3990_v47, %v3990_v47 }
  0x6e   : > { %v1943_v42 = vsel %vm1328_vm5, %v1942_v8, %v1941_v19  ;;  %4918 = vst [vmem:[#allocation32_spill] sm:$0xff] %v4004_v37  ;;  %v4011_v36 = vrot.slane %v459_v40, %v3608_v13  ;;  %v1933_v59 = vsel %vm1334_vm7, %v1932_v7, %v1931_v0  ;;  %v4021_v19 = vcombine.high %v3999_v11, %v3999_v11 }
  0x6f   : > { %v1945_v6 = vsel %vm1331_vm6, %v1944_v63, %v1943_v42  ;;  %v4017_v32 = vcombine.high %v3996_v38, %v3996_v38  ;;  %v483_v39 = vcombine.high %v3171_v4, %v3171_v4  ;;  %v4029_v2 = vrot.slane %v3171_v4, %v3608_v13 }
  0x70   : > { %v1947_v20 = vsel %vm1334_vm7, %v1946_v35, %v1945_v6  ;;  %v4026_v8 = vcombine.high %v4011_v36, %v4011_v36  ;;  %v507_v63 = vcombine.high %v3172_v9, %v3172_v9  ;;  %v4032_v14 = vrot.slane %v3172_v9, %v3608_v13 }
  0x71   : > { %v1976_v7 = vpack.c.b16 %v1947_v20, %v1933_v59  ;;  %v4036_v17 = vrot.slane %v4004_v37, %v3608_v13  ;;  %v4039_v5 = vrot.slane %v483_v39, %v3608_v13  ;;  %v4043_v35 = vcombine.high %v4029_v2, %v4029_v2 }
  0x72   : > { %v703_v40 = vshrl.u32 %v3990_v47, 16  ;;  %v708_v4 = vshll.u32 %v3996_v38, 16  ;;  %v4049_v9 = vrot.slane %v507_v63, %v3608_v13  ;;  %v4053_v0 = vcombine.high %v4032_v14, %v4032_v14 }
  0x73   : > { %4919 = vst [vmem:[#allocation33_spill] sm:$0xff] %v4036_v17  ;;  %3296 = vmatprep.mubr.msk.bf16.mxu1 %vm1380_vm8, %v1976_v7  ;;  %v711_v42 = vshrl.u32 %v3996_v38, 16  ;;  %v716_v59 = vshll.u32 %v4008_v56, 16  ;;  %v4059_v6 = vcombine.high %v4039_v5, %v4039_v5  ;;  %v719_v39 = vshrl.u32 %v4008_v56, 16 }
  0x74   : > { %v710_v20 = vsel %vm3704_vm15, %v703_v40, %v708_v4  ;;  %v724_v7 = vshll.u32 %v4017_v32, 16  ;;  %v4067_v63 = vcombine.high %v4049_v9, %v4049_v9  ;;  %v727_v24 = vshrl.u32 %v4017_v32, 16 }
  0x75   : > { %v718_v16 = vsel %vm3704_vm15, %v711_v42, %v716_v59  ;;  %v732_v10 = vshll.u32 %v3999_v11, 16  ;;  %v735_v40 = vshrl.u32 %v3999_v11, 16  ;;  %v740_v4 = vshll.u32 %v4011_v36, 16 }
  0x76   : > { %v726_v37 = vsel %vm3704_vm15, %v719_v39, %v724_v7  ;;  %v743_v62 = vshrl.u32 %v4011_v36, 16  ;;  %v748_v60 = vshll.u32 %v4021_v19, 16  ;;  %v751_v42 = vshrl.u32 %v4021_v19, 16 }
  0x77   : > { %v734_v61 = vsel %vm3704_vm15, %v727_v24, %v732_v10  ;;  %v756_v59 = vshll.u32 %v4026_v8, 16  ;;  %v742_v53 = vsel %vm3704_vm15, %v735_v40, %v740_v4  ;;  %v759_v39 = vshrl.u32 %v4026_v8, 16 }
  0x78   : > { %v764_v7 = vshll.u32 %v4029_v2, 16  ;;  %v767_v58 = vshrl.u32 %v4029_v2, 16  ;;  %v750_v57 = vsel %vm3704_vm15, %v743_v62, %v748_v60  ;;  %v772_v10 = vshll.u32 %v4039_v5, 16 }
  0x79   : > { %v758_v24 = vsel %vm3704_vm15, %v751_v42, %v756_v59  ;;  %v775_v54 = vshrl.u32 %v4039_v5, 16  ;;  %v780_v40 = vshll.u32 %v4043_v35, 16  ;;  %v783_v4 = vshrl.u32 %v4043_v35, 16 }
  0x7a   : > { %v766_v52 = vsel %vm3704_vm15, %v759_v39, %v764_v7  ;;  %v788_v50 = vshll.u32 %v4059_v6, 16  ;;  %v774_v55 = vsel %vm3704_vm15, %v767_v58, %v772_v10  ;;  %v791_v60 = vshrl.u32 %v4059_v6, 16 }
  0x7b   : > { %v796_v62 = vshll.u32 %v4032_v14, 16  ;;  %v799_v42 = vshrl.u32 %v4032_v14, 16  ;;  %v782_v59 = vsel %vm3704_vm15, %v775_v54, %v780_v40  ;;  %v804_v7 = vshll.u32 %v4049_v9, 16 }
  0x7c   : > { %v790_v39 = vsel %vm3704_vm15, %v783_v4, %v788_v50  ;;  %v807_v49 = vshrl.u32 %v4049_v9, 16  ;;  %v812_v58 = vshll.u32 %v4053_v0, 16  ;;  %v815_v10 = vshrl.u32 %v4053_v0, 16 }
  0x7d   : > { %v798_v48 = vsel %vm3704_vm15, %v791_v60, %v796_v62  ;;  %v820_v46 = vshll.u32 %v4067_v63, 16  ;;  %v806_v31 = vsel %vm3704_vm15, %v799_v42, %v804_v7  ;;  %v823_v54 = vshrl.u32 %v4067_v63, 16 }
  0x7e   : > { %v828_v50 = vshll.u32 %v4036_v17, 16  ;;  %v1065_v40 = vrot.slane %v710_v20, %v3608_v13  ;;  %v814_v4 = vsel %vm3704_vm15, %v807_v49, %v812_v58  ;;  %v1079_v62 = vrot.slane %v718_v16, %v3608_v13 }
  0x7f   : > { %v822_v60 = vsel %vm3704_vm15, %v815_v10, %v820_v46  ;;  %v1093_v28 = vrot.slane %v726_v37, %v3608_v13  ;;  %v1107_v7 = vrot.slane %v734_v61, %v3608_v13  ;;  %v1121_v17 = vrot.slane %v742_v53, %v3608_v13 }
  0x80   : > { %v830_v33 = vsel %vm3704_vm15, %v823_v54, %v828_v50  ;;  %v1072_v42 = vrot.slane %v1065_v40, %v3608_v13  ;;  %v4132_v20 = vrot.slane %v1079_v62, %v3608_v13  ;;  %v1135_v46 = vrot.slane %v750_v57, %v3608_v13 }
  0x81   : > { %v1100_v49 = vrot.slane %v1093_v28, %v3608_v13  ;;  %v1149_v16 = vrot.slane %v758_v24, %v3608_v13  ;;  %v1114_v37 = vrot.slane %v1107_v7, %v3608_v13  ;;  %v1128_v58 = vrot.slane %v1121_v17, %v3608_v13 }
  0x82   : > { %4920 = vst [vmem:[#allocation34_spill] sm:$0xff] %v4132_v20  ;;  %v1163_v10 = vrot.slane %v766_v52, %v3608_v13  ;;  %v1177_v54 = vrot.slane %v774_v55, %v3608_v13  ;;  %v1142_v61 = vrot.slane %v1135_v46, %v3608_v13  ;;  %v1191_v50 = vrot.slane %v782_v59, %v3608_v13 }
  0x83   : > { %v1156_v53 = vrot.slane %v1149_v16, %v3608_v13  ;;  %v1205_v28 = vrot.slane %v790_v39, %v3608_v13  ;;  %v1219_v40 = vrot.slane %v798_v48, %v3608_v13  ;;  %v1233_v17 = vrot.slane %v806_v31, %v3608_v13 }
  0x84   : > { %v1170_v57 = vrot.slane %v1163_v10, %v3608_v13  ;;  %v1184_v24 = vrot.slane %v1177_v54, %v3608_v13  ;;  %v1198_v52 = vrot.slane %v1191_v50, %v3608_v13  ;;  %v1247_v62 = vrot.slane %v814_v4, %v3608_v13 }
  0x85   : > { %v1212_v55 = vrot.slane %v1205_v28, %v3608_v13  ;;  %v1261_v7 = vrot.slane %v822_v60, %v3608_v13  ;;  %v1226_v59 = vrot.slane %v1219_v40, %v3608_v13  ;;  %v1240_v39 = vrot.slane %v1233_v17, %v3608_v13 }
  0x86   : > { %v1275_v46 = vrot.slane %v830_v33, %v3608_v13  ;;  %v1299_v16 = vunpack.c.l.b16 %v1072_v42  ;;  %v1254_v10 = vrot.slane %v1247_v62, %v3608_v13  ;;  %v4841_v31 = vunpack.c.l.b16 %v4132_v20 }
  0x87   : > { %v1268_v48 = vrot.slane %v1261_v7, %v3608_v13  ;;  %v4159_v54 = vunpack.c.l.b16 %v1100_v49  ;;  %v4162_v4 = vunpack.c.l.b16 %v1114_v37  ;;  %v4164_v60 = vunpack.c.l.b16 %v1128_v58 }
  0x88   : > { %v1282_v50 = vrot.slane %v1275_v46, %v3608_v13  ;;  %v4166_v28 = vunpack.c.l.b16 %v1142_v61  ;;  %v4168_v40 = vunpack.c.l.b16 %v1156_v53  ;;  %v4170_v33 = vunpack.c.l.b16 %v1170_v57 }
  0x89   : > { %4921 = vst [vmem:[#allocation35_spill] sm:$0xff] %v4159_v54  ;;  %4922 = vst [vmem:[#allocation36_spill] sm:$0xff] %v4164_v60  ;;  %v4172_v42 = vunpack.c.l.b16 %v1184_v24  ;;  %v4174_v17 = vunpack.c.l.b16 %v1198_v52  ;;  %v4176_v62 = vunpack.c.l.b16 %v1212_v55  ;;  %v4178_v49 = vunpack.c.l.b16 %v1226_v59 }
  0x8a   : > { %4923 = vst [vmem:[#allocation37_spill] sm:$0xff] %v4166_v28  ;;  %4924 = vst [vmem:[#allocation38_spill] sm:$0xff] %v4168_v40  ;;  %v4180_v7 = vunpack.c.l.b16 %v1240_v39  ;;  %v4182_v37 = vunpack.c.l.b16 %v1254_v10  ;;  %v4184_v58 = vunpack.c.l.b16 %v1268_v48  ;;  %v4186_v61 = vunpack.c.l.b16 %v1282_v50 }
  0x8b   : > { %4925 = vst [vmem:[#allocation39_spill] sm:$0xff] %v4174_v17  ;;  %4926 = vst [vmem:[#allocation40_spill] sm:$0xff] %v4176_v62  ;;  %v1350_v53 = vrot.slane %v4841_v31, 7  ;;  %v1352_v57 = vrot.slane %v4159_v54, 6  ;;  %v1354_v24 = vrot.slane %v4162_v4, 5  ;;  %v1356_v52 = vrot.slane %v4164_v60, 4 }
  0x8c   : > { %4927 = vst [vmem:[#allocation41_spill] sm:$0xff] %v4182_v37  ;;  %v1358_v55 = vrot.slane %v4166_v28, 3  ;;  %v1360_v59 = vrot.slane %v4168_v40, 2  ;;  %v1362_v46 = vrot.slane %v4170_v33, 1  ;;  %v1364_v10 = vrot.slane %v4174_v17, 7 }
  0x8d   : > { %v1351_v39 = vsel %vm1316_vm0, %v1350_v53, %v1299_v16  ;;  %v1366_v48 = vrot.slane %v4176_v62, 6  ;;  %v1368_v31 = vrot.slane %v4178_v49, 5  ;;  %v1370_v20 = vrot.slane %v4180_v7, 4 }
  0x8e   : > { %v1353_v50 = vsel %vm1319_vm1, %v1352_v57, %v1351_v39  ;;  %v1372_v60 = vrot.slane %v4182_v37, 3  ;;  %v1365_v40 = vsel %vm1316_vm0, %v1364_v10, %v4172_v42  ;;  %v1374_v16 = vrot.slane %v4184_v58, 2 }
  0x8f   : > { %v1355_v28 = vsel %vm1322_vm2, %v1354_v24, %v1353_v50  ;;  %v1376_v53 = vrot.slane %v4186_v61, 1  ;;  %v1367_v62 = vsel %vm1319_vm1, %v1366_v48, %v1365_v40  ;;  %v1670_v57 = vrot.slane %v3990_v47, %v3608_v13 }
  0x90   : > { %v1357_v17 = vsel %vm1325_vm3, %v1356_v52, %v1355_v28  ;;  %v1684_v39 = vrot.slane %v3996_v38, %v3608_v13  ;;  %v1369_v24 = vsel %vm1322_vm2, %v1368_v31, %v1367_v62  ;;  %v1698_v10 = vrot.slane %v4008_v56, %v3608_v13 }
  0x91   : > { %v1359_v37 = vsel %vm1328_vm5, %v1358_v55, %v1357_v17  ;;  %v1712_v50 = vrot.slane %v4017_v32, %v3608_v13  ;;  %v1371_v40 = vsel %vm1325_vm3, %v1370_v20, %v1369_v24  ;;  %v1677_v52 = vrot.slane %v1670_v57, %v3608_v13 }
  0x92   : > { %v1361_v28 = vsel %vm1331_vm6, %v1360_v59, %v1359_v37  ;;  %v4224_v47 = vrot.slane %v1684_v39, %v3608_v13  ;;  %v1373_v17 = vsel %vm1328_vm5, %v1372_v60, %v1371_v40  ;;  %v1705_v31 = vrot.slane %v1698_v10, %v3608_v13 }
  0x93   : > { %v1363_v38 = vsel %vm1334_vm7, %v1362_v46, %v1361_v28  ;;  %v1719_v56 = vrot.slane %v1712_v50, %v3608_v13  ;;  %v1375_v62 = vsel %vm1331_vm6, %v1374_v16, %v1373_v17  ;;  %v1726_v32 = vrot.slane %v3999_v11, %v3608_v13 }
  0x94   : > { %v1740_v20 = vrot.slane %v4011_v36, %v3608_v13  ;;  %v1754_v37 = vrot.slane %v4021_v19, %v3608_v13  ;;  %v1377_v55 = vsel %vm1334_vm7, %v1376_v53, %v1375_v62  ;;  %v1768_v60 = vrot.slane %v4026_v8, %v3608_v13 }
  0x95   : > { %v1782_v59 = vrot.slane %v4029_v2, %v3608_v13  ;;  %v1796_v46 = vrot.slane %v4039_v5, %v3608_v13  ;;  %v1379_v48 = vpack.c.b16 %v1377_v55, %v1363_v38  ;;  %v1733_v11 = vrot.slane %v1726_v32, %v3608_v13  ;;  %v4253_v2 = vld [vmem:[%s3604_s13 + $0x10] sm:$0xf] }
  0x96   : > { %v1747_v16 = vrot.slane %v1740_v20, %v3608_v13  ;;  %v1761_v36 = vrot.slane %v1754_v37, %v3608_v13  ;;  %v1775_v19 = vrot.slane %v1768_v60, %v3608_v13  ;;  %v1810_v8 = vrot.slane %v4043_v35, %v3608_v13 }
  0x97   : > { %v1789_v53 = vrot.slane %v1782_v59, %v3608_v13  ;;  %v1803_v57 = vrot.slane %v1796_v46, %v3608_v13  ;;  %3291 = vmatmul.mubr.msk.bf16.vlgmr.msra.gmra.mxu0 %vm1380_vm8, %v1379_v48  ;;  %v1824_v5 = vrot.slane %v4059_v6, %v3608_v13  ;;  %v1838_v39 = vrot.slane %v4032_v14, %v3608_v13 }
  0x98   : > { %v1852_v24 = vrot.slane %v4049_v9, %v3608_v13  ;;  %v1866_v10 = vrot.slane %v4053_v0, %v3608_v13  ;;  %v1817_v50 = vrot.slane %v1810_v8, %v3608_v13  ;;  %v1880_v35 = vrot.slane %v4067_v63, %v3608_v13  ;;  %3301 = vmatpush3.bf16.msra.mxu0 %v3644_v26 }
  0x99   : > { %v1904_v28 = vunpack.c.l.b16 %v1677_v52  ;;  %v4855_v40 = vunpack.c.l.b16 %v4224_v47  ;;  %v1831_v6 = vrot.slane %v1824_v5, %v3608_v13  ;;  %v1845_v14 = vrot.slane %v1838_v39, %v3608_v13  ;;  %3334 = vmatprep.subr.msk.bf16.mxu0 %vm1387_vm4, %v4253_v2 }
  0x9a   : > { %v1859_v38 = vrot.slane %v1852_v24, %v3608_v13  ;;  %v1873_v9 = vrot.slane %v1866_v10, %v3608_v13  ;;  %v1887_v0 = vrot.slane %v1880_v35, %v3608_v13  ;;  %v4276_v17 = vunpack.c.l.b16 %v1705_v31 }
  0x9b   : > { %v4278_v63 = vunpack.c.l.b16 %v1719_v56  ;;  %v4280_v52 = vunpack.c.l.b16 %v1733_v11  ;;  %v4282_v26 = vunpack.c.l.b16 %v1747_v16  ;;  %v4284_v62 = vunpack.c.l.b16 %v1761_v36 }
  0x9c   : > { %4928 = vst [vmem:[#allocation42_spill] sm:$0xff] %v4276_v17  ;;  %v4286_v32 = vunpack.c.l.b16 %v1775_v19  ;;  %v4288_v20 = vunpack.c.l.b16 %v1789_v53  ;;  %v4290_v37 = vunpack.c.l.b16 %v1803_v57  ;;  %v4292_v55 = vunpack.c.l.b16 %v1817_v50 }
  0x9d   : > { %v4294_v60 = vunpack.c.l.b16 %v1831_v6  ;;  %v4296_v31 = vunpack.c.l.b16 %v1845_v14  ;;  %v4298_v56 = vunpack.c.l.b16 %v1859_v38  ;;  %v4300_v59 = vunpack.c.l.b16 %v1873_v9 }
  0x9e   : > { %4929 = vst [vmem:[#allocation43_spill] sm:$0xff] %v4286_v32  ;;  %4930 = vst [vmem:[#allocation44_spill] sm:$0xff] %v4288_v20  ;;  %v4302_v46 = vunpack.c.l.b16 %v1887_v0  ;;  %v1948_v48 = vrot.slane %v4855_v40, 7  ;;  %v1950_v11 = vrot.slane %v4276_v17, 6  ;;  %v1952_v16 = vrot.slane %v4278_v63, 5 }
  0x9f   : > { %4931 = vst [vmem:[#allocation45_spill] sm:$0xff] %v4292_v55  ;;  %4932 = vst [vmem:[#allocation46_spill] sm:$0xff] %v4298_v56  ;;  %v1954_v36 = vrot.slane %v4280_v52, 4  ;;  %v1956_v19 = vrot.slane %v4282_v26, 3  ;;  %v1958_v57 = vrot.slane %v4284_v62, 2  ;;  %v1960_v8 = vrot.slane %v4286_v32, 1 }
  0xa0   : > { %v1949_v53 = vsel %vm1316_vm0, %v1948_v48, %v1904_v28  ;;  %v1962_v5 = vrot.slane %v4290_v37, 7  ;;  %v1964_v24 = vrot.slane %v4292_v55, 6  ;;  %v1966_v10 = vrot.slane %v4294_v60, 5 }
  0xa1   : > { %v1951_v39 = vsel %vm1319_vm1, %v1950_v11, %v1949_v53  ;;  %v1968_v50 = vrot.slane %v4296_v31, 4  ;;  %v1970_v28 = vrot.slane %v4298_v56, 3  ;;  %v1972_v14 = vrot.slane %v4300_v59, 2 }
  0xa2   : > { %v1953_v35 = vsel %vm1322_vm2, %v1952_v16, %v1951_v39  ;;  %v1963_v6 = vsel %vm1316_vm0, %v1962_v5, %v4288_v20  ;;  %v1974_v0 = vrot.slane %v4302_v46, 1  ;;  %v2046_v48 = vrot.slane %v3690_v41, %v3608_v13 }
  0xa3   : > { %v1955_v38 = vsel %vm1325_vm3, %v1954_v36, %v1953_v35  ;;  %v1965_v9 = vsel %vm1319_vm1, %v1964_v24, %v1963_v6  ;;  %v2070_v53 = vrot.slane %v3934_v43, 7  ;;  %v2072_v5 = vrot.slane %v3936_v12, 6 }
  0xa4   : > { %v1957_v11 = vsel %vm1328_vm5, %v1956_v19, %v1955_v38  ;;  %v1967_v16 = vsel %vm1322_vm2, %v1966_v10, %v1965_v9  ;;  %v2053_v36 = vrot.slane %v2046_v48, %v3608_v13  ;;  %v2074_v24 = vrot.slane %v3938_v21, 5 }
  0xa5   : > { %v1959_v39 = vsel %vm1331_vm6, %v1958_v57, %v1957_v11  ;;  %v1969_v40 = vsel %vm1325_vm3, %v1968_v50, %v1967_v16  ;;  %v4933_v19 = vunpack.c.l.b16 %v3895_v22  ;;  %v2076_v38 = vrot.slane %v3941_v44, 4 }
  0xa6   : > { %v1961_v35 = vsel %vm1334_vm7, %v1960_v8, %v1959_v39  ;;  %v1971_v6 = vsel %vm1328_vm5, %v1970_v28, %v1969_v40  ;;  %v4343_v57 = vunpack.c.l.b16 %v2053_v36  ;;  %v2078_v48 = vrot.slane %v3943_v23, 3 }
  0xa7   : > { %v2071_v10 = vsel %vm1316_vm0, %v2070_v53, %v4933_v19  ;;  %v1973_v9 = vsel %vm1331_vm6, %v1972_v14, %v1971_v6  ;;  %v2080_v40 = vrot.slane %v3945_v51, 2  ;;  %v2082_v22 = vrot.slane %v3947_v18, 1 }
  0xa8   : > { %4934 = vst [vmem:[#allocation47_spill] sm:$0xff] %v4343_v57  ;;  %v2073_v50 = vsel %vm1319_vm1, %v2072_v5, %v2071_v10  ;;  %v1975_v11 = vsel %vm1334_vm7, %v1974_v0, %v1973_v9  ;;  %v2084_v14 = vrot.slane %v3951_v34, 7  ;;  %v2086_v53 = vrot.slane %v3953_v29, 6 }
  0xa9   : > { %v2075_v8 = vsel %vm1322_vm2, %v2074_v24, %v2073_v50  ;;  %v1977_v28 = vpack.c.b16 %v1975_v11, %v1961_v35  ;;  %v2088_v5 = vrot.slane %v3955_v15, 5  ;;  %v2090_v36 = vrot.slane %v3957_v30, 4  ;;  %v4359_v24 = vld [vmem:[%s3604_s13 + $0x14] sm:$0xf]  ;;  %v4947_v30 = vld [vmem:[#allocation18_spill] sm:$0xff] }
  0xaa   : > { %v2077_v16 = vsel %vm1325_vm3, %v2076_v38, %v2075_v8  ;;  %v2092_v0 = vrot.slane %v3959_v3, 3  ;;  %v2085_v6 = vsel %vm1316_vm0, %v2084_v14, %v3949_v1  ;;  %v2094_v19 = vrot.slane %v3961_v25, 2  ;;  %v4935_v50 = vld [vmem:[#allocation5_spill] sm:$0xff] }
  0xab   : > { %v2079_v39 = vsel %vm1328_vm5, %v2078_v48, %v2077_v16  ;;  %3297 = vmatmul.mubr.msk.bf16.vlgmr.msra.gmra.mxu1 %vm1380_vm8, %v1977_v28  ;;  %v2096_v10 = vrot.slane %v4343_v57, 1  ;;  %v2087_v9 = vsel %vm1319_vm1, %v2086_v53, %v2085_v6  ;;  %v2190_v48 = vcombine.high %v4935_v50, %v4935_v50  ;;  %v4937_v16 = vld [vmem:[#allocation9_spill] sm:$0xff]  ;;  %v4939_v53 = vld [vmem:[#allocation11_spill] sm:$0xff]  ;;  %v4940_v6 = vld [vmem:[#allocation12_spill] sm:$0xff] }
  0xac   : > { %v2081_v35 = vsel %vm1331_vm6, %v2080_v40, %v2079_v39  ;;  %3307 = vmatpush3.bf16.msra.mxu1 %v3648_v27  ;;  %v2206_v11 = vshrl.u32 %v3690_v41, 16  ;;  %v2089_v8 = vsel %vm1322_vm2, %v2088_v5, %v2087_v9  ;;  %v4936_v40 = vld [vmem:[#allocation8_spill] sm:$0xff]  ;;  %v2258_v14 = vrot.slane %v4937_v16, 6  ;;  %v4938_v39 = vld [vmem:[#allocation10_spill] sm:$0xff]  ;;  %v4941_v9 = vld [vmem:[#allocation7_spill] sm:$0xff] }
  0xad   : > { %v2083_v38 = vsel %vm1334_vm7, %v2082_v22, %v2081_v35  ;;  %v2256_v28 = vrot.slane %v4936_v40, 7  ;;  %v2260_v25 = vrot.slane %v4938_v39, 5  ;;  %3335 = vmatprep.subr.msk.bf16.mxu1 %vm1387_vm4, %v4359_v24  ;;  %v2091_v27 = vsel %vm1325_vm3, %v2090_v36, %v2089_v8  ;;  %v4943_v41 = vld [vmem:[#allocation13_spill] sm:$0xff]  ;;  %v4944_v57 = vld [vmem:[#allocation14_spill] sm:$0xff]  ;;  %v4945_v8 = vld [vmem:[#allocation16_spill] sm:$0xff] }
  0xae   : > { %v4381_v22 = vrot.slane %v2190_v48, %v3608_v13  ;;  %v2262_v35 = vrot.slane %v4939_v53, 4  ;;  %v2264_v50 = vrot.slane %v4940_v6, 3  ;;  %v2093_v5 = vsel %vm1328_vm5, %v2092_v0, %v2091_v27  ;;  %v4946_v27 = vld [vmem:[#allocation17_spill] sm:$0xff] }
  0xaf   : > { %v4942_v40 = vunpack.c.l.b16 %v4941_v9  ;;  %v2266_v39 = vrot.slane %v4943_v41, 2  ;;  %v2268_v3 = vrot.slane %v4944_v57, 1  ;;  %v2095_v34 = vsel %vm1331_vm6, %v2094_v19, %v2093_v5  ;;  %v4948_v5 = vld [vmem:[#allocation15_spill] sm:$0xff] }
  0xb0   : > { %v2211_v36 = vshll.u32 %v4381_v22, 16  ;;  %v2270_v53 = vrot.slane %v4945_v8, 7  ;;  %v2097_v6 = vsel %vm1334_vm7, %v2096_v10, %v2095_v34  ;;  %v2272_v9 = vrot.slane %v4946_v27, 6 }
  0xb1   : > { %v2257_v16 = vsel %vm1316_vm0, %v2256_v28, %v4942_v40  ;;  %v2274_v40 = vrot.slane %v4947_v30, 5  ;;  %v2126_v28 = vpack.c.b16 %v2097_v6, %v2083_v38  ;;  %v2630_v45 = vrot.slane %v4184_v58, 4 }
  0xb2   : > { %v2259_v48 = vsel %vm1319_vm1, %v2258_v14, %v2257_v16  ;;  %v2213_v41 = vsel %vm3704_vm15, %v2206_v11, %v2211_v36  ;;  %v2271_v57 = vsel %vm1316_vm0, %v2270_v53, %v4948_v5  ;;  %v4950_v11 = vld [vmem:[#allocation20_spill] sm:$0xff] }
  0xb3   : > { %v2261_v0 = vsel %vm1322_vm2, %v2260_v25, %v2259_v48  ;;  %v2232_v16 = vrot.slane %v2213_v41, %v3608_v13  ;;  %v2273_v34 = vsel %vm1319_vm1, %v2272_v9, %v2271_v57  ;;  %v4949_v25 = vld [vmem:[#allocation19_spill] sm:$0xff]  ;;  %3302 = vmatprep.mubr.msk.bf16.mxu0 %vm1380_vm8, %v2126_v28  ;;  %v2278_v36 = vrot.slane %v4950_v11, 3  ;;  %v4952_v57 = vld [vmem:[#allocation33_spill] sm:$0xff] }
  0xb4   : > { %v2263_v19 = vsel %vm1325_vm3, %v2262_v35, %v2261_v0  ;;  %v2276_v10 = vrot.slane %v4949_v25, 4  ;;  %v2275_v6 = vsel %vm1322_vm2, %v2274_v40, %v2273_v34  ;;  %v4951_v35 = vld [vmem:[#allocation21_spill] sm:$0xff]  ;;  %v2060_v0 = vrot.slane %v4952_v57, %v3608_v13 }
  0xb5   : > { %v2265_v14 = vsel %vm1328_vm5, %v2264_v50, %v2263_v19  ;;  %v2280_v48 = vrot.slane %v4951_v35, 2  ;;  %v4414_v53 = vrot.slane %v2232_v16, %v3608_v13  ;;  %v2100_v40 = vrot.slane %v4278_v63, 6 }
  0xb6   : > { %v2267_v38 = vsel %vm1331_vm6, %v2266_v39, %v2265_v14  ;;  %v2277_v50 = vsel %vm1325_vm3, %v2276_v10, %v2275_v6  ;;  %v2098_v39 = vrot.slane %v4276_v17, 7  ;;  %v2102_v28 = vrot.slane %v4280_v52, 5 }
  0xb7   : > { %v2269_v41 = vsel %vm1334_vm7, %v2268_v3, %v2267_v38  ;;  %v2279_v9 = vsel %vm1328_vm5, %v2278_v36, %v2277_v50  ;;  %v4872_v19 = vunpack.c.l.b16 %v4414_v53  ;;  %v2067_v14 = vrot.slane %v2060_v0, %v3608_v13 }
  0xb8   : > { %v2281_v16 = vsel %vm1331_vm6, %v2280_v48, %v2279_v9  ;;  %v2104_v3 = vrot.slane %v4282_v26, 4  ;;  %v4953_v34 = vunpack.c.l.b16 %v4224_v47  ;;  %v2106_v38 = vrot.slane %v4284_v62, 3 }
  0xb9   : > { %v2108_v6 = vrot.slane %v4286_v32, 2  ;;  %v2110_v36 = vrot.slane %v4288_v20, 1  ;;  %v2282_v50 = vrot.slane %v4872_v19, 1  ;;  %v4436_v17 = vunpack.c.l.b16 %v2067_v14 }
  0xba   : > { %v2099_v10 = vsel %vm1316_vm0, %v2098_v39, %v4953_v34  ;;  %v2112_v0 = vrot.slane %v4292_v55, 7  ;;  %v2114_v47 = vrot.slane %v4294_v60, 6  ;;  %v2116_v39 = vrot.slane %v4296_v31, 5 }
  0xbb   : > { %v2101_v48 = vsel %vm1319_vm1, %v2100_v40, %v2099_v10  ;;  %v2118_v34 = vrot.slane %v4298_v56, 4  ;;  %v2283_v32 = vsel %vm1334_vm7, %v2282_v50, %v2281_v16  ;;  %v2120_v19 = vrot.slane %v4300_v59, 3  ;;  %v4954_v50 = vld [vmem:[#allocation32_spill] sm:$0xff] }
  0xbc   : > { %v2103_v9 = vsel %vm1322_vm2, %v2102_v28, %v2101_v48  ;;  %v2113_v14 = vsel %vm1316_vm0, %v2112_v0, %v4290_v37  ;;  %v2312_v40 = vpack.c.b16 %v2283_v32, %v2269_v41  ;;  %v2122_v48 = vrot.slane %v4302_v46, 2 }
  0xbd   : > { %v2105_v20 = vsel %vm1325_vm3, %v2104_v3, %v2103_v9  ;;  %v2115_v28 = vsel %vm1319_vm1, %v2114_v47, %v2113_v14  ;;  %v2124_v16 = vrot.slane %v4436_v17, 1  ;;  %v2198_v3 = vcombine.high %v4954_v50, %v4954_v50  ;;  %v4955_v47 = vld [vmem:[#allocation36_spill] sm:$0xff] }
  0xbe   : > { %v2107_v10 = vsel %vm1328_vm5, %v2106_v38, %v2105_v20  ;;  %v2117_v56 = vsel %vm1322_vm2, %v2116_v39, %v2115_v28  ;;  %3308 = vmatprep.mubr.msk.bf16.mxu1 %vm1380_vm8, %v2312_v40  ;;  %v2214_v20 = vshrl.u32 %v4952_v57, 16  ;;  %v2284_v41 = vrot.slane %v4159_v54, 7  ;;  %v4956_v40 = vld [vmem:[#allocation34_spill] sm:$0xff] }
  0xbf   : > { %v2109_v55 = vsel %vm1331_vm6, %v2108_v6, %v2107_v10  ;;  %v2119_v32 = vsel %vm1325_vm3, %v2118_v34, %v2117_v56  ;;  %v4464_v6 = vrot.slane %v2198_v3, %v3608_v13  ;;  %v2286_v9 = vrot.slane %v4162_v4, 6  ;;  %v4958_v56 = vld [vmem:[#allocation37_spill] sm:$0xff]  ;;  %v4959_v34 = vld [vmem:[#allocation38_spill] sm:$0xff] }
  0xc0   : > { %v2111_v0 = vsel %vm1334_vm7, %v2110_v36, %v2109_v55  ;;  %v2121_v38 = vsel %vm1328_vm5, %v2120_v19, %v2119_v32  ;;  %v2288_v39 = vrot.slane %v4955_v47, 5  ;;  %v4957_v10 = vunpack.c.l.b16 %v4956_v40 }
  0xc1   : > { %v2123_v14 = vsel %vm1331_vm6, %v2122_v48, %v2121_v38  ;;  %v2290_v36 = vrot.slane %v4958_v56, 4  ;;  %v2292_v28 = vrot.slane %v4959_v34, 3  ;;  %v2219_v19 = vshll.u32 %v4464_v6, 16  ;;  %v4960_v38 = vld [vmem:[#allocation40_spill] sm:$0xff] }
  0xc2   : > { %v2285_v55 = vsel %vm1316_vm0, %v2284_v41, %v4957_v10  ;;  %v2125_v50 = vsel %vm1334_vm7, %v2124_v16, %v2123_v14  ;;  %v2294_v32 = vrot.slane %v4170_v33, 2  ;;  %v2296_v48 = vrot.slane %v4172_v42, 1 }
  0xc3   : > { %v2287_v3 = vsel %vm1319_vm1, %v2286_v9, %v2285_v55  ;;  %v2127_v54 = vpack.c.b16 %v2125_v50, %v2111_v0  ;;  %v2298_v41 = vrot.slane %v4960_v38, 7  ;;  %v2221_v40 = vsel %vm3704_vm15, %v2214_v20, %v2219_v19  ;;  %v4962_v50 = vld [vmem:[#allocation41_spill] sm:$0xff]  ;;  %v4497_v19 = vld [vmem:[%s3604_s13 + $0x18] sm:$0xf] }
  0xc4   : > { %v2289_v47 = vsel %vm1322_vm2, %v2288_v39, %v2287_v3  ;;  %v2300_v16 = vrot.slane %v4178_v49, 6  ;;  %v2302_v14 = vrot.slane %v4180_v7, 5  ;;  %v2246_v0 = vrot.slane %v2221_v40, %v3608_v13  ;;  %v4961_v39 = vld [vmem:[#allocation39_spill] sm:$0xff] }
  0xc5   : > { %v2291_v10 = vsel %vm1325_vm3, %v2290_v36, %v2289_v47  ;;  %3303 = vmatmul.mubr.msk.bf16.vlgmr.msra.gmra.mxu0 %vm1380_vm8, %v2127_v54  ;;  %v2299_v55 = vsel %vm1316_vm0, %v2298_v41, %v4961_v39  ;;  %v2304_v3 = vrot.slane %v4962_v50, 4  ;;  %v2306_v47 = vrot.slane %v4184_v58, 3 }
  0xc6   : > { %v2293_v9 = vsel %vm1328_vm5, %v2292_v28, %v2291_v10  ;;  %v2301_v20 = vsel %vm1319_vm1, %v2300_v16, %v2299_v55  ;;  %v2308_v36 = vrot.slane %v4186_v61, 2  ;;  %v4500_v54 = vrot.slane %v2246_v0, %v3608_v13 }
  0xc7   : > { %v2295_v38 = vsel %vm1331_vm6, %v2294_v32, %v2293_v9  ;;  %v2303_v40 = vsel %vm1322_vm2, %v2302_v14, %v2301_v20  ;;  %v2475_v41 = vsel %vm1387_vm4, %v4253_v2, 0  ;;  %v2647_v10 = vsel %vm1387_vm4, %v4359_v24, 0 }
  0xc8   : > { %v2297_v28 = vsel %vm1334_vm7, %v2296_v48, %v2295_v38  ;;  %v2305_v32 = vsel %vm1325_vm3, %v2304_v3, %v2303_v40  ;;  %3313 = vmatpush3.bf16.msra.mxu0 %v2475_v41  ;;  %v2386_v16 = vrot.slane %v4381_v22, %v3608_v13  ;;  %v2410_v9 = vrot.slane %v3936_v12, 7  ;;  %v4964_v12 = vld [vmem:[#allocation29_spill] sm:$0xff] }
  0xc9   : > { %v4878_v0 = vunpack.c.l.b16 %v4500_v54  ;;  %v2307_v48 = vsel %vm1328_vm5, %v2306_v47, %v2305_v32  ;;  %v2412_v38 = vrot.slane %v3938_v21, 6  ;;  %v2414_v14 = vrot.slane %v3941_v44, 5  ;;  %3336 = vmatprep.subr.msk.bf16.mxu0 %vm1387_vm4, %v4497_v19 }
  0xca   : > { %v2309_v2 = vsel %vm1331_vm6, %v2308_v36, %v2307_v48  ;;  %v4520_v24 = vrot.slane %v2386_v16, %v3608_v13  ;;  %v2411_v55 = vsel %vm1316_vm0, %v2410_v9, %v3934_v43  ;;  %v2416_v3 = vrot.slane %v3943_v23, 4  ;;  %v4966_v23 = vld [vmem:[#allocation30_spill] sm:$0xff] }
  0xcb   : > { %v2310_v20 = vrot.slane %v4878_v0, 1  ;;  %v2413_v47 = vsel %vm1319_vm1, %v2412_v38, %v2411_v55  ;;  %v2418_v40 = vrot.slane %v3945_v51, 3  ;;  %v2420_v41 = vrot.slane %v3947_v18, 2  ;;  %v4965_v18 = vld [vmem:[#allocation27_spill] sm:$0xff] }
  0xcc   : > { %4963 = vst [vmem:[#allocation5_spill] sm:$0xff] %v4520_v24  ;;  %v2415_v36 = vsel %vm1322_vm2, %v2414_v14, %v2413_v47  ;;  %v2422_v16 = vrot.slane %v3949_v1, 1  ;;  %v2424_v48 = vrot.slane %v3953_v29, 7  ;;  %v2426_v0 = vrot.slane %v3955_v15, 6  ;;  %v4967_v1 = vld [vmem:[#allocation31_spill] sm:$0xff] }
  0xcd   : > { %v2311_v43 = vsel %vm1334_vm7, %v2310_v20, %v2309_v2  ;;  %v2417_v9 = vsel %vm1325_vm3, %v2416_v3, %v2415_v36  ;;  %v2428_v38 = vrot.slane %v4964_v12, 5  ;;  %v2430_v14 = vrot.slane %v4966_v23, 4  ;;  %v4968_v20 = vld [vmem:[#allocation47_spill] sm:$0xff] }
  0xce   : > { %v2313_v55 = vpack.c.b16 %v2311_v43, %v2297_v28  ;;  %v2419_v51 = vsel %vm1328_vm5, %v2418_v40, %v2417_v9  ;;  %v2425_v32 = vsel %vm1316_vm0, %v2424_v48, %v4965_v18  ;;  %v2432_v2 = vrot.slane %v4967_v1, 3  ;;  %v4970_v48 = vld [vmem:[#allocation6_spill] sm:$0xff] }
  0xcf   : > { %v2421_v47 = vsel %vm1331_vm6, %v2420_v41, %v2419_v51  ;;  %v2427_v29 = vsel %vm1319_vm1, %v2426_v0, %v2425_v32  ;;  %v2434_v3 = vrot.slane %v4968_v20, 2  ;;  %v4969_v40 = vunpack.c.l.b16 %v4520_v24  ;;  %v4971_v41 = vld [vmem:[#allocation8_spill] sm:$0xff]  ;;  %v4972_v32 = vld [vmem:[#allocation9_spill] sm:$0xff] }
  0xd0   : > { %3309 = vmatmul.mubr.msk.bf16.vlgmr.msra.gmra.mxu1 %vm1380_vm8, %v2313_v55  ;;  %v2423_v36 = vsel %vm1334_vm7, %v2422_v16, %v2421_v47  ;;  %v2429_v28 = vsel %vm1322_vm2, %v2428_v38, %v2427_v29  ;;  %v4553_v9 = vcombine.high %v4970_v48, %v4970_v48  ;;  %v2532_v0 = vshrl.u32 %v4381_v22, 16  ;;  %v4974_v16 = vld [vmem:[#allocation14_spill] sm:$0xff]  ;;  %v4977_v22 = vld [vmem:[#allocation11_spill] sm:$0xff] }
  0xd1   : > { %v2436_v43 = vrot.slane %v4969_v40, 1  ;;  %3319 = vmatpush3.bf16.msra.mxu1 %v2647_v10  ;;  %v2431_v51 = vsel %vm1325_vm3, %v2430_v14, %v2429_v28  ;;  %v4973_v20 = vrot.slane %v4972_v32, 7  ;;  %v2592_v47 = vrot.slane %v4974_v16, 2  ;;  %v4975_v40 = vld [vmem:[#allocation10_spill] sm:$0xff] }
  0xd2   : > { %v2433_v29 = vsel %vm1328_vm5, %v2432_v2, %v2431_v51  ;;  %v2537_v38 = vshll.u32 %v4553_v9, 16  ;;  %v4976_v24 = vrot.slane %v4975_v40, 6  ;;  %v2594_v10 = vrot.slane %v4948_v5, 1  ;;  %v4981_v5 = vld [vmem:[#allocation12_spill] sm:$0xff] }
  0xd3   : > { %v2583_v55 = vsel %vm1316_vm0, %v4973_v20, %v4971_v41  ;;  %v2435_v14 = vsel %vm1331_vm6, %v2434_v3, %v2433_v29  ;;  %v4978_v28 = vrot.slane %v4977_v22, 5  ;;  %v4979_v20 = vrot.slane %v4946_v27, 7 }
  0xd4   : > { %v2585_v48 = vsel %vm1319_vm1, %v4976_v24, %v2583_v55  ;;  %v4980_v2 = vunpack.c.l.b16 %v4414_v53  ;;  %v2437_v16 = vsel %vm1334_vm7, %v2436_v43, %v2435_v14  ;;  %v2539_v24 = vsel %vm3704_vm15, %v2532_v0, %v2537_v38 }
  0xd5   : > { %v2587_v32 = vsel %vm1322_vm2, %v4978_v28, %v2585_v48  ;;  %v2597_v41 = vsel %vm1316_vm0, %v4979_v20, %v4945_v8  ;;  %v4982_v55 = vrot.slane %v4981_v5, 4  ;;  %v4983_v29 = vrot.slane %v4947_v30, 6  ;;  %v4984_v8 = vld [vmem:[#allocation13_spill] sm:$0xff] }
  0xd6   : > { %v2606_v51 = vrot.slane %v4980_v2, 2  ;;  %v2466_v48 = vpack.c.b16 %v2437_v16, %v2423_v36  ;;  %v2558_v27 = vrot.slane %v2539_v24, %v3608_v13  ;;  %v4985_v22 = vrot.slane %v4984_v8, 3  ;;  %v4989_v16 = vld [vmem:[#allocation42_spill] sm:$0xff] }
  0xd7   : > { %v2589_v3 = vsel %vm1325_vm3, %v4982_v55, %v2587_v32  ;;  %v2599_v40 = vsel %vm1319_vm1, %v4983_v29, %v2597_v41  ;;  %v4986_v43 = vrot.slane %v4949_v25, 5  ;;  %v4987_v38 = vrot.slane %v4950_v11, 4 }
  0xd8   : > { %v2591_v53 = vsel %vm1328_vm5, %v4985_v22, %v2589_v3  ;;  %v2400_v30 = vrot.slane %v4464_v6, %v3608_v13  ;;  %v2438_v36 = vrot.slane %v4278_v63, 7  ;;  %3314 = vmatprep.mubr.msk.bf16.mxu0 %vm1380_vm8, %v2466_v48  ;;  %v2565_v32 = vrot.slane %v2558_v27, %v3608_v13 }
  0xd9   : > { %v2601_v14 = vsel %vm1322_vm2, %v4986_v43, %v2599_v40  ;;  %v2593_v0 = vsel %vm1331_vm6, %v2592_v47, %v2591_v53  ;;  %v4988_v25 = vrot.slane %v4951_v35, 3  ;;  %v2440_v47 = vrot.slane %v4280_v52, 6  ;;  %v4990_v35 = vld [vmem:[#allocation43_spill] sm:$0xff] }
  0xda   : > { %v2603_v28 = vsel %vm1325_vm3, %v4987_v38, %v2601_v14  ;;  %v2595_v20 = vsel %vm1334_vm7, %v2594_v10, %v2593_v0  ;;  %v4610_v2 = vrot.slane %v2400_v30, %v3608_v13  ;;  %v2439_v24 = vsel %vm1316_vm0, %v2438_v36, %v4989_v16  ;;  %v4992_v38 = vld [vmem:[#allocation46_spill] sm:$0xff] }
  0xdb   : > { %v2605_v41 = vsel %vm1328_vm5, %v4988_v25, %v2603_v28  ;;  %v2442_v5 = vrot.slane %v4282_v26, 5  ;;  %v2580_v55 = vunpack.c.l.b16 %v2565_v32  ;;  %v2441_v3 = vsel %vm1319_vm1, %v2440_v47, %v2439_v24 }
  0xdc   : > { %v2607_v11 = vsel %vm1331_vm6, %v2606_v51, %v2605_v41  ;;  %v2444_v10 = vrot.slane %v4284_v62, 4  ;;  %v2446_v29 = vrot.slane %v4990_v35, 3  ;;  %v2409_v40 = vunpack.c.l.b16 %v4610_v2  ;;  %v4991_v51 = vld [vmem:[#allocation44_spill] sm:$0xff]  ;;  %v4993_v41 = vld [vmem:[#allocation45_spill] sm:$0xff] }
  0xdd   : > { %v2443_v48 = vsel %vm1322_vm2, %v2442_v5, %v2441_v3  ;;  %v2448_v27 = vrot.slane %v4991_v51, 2  ;;  %v2450_v8 = vrot.slane %v4290_v37, 1  ;;  %v2608_v22 = vrot.slane %v2580_v55, 1 }
  0xde   : > { %v2445_v53 = vsel %vm1325_vm3, %v2444_v10, %v2443_v48  ;;  %v2452_v43 = vrot.slane %v4294_v60, 7  ;;  %v2454_v14 = vrot.slane %v4296_v31, 6  ;;  %v2456_v28 = vrot.slane %v4992_v38, 5 }
  0xdf   : > { %v2447_v0 = vsel %vm1328_vm5, %v2446_v29, %v2445_v53  ;;  %v2458_v30 = vrot.slane %v4300_v59, 4  ;;  %v2460_v36 = vrot.slane %v4302_v46, 3  ;;  %v2609_v32 = vsel %vm1334_vm7, %v2608_v22, %v2607_v11 }
  0xe0   : > { %v2449_v25 = vsel %vm1331_vm6, %v2448_v27, %v2447_v0  ;;  %v2453_v47 = vsel %vm1316_vm0, %v2452_v43, %v4993_v41  ;;  %v2462_v16 = vrot.slane %v4436_v17, 2  ;;  %v2638_v24 = vpack.c.b16 %v2609_v32, %v2595_v20  ;;  %v4994_v27 = vld [vmem:[#allocation36_spill] sm:$0xff] }
  0xe1   : > { %v2451_v5 = vsel %vm1334_vm7, %v2450_v8, %v2449_v25  ;;  %v2455_v55 = vsel %vm1319_vm1, %v2454_v14, %v2453_v47  ;;  %v2464_v3 = vrot.slane %v2409_v40, 1  ;;  %v4641_v11 = vcombine.high %v4952_v57, %v4952_v57  ;;  %v4995_v57 = vld [vmem:[#allocation35_spill] sm:$0xff] }
  0xe2   : > { %v2457_v10 = vsel %vm1322_vm2, %v2456_v28, %v2455_v55  ;;  %v2540_v29 = vshrl.u32 %v4464_v6, 16  ;;  %v2610_v48 = vrot.slane %v4162_v4, 7  ;;  %3320 = vmatprep.mubr.msk.bf16.mxu1 %vm1380_vm8, %v2638_v24  ;;  %v2612_v8 = vrot.slane %v4994_v27, 6  ;;  %v4996_v55 = vld [vmem:[#allocation40_spill] sm:$0xff] }
  0xe3   : > { %v2459_v20 = vsel %vm1325_vm3, %v2458_v30, %v2457_v10  ;;  %v2614_v22 = vrot.slane %v4958_v56, 5  ;;  %v2616_v53 = vrot.slane %v4959_v34, 4  ;;  %v2545_v14 = vshll.u32 %v4641_v11, 16 }
  0xe4   : > { %v2461_v43 = vsel %vm1328_vm5, %v2460_v36, %v2459_v20  ;;  %v2611_v0 = vsel %vm1316_vm0, %v2610_v48, %v4995_v57  ;;  %v2618_v6 = vrot.slane %v4170_v33, 3  ;;  %v2620_v30 = vrot.slane %v4172_v42, 2 }
  0xe5   : > { %v2463_v4 = vsel %vm1331_vm6, %v2462_v16, %v2461_v43  ;;  %v2613_v28 = vsel %vm1319_vm1, %v2612_v8, %v2611_v0  ;;  %v2622_v32 = vrot.slane %v4961_v39, 1  ;;  %v2547_v34 = vsel %vm3704_vm15, %v2540_v29, %v2545_v14  ;;  %v4998_v14 = vld [vmem:[#allocation23_spill] sm:$0xff] }
  0xe6   : > { %v2465_v56 = vsel %vm1334_vm7, %v2464_v3, %v2463_v4  ;;  %v2615_v36 = vsel %vm1322_vm2, %v2614_v22, %v2613_v28  ;;  %v2624_v25 = vrot.slane %v4178_v49, 7  ;;  %v2572_v33 = vrot.slane %v2547_v34, %v3608_v13  ;;  %v5000_v28 = vld [vmem:[#allocation22_spill] sm:$0xff] }
  0xe7   : > { %v2467_v47 = vpack.c.b16 %v2465_v56, %v2451_v5  ;;  %v2617_v16 = vsel %vm1325_vm3, %v2616_v53, %v2615_v36  ;;  %v2626_v24 = vrot.slane %v4180_v7, 6  ;;  %v2628_v3 = vrot.slane %v4962_v50, 5  ;;  %v5002_v56 = vld [vmem:[#allocation26_spill] sm:$0xff] }
  0xe8   : > { %v2619_v42 = vsel %vm1328_vm5, %v2618_v6, %v2617_v16  ;;  %v2625_v39 = vsel %vm1316_vm0, %v2624_v25, %v4996_v55  ;;  %v2579_v49 = vrot.slane %v2572_v33, %v3608_v13  ;;  %v2632_v29 = vrot.slane %v4186_v61, 3 }
  0xe9   : > { %3315 = vmatmul.mubr.msk.bf16.vlgmr.msra.gmra.mxu0 %vm1380_vm8, %v2467_v47  ;;  %v2621_v5 = vsel %vm1331_vm6, %v2620_v30, %v2619_v42  ;;  %v2627_v10 = vsel %vm1319_vm1, %v2626_v24, %v2625_v39  ;;  %v4997_v20 = vunpack.c.l.b16 %v4500_v54  ;;  %v2801_v58 = vsel %vm1387_vm4, %v4497_v19, 0  ;;  %v4999_v54 = vld [vmem:[#allocation24_spill] sm:$0xff] }
  0xea   : > { %v2623_v7 = vsel %vm1334_vm7, %v2622_v32, %v2621_v5  ;;  %v2629_v48 = vsel %vm1322_vm2, %v2628_v3, %v2627_v10  ;;  %v2581_v50 = vunpack.c.l.b16 %v2579_v49  ;;  %3325 = vmatpush3.bf16.msra.mxu0 %v2801_v58  ;;  %v2712_v22 = vrot.slane %v4553_v9, %v3608_v13  ;;  %v5001_v32 = vld [vmem:[#allocation25_spill] sm:$0xff]  ;;  %v5003_v3 = vld [vmem:[#allocation28_spill] sm:$0xff]  ;;  %v5004_v49 = vld [vmem:[#allocation47_spill] sm:$0xff] }
  0xeb   : > { %v2634_v27 = vrot.slane %v4997_v20, 2  ;;  %v2631_v8 = vsel %vm1325_vm3, %v2630_v45, %v2629_v48  ;;  %v2736_v53 = vrot.slane %v3938_v21, 7  ;;  %v2738_v43 = vrot.slane %v3941_v44, 6 }
  0xec   : > { %v2633_v61 = vsel %vm1328_vm5, %v2632_v29, %v2631_v8  ;;  %v2740_v57 = vrot.slane %v4998_v14, 5  ;;  %v2742_v0 = vrot.slane %v4999_v54, 4  ;;  %v2636_v19 = vrot.slane %v2581_v50, 1  ;;  %v5005_v29 = vld [vmem:[#allocation5_spill] sm:$0xff] }
  0xed   : > { %v2635_v6 = vsel %vm1331_vm6, %v2634_v27, %v2633_v61  ;;  %v2719_v4 = vrot.slane %v2712_v22, %v3608_v13  ;;  %v2737_v30 = vsel %vm1316_vm0, %v2736_v53, %v5000_v28  ;;  %v2744_v21 = vrot.slane %v5001_v32, 3 }
  0xee   : > { %v2739_v9 = vsel %vm1319_vm1, %v2738_v43, %v2737_v30  ;;  %v2746_v34 = vrot.slane %v5002_v56, 2  ;;  %v2748_v44 = vrot.slane %v4965_v18, 1  ;;  %v2637_v36 = vsel %vm1334_vm7, %v2636_v19, %v2635_v6 }
  0xef   : > { %v2734_v25 = vunpack.c.l.b16 %v2719_v4  ;;  %v2741_v47 = vsel %vm1322_vm2, %v2740_v57, %v2739_v9  ;;  %v2750_v33 = vrot.slane %v3955_v15, 7  ;;  %v2639_v16 = vpack.c.b16 %v2637_v36, %v2623_v7 }
  0xf0   : > { %v2743_v24 = vsel %vm1325_vm3, %v2742_v0, %v2741_v47  ;;  %v2752_v42 = vrot.slane %v4964_v12, 6  ;;  %v2754_v55 = vrot.slane %v4966_v23, 5  ;;  %v2756_v18 = vrot.slane %v4967_v1, 4 }
  0xf1   : > { %v2745_v39 = vsel %vm1328_vm5, %v2744_v21, %v2743_v24  ;;  %v2751_v45 = vsel %vm1316_vm0, %v2750_v33, %v5003_v3  ;;  %v2758_v5 = vrot.slane %v5004_v49, 3  ;;  %3321 = vmatmul.mubr.msk.bf16.vlgmr.msra.gmra.mxu1 %vm1380_vm8, %v2639_v16  ;;  %v5006_v7 = vunpack.c.l.b16 %v5005_v29 }
  0xf2   : > { %v2747_v15 = vsel %vm1331_vm6, %v2746_v34, %v2745_v39  ;;  %v2753_v10 = vsel %vm1319_vm1, %v2752_v42, %v2751_v45  ;;  %v2762_v48 = vrot.slane %v2734_v25, 1  ;;  %v2726_v27 = vrot.slane %v4641_v11, %v3608_v13 }
  0xf3   : > { %v2760_v12 = vrot.slane %v5006_v7, 2  ;;  %v2749_v23 = vsel %vm1334_vm7, %v2748_v44, %v2747_v15  ;;  %v2755_v20 = vsel %vm1322_vm2, %v2754_v55, %v2753_v10  ;;  %v2764_v1 = vrot.slane %v4280_v52, 7 }
  0xf4   : > { %v2757_v58 = vsel %vm1325_vm3, %v2756_v18, %v2755_v20  ;;  %v2766_v50 = vrot.slane %v4282_v26, 6  ;;  %v2768_v8 = vrot.slane %v4284_v62, 5  ;;  %v2770_v22 = vrot.slane %v4990_v35, 4 }
  0xf5   : > { %v2759_v53 = vsel %vm1328_vm5, %v2758_v5, %v2757_v58  ;;  %v2733_v61 = vrot.slane %v2726_v27, %v3608_v13  ;;  %v2765_v43 = vsel %vm1316_vm0, %v2764_v1, %v4278_v63  ;;  %v2772_v14 = vrot.slane %v4991_v51, 3 }
  0xf6   : > { %v2761_v11 = vsel %vm1331_vm6, %v2760_v12, %v2759_v53  ;;  %v2767_v52 = vsel %vm1319_vm1, %v2766_v50, %v2765_v43  ;;  %v2774_v57 = vrot.slane %v4290_v37, 2  ;;  %v2776_v26 = vrot.slane %v4993_v41, 1 }
  0xf7   : > { %v2763_v62 = vsel %vm1334_vm7, %v2762_v48, %v2761_v11  ;;  %v2735_v35 = vunpack.c.l.b16 %v2733_v61  ;;  %v2769_v54 = vsel %vm1322_vm2, %v2768_v8, %v2767_v52  ;;  %v2778_v13 = vrot.slane %v4296_v31, 7 }
  0xf8   : > { %v2792_v0 = vpack.c.b16 %v2763_v62, %v2749_v23  ;;  %v2771_v63 = vsel %vm1325_vm3, %v2770_v22, %v2769_v54  ;;  %v2780_v51 = vrot.slane %v4992_v38, 6  ;;  %v2782_v6 = vrot.slane %v4300_v59, 5 }
  0xf9   : > { %v2773_v19 = vsel %vm1328_vm5, %v2772_v14, %v2771_v63  ;;  %v2779_v37 = vsel %vm1316_vm0, %v2778_v13, %v4294_v60  ;;  %v2784_v41 = vrot.slane %v4302_v46, 4  ;;  %v2786_v4 = vrot.slane %v4436_v17, 3 }
  0xfa   : > { %3326 = vmatprep.mubr.msk.bf16.mxu0 %vm1380_vm8, %v2792_v0  ;;  %v2775_v31 = vsel %vm1331_vm6, %v2774_v57, %v2773_v19  ;;  %v2781_v28 = vsel %vm1319_vm1, %v2780_v51, %v2779_v37  ;;  %v2788_v38 = vrot.slane %v2409_v40, 2  ;;  %v2790_v30 = vrot.slane %v2735_v35, 1 }
  0xfb   : > { %v2783_v59 = vsel %vm1322_vm2, %v2782_v6, %v2781_v28  ;;  %v2777_v60 = vsel %vm1334_vm7, %v2776_v26, %v2775_v31 }
  0xfc   : > { %v2785_v9 = vsel %vm1325_vm3, %v2784_v41, %v2783_v59 }
  0xfd   : > { %v2787_v46 = vsel %vm1328_vm5, %v2786_v4, %v2785_v9 }
  0xfe   : > { %v2789_v17 = vsel %vm1331_vm6, %v2788_v38, %v2787_v46 }
  0xff   : > { %v2791_v32 = vsel %vm1334_vm7, %v2790_v30, %v2789_v17 }
 0x100   : > { %v2793_v21 = vpack.c.b16 %v2791_v32, %v2777_v60 }
 0x102   : > { %3327 = vmatmul.mubr.msk.bf16.vlgmr.msra.gmra.mxu0 %vm1380_vm8, %v2793_v21 }
 0x157   : > { %v3292_v56 = vpop.f32.mrf.mxu0 }
 0x159   : > { %v1425_v34 = vpop.f32.mrf.mxu0 }
 0x15b   : > { %v3293_v40 = vpop.f32.mrf.mxu0 }
 0x15d   : > { %v1428_v36 = vpop.f32.mrf.mxu0 }
 0x16b   : > { %v3298_v2 = vpop.f32.mrf.mxu1 }
 0x16c   : > { %v2030_v18 = vadd.f32 %v3298_v2, %v3292_v56 }
 0x16d   : > { %v2021_v44 = vpop.f32.mrf.mxu1 }
 0x16e   : > { %v2022_v15 = vadd.f32 %v2021_v44, %v1425_v34 }
 0x16f   : > { %v3299_v25 = vpop.f32.mrf.mxu1 }
 0x170   : > { %v2033_v29 = vadd.f32 %v3299_v25, %v3293_v40 }
 0x171   : > { %v2024_v33 = vpop.f32.mrf.mxu1 }
 0x172   : > { %v2025_v23 = vadd.f32 %v2024_v33, %v1428_v36 }
 0x185   : > { %v3304_v47 = vpop.f32.mrf.mxu0 }
 0x186   : > { %v2188_v10 = vadd.f32 %v3304_v47, %v2030_v18 }
 0x187   : > { %v2171_v16 = vpop.f32.mrf.mxu0 }
 0x188   : > { %v2186_v7 = vadd.f32 %v2171_v16, %v2022_v15 }
 0x189   : > { %v3305_v42 = vpop.f32.mrf.mxu0 }
 0x18a   : > { %v2189_v27 = vadd.f32 %v3305_v42, %v2033_v29 }
 0x18b   : > { %v2174_v39 = vpop.f32.mrf.mxu0 }
 0x18c   : > { %v2187_v58 = vadd.f32 %v2174_v39, %v2025_v23 }
 0x190   : > { %v3310_v24 = vpop.f32.mrf.mxu1 }
 0x191   : > { %v2374_v20 = vadd.f32 %v3310_v24, %v2188_v10 }
 0x192   : > { %v2357_v55 = vpop.f32.mrf.mxu1 }
 0x193   : > { %v2372_v1 = vadd.f32 %v2357_v55, %v2186_v7 }
 0x194   : > { %v3311_v3 = vpop.f32.mrf.mxu1 }
 0x195   : > { %v2375_v53 = vadd.f32 %v3311_v3, %v2189_v27 }
 0x196   : > { %v2360_v49 = vpop.f32.mrf.mxu1 }
 0x197   : > { %v2373_v43 = vadd.f32 %v2360_v49, %v2187_v58 }
 0x1a9   : > { %v3316_v45 = vpop.f32.mrf.mxu0 }
 0x1aa   : > { %v2528_v50 = vadd.f32 %v3316_v45, %v2374_v20 }
 0x1ab   : > { %v2511_v5 = vpop.f32.mrf.mxu0 }
 0x1ac   : > { %v2526_v61 = vadd.f32 %v2511_v5, %v2372_v1 }
 0x1ad   : > { %v3317_v48 = vpop.f32.mrf.mxu0 }
 0x1ae   : > { %v2529_v11 = vadd.f32 %v3317_v48, %v2375_v53 }
 0x1af   : > { %v2514_v22 = vpop.f32.mrf.mxu0 }
 0x1b0   : > { %v2527_v62 = vadd.f32 %v2514_v22, %v2373_v43 }
 0x1b1   : > { %v3322_v12 = vpop.f32.mrf.mxu1 }
 0x1b2   : > { %v2700_v14 = vadd.f32 %v3322_v12, %v2528_v50 }
 0x1b3   : > { %v2683_v8 = vpop.f32.mrf.mxu1 }
 0x1b4   : > { %v2698_v26 = vadd.f32 %v2683_v8, %v2526_v61 }
 0x1b5   : > { %v3323_v52 = vpop.f32.mrf.mxu1 }
 0x1b6   : > { %v2701_v13 = vadd.f32 %v3323_v52, %v2529_v11 }
 0x1b7   : > { %v2686_v63 = vpop.f32.mrf.mxu1 }
 0x1b8   : > { %v2699_v6 = vadd.f32 %v2686_v63, %v2527_v62 }
 0x1c2   : > { %v3328_v57 = vpop.f32.mrf.mxu0 }
 0x1c3   : > { %v2854_v35 = vadd.f32 %v3328_v57, %v2700_v14 }
 0x1c4   : > { %v2837_v54 = vpop.f32.mrf.mxu0 }
 0x1c5   : > { %v2852_v0 = vadd.f32 %v2837_v54, %v2698_v26  ;;  %2859 = sbr.rel (%p3238_p1) target bundleno = 460 (0x1cc), region = 73 }
 0x1c6   : > { %v3329_v51 = vpop.f32.mrf.mxu0 }
 0x1c7   : > { %v2855_v19 = vadd.f32 %v3329_v51, %v2701_v13 }
 0x1c8   : > { %v2840_v37 = vpop.f32.mrf.mxu0 }
 0x1c9   : > { %v2853_v41 = vadd.f32 %v2840_v37, %v2699_v6 }
 0x1ca   : > { %2860 = vst [vmem:[#allocation2 + $0x10] sm:$0xff] %v2852_v0  ;;  %2862 = vst [vmem:[#allocation2 + $0x18] sm:$0xff] %v2854_v35 }
 0x1cb   : > { %2861 = vst [vmem:[#allocation2] sm:$0xff] %v2853_v41  ;;  %2863 = vst [vmem:[#allocation2 + $0x8] sm:$0xff] %v2855_v19 }
 0x1cc PF: > { %p3239_p2 = scmp.le.s32.totalorder %s3467_s19, 0 }
 0x1ce   : > { %2867 = sbr.rel (%p3239_p2) target bundleno = 472 (0x1d8), region = 77 }
 0x1d3   : > { %v2868_v4 = vld [vmem:[#allocation2 + $0x10] sm:$0xff]  ;;  %v2869_v31 = vld [vmem:[#allocation2] sm:$0xff]  ;;  %v2870_v28 = vld [vmem:[#allocation2 + $0x18] sm:$0xff] }
 0x1d4   : > { %v2872_v38 = vadd.f32 %v2868_v4, %v2852_v0  ;;  %v2873_v59 = vadd.f32 %v2869_v31, %v2853_v41  ;;  %v2874_v30 = vadd.f32 %v2870_v28, %v2854_v35  ;;  %v2871_v9 = vld [vmem:[#allocation2 + $0x8] sm:$0xff] }
 0x1d5   : > { %v2875_v60 = vadd.f32 %v2871_v9, %v2855_v19 }
 0x1d6   : > { %2876 = vst [vmem:[#allocation2 + $0x10] sm:$0xff] %v2872_v38  ;;  %2877 = vst [vmem:[#allocation2] sm:$0xff] %v2873_v59 }
 0x1d7   : > { %2878 = vst [vmem:[#allocation2 + $0x18] sm:$0xff] %v2874_v30  ;;  %2879 = vst [vmem:[#allocation2 + $0x8] sm:$0xff] %v2875_v60 }
 0x1d8 PF: > { %p3240_p3 = scmp.ne.s32.totalorder %s3467_s19, 6 }
 0x1da   : > { %2883 = sbr.rel (%p3240_p3) target bundleno = 501 (0x1f5), region = 81 }
 0x1df   : > { %v2884_v46 = vld [vmem:[#allocation2 + $0x10] sm:$0xff]  ;;  %v2885_v17 = vld [vmem:[#allocation2] sm:$0xff]  ;;  %v2886_v32 = vld [vmem:[#allocation2 + $0x18] sm:$0xff] }
 0x1e0   : > { %v3259_v21 = vpack.c.bf16 %v2885_v17, %v2884_v46  ;;  %v2908_v56 = vadd.f32 %v2885_v17, %v2884_v46  ;;  %v2917_v34 = vmul.f32 %v2884_v46, %v2884_v46  ;;  %v2918_v2 = vmul.f32 %v2885_v17, %v2885_v17  ;;  %v2887_v40 = vld [vmem:[#allocation2 + $0x8] sm:$0xff] }
 0x1e1   : > { %v3264_v44 = vpack.c.bf16 %v2887_v40, %v2886_v32  ;;  %v2919_v36 = vmul.f32 %v2886_v32, %v2886_v32  ;;  %v2920_v33 = vmul.f32 %v2887_v40, %v2887_v40 }
 0x1e2   : > { %3260 = vst [vmem:[%s4757_s8] sm:$0xff] %v3259_v21   ;;  %v2921_v25 = vadd.f32 %v2918_v2, %v2917_v34  ;;  %v2909_v47 = vadd.f32 %v2908_v56, %v2886_v32 }
 0x1e3   : > { %3266 = vst [vmem:[%s4757_s8 + $0x8] sm:$0xff] %v3264_v44  }
 0x1e4   : > { %v2910_v16 = vadd.f32 %v2909_v47, %v2887_v40  ;;  %v2922_v24 = vadd.f32 %v2921_v25, %v2919_v36 }
 0x1e6   : > { %v2911_v42 = vrot.slane %v2910_v16, 4  ;;  %v2923_v55 = vadd.f32 %v2922_v24, %v2920_v33 }
 0x1e8   : > { %v2912_v39 = vadd.f32 %v2911_v42, %v2910_v16  ;;  %v2924_v3 = vrot.slane %v2923_v55, 4 }
 0x1ea   : > { %v2913_v45 = vrot.slane %v2912_v39, 2  ;;  %v2925_v18 = vadd.f32 %v2924_v3, %v2923_v55 }
 0x1ec   : > { %v2914_v49 = vadd.f32 %v2913_v45, %v2912_v39  ;;  %v2926_v5 = vrot.slane %v2925_v18, 2 }
 0x1ee   : > { %v2915_v15 = vrot.slane %v2914_v49, 1  ;;  %v2927_v10 = vadd.f32 %v2926_v5, %v2925_v18 }
 0x1f0   : > { %v2916_v29 = vadd.f32 %v2915_v15, %v2914_v49  ;;  %v2928_v7 = vrot.slane %v2927_v10, 1 }
 0x1f2   : > { %2930 = vst [vmem:[%s3613_s5] sm:$0xff] %v2916_v29  ;;  %v2929_v12 = vadd.f32 %v2928_v7, %v2927_v10 }
 0x1f4   : > { %2931 = vst [vmem:[%s3618_s30] sm:$0xff] %v2929_v12 }
 0x1f5 PF: > { %2946 = sbr.rel (!%p3577_p8) target bundleno = 506 (0x1fa), region = 85  ;;  %s3255_s19 = sshll.u32 (%p3577_p8), %s3471_s20, 3  ;;  %v2966_v48 = vld [vmem:[%s4757_s8] sm:$0xff] (%p3577_p8)   ;;  %v2970_v23 = vld [vmem:[%s4757_s8 + $0x8] sm:$0xff] (%p3577_p8)  }
 0x1f6   : > { %s2949_s12 = scalar_lea.vmem (%p3577_p8), %s4803_s2, %s3255_s19 }
 0x1f7   : > { %2967 = vst [vmem:[%s2949_s12] sm:$0xff] (%p3577_p8), %v2966_v48   ;;  %2971 = vst [vmem:[%s2949_s12 + $0x80] sm:$0xff] (%p3577_p8), %v2970_v23  }
 0x1fa PF: > { %s15_s23 = sadd.s32 1, %s3483_s23   ;;  %s5007_s15 = smov %s3455_s16 }
 0x1fb   : > { %p12_p4 = scmp.ge.s32.totalorder %s15_s23, 114   ;;  %s5008_s16 = smov %s3582_s10 }
 0x1fc   : > { %s5009_s17 = smov %s3463_s18  ;;  %s5010_s18 = smov %s3585_s11 }
 0x1fd   : > { %s5011_s19 = smov %s3475_s21  ;;  %s5012_s20 = smov %s3479_s22 }
 0x1fe   : > { %s5013_s21 = smov %s5016_s25  ;;  %s5014_s22 = smov %s5020_s26 }
 0x1ff   :  { %14 = sbr.rel (!%p12_p4) target bundleno = 5 (0x5), region = 188 }

// kernel: _lambda_.31
= control target key start
LH: loop header
LB: loop body
LE: loop exit
PB: predicated region body
PF: predicated region fallthrough
CT: control target
= control target key end

     0   :  { %s205_s0 = inlined_call_operand.vmem [shape: bf16[32,256], index: 0, kind: input, shape index: {}]   ;;  %s206_s1 = inlined_call_operand.vmem [shape: f32[1,128], index: 1, kind: input, shape index: {}]   ;;  %s207_s2 = inlined_call_operand.vmem [shape: f32[1,128], index: 2, kind: input, shape index: {}]   ;;  %s208_s3 = inlined_call_operand.vmem [shape: bf16[32,128], index: 3, kind: output, shape index: {}]  }
   0x1   :  { %v26_v0 = vld [vmem:[%s205_s0] sm:$0xf]  ;;  %v28_v1 = vld [vmem:[%s205_s0 + $0x8] sm:$0xf]  ;;  %v30_v2 = vld [vmem:[%s205_s0 + $0x10] sm:$0xf] }
   0x2   :  { %27 = vst [vmem:[#allocation2] sm:$0xf] %v26_v0  ;;  %29 = vst [vmem:[#allocation2 + $0x4] sm:$0xf] %v28_v1  ;;  %v32_v3 = vld [vmem:[%s205_s0 + $0x18] sm:$0xf] }
   0x3   :  { %31 = vst [vmem:[#allocation2 + $0x8] sm:$0xf] %v30_v2  ;;  %33 = vst [vmem:[#allocation2 + $0xc] sm:$0xf] %v32_v3  ;;  %v131_v5 = vld [vmem:[%s206_s1] ss:$0 sm:$0xff] }
   0x4   :  { %v132_v9 = vld [vmem:[%s207_s2] ss:$0 sm:$0xff] }
   0x9   :  { %v142_v4 = vld [vmem:[#allocation2] sm:$0xff]  }
   0xa   :  { %v143_v6 = vunpack.c.l.bf16 %v142_v4  ;;  %v144_v7 = vunpack.c.h.bf16 %v142_v4  ;;  %v159_v8 = vld [vmem:[#allocation2 + $0x8] sm:$0xff]  }
   0xb   :  { %v147_v10 = vunpack.c.l.bf16 %v159_v8  ;;  %v148_v11 = vunpack.c.h.bf16 %v159_v8 }
   0xc   :  { %v84_v12 = vmul.f32 %v143_v6, %v131_v5  ;;  %v85_v13 = vmul.f32 %v144_v7, %v131_v5 }
   0xd   :  { %v86_v14 = vmul.f32 %v147_v10, %v131_v5  ;;  %v87_v15 = vmul.f32 %v148_v11, %v131_v5 }
   0xe   :  { %v95_v16 = vadd.f32 %v132_v9, %v84_v12  ;;  %v96_v17 = vadd.f32 %v132_v9, %v85_v13 }
   0xf   :  { %v97_v18 = vadd.f32 %v132_v9, %v86_v14  ;;  %v98_v19 = vadd.f32 %v132_v9, %v87_v15 }
  0x10   :  { %v99_v20 = vmax.f32 %v95_v16, 0.0  ;;  %v100_v21 = vmax.f32 %v96_v17, 0.0 }
  0x11   :  { %v101_v22 = vmax.f32 %v97_v18, 0.0  ;;  %v102_v23 = vmax.f32 %v98_v19, 0.0 }
  0x12   :  { %v152_v24 = vpack.c.bf16 %v100_v21, %v99_v20 }
  0x13   :  { %v157_v25 = vpack.c.bf16 %v102_v23, %v101_v22 }
  0x14   :  { %153 = vst [vmem:[%s208_s3] sm:$0xff] %v152_v24  }
  0x15   :  { %160 = vst [vmem:[%s208_s3 + $0x8] sm:$0xff] %v157_v25  }

// kernel: _lambda_.33
= control target key start
LH: loop header
LB: loop body
LE: loop exit
PB: predicated region body
PF: predicated region fallthrough
CT: control target
= control target key end

     0   :  { %s1294_s15 = smov 0   ;;  %s1296_s16 = smov 0   ;;  %s1543_s0 = inlined_call_operand.vmem [shape: bf16[2,6,6,128], index: 0, kind: input, shape index: {}]   ;;  %s1544_s1 = inlined_call_operand.vmem [shape: bf16[9,128,128], index: 1, kind: input, shape index: {}]   ;;  %s1545_s2 = inlined_call_operand.vmem [shape: bf16[2,4,4,128], index: 2, kind: output, shape index: {0}]   ;;  %s1546_s3 = inlined_call_operand.vmem [shape: f32[4,8,128], index: 3, kind: output, shape index: {1}]   ;;  %s1547_s4 = inlined_call_operand.vmem [shape: f32[4,8,128], index: 4, kind: output, shape index: {2}]  }
   0x1   :  { %s1298_s17 = smov 0   ;;  %s1300_s18 = smov 0  }
   0x2   :  { %s1302_s19 = smov 0   ;;  %s1304_s20 = smov 0  }
   0x3   :  { %s1306_s21 = smov 0   ;;  %s1308_s22 = smov 0  }
   0x4   :  { %s1310_s23 = smov 0  }
   0x5 LB: > { %s24_s24 = sadd.s32 1, %s1256_s21  ;;  %s27_s25 = sadd.s32 1, %s1260_s22  ;;  %s1264_s23 = sphi %s1310_s23, %s15_s23   ;;  %s1260_s22 = sphi %s1308_s22, %s1559_s22   ;;  %s1256_s21 = sphi %s1306_s21, %s1558_s21   ;;  %s1252_s20 = sphi %s1304_s20, %s1557_s20   ;;  %s1248_s19 = sphi %s1302_s19, %s1556_s19   ;;  %s1244_s18 = sphi %s1300_s18, %s1555_s18   ;;  %s1240_s17 = sphi %s1298_s17, %s1554_s17   ;;  %s1236_s16 = sphi %s1296_s16, %s1553_s16   ;;  %s1232_s15 = sphi %s1294_s15, %s1552_s15  }
   0x6   : > { %p25_p0 = scmp.ge.s32.totalorder %s24_s24, 3  ;;  %s925_s26 = sadd.s32 4294967295, %s1264_s23  }
   0x7   : > { %s31_s27 = sadd.s32 %s1256_s21, %s1260_s22  ;;  %p43_p1 = scmp.ne.s32.totalorder %s1244_s18, %s1240_s17 }
   0x8   : > { %s1561_s24 = smov (%p25_p0, %s24_s24), 0  ;;  %s1563_s25 = smov (!%p25_p0, %s27_s25), %s1260_s22 }
   0x9   : > { %p44_p2 = scmp.eq.s32.totalorder %s1264_s23, 0  ;;  %p29_p3 = scmp.ge.s32.totalorder %s1563_s25, 4 }
   0xa   : > { %s36_s28 = sadd.s32 1, %s1244_s18  ;;  %p93_p5 = scmp.ne.s32.totalorder %s1236_s16, %s1232_s15 }
   0xb   : > { %p1351_p4 = por %p44_p2, %p43_p1  ;;  %s1565_s25 = smov (%p29_p3, %s1563_s25), 0 }
   0xc   : > { %s83_s30 = sadd.s32 1, %s1236_s16  ;;  %p94_p6 = scmp.eq.s32.totalorder %s925_s26, 11 }
   0xd   : > { %s32_s5 = sadd.s32 %s1565_s25, %s1561_s24  ;;  %s80_s6 = ssub.s32 %s1260_s22, %s1565_s25 }
   0xe   : > { %s33_s7 = ssub.s32 %s31_s27, %s32_s5  ;;  %p81_p7 = scmp.eq.s32.totalorder %s80_s6, 0 }
   0xf   : > { %p34_p8 = scmp.eq.s32.totalorder %s33_s7, 0  ;;  %p1364_p9 = por %p94_p6, %p93_p5 }
  0x10   : > { %s1369_s9 = scalar_select %p81_p7, %s1236_s16, %s83_s30  }
  0x11   : > { %s1372_s10 = scalar_select %p34_p8, %s1244_s18, %s36_s28  }
  0x12   : > { %p928_p10 = scmp.ge.s32.totalorder %s1264_s23, 12 }
  0x14   : > { %171 = sbr.rel (%p928_p10) target bundleno = 30 (0x1e), region = 20 }
  0x19   : > { %174 = sbr.rel (!%p1351_p4) target bundleno = 30 (0x1e), region = 24  ;;  %s176_s11 = sand.u32 (%p1351_p4), 1, %s1244_s18  }
  0x1a   : > { %s930_s12 = sshll.u32 (%p1351_p4), %s31_s27, 2  ;;  %s929_s13 = sshll.u32 (%p1351_p4), %s176_s11, 3 }
  0x1b   : > { %s181_s5 = scalar_lea.vmem (%p1351_p4), %s1543_s0, %s930_s12  ;;  %s178_s30 = scalar_lea.vmem (%p1351_p4), [#allocation3], %s929_s13 }
  0x1c   : > { %v198_v0 = vld [vmem:[%s181_s5] sm:$0xf] (%p1351_p4)  ;;  %v200_v1 = vld [vmem:[%s181_s5 + $0x18] sm:$0xf] (%p1351_p4) }
  0x1d   : > { %199 = vst [vmem:[%s178_s30] sm:$0xf] (%p1351_p4), %v198_v0  ;;  %201 = vst [vmem:[%s178_s30 + $0x4] sm:$0xf] (%p1351_p4), %v200_v1 }
  0x1e PF: > { %p931_p11 = scmp.ge.s32.totalorder %s1264_s23, 1  ;;  %p228_p12 = scmp.lt.s32.totalorder %s1264_s23, 13 }
  0x20   : > { %p229_p13 = pnand %p931_p11, %p228_p12 }
  0x21   : > { %s252_s27 = sand.u32 (!%p229_p13), 1, %s1232_s15   ;;  %p268_p0 = scmp.lt.s32.totalorder (!%p229_p13), %s1252_s20, 3 }
  0x22   : > { %232 = sbr.rel (%p229_p13) target bundleno = 344 (0x158), region = 65  ;;  %s1385_s28 = sshll.u32 (!%p229_p13), %s252_s27, 2 }
  0x23   : > { %s1005_s29 = smul.u32 (!%p229_p13), 192, %s1248_s19  ;;  %s1499_s7 = scalar_lea.vmem (!%p229_p13), [#allocation4], %s1385_s28 }
  0x24   : > { %p998_p1 = scmp.ne.s32.totalorder (!%p229_p13), %s1248_s19, 0 }
  0x25   : > { %s1398_s15 = scalar_lea.vmem (!%p229_p13), %s1544_s1, %s1005_s29  ;;  %s235_s29 = sand.u32 (!%p229_p13), 1, %s1240_s17  }
  0x27   : > { %v1266_v2 = vmov 0.0   ;;  %vm1267_vm0 = vmmov 0   ;;  %s269_s6 = scalar_select %p268_p0, %s1252_s20, 3  ;;  %v1168_v3 = vld [vmem:[%s1398_s15 + $0x78] sm:$0xff]   ;;  %v1170_v5 = vld [vmem:[%s1398_s15 + $0x70] sm:$0xff]   ;;  %v304_v9 = vlaneseq  ;;  %v1172_v10 = vld [vmem:[%s1398_s15 + $0x68] sm:$0xff]  }
  0x28   : > { %1033 = vmatprep.subr.bf16.mxu0 %v1266_v2  ;;  %1053 = vmatprep.subr.bf16.mxu1 %v1266_v2  ;;  %v1169_v4 = vld [vmem:[%s1398_s15 + $0x38] sm:$0xff]   ;;  %v1171_v6 = vld [vmem:[%s1398_s15 + $0x30] sm:$0xff]   ;;  %v1268_v7 = vmov 1983009808   ;;  %vm317_vm1 = vsmask.f32 1280 }
  0x29   : > { %1049 = vmatprep.mubr.msk.bf16.mxu0 %vm1267_vm0, %v1266_v2  ;;  %1069 = vmatprep.mubr.msk.bf16.mxu1 %vm1267_vm0, %v1266_v2  ;;  %s934_s12 = sshll.u32 %s269_s6, 3  ;;  %v302_v8 = vunpack.c.l.s4 %v1268_v7  ;;  %v1173_v11 = vld [vmem:[%s1398_s15 + $0x28] sm:$0xff]   ;;  %vm318_vm2 = vsmask.f32 3336  ;;  %v305_v13 = vshrl.u32 %v304_v9, 7  ;;  %v1174_v14 = vld [vmem:[%s1398_s15 + $0x60] sm:$0xff]  }
  0x2a   : > { %s1404_s26 = scalar_lea.vmem %s1546_s3, %s934_s12  ;;  %s1409_s27 = scalar_lea.vmem %s1547_s4, %s934_s12  ;;  %1034 = vmatpush3.bf16.msra.mxu0 %v1168_v3  ;;  %1054 = vmatpush3.bf16.msra.mxu1 %v1169_v4  ;;  %v1175_v15 = vld [vmem:[%s1398_s15 + $0x20] sm:$0xff]   ;;  %vm320_vm3 = vsmask.f32 5392  ;;  %v1176_v17 = vld [vmem:[%s1398_s15 + $0x58] sm:$0xff]   ;;  %vm319_vm4 = vmor %vm317_vm1, %vm318_vm2  ;;  %vm322_vm5 = vsmask.f32 7448 }
  0x2b   : > { %1035 = vmatprep.subr.bf16.mxu0 %v1266_v2  ;;  %1055 = vmatprep.subr.bf16.mxu1 %v1266_v2  ;;  %v303_v12 = vunpack.c.0.s8 %v302_v8  ;;  %s932_s6 = sshll.u32 %s235_s29, 3  ;;  %v1177_v18 = vld [vmem:[%s1398_s15 + $0x18] sm:$0xff]   ;;  %v1178_v23 = vld [vmem:[%s1398_s15 + $0x50] sm:$0xff]   ;;  %vm1456_vm6 = vmor %vm319_vm4, %vm320_vm3  ;;  %vm566_vm8 = vcmask 1040384   ;;  %vm567_vm9 = vcmask 1042434   ;;  %vm569_vm11 = vcmask 1044484  }
  0x2c   : > { %s237_s17 = scalar_lea.vmem [#allocation3], %s932_s6  ;;  %v1179_v24 = vld [vmem:[%s1398_s15 + $0x10] sm:$0xff]   ;;  %v1180_v36 = vld [vmem:[%s1398_s15 + $0x48] sm:$0xff]   ;;  %vm323_vm7 = vmor %vm1456_vm6, %vm322_vm5  ;;  %vm571_vm13 = vcmask 1046534  }
  0x2d   : > { %v1425_v16 = vsub.s32 %v303_v12, %v305_v13  ;;  %v277_v19 = vld [vmem:[%s237_s17] sm:$0x7]  ;;  %v278_v20 = vld [vmem:[%s237_s17 + $0x4] sm:$0x7]  ;;  %v1182_v45 = vld [vmem:[%s1398_s15 + $0x40] sm:$0xff]  }
  0x2e   : > { %1036 = vmatpush3.bf16.msra.mxu0 %v1170_v5  ;;  %1056 = vmatpush3.bf16.msra.mxu1 %v1171_v6  ;;  %v1181_v39 = vld [vmem:[%s1398_s15 + $0x8] sm:$0xff]   ;;  %v469_v47 = vcombine.low %v277_v19, %v278_v20  ;;  %v1183_v48 = vld [vmem:[%s1398_s15] sm:$0xff]   ;;  %v1185_v53 = vld [vmem:[%s1398_s15 + $0xb8] sm:$0xff]  }
  0x2f   : > { %1037 = vmatprep.subr.bf16.mxu0 %v1266_v2  ;;  %1057 = vmatprep.subr.bf16.mxu1 %v1266_v2  ;;  %v1432_v21 = vrot.slane %v277_v19, %v1425_v16  ;;  %v1435_v22 = vrot.slane %v278_v20, %v1425_v16  ;;  %v1186_v55 = vld [vmem:[%s1398_s15 + $0xb0] sm:$0xff]   ;;  %v1187_v56 = vld [vmem:[%s1398_s15 + $0xa8] sm:$0xff]   ;;  %v1188_v57 = vld [vmem:[%s1398_s15 + $0xa0] sm:$0xff]  }
  0x30   : > { %v476_v52 = vrot.slane %v469_v47, %v1425_v16  ;;  %vm568_vm10 = vmor %vm566_vm8, %vm567_vm9  ;;  %v1189_v58 = vld [vmem:[%s1398_s15 + $0x98] sm:$0xff]   ;;  %v1190_v59 = vld [vmem:[%s1398_s15 + $0x90] sm:$0xff]  }
  0x31   : > { %v1444_v25 = vcombine.high %v1432_v21, %v1432_v21  ;;  %v1448_v26 = vcombine.high %v1435_v22, %v1435_v22  ;;  %v325_v27 = vshrl.u32 %v1432_v21, 16  ;;  %v328_v28 = vshll.u32 %v1432_v21, 16  ;;  %vm570_vm12 = vmor %vm568_vm10, %vm569_vm11  ;;  %v1191_v0 = vld [vmem:[%s1398_s15 + $0x88] sm:$0xff]   ;;  %v1192_v5 = vld [vmem:[%s1398_s15 + $0x80] sm:$0xff]  }
  0x32   : > { %1038 = vmatpush3.bf16.msra.mxu0 %v1172_v10  ;;  %1058 = vmatpush3.bf16.msra.mxu1 %v1173_v11  ;;  %v339_v29 = vshrl.u32 %v1435_v22, 16  ;;  %v342_v30 = vshll.u32 %v1435_v22, 16  ;;  %v971_v60 = vrot.slane %v1432_v21, 9  ;;  %v972_v62 = vrot.slane %v1435_v22, 9  ;;  %vm572_vm14 = vmor %vm570_vm12, %vm571_vm13 }
  0x33   : > { %1039 = vmatprep.subr.bf16.mxu0 %v1266_v2  ;;  %1059 = vmatprep.subr.bf16.mxu1 %v1266_v2  ;;  %v327_v32 = vrot.slane %v325_v27, 6  ;;  %v330_v33 = vrot.slane %v328_v28, 7  ;;  %v334_v34 = vshll.u32 %v1444_v25, 16  ;;  %v348_v35 = vshll.u32 %v1448_v26, 16 }
  0x34   : > { %v341_v37 = vrot.slane %v339_v29, 6  ;;  %v344_v38 = vrot.slane %v342_v30, 7  ;;  %v575_v61 = vrot.slane %v1444_v25, 7  ;;  %v579_v63 = vrot.slane %v1448_v26, 7 }
  0x35   : > { %v331_v40 = vor.u32 %v330_v33, %v327_v32  ;;  %v336_v41 = vrot.slane %v334_v34, 7  ;;  %v350_v43 = vrot.slane %v348_v35, 7 }
  0x36   : > { %1040 = vmatpush3.bf16.msra.mxu0 %v1174_v14  ;;  %1060 = vmatpush3.bf16.msra.mxu1 %v1175_v15  ;;  %v345_v42 = vor.u32 %v344_v38, %v341_v37  ;;  %v576_v1 = vsel %vm572_vm14, %v971_v60, %v575_v61  ;;  %v580_v3 = vsel %vm572_vm14, %v972_v62, %v579_v63 }
  0x37   : > { %1041 = vmatprep.subr.bf16.mxu0 %v1266_v2  ;;  %1061 = vmatprep.subr.bf16.mxu1 %v1266_v2  ;;  %v332_v44 = vrot.slane %v331_v40, 2  ;;  %v601_v4 = vcombine.low %v576_v1, %v580_v3 }
  0x38   : > { %v346_v46 = vrot.slane %v345_v42, 2 }
  0x39   : > { %v337_v49 = vsel %vm323_vm7, %v332_v44, %v336_v41  ;;  %v608_v6 = vrot.slane %v601_v4, %v1425_v16 }
  0x3a   : > { %1042 = vmatpush3.bf16.msra.mxu0 %v1176_v17  ;;  %1062 = vmatpush3.bf16.msra.mxu1 %v1177_v18  ;;  %v351_v50 = vsel %vm323_vm7, %v346_v46, %v350_v43 }
  0x3b   : > { %1043 = vmatprep.subr.bf16.mxu0 %v1266_v2  ;;  %1063 = vmatprep.subr.bf16.mxu1 %v1266_v2  ;;  %v372_v51 = vcombine.low %v337_v49, %v351_v50 }
  0x3d   : > { %v379_v54 = vrot.slane %v372_v51, %v1425_v16 }
  0x3e   : > { %1044 = vmatpush3.bf16.msra.mxu0 %v1178_v23  ;;  %1064 = vmatpush3.bf16.msra.mxu1 %v1179_v24 }
  0x3f   : > { %1045 = vmatprep.subr.bf16.mxu0 %v1266_v2  ;;  %1065 = vmatprep.subr.bf16.mxu1 %v1266_v2 }
  0x42   : > { %1046 = vmatpush3.bf16.msra.mxu0 %v1180_v36  ;;  %1066 = vmatpush3.bf16.msra.mxu1 %v1181_v39 }
  0x43   : > { %1047 = vmatprep.subr.bf16.mxu0 %v1266_v2  ;;  %1067 = vmatprep.subr.bf16.mxu1 %v1266_v2 }
  0x46   : > { %1048 = vmatpush3.bf16.msra.mxu0 %v1182_v45  ;;  %1068 = vmatpush3.bf16.msra.mxu1 %v1183_v48 }
  0x47   : > { %1073 = vmatprep.subr.bf16.mxu0 %v1266_v2 }
  0x49   : > { %1050 = vmatmul.mubr.bf16.vlgmr.msra.gmra.mxu0 %v379_v54  ;;  %1070 = vmatmul.mubr.bf16.vlgmr.msra.gmra.mxu1 %v476_v52 }
  0x4a   : > { %1074 = vmatpush3.bf16.msra.mxu0 %v1185_v53  ;;  %1089 = vmatprep.mubr.msk.bf16.mxu0 %vm1267_vm0, %v1266_v2 }
  0x4b   : > { %1075 = vmatprep.subr.bf16.mxu0 %v1266_v2 }
  0x4e   : > { %1076 = vmatpush3.bf16.msra.mxu0 %v1186_v55 }
  0x4f   : > { %1077 = vmatprep.subr.bf16.mxu0 %v1266_v2 }
  0x52   : > { %1078 = vmatpush3.bf16.msra.mxu0 %v1187_v56 }
  0x53   : > { %1079 = vmatprep.subr.bf16.mxu0 %v1266_v2 }
  0x56   : > { %1080 = vmatpush3.bf16.msra.mxu0 %v1188_v57 }
  0x57   : > { %1081 = vmatprep.subr.bf16.mxu0 %v1266_v2 }
  0x5a   : > { %1082 = vmatpush3.bf16.msra.mxu0 %v1189_v58 }
  0x5b   : > { %1083 = vmatprep.subr.bf16.mxu0 %v1266_v2 }
  0x5e   : > { %1084 = vmatpush3.bf16.msra.mxu0 %v1190_v59 }
  0x5f   : > { %1085 = vmatprep.subr.bf16.mxu0 %v1266_v2 }
  0x62   : > { %1086 = vmatpush3.bf16.msra.mxu0 %v1191_v0 }
  0x63   : > { %1087 = vmatprep.subr.bf16.mxu0 %v1266_v2 }
  0x66   : > { %1088 = vmatpush3.bf16.msra.mxu0 %v1192_v5 }
  0x69   : > { %1090 = vmatmul.mubr.bf16.vlgmr.msra.gmra.mxu0 %v608_v6 }
 0x109   : > { %v463_v7 = vpop.f32.mrf.mxu0  ;;  %v560_v8 = vpop.f32.mrf.mxu1 }
 0x10a   : > { %v561_v15 = vadd.f32 %v560_v8, %v463_v7 }
 0x10b   : > { %v1051_v9 = vpop.f32.mrf.mxu0  ;;  %v1071_v10 = vpop.f32.mrf.mxu1 }
 0x10d   : > { %v466_v11 = vpop.f32.mrf.mxu0  ;;  %v563_v12 = vpop.f32.mrf.mxu1 }
 0x10f   : > { %v1052_v13 = vpop.f32.mrf.mxu0  ;;  %v1072_v14 = vpop.f32.mrf.mxu1 }
 0x129   : > { %v692_v17 = vpop.f32.mrf.mxu0 }
 0x12a   : > { %v698_v18 = vadd.f32 %v692_v17, %v561_v15 }
 0x12b   : > { %v1091_v19 = vpop.f32.mrf.mxu0  ;;  %702 = sbr.rel (%p998_p1) target bundleno = 305 (0x131), region = 73 }
 0x12d   : > { %v695_v20 = vpop.f32.mrf.mxu0 }
 0x12f   : > { %v1092_v21 = vpop.f32.mrf.mxu0 }
 0x130   : > { %703 = vst [vmem:[#allocation2] sm:$0xff] %v698_v18 }
 0x131 PF: > { %p999_p2 = scmp.le.s32.totalorder %s1248_s19, 0 }
 0x133   : > { %707 = sbr.rel (%p999_p2) target bundleno = 316 (0x13c), region = 77 }
 0x138   : > { %v708_v2 = vld [vmem:[#allocation2] sm:$0xff] }
 0x139   : > { %v709_v16 = vadd.f32 %v708_v2, %v698_v18 }
 0x13b   : > { %710 = vst [vmem:[#allocation2] sm:$0xff] %v709_v16 }
 0x13c PF: > { %p1000_p3 = scmp.ne.s32.totalorder %s1248_s19, 2 }
 0x13e   : > { %714 = sbr.rel (%p1000_p3) target bundleno = 339 (0x153), region = 81 }
 0x143   : > { %v715_v22 = vld [vmem:[#allocation2] sm:$0xff] }
 0x144   : > { %v719_v23 = vpack.c.bf16 %v715_v22, %v715_v22  ;;  %v717_v24 = vcombine.high %v715_v22, %v715_v22  ;;  %v723_v25 = vrot.slane %v715_v22, 4  ;;  %v729_v26 = vmul.f32 %v715_v22, %v715_v22 }
 0x146   : > { %721 = vst [vmem:[%s1499_s7] sm:$0x3] %v719_v23  ;;  %v720_v27 = vpack.c.bf16 %v717_v24, %v717_v24  ;;  %v724_v28 = vadd.f32 %v723_v25, %v715_v22  ;;  %v730_v29 = vrot.slane %v729_v26, 4 }
 0x148   : > { %722 = vst [vmem:[%s1499_s7 + $0x2] sm:$0x3] %v720_v27  ;;  %v725_v30 = vrot.slane %v724_v28, 2  ;;  %v731_v31 = vadd.f32 %v730_v29, %v729_v26 }
 0x14a   : > { %v726_v32 = vadd.f32 %v725_v30, %v724_v28  ;;  %v732_v33 = vrot.slane %v731_v31, 2 }
 0x14c   : > { %v727_v34 = vrot.slane %v726_v32, 1  ;;  %v733_v35 = vadd.f32 %v732_v33, %v731_v31 }
 0x14e   : > { %v728_v36 = vadd.f32 %v727_v34, %v726_v32  ;;  %v734_v37 = vrot.slane %v733_v35, 1 }
 0x150   : > { %736 = vst [vmem:[%s1404_s26] sm:$0xff] %v728_v36  ;;  %v735_v38 = vadd.f32 %v734_v37, %v733_v35 }
 0x152   : > { %737 = vst [vmem:[%s1409_s27] sm:$0xff] %v735_v38 }
 0x153 PF: > { %752 = sbr.rel (!%p1364_p9) target bundleno = 344 (0x158), region = 85  ;;  %s1002_s19 = sshll.u32 (%p1364_p9), %s1252_s20, 1  ;;  %v771_v39 = vld [vmem:[%s1499_s7] sm:$0x3] (%p1364_p9)  ;;  %v773_v40 = vld [vmem:[%s1499_s7 + $0x2] sm:$0x3] (%p1364_p9) }
 0x154   : > { %s754_s15 = scalar_lea.vmem (%p1364_p9), %s1545_s2, %s1002_s19 }
 0x155   : > { %772 = vst [vmem:[%s754_s15] sm:$0x3] (%p1364_p9), %v771_v39  ;;  %774 = vst [vmem:[%s754_s15 + $0x8] sm:$0x3] (%p1364_p9), %v773_v40 }
 0x158 PF: > { %s15_s23 = sadd.s32 1, %s1264_s23   ;;  %s1552_s15 = smov %s1236_s16 }
 0x159   : > { %p12_p4 = scmp.ge.s32.totalorder %s15_s23, 14   ;;  %s1553_s16 = smov %s1369_s9 }
 0x15a   : > { %s1554_s17 = smov %s1244_s18  ;;  %s1555_s18 = smov %s1372_s10 }
 0x15b   : > { %s1556_s19 = smov %s1256_s21  ;;  %s1557_s20 = smov %s1260_s22 }
 0x15c   : > { %s1558_s21 = smov %s1561_s24  ;;  %s1559_s22 = smov %s1565_s25 }
 0x15d   :  { %14 = sbr.rel (!%p12_p4) target bundleno = 5 (0x5), region = 177 }

// kernel: _lambda_.34
= control target key start
LH: loop header
LB: loop body
LE: loop exit
PB: predicated region body
PF: predicated region fallthrough
CT: control target
= control target key end

     0   :  { %s175_s0 = inlined_call_operand.vmem [shape: bf16[32,128], index: 0, kind: input, shape index: {}]   ;;  %s176_s1 = inlined_call_operand.vmem [shape: f32[1,128], index: 1, kind: input, shape index: {}]   ;;  %s177_s2 = inlined_call_operand.vmem [shape: f32[1,128], index: 2, kind: input, shape index: {}]   ;;  %s178_s3 = inlined_call_operand.vmem [shape: bf16[32,128], index: 3, kind: input, shape index: {}]   ;;  %s179_s4 = inlined_call_operand.vmem [shape: bf16[32,128], index: 4, kind: output, shape index: {}]  }
   0x1   :  { %v98_v0 = vld [vmem:[%s175_s0] sm:$0xff]   ;;  %v123_v5 = vld [vmem:[%s175_s0 + $0x8] sm:$0xff]  }
   0x2   :  { %v87_v1 = vld [vmem:[%s176_s1] ss:$0 sm:$0xff]  ;;  %v99_v2 = vunpack.c.l.bf16 %v98_v0  ;;  %v100_v3 = vunpack.c.h.bf16 %v98_v0  ;;  %v124_v6 = vld [vmem:[%s178_s3 + $0x8] sm:$0xff]   ;;  %v103_v8 = vunpack.c.l.bf16 %v123_v5  ;;  %v104_v9 = vunpack.c.h.bf16 %v123_v5 }
   0x3   :  { %v106_v4 = vld [vmem:[%s178_s3] sm:$0xff]   ;;  %v111_v16 = vunpack.c.l.bf16 %v124_v6  ;;  %v112_v17 = vunpack.c.h.bf16 %v124_v6 }
   0x4   :  { %v88_v7 = vld [vmem:[%s177_s2] ss:$0 sm:$0xff]  ;;  %v32_v10 = vmul.f32 %v99_v2, %v87_v1  ;;  %v33_v11 = vmul.f32 %v100_v3, %v87_v1  ;;  %v107_v12 = vunpack.c.l.bf16 %v106_v4  ;;  %v108_v13 = vunpack.c.h.bf16 %v106_v4 }
   0x5   :  { %v34_v14 = vmul.f32 %v103_v8, %v87_v1  ;;  %v35_v15 = vmul.f32 %v104_v9, %v87_v1 }
   0x6   :  { %v43_v18 = vadd.f32 %v88_v7, %v32_v10  ;;  %v44_v19 = vadd.f32 %v88_v7, %v33_v11 }
   0x7   :  { %v45_v20 = vadd.f32 %v88_v7, %v34_v14  ;;  %v46_v21 = vadd.f32 %v88_v7, %v35_v15 }
   0x8   :  { %v55_v22 = vadd.f32 %v107_v12, %v43_v18  ;;  %v56_v23 = vadd.f32 %v108_v13, %v44_v19 }
   0x9   :  { %v57_v24 = vadd.f32 %v111_v16, %v45_v20  ;;  %v58_v25 = vadd.f32 %v112_v17, %v46_v21 }
   0xa   :  { %v59_v26 = vmax.f32 %v55_v22, 0.0  ;;  %v60_v27 = vmax.f32 %v56_v23, 0.0 }
   0xb   :  { %v61_v28 = vmax.f32 %v57_v24, 0.0  ;;  %v62_v29 = vmax.f32 %v58_v25, 0.0 }
   0xc   :  { %v116_v30 = vpack.c.bf16 %v60_v27, %v59_v26 }
   0xd   :  { %v121_v31 = vpack.c.bf16 %v62_v29, %v61_v28 }
   0xe   :  { %117 = vst [vmem:[%s179_s4] sm:$0xff] %v116_v30  }
   0xf   :  { %125 = vst [vmem:[%s179_s4 + $0x8] sm:$0xff] %v121_v31  }

// kernel: _lambda_.32
= control target key start
LH: loop header
LB: loop body
LE: loop exit
PB: predicated region body
PF: predicated region fallthrough
CT: control target
= control target key end

     0   :  { %s206_s0 = inlined_call_operand.vmem [shape: bf16[32,256], index: 0, kind: input, shape index: {}]   ;;  %s207_s1 = inlined_call_operand.vmem [shape: f32[1,128], index: 1, kind: input, shape index: {}]   ;;  %s208_s2 = inlined_call_operand.vmem [shape: f32[1,128], index: 2, kind: input, shape index: {}]   ;;  %s209_s3 = inlined_call_operand.vmem [shape: bf16[32,128], index: 3, kind: output, shape index: {}]  }
   0x1   :  { %v128_v0 = vld [vmem:[%s206_s0 + $0x4] sm:$0xf]  ;;  %v129_v1 = vld [vmem:[%s206_s0 + $0xc] sm:$0xf]  ;;  %v130_v2 = vld [vmem:[%s206_s0 + $0x14] sm:$0xf] }
   0x2   :  { %28 = vst [vmem:[#allocation2] sm:$0xf] %v128_v0  ;;  %30 = vst [vmem:[#allocation2 + $0x4] sm:$0xf] %v129_v1  ;;  %v131_v3 = vld [vmem:[%s206_s0 + $0x1c] sm:$0xf] }
   0x3   :  { %32 = vst [vmem:[#allocation2 + $0x8] sm:$0xf] %v130_v2  ;;  %34 = vst [vmem:[#allocation2 + $0xc] sm:$0xf] %v131_v3  ;;  %v132_v5 = vld [vmem:[%s207_s1] ss:$0 sm:$0xff] }
   0x4   :  { %v133_v9 = vld [vmem:[%s208_s2] ss:$0 sm:$0xff] }
   0x9   :  { %v143_v4 = vld [vmem:[#allocation2] sm:$0xff]  }
   0xa   :  { %v144_v6 = vunpack.c.l.bf16 %v143_v4  ;;  %v145_v7 = vunpack.c.h.bf16 %v143_v4  ;;  %v160_v8 = vld [vmem:[#allocation2 + $0x8] sm:$0xff]  }
   0xb   :  { %v148_v10 = vunpack.c.l.bf16 %v160_v8  ;;  %v149_v11 = vunpack.c.h.bf16 %v160_v8 }
   0xc   :  { %v85_v12 = vmul.f32 %v144_v6, %v132_v5  ;;  %v86_v13 = vmul.f32 %v145_v7, %v132_v5 }
   0xd   :  { %v87_v14 = vmul.f32 %v148_v10, %v132_v5  ;;  %v88_v15 = vmul.f32 %v149_v11, %v132_v5 }
   0xe   :  { %v96_v16 = vadd.f32 %v133_v9, %v85_v12  ;;  %v97_v17 = vadd.f32 %v133_v9, %v86_v13 }
   0xf   :  { %v98_v18 = vadd.f32 %v133_v9, %v87_v14  ;;  %v99_v19 = vadd.f32 %v133_v9, %v88_v15 }
  0x10   :  { %v153_v20 = vpack.c.bf16 %v97_v17, %v96_v16 }
  0x11   :  { %v158_v21 = vpack.c.bf16 %v99_v19, %v98_v18 }
  0x12   :  { %154 = vst [vmem:[%s209_s3] sm:$0xff] %v153_v20  }
  0x13   :  { %161 = vst [vmem:[%s209_s3 + $0x8] sm:$0xff] %v158_v21  }

// kernel: _lambda_.36
= control target key start
LH: loop header
LB: loop body
LE: loop exit
PB: predicated region body
PF: predicated region fallthrough
CT: control target
= control target key end

     0   :  { %s73_s0 = inlined_call_operand.vmem [shape: bf16[8,256], index: 0, kind: input, shape index: {}]   ;;  %s74_s1 = inlined_call_operand.vmem [shape: f32[1,128], index: 1, kind: input, shape index: {}]   ;;  %s75_s2 = inlined_call_operand.vmem [shape: f32[1,128], index: 2, kind: input, shape index: {}]   ;;  %s76_s3 = inlined_call_operand.vmem [shape: bf16[8,128], index: 3, kind: output, shape index: {}]  }
   0x1   :  { %v14_v0 = vld [vmem:[%s73_s0] sm:$0xf] }
   0x2   :  { %v39_v1 = vld [vmem:[%s74_s1] ss:$0 sm:$0xff]  ;;  %v15_v2 = vunpack.c.l.bf16 %v14_v0 }
   0x3   :  { %v40_v3 = vld [vmem:[%s75_s2] ss:$0 sm:$0xff] }
   0x4   :  { %v23_v4 = vmul.f32 %v39_v1, %v15_v2 }
   0x6   :  { %v31_v5 = vadd.f32 %v40_v3, %v23_v4 }
   0x8   :  { %v32_v6 = vmax.f32 %v31_v5, 0.0 }
   0xa   :  { %v33_v7 = vpack.c.bf16 %v32_v6, %v32_v6 }
   0xc   :  { %34 = vst [vmem:[%s76_s3] sm:$0xf] %v33_v7 }

// kernel: _lambda_.37
= control target key start
LH: loop header
LB: loop body
LE: loop exit
PB: predicated region body
PF: predicated region fallthrough
CT: control target
= control target key end

     0   :  { %s76_s0 = inlined_call_operand.vmem [shape: bf16[8,256], index: 0, kind: input, shape index: {}]   ;;  %s77_s1 = inlined_call_operand.vmem [shape: f32[1,128], index: 1, kind: input, shape index: {}]   ;;  %s78_s2 = inlined_call_operand.vmem [shape: f32[1,128], index: 2, kind: input, shape index: {}]   ;;  %s79_s3 = inlined_call_operand.vmem [shape: bf16[8,128], index: 3, kind: output, shape index: {}]  }
   0x1   :  { %v41_v0 = vld [vmem:[%s76_s0 + $0x4] sm:$0xf]  ;;  %v42_v1 = vld [vmem:[%s77_s1] ss:$0 sm:$0xff] }
   0x2   :  { %v18_v2 = vunpack.c.l.bf16 %v41_v0  ;;  %v43_v3 = vld [vmem:[%s78_s2] ss:$0 sm:$0xff] }
   0x4   :  { %v26_v4 = vmul.f32 %v42_v1, %v18_v2 }
   0x6   :  { %v34_v5 = vadd.f32 %v43_v3, %v26_v4 }
   0x8   :  { %v35_v6 = vpack.c.bf16 %v34_v5, %v34_v5 }
   0xa   :  { %36 = vst [vmem:[%s79_s3] sm:$0xf] %v35_v6 }

// kernel: _lambda_.35
= control target key start
LH: loop header
LB: loop body
LE: loop exit
PB: predicated region body
PF: predicated region fallthrough
CT: control target
= control target key end

     0   :  { %s1680_s15 = smov 0   ;;  %s1682_s16 = smov 0   ;;  %s1959_s0 = inlined_call_operand.vmem [shape: bf16[2,6,7,128], index: 0, kind: input, shape index: {}]   ;;  %s1960_s1 = inlined_call_operand.vmem [shape: bf16[9,128,256], index: 1, kind: input, shape index: {}]   ;;  %s1961_s2 = inlined_call_operand.vmem [shape: bf16[2,2,2,256], index: 2, kind: output, shape index: {0}]   ;;  %s1962_s3 = inlined_call_operand.vmem [shape: f32[2,8,256], index: 3, kind: output, shape index: {1}]   ;;  %s1963_s4 = inlined_call_operand.vmem [shape: f32[2,8,256], index: 4, kind: output, shape index: {2}]  }
   0x1   :  { %s1684_s17 = smov 0   ;;  %s1686_s18 = smov 0  }
   0x2   :  { %s1688_s19 = smov 0   ;;  %s1690_s20 = smov 0  }
   0x3   :  { %s1692_s21 = smov 0   ;;  %s1694_s22 = smov 0  }
   0x4   :  { %s1696_s23 = smov 0  }
   0x5 LB: > { %s1313_s24 = sadd.s32 4294967295, %s1650_s23   ;;  %s24_s25 = sadd.s32 1, %s1642_s21  ;;  %s1650_s23 = sphi %s1696_s23, %s15_s23   ;;  %s1646_s22 = sphi %s1694_s22, %s1976_s22   ;;  %s1642_s21 = sphi %s1692_s21, %s1975_s21   ;;  %s1638_s20 = sphi %s1690_s20, %s1974_s20   ;;  %s1634_s19 = sphi %s1688_s19, %s1973_s19   ;;  %s1630_s18 = sphi %s1686_s18, %s1972_s18   ;;  %s1626_s17 = sphi %s1684_s17, %s1971_s17   ;;  %s1622_s16 = sphi %s1682_s16, %s1970_s16   ;;  %s1618_s15 = sphi %s1680_s15, %s1969_s15  }
   0x6   : > { %p25_p0 = scmp.ge.s32.totalorder %s24_s25, 3  ;;  %s27_s26 = sadd.s32 1, %s1646_s22 }
   0x7   : > { %s1315_s27 = sshll.u32 %s1646_s22, 1  ;;  %s38_s28 = sadd.s32 1, %s1630_s18 }
   0x8   : > { %s1978_s25 = smov (%p25_p0, %s24_s25), 0  ;;  %s1980_s26 = smov (!%p25_p0, %s27_s26), %s1646_s22 }
   0x9   : > { %s32_s29 = sadd.s32 %s1642_s21, %s1315_s27  ;;  %p45_p1 = scmp.ne.s32.totalorder %s1630_s18, %s1626_s17 }
   0xa   : > { %p29_p2 = scmp.ge.s32.totalorder %s1980_s26, 2  ;;  %p46_p3 = scmp.eq.s32.totalorder %s1650_s23, 0 }
   0xb   : > { %s85_s30 = sadd.s32 1, %s1622_s16  ;;  %p95_p4 = scmp.ne.s32.totalorder %s1622_s16, %s1618_s15 }
   0xc   : > { %s1982_s26 = smov (%p29_p2, %s1980_s26), 0  ;;  %p47_p5 = por %p46_p3, %p45_p1 }
   0xd   : > { %p96_p6 = scmp.eq.s32.totalorder %s1313_s24, 5  ;;  %s1316_s5 = sshll.u32 %s1982_s26, 1 }
   0xe   : > { %s82_s6 = ssub.s32 %s1646_s22, %s1982_s26  ;;  %s34_s7 = sadd.s32 %s1316_s5, %s1978_s25 }
   0xf   : > { %p83_p7 = scmp.eq.s32.totalorder %s82_s6, 0  ;;  %s35_s8 = ssub.s32 %s32_s29, %s34_s7 }
  0x10   : > { %p1746_p8 = por %p96_p6, %p95_p4  ;;  %p36_p9 = scmp.eq.s32.totalorder %s35_s8, 0 }
  0x11   : > { %s1751_s10 = scalar_select %p83_p7, %s1622_s16, %s85_s30  }
  0x12   : > { %s1754_s11 = scalar_select %p36_p9, %s1630_s18, %s38_s28  }
  0x13   : > { %p1318_p10 = scmp.ge.s32.totalorder %s1650_s23, 6 }
  0x15   : > { %173 = sbr.rel (%p1318_p10) target bundleno = 31 (0x1f), region = 20 }
  0x1a   : > { %176 = sbr.rel (!%p47_p5) target bundleno = 31 (0x1f), region = 24  ;;  %s178_s12 = sand.u32 (%p47_p5), 1, %s1630_s18  }
  0x1b   : > { %s1321_s13 = sshll.u32 (%p47_p5), %s32_s29, 2  ;;  %s1319_s14 = sshll.u32 (%p47_p5), %s178_s12, 3 }
  0x1c   : > { %s184_s5 = scalar_lea.vmem (%p47_p5), %s1959_s0, %s1321_s13  ;;  %s180_s6 = scalar_lea.vmem (%p47_p5), [#allocation3], %s1319_s14 }
  0x1d   : > { %v201_v0 = vld [vmem:[%s184_s5] sm:$0xf] (%p47_p5)  ;;  %v203_v1 = vld [vmem:[%s184_s5 + $0x18] sm:$0xf] (%p47_p5) }
  0x1e   : > { %202 = vst [vmem:[%s180_s6] sm:$0xf] (%p47_p5), %v201_v0  ;;  %204 = vst [vmem:[%s180_s6 + $0x4] sm:$0xf] (%p47_p5), %v203_v1 }
  0x1f PF: > { %p1322_p11 = scmp.ge.s32.totalorder %s1650_s23, 1  ;;  %p231_p12 = scmp.lt.s32.totalorder %s1650_s23, 7 }
  0x21   : > { %p232_p13 = pnand %p1322_p11, %p231_p12 }
  0x22   : > { %s255_s28 = sand.u32 (!%p232_p13), 1, %s1618_s15   ;;  %p274_p0 = scmp.lt.s32.totalorder (!%p232_p13), %s1638_s20, 1 }
  0x23   : > { %235 = sbr.rel (%p232_p13) target bundleno = 355 (0x163), region = 65  ;;  %s1765_s29 = sshll.u32 (!%p232_p13), %s255_s28, 2 }
  0x24   : > { %s1432_s30 = smul.u32 (!%p232_p13), 384, %s1634_s19  ;;  %s1910_s8 = scalar_lea.vmem (!%p232_p13), [#allocation4], %s1765_s29 }
  0x25   : > { %p1419_p1 = scmp.ne.s32.totalorder (!%p232_p13), %s1634_s19, 0 }
  0x26   : > { %s1774_s13 = scalar_lea.vmem (!%p232_p13), %s1960_s1, %s1432_s30  ;;  %s238_s30 = sand.u32 (!%p232_p13), 1, %s1626_s17  }
  0x28   : > { %v1652_v2 = vmov 0   ;;  %s275_s7 = scalar_select %p274_p0, %s1638_s20, 1  ;;  %v1508_v3 = vld [vmem:[%s1774_s13 + $0xf4] ss:$8 sps:$4 sm:$0xff]   ;;  %v1512_v5 = vld [vmem:[%s1774_s13 + $0xf0] ss:$8 sps:$4 sm:$0xff]   ;;  %v300_v19 = vlaneseq }
  0x29   : > { %607 = vmatprep.mubr.bf16.mxu0 %v1652_v2  ;;  %796 = vmatprep.mubr.bf16.mxu1 %v1652_v2  ;;  %v1510_v4 = vld [vmem:[%s1774_s13 + $0x74] ss:$8 sps:$4 sm:$0xff]   ;;  %v1513_v6 = vld [vmem:[%s1774_s13 + $0x70] ss:$8 sps:$4 sm:$0xff]   ;;  %v1514_v7 = vld [vmem:[%s1774_s13 + $0xe4] ss:$8 sps:$4 sm:$0xff]  }
  0x2a   : > { %s1430_s15 = sshll.u32 %s275_s7, 4  ;;  %575 = vmatprep.subr.bf16.mxu0 %v1508_v3  ;;  %764 = vmatprep.subr.bf16.mxu1 %v1510_v4  ;;  %v1516_v8 = vld [vmem:[%s1774_s13 + $0x64] ss:$8 sps:$4 sm:$0xff]   ;;  %v1518_v9 = vld [vmem:[%s1774_s13 + $0xe0] ss:$8 sps:$4 sm:$0xff]   ;;  %v1810_v26 = vshrl.u32 %v300_v19, 7 }
  0x2b   : > { %s1780_s27 = scalar_lea.vmem %s1962_s3, %s1430_s15  ;;  %s1785_s28 = scalar_lea.vmem %s1963_s4, %s1430_s15  ;;  %576 = vmatpush1.bf16.msra.mxu0 %v1512_v5  ;;  %765 = vmatpush1.bf16.msra.mxu1 %v1513_v6  ;;  %v1519_v10 = vld [vmem:[%s1774_s13 + $0x60] ss:$8 sps:$4 sm:$0xff]   ;;  %vm355_vm0 = vsmask.f32 256  ;;  %v1520_v11 = vld [vmem:[%s1774_s13 + $0xd4] ss:$8 sps:$4 sm:$0xff]  }
  0x2c   : > { %577 = vmatprep.subr.bf16.mxu0 %v1514_v7  ;;  %766 = vmatprep.subr.bf16.mxu1 %v1516_v8  ;;  %vm356_vm1 = vsmask.f32 1284  ;;  %v1522_v12 = vld [vmem:[%s1774_s13 + $0x54] ss:$8 sps:$4 sm:$0xff]   ;;  %v1524_v13 = vld [vmem:[%s1774_s13 + $0xd0] ss:$8 sps:$4 sm:$0xff]  }
  0x2d   : > { %v1525_v14 = vld [vmem:[%s1774_s13 + $0x50] ss:$8 sps:$4 sm:$0xff]   ;;  %v1526_v15 = vld [vmem:[%s1774_s13 + $0xc4] ss:$8 sps:$4 sm:$0xff]   ;;  %v1653_v17 = vmov 1966171168   ;;  %vm1801_vm2 = vmor %vm355_vm0, %vm356_vm1 }
  0x2e   : > { %v1528_v16 = vld [vmem:[%s1774_s13 + $0x44] ss:$8 sps:$4 sm:$0xff]   ;;  %v298_v18 = vunpack.c.l.s4 %v1653_v17  ;;  %v1530_v21 = vld [vmem:[%s1774_s13 + $0xc0] ss:$8 sps:$4 sm:$0xff]   ;;  %vm358_vm3 = vsmask.f32 2312 }
  0x2f   : > { %578 = vmatpush1.bf16.msra.mxu0 %v1518_v9  ;;  %767 = vmatpush1.bf16.msra.mxu1 %v1519_v10  ;;  %v1531_v22 = vld [vmem:[%s1774_s13 + $0x40] ss:$8 sps:$4 sm:$0xff]   ;;  %v1532_v23 = vld [vmem:[%s1774_s13 + $0xb4] ss:$8 sps:$4 sm:$0xff]   ;;  %vm360_vm4 = vsmask.f32 3340  ;;  %vm359_vm5 = vmor %vm1801_vm2, %vm358_vm3 }
  0x30   : > { %579 = vmatprep.subr.bf16.mxu0 %v1520_v11  ;;  %768 = vmatprep.subr.bf16.mxu1 %v1522_v12  ;;  %v1534_v24 = vld [vmem:[%s1774_s13 + $0x34] ss:$8 sps:$4 sm:$0xff]   ;;  %v299_v25 = vunpack.c.0.s8 %v298_v18  ;;  %v1536_v27 = vld [vmem:[%s1774_s13 + $0xb0] ss:$8 sps:$4 sm:$0xff]   ;;  %s1323_s7 = sshll.u32 %s238_s30, 3  ;;  %vm361_vm7 = vmor %vm359_vm5, %vm360_vm4  ;;  %vm485_vm15 = vcmask 1041409  }
  0x31   : > { %v1537_v28 = vld [vmem:[%s1774_s13 + $0x30] ss:$8 sps:$4 sm:$0xff]   ;;  %v1538_v29 = vld [vmem:[%s1774_s13 + $0xa4] ss:$8 sps:$4 sm:$0xff]   ;;  %vm362_vm6 = vsmask.f32 4368 }
  0x32   : > { %v1540_v30 = vld [vmem:[%s1774_s13 + $0x24] ss:$8 sps:$4 sm:$0xff]   ;;  %v1820_v31 = vsub.s32 %v299_v25, %v1810_v26  ;;  %vm364_vm8 = vsmask.f32 5396  ;;  %vm366_vm9 = vsmask.f32 6424  ;;  %vm363_vm11 = vmor %vm361_vm7, %vm362_vm6 }
  0x33   : > { %580 = vmatpush1.bf16.msra.mxu0 %v1524_v13  ;;  %769 = vmatpush1.bf16.msra.mxu1 %v1525_v14  ;;  %v1542_v32 = vld [vmem:[%s1774_s13 + $0xa0] ss:$8 sps:$4 sm:$0xff]   ;;  %vm368_vm10 = vsmask.f32 7452  ;;  %v1544_v34 = vld [vmem:[%s1774_s13 + $0x94] ss:$8 sps:$4 sm:$0xff]   ;;  %vm365_vm12 = vmor %vm363_vm11, %vm364_vm8 }
  0x34   : > { %581 = vmatprep.subr.bf16.mxu0 %v1526_v15  ;;  %770 = vmatprep.subr.bf16.mxu1 %v1528_v16  ;;  %v1543_v33 = vld [vmem:[%s1774_s13 + $0x20] ss:$8 sps:$4 sm:$0xff]   ;;  %v1546_v35 = vld [vmem:[%s1774_s13 + $0x14] ss:$8 sps:$4 sm:$0xff]   ;;  %s240_s17 = scalar_lea.vmem [#allocation3], %s1323_s7  ;;  %vm367_vm13 = vmor %vm365_vm12, %vm366_vm9  ;;  %vm488_vm0 = vcmask 1042434  }
  0x35   : > { %v1329_v36 = vld.sshfl [vmem:[%s240_s17] sm:$0x33 pattern:$0x75316420]  ;;  %v1550_v44 = vld [vmem:[%s1774_s13 + $0x84] ss:$8 sps:$4 sm:$0xff]   ;;  %vm1843_vm14 = vmor %vm367_vm13, %vm368_vm10 }
  0x36   : > { %v1330_v37 = vld.sshfl [vmem:[%s240_s17 + $0x4] sm:$0x33 pattern:$0x75316420]  ;;  %v296_v38 = vcombine.high %v1329_v36, %v1329_v36  ;;  %v303_v39 = vrot.slane %v1329_v36, %v1820_v31  ;;  %v1548_v40 = vld [vmem:[%s1774_s13 + $0x90] ss:$8 sps:$4 sm:$0xff]  }
  0x37   : > { %582 = vmatpush1.bf16.msra.mxu0 %v1530_v21  ;;  %771 = vmatpush1.bf16.msra.mxu1 %v1531_v22  ;;  %v318_v41 = vcombine.high %v1330_v37, %v1330_v37  ;;  %v325_v42 = vrot.slane %v1330_v37, %v1820_v31  ;;  %v1549_v43 = vld [vmem:[%s1774_s13 + $0x10] ss:$8 sps:$4 sm:$0xff]   ;;  %v1552_v49 = vld [vmem:[%s1774_s13 + $0x4] ss:$8 sps:$4 sm:$0xff]   ;;  %v1554_v63 = vld [vmem:[%s1774_s13 + $0x80] ss:$8 sps:$4 sm:$0xff]  }
  0x38   : > { %583 = vmatprep.subr.bf16.mxu0 %v1532_v23  ;;  %772 = vmatprep.subr.bf16.mxu1 %v1534_v24  ;;  %v310_v45 = vrot.slane %v296_v38, %v1820_v31  ;;  %v1835_v46 = vcombine.high %v303_v39, %v303_v39  ;;  %v371_v47 = vshrl.u32 %v303_v39, 16  ;;  %v622_v48 = vrot.slane %v303_v39, %v1820_v31  ;;  %v1555_v0 = vld [vmem:[%s1774_s13] ss:$8 sps:$4 sm:$0xff]   ;;  %v1558_v8 = vld [vmem:[%s1774_s13 + $0x174] ss:$8 sps:$4 sm:$0xff]  }
  0x39   : > { %v332_v50 = vrot.slane %v318_v41, %v1820_v31  ;;  %v1840_v51 = vcombine.high %v325_v42, %v325_v42  ;;  %v388_v53 = vshrl.u32 %v325_v42, 16  ;;  %v650_v54 = vrot.slane %v325_v42, %v1820_v31  ;;  %v1556_v42 = vld [vmem:[%s1774_s13 + $0x170] ss:$8 sps:$4 sm:$0xff]  }
  0x3a   : > { %v376_v55 = vshll.u32 %v310_v45, 16  ;;  %v379_v56 = vshrl.u32 %v310_v45, 16  ;;  %v384_v57 = vshll.u32 %v1835_v46, 16  ;;  %v629_v58 = vrot.slane %v622_v48, %v1820_v31 }
  0x3b   : > { %584 = vmatpush1.bf16.msra.mxu0 %v1536_v27  ;;  %773 = vmatpush1.bf16.msra.mxu1 %v1537_v28  ;;  %v393_v59 = vshll.u32 %v332_v50, 16  ;;  %v396_v60 = vshrl.u32 %v332_v50, 16  ;;  %v401_v61 = vshll.u32 %v1840_v51, 16  ;;  %v636_v62 = vrot.slane %v310_v45, %v1820_v31  ;;  %v1559_v45 = vld [vmem:[%s1774_s13 + $0x160] ss:$8 sps:$4 sm:$0xff]  }
  0x3c   : > { %585 = vmatprep.subr.bf16.mxu0 %v1538_v29  ;;  %774 = vmatprep.subr.bf16.mxu1 %v1540_v30  ;;  %v378_v1 = vsel %vm1843_vm14, %v371_v47, %v376_v55  ;;  %v386_v3 = vsel %vm1843_vm14, %v379_v56, %v384_v57  ;;  %v657_v4 = vrot.slane %v650_v54, %v1820_v31  ;;  %v672_v15 = vunpack.c.l.b16 %v629_v58  ;;  %v1564_v47 = vld [vmem:[%s1774_s13 + $0x154] ss:$8 sps:$4 sm:$0xff]   ;;  %v1573_v57 = vld [vmem:[%s1774_s13 + $0x124] ss:$8 sps:$4 sm:$0xff]  }
  0x3d   : > { %v395_v5 = vsel %vm1843_vm14, %v388_v53, %v393_v59  ;;  %v403_v6 = vsel %vm1843_vm14, %v396_v60, %v401_v61  ;;  %v430_v7 = vrot.slane %v378_v1, %v1820_v31  ;;  %v444_v9 = vrot.slane %v386_v3, %v1820_v31  ;;  %v1565_v53 = vld [vmem:[%s1774_s13 + $0x140] ss:$8 sps:$4 sm:$0xff]   ;;  %v1570_v54 = vld [vmem:[%s1774_s13 + $0x134] ss:$8 sps:$4 sm:$0xff]   ;;  %v1579_v1 = vld [vmem:[%s1774_s13 + $0x104] ss:$8 sps:$4 sm:$0xff]  }
  0x3e   : > { %v458_v10 = vrot.slane %v395_v5, %v1820_v31  ;;  %v472_v11 = vrot.slane %v403_v6, %v1820_v31  ;;  %v1869_v12 = vrot.slane %v636_v62, %v1820_v31  ;;  %v664_v14 = vrot.slane %v332_v50, %v1820_v31  ;;  %v1567_v50 = vld [vmem:[%s1774_s13 + $0x144] ss:$8 sps:$4 sm:$0xff]   ;;  %v1571_v59 = vld [vmem:[%s1774_s13 + $0x120] ss:$8 sps:$4 sm:$0xff]   ;;  %v1576_v62 = vld [vmem:[%s1774_s13 + $0x114] ss:$8 sps:$4 sm:$0xff]  }
  0x3f   : > { %586 = vmatpush1.bf16.msra.mxu0 %v1542_v32  ;;  %775 = vmatpush1.bf16.msra.mxu1 %v1543_v33  ;;  %v437_v13 = vrot.slane %v430_v7, %v1820_v31  ;;  %v674_v16 = vunpack.c.l.b16 %v657_v4  ;;  %v451_v17 = vrot.slane %v444_v9, %v1820_v31  ;;  %vm491_vm1 = vcmask 1043459   ;;  %v1577_v4 = vld [vmem:[%s1774_s13 + $0x100] ss:$8 sps:$4 sm:$0xff]  }
  0x40   : > { %587 = vmatprep.subr.bf16.mxu0 %v1544_v34  ;;  %776 = vmatprep.subr.bf16.mxu1 %v1546_v35  ;;  %v465_v18 = vrot.slane %v458_v10, %v1820_v31  ;;  %v479_v19 = vrot.slane %v472_v11, %v1820_v31  ;;  %v673_v20 = vunpack.c.l.b16 %v1869_v12  ;;  %v671_v22 = vrot.slane %v664_v14, %v1820_v31 }
  0x41   : > { %v480_v21 = vunpack.c.l.b16 %v437_v13  ;;  %v678_v23 = vrot.slane %v674_v16, 6  ;;  %v481_v24 = vunpack.c.l.b16 %v451_v17  ;;  %v831_v48 = vrot.slane %v1835_v46, %v1820_v31  ;;  %v1568_v46 = vld [vmem:[%s1774_s13 + $0x130] ss:$8 sps:$4 sm:$0xff]  }
  0x42   : > { %v482_v25 = vunpack.c.l.b16 %v465_v18  ;;  %v483_v27 = vunpack.c.l.b16 %v479_v19  ;;  %v676_v28 = vrot.slane %v673_v20, 7  ;;  %v675_v29 = vunpack.c.l.b16 %v671_v22 }
  0x43   : > { %588 = vmatpush1.bf16.msra.mxu0 %v1548_v40  ;;  %777 = vmatpush1.bf16.msra.mxu1 %v1549_v43  ;;  %v484_v30 = vrot.slane %v481_v24, 7  ;;  %v838_v52 = vrot.slane %v831_v48, %v1820_v31 }
  0x44   : > { %589 = vmatprep.subr.bf16.mxu0 %v1550_v44  ;;  %778 = vmatprep.subr.bf16.mxu1 %v1552_v49  ;;  %v487_v32 = vrot.slane %v482_v25, 6  ;;  %v490_v33 = vrot.slane %v483_v27, 5  ;;  %v677_v34 = vsel %vm485_vm15, %v676_v28, %v672_v15  ;;  %v680_v36 = vrot.slane %v675_v29, 5  ;;  %v1561_v44 = vld [vmem:[%s1774_s13 + $0x164] ss:$8 sps:$4 sm:$0xff]  }
  0x45   : > { %v679_v35 = vsel %vm488_vm0, %v678_v23, %v677_v34  ;;  %v486_v37 = vsel %vm485_vm15, %v484_v30, %v480_v21  ;;  %v1562_v49 = vld [vmem:[%s1774_s13 + $0x150] ss:$8 sps:$4 sm:$0xff]   ;;  %v853_v55 = vunpack.c.l.b16 %v838_v52  ;;  %v857_v61 = vrot.slane %v675_v29, 6 }
  0x46   : > { %v489_v38 = vsel %vm488_vm0, %v487_v32, %v486_v37  ;;  %v681_v39 = vsel %vm491_vm1, %v680_v36, %v679_v35 }
  0x47   : > { %590 = vmatpush1.bf16.msra.mxu0 %v1554_v63  ;;  %779 = vmatpush1.bf16.msra.mxu1 %v1555_v0  ;;  %v492_v40 = vsel %vm491_vm1, %v490_v33, %v489_v38  ;;  %v682_v41 = vpack.c.b16 %v681_v39, %v681_v39  ;;  %v855_v58 = vrot.slane %v853_v55, 7  ;;  %v1574_v63 = vld [vmem:[%s1774_s13 + $0x110] ss:$8 sps:$4 sm:$0xff]  }
  0x48   : > { %943 = vmatprep.subr.bf16.mxu0 %v1558_v8  ;;  %v493_v43 = vpack.c.b16 %v492_v40, %v492_v40 }
  0x4a   : > { %797 = vmatmul.mubr.bf16.vlgmr.msra.gmra.mxu1 %v682_v41  ;;  %608 = vmatmul.mubr.bf16.vlgmr.msra.gmra.mxu0 %v493_v43 }
  0x4b   : > { %944 = vmatpush1.bf16.msra.mxu0 %v1556_v42  ;;  %975 = vmatprep.mubr.bf16.mxu0 %v1652_v2  ;;  %v845_v2 = vrot.slane %v1840_v51, %v1820_v31  ;;  %v856_v51 = vsel %vm485_vm15, %v855_v58, %v673_v20 }
  0x4c   : > { %945 = vmatprep.subr.bf16.mxu0 %v1561_v44  ;;  %v858_v3 = vsel %vm488_vm0, %v857_v61, %v856_v51 }
  0x4d   : > { %v852_v56 = vrot.slane %v845_v2, %v1820_v31 }
  0x4f   : > { %946 = vmatpush1.bf16.msra.mxu0 %v1559_v45  ;;  %v854_v60 = vunpack.c.l.b16 %v852_v56 }
  0x50   : > { %947 = vmatprep.subr.bf16.mxu0 %v1564_v47 }
  0x51   : > { %v859_v0 = vrot.slane %v854_v60, 5 }
  0x53   : > { %948 = vmatpush1.bf16.msra.mxu0 %v1562_v49  ;;  %v860_v5 = vsel %vm491_vm1, %v859_v0, %v858_v3 }
  0x54   : > { %949 = vmatprep.subr.bf16.mxu0 %v1567_v50  ;;  %v861_v6 = vpack.c.b16 %v860_v5, %v860_v5 }
  0x57   : > { %950 = vmatpush1.bf16.msra.mxu0 %v1565_v53 }
  0x58   : > { %951 = vmatprep.subr.bf16.mxu0 %v1570_v54 }
  0x5b   : > { %952 = vmatpush1.bf16.msra.mxu0 %v1568_v46 }
  0x5c   : > { %953 = vmatprep.subr.bf16.mxu0 %v1573_v57 }
  0x5f   : > { %954 = vmatpush1.bf16.msra.mxu0 %v1571_v59 }
  0x60   : > { %955 = vmatprep.subr.bf16.mxu0 %v1576_v62 }
  0x63   : > { %956 = vmatpush1.bf16.msra.mxu0 %v1574_v63 }
  0x64   : > { %957 = vmatprep.subr.bf16.mxu0 %v1579_v1 }
  0x67   : > { %958 = vmatpush1.bf16.msra.mxu0 %v1577_v4 }
  0x6a   : > { %976 = vmatmul.mubr.bf16.vlgmr.msra.gmra.mxu0 %v861_v6 }
 0x10a   : > { %v798_v7 = vpop.f32.mrf.mxu1  ;;  %v609_v8 = vpop.f32.mrf.mxu0 }
 0x10b   : > { %v799_v15 = vadd.f32 %v798_v7, %v609_v8 }
 0x10c   : > { %v800_v9 = vpop.f32.mrf.mxu1  ;;  %v611_v10 = vpop.f32.mrf.mxu0 }
 0x10d   : > { %v801_v17 = vadd.f32 %v800_v9, %v611_v10 }
 0x10e   : > { %v802_v11 = vpop.f32.mrf.mxu1  ;;  %v613_v12 = vpop.f32.mrf.mxu0 }
 0x110   : > { %v803_v13 = vpop.f32.mrf.mxu1  ;;  %v614_v14 = vpop.f32.mrf.mxu0 }
 0x12a   : > { %v977_v16 = vpop.f32.mrf.mxu0 }
 0x12b   : > { %v984_v18 = vadd.f32 %v977_v16, %v799_v15 }
 0x12c   : > { %v979_v19 = vpop.f32.mrf.mxu0  ;;  %989 = sbr.rel (%p1419_p1) target bundleno = 308 (0x134), region = 73 }
 0x12d   : > { %v985_v20 = vadd.f32 %v979_v19, %v801_v17 }
 0x12e   : > { %v981_v21 = vpop.f32.mrf.mxu0 }
 0x130   : > { %v982_v22 = vpop.f32.mrf.mxu0 }
 0x131   : > { %v992_v23 = vcombine.low %v984_v18, %v985_v20 }
 0x133   : > { %994 = vst [vmem:[#allocation2] sm:$0xff] %v992_v23 }
 0x134 PF: > { %p1420_p2 = scmp.le.s32.totalorder %s1634_s19, 0 }
 0x136   : > { %998 = sbr.rel (%p1420_p2) target bundleno = 320 (0x140), region = 77 }
 0x13b   : > { %v999_v24 = vld [vmem:[#allocation2] sm:$0xff]  ;;  %v1002_v25 = vcombine.low %v984_v18, %v985_v20 }
 0x13d   : > { %v1004_v27 = vadd.f32 %v1002_v25, %v999_v24 }
 0x13f   : > { %1005 = vst [vmem:[#allocation2] sm:$0xff] %v1004_v27 }
 0x140 PF: > { %p1421_p3 = scmp.ne.s32.totalorder %s1634_s19, 2 }
 0x142   : > { %1009 = sbr.rel (%p1421_p3) target bundleno = 347 (0x15b), region = 81 }
 0x147   : > { %v1010_v28 = vld [vmem:[#allocation2] sm:$0xff]  ;;  %vm1084_vm2 = vcmask 1043456   ;;  %v1654_v29 = vmov 1983009808  }
 0x148   : > { %v1013_v30 = vunpack.c.l.s4 %v1654_v29  ;;  %v1085_v32 = vsel %vm1084_vm2, %v1010_v28, 0.0  ;;  %v1082_v33 = vcombine.high %v1010_v28, %v1010_v28  ;;  %v1099_v34 = vmul.f32 %v1010_v28, %v1010_v28 }
 0x149   : > { %v1086_v35 = vrot.slane %v1085_v32, 4 }
 0x14a   : > { %v1014_v36 = vunpack.c.0.s8 %v1013_v30  ;;  %v1092_v37 = vsel %vm1084_vm2, %v1082_v33, 0.0  ;;  %v1103_v38 = vsel %vm1084_vm2, %v1099_v34, 0.0  ;;  %v1101_v39 = vcombine.high %v1099_v34, %v1099_v34 }
 0x14b   : > { %v1087_v40 = vadd.f32 %v1086_v35, %v1085_v32  ;;  %v1093_v41 = vrot.slane %v1092_v37, 4  ;;  %v1104_v42 = vrot.slane %v1103_v38, 4 }
 0x14c   : > { %v1017_v43 = vsub.s32 %v1014_v36, %v1810_v26  ;;  %v1110_v44 = vsel %vm1084_vm2, %v1101_v39, 0.0 }
 0x14d   : > { %v1088_v45 = vrot.slane %v1087_v40, 2  ;;  %v1094_v47 = vadd.f32 %v1093_v41, %v1092_v37  ;;  %v1105_v48 = vadd.f32 %v1104_v42, %v1103_v38  ;;  %v1111_v49 = vrot.slane %v1110_v44, 4 }
 0x14e   : > { %v1018_v50 = vrot.slane %v1010_v28, %v1017_v43 }
 0x14f   : > { %v1089_v52 = vadd.f32 %v1088_v45, %v1087_v40  ;;  %v1095_v53 = vrot.slane %v1094_v47, 2  ;;  %v1106_v2 = vrot.slane %v1105_v48, 2  ;;  %v1112_v54 = vadd.f32 %v1111_v49, %v1110_v44 }
 0x150   : > { %v1026_v55 = vrot.slane %v1018_v50, %v1017_v43  ;;  %v1019_v46 = vcombine.high %v1018_v50, %v1018_v50 }
 0x151   : > { %v1090_v56 = vrot.slane %v1089_v52, 1  ;;  %v1096_v57 = vadd.f32 %v1095_v53, %v1094_v47  ;;  %v1107_v58 = vadd.f32 %v1106_v2, %v1105_v48  ;;  %v1113_v59 = vrot.slane %v1112_v54, 2 }
 0x152   : > { %v1027_v26 = vcombine.high %v1026_v55, %v1026_v55  ;;  %v1034_v60 = vrot.slane %v1019_v46, %v1017_v43 }
 0x153   : > { %v1091_v61 = vadd.f32 %v1090_v56, %v1089_v52  ;;  %v1097_v62 = vrot.slane %v1096_v57, 1  ;;  %v1108_v51 = vrot.slane %v1107_v58, 1  ;;  %v1114_v63 = vadd.f32 %v1113_v59, %v1112_v54 }
 0x154   : > { %v1422_v0 = vpack.c.bf16 %v1027_v26, %v1026_v55  ;;  %v1035_v1 = vcombine.high %v1034_v60, %v1034_v60 }
 0x155   : > { %1117 = vst [vmem:[%s1780_s27] sm:$0xff] %v1091_v61  ;;  %v1098_v3 = vadd.f32 %v1097_v62, %v1096_v57  ;;  %v1109_v4 = vadd.f32 %v1108_v51, %v1107_v58  ;;  %v1115_v5 = vrot.slane %v1114_v63, 1 }
 0x156   : > { %v1055_v6 = vrot.slane %v1422_v0, %v1820_v31  ;;  %v1423_v7 = vpack.c.bf16 %v1035_v1, %v1034_v60 }
 0x157   : > { %1118 = vst [vmem:[%s1780_s27 + $0x8] sm:$0xff] %v1098_v3  ;;  %1119 = vst [vmem:[%s1785_s28] sm:$0xff] %v1109_v4  ;;  %v1116_v8 = vadd.f32 %v1115_v5, %v1114_v63 }
 0x158   : > { %1424 = vst.sshfl [vmem:[%s1910_s8] sm:$0x5 pattern:$0x73625140] %v1055_v6  ;;  %v1070_v9 = vrot.slane %v1423_v7, %v1820_v31 }
 0x159   : > { %1120 = vst [vmem:[%s1785_s28 + $0x8] sm:$0xff] %v1116_v8 }
 0x15a   : > { %1425 = vst.sshfl [vmem:[%s1910_s8 + $0x2] sm:$0x5 pattern:$0x73625140] %v1070_v9 }
 0x15b PF: > { %1137 = sbr.rel (!%p1746_p8) target bundleno = 355 (0x163), region = 85  ;;  %s1427_s19 = sshll.u32 (%p1746_p8), %s1638_s20, 1 }
 0x15c   : > { %s1139_s13 = scalar_lea.vmem (%p1746_p8), %s1961_s2, %s1427_s19 }
 0x15f   : > { %v1156_v10 = vld [vmem:[%s1910_s8] sm:$0x3] (%p1746_p8) }
 0x160   : > { %1157 = vst [vmem:[%s1139_s13] sm:$0x3] %v1156_v10 }
 0x161   : > { %v1158_v11 = vld [vmem:[%s1910_s8 + $0x2] sm:$0x3] }
 0x162   : > { %1159 = vst [vmem:[%s1139_s13 + $0x4] sm:$0x3] %v1158_v11 }
 0x163 PF: > { %s15_s23 = sadd.s32 1, %s1650_s23   ;;  %s1969_s15 = smov %s1622_s16 }
 0x164   : > { %p12_p4 = scmp.ge.s32.totalorder %s15_s23, 8   ;;  %s1970_s16 = smov %s1751_s10 }
 0x165   : > { %s1971_s17 = smov %s1630_s18  ;;  %s1972_s18 = smov %s1754_s11 }
 0x166   : > { %s1973_s19 = smov %s1642_s21  ;;  %s1974_s20 = smov %s1646_s22 }
 0x167   : > { %s1975_s21 = smov %s1978_s25  ;;  %s1976_s22 = smov %s1982_s26 }
 0x168   :  { %14 = sbr.rel (!%p12_p4) target bundleno = 5 (0x5), region = 177 }

// kernel: _lambda_.39
= control target key start
LH: loop header
LB: loop body
LE: loop exit
PB: predicated region body
PF: predicated region fallthrough
CT: control target
= control target key end

     0   :  { %s87_s0 = inlined_call_operand.vmem [shape: bf16[8,128], index: 0, kind: input, shape index: {}]   ;;  %s88_s1 = inlined_call_operand.vmem [shape: f32[1,128], index: 1, kind: input, shape index: {}]   ;;  %s89_s2 = inlined_call_operand.vmem [shape: f32[1,128], index: 2, kind: input, shape index: {}]   ;;  %s90_s3 = inlined_call_operand.vmem [shape: bf16[8,128], index: 3, kind: input, shape index: {}]   ;;  %s91_s4 = inlined_call_operand.vmem [shape: bf16[8,128], index: 4, kind: output, shape index: {}]  }
   0x1   :  { %v17_v0 = vld [vmem:[%s87_s0] sm:$0xf] }
   0x2   :  { %v45_v1 = vld [vmem:[%s88_s1] ss:$0 sm:$0xff]  ;;  %v18_v2 = vunpack.c.l.bf16 %v17_v0 }
   0x3   :  { %v35_v3 = vld [vmem:[%s90_s3] sm:$0xf] }
   0x4   :  { %v46_v4 = vld [vmem:[%s89_s2] ss:$0 sm:$0xff]  ;;  %v26_v5 = vmul.f32 %v45_v1, %v18_v2  ;;  %v36_v6 = vunpack.c.l.bf16 %v35_v3 }
   0x6   :  { %v34_v7 = vadd.f32 %v46_v4, %v26_v5 }
   0x8   :  { %v37_v8 = vadd.f32 %v36_v6, %v34_v7 }
   0xa   :  { %v38_v9 = vmax.f32 %v37_v8, 0.0 }
   0xc   :  { %v39_v10 = vpack.c.bf16 %v38_v9, %v38_v9 }
   0xe   :  { %40 = vst [vmem:[%s91_s4] sm:$0xf] %v39_v10 }

// kernel: _lambda_.38
= control target key start
LH: loop header
LB: loop body
LE: loop exit
PB: predicated region body
PF: predicated region fallthrough
CT: control target
= control target key end

     0   :  { %s1299_s15 = smov 0   ;;  %s1301_s16 = smov 0   ;;  %s1542_s0 = inlined_call_operand.vmem [shape: bf16[2,4,4,128], index: 0, kind: input, shape index: {}]   ;;  %s1543_s1 = inlined_call_operand.vmem [shape: bf16[9,128,128], index: 1, kind: input, shape index: {}]   ;;  %s1544_s2 = inlined_call_operand.vmem [shape: bf16[2,2,2,128], index: 2, kind: output, shape index: {0}]   ;;  %s1545_s3 = inlined_call_operand.vmem [shape: f32[2,8,128], index: 3, kind: output, shape index: {1}]   ;;  %s1546_s4 = inlined_call_operand.vmem [shape: f32[2,8,128], index: 4, kind: output, shape index: {2}]  }
   0x1   :  { %s1303_s17 = smov 0   ;;  %s1305_s18 = smov 0  }
   0x2   :  { %s1307_s19 = smov 0   ;;  %s1309_s20 = smov 0  }
   0x3   :  { %s1311_s21 = smov 0   ;;  %s1313_s22 = smov 0  }
   0x4   :  { %s1315_s23 = smov 0  }
   0x5 LB: > { %s24_s24 = sadd.s32 1, %s1260_s21  ;;  %s27_s25 = sadd.s32 1, %s1264_s22  ;;  %s1268_s23 = sphi %s1315_s23, %s15_s23   ;;  %s1264_s22 = sphi %s1313_s22, %s1556_s22   ;;  %s1260_s21 = sphi %s1311_s21, %s1555_s21   ;;  %s1256_s20 = sphi %s1309_s20, %s1554_s20   ;;  %s1252_s19 = sphi %s1307_s19, %s1553_s19   ;;  %s1248_s18 = sphi %s1305_s18, %s1552_s18   ;;  %s1244_s17 = sphi %s1303_s17, %s1551_s17   ;;  %s1240_s16 = sphi %s1301_s16, %s1550_s16   ;;  %s1236_s15 = sphi %s1299_s15, %s1549_s15  }
   0x6   : > { %p25_p0 = scmp.ge.s32.totalorder %s24_s24, 3  ;;  %s930_s26 = sadd.s32 4294967295, %s1268_s23  }
   0x7   : > { %s31_s27 = sadd.s32 %s1260_s21, %s1264_s22  ;;  %p43_p1 = scmp.ne.s32.totalorder %s1248_s18, %s1244_s17 }
   0x8   : > { %s1558_s24 = smov (%p25_p0, %s24_s24), 0  ;;  %s1560_s25 = smov (!%p25_p0, %s27_s25), %s1264_s22 }
   0x9   : > { %p44_p2 = scmp.eq.s32.totalorder %s1268_s23, 0  ;;  %p29_p3 = scmp.ge.s32.totalorder %s1560_s25, 2 }
   0xa   : > { %s36_s28 = sadd.s32 1, %s1248_s18  ;;  %p93_p5 = scmp.ne.s32.totalorder %s1240_s16, %s1236_s15 }
   0xb   : > { %p1356_p4 = por %p44_p2, %p43_p1  ;;  %s1562_s25 = smov (%p29_p3, %s1560_s25), 0 }
   0xc   : > { %s83_s30 = sadd.s32 1, %s1240_s16  ;;  %p94_p6 = scmp.eq.s32.totalorder %s930_s26, 5 }
   0xd   : > { %s32_s5 = sadd.s32 %s1562_s25, %s1558_s24  ;;  %s80_s6 = ssub.s32 %s1264_s22, %s1562_s25 }
   0xe   : > { %s33_s7 = ssub.s32 %s31_s27, %s32_s5  ;;  %p81_p7 = scmp.eq.s32.totalorder %s80_s6, 0 }
   0xf   : > { %p34_p8 = scmp.eq.s32.totalorder %s33_s7, 0  ;;  %p1369_p9 = por %p94_p6, %p93_p5 }
  0x10   : > { %s1374_s9 = scalar_select %p81_p7, %s1240_s16, %s83_s30  }
  0x11   : > { %s1377_s10 = scalar_select %p34_p8, %s1248_s18, %s36_s28  }
  0x12   : > { %p933_p10 = scmp.ge.s32.totalorder %s1268_s23, 6 }
  0x14   : > { %171 = sbr.rel (%p933_p10) target bundleno = 30 (0x1e), region = 20 }
  0x19   : > { %174 = sbr.rel (!%p1356_p4) target bundleno = 30 (0x1e), region = 24  ;;  %s176_s11 = sand.u32 (%p1356_p4), 1, %s1248_s18  }
  0x1a   : > { %s935_s12 = sshll.u32 (%p1356_p4), %s31_s27, 1  ;;  %s934_s13 = sshll.u32 (%p1356_p4), %s176_s11, 2 }
  0x1b   : > { %s181_s5 = scalar_lea.vmem (%p1356_p4), %s1542_s0, %s935_s12  ;;  %s178_s30 = scalar_lea.vmem (%p1356_p4), [#allocation3], %s934_s13 }
  0x1c   : > { %v198_v0 = vld [vmem:[%s181_s5] sm:$0x3] (%p1356_p4)  ;;  %v200_v1 = vld [vmem:[%s181_s5 + $0x8] sm:$0x3] (%p1356_p4) }
  0x1d   : > { %199 = vst [vmem:[%s178_s30] sm:$0x3] (%p1356_p4), %v198_v0  ;;  %201 = vst [vmem:[%s178_s30 + $0x2] sm:$0x3] (%p1356_p4), %v200_v1 }
  0x1e PF: > { %p936_p11 = scmp.ge.s32.totalorder %s1268_s23, 1  ;;  %p220_p12 = scmp.lt.s32.totalorder %s1268_s23, 7 }
  0x20   : > { %p221_p13 = pnand %p936_p11, %p220_p12 }
  0x21   : > { %s244_s27 = sand.u32 (!%p221_p13), 1, %s1236_s15   ;;  %p260_p0 = scmp.lt.s32.totalorder (!%p221_p13), %s1256_s20, 1 }
  0x22   : > { %224 = sbr.rel (%p221_p13) target bundleno = 345 (0x159), region = 58  ;;  %s1390_s28 = sshll.u32 (!%p221_p13), %s244_s27, 1 }
  0x23   : > { %s1010_s29 = smul.u32 (!%p221_p13), 192, %s1252_s19  ;;  %s1497_s7 = scalar_lea.vmem (!%p221_p13), [#allocation4], %s1390_s28 }
  0x24   : > { %p1004_p1 = scmp.ne.s32.totalorder (!%p221_p13), %s1252_s19, 0 }
  0x25   : > { %s1403_s15 = scalar_lea.vmem (!%p221_p13), %s1543_s1, %s1010_s29  ;;  %s227_s29 = sand.u32 (!%p221_p13), 1, %s1244_s17  }
  0x27   : > { %v1270_v2 = vmov 0.0   ;;  %vm1271_vm0 = vmmov 0   ;;  %s261_s6 = scalar_select %p260_p0, %s1256_s20, 1  ;;  %vm309_vm1 = vsmask.f32 256  ;;  %v1174_v3 = vld [vmem:[%s1403_s15 + $0x78] sm:$0xff]   ;;  %v296_v7 = vlaneseq }
  0x28   : > { %1038 = vmatprep.subr.bf16.mxu0 %v1270_v2  ;;  %1058 = vmatprep.subr.bf16.mxu1 %v1270_v2  ;;  %vm310_vm2 = vsmask.f32 1284  ;;  %v1175_v4 = vld [vmem:[%s1403_s15 + $0x38] sm:$0xff]   ;;  %v1176_v5 = vld [vmem:[%s1403_s15 + $0x70] sm:$0xff]   ;;  %vm312_vm3 = vsmask.f32 2312 }
  0x29   : > { %1054 = vmatprep.mubr.msk.bf16.mxu0 %vm1271_vm0, %v1270_v2  ;;  %1074 = vmatprep.mubr.msk.bf16.mxu1 %vm1271_vm0, %v1270_v2  ;;  %s939_s12 = sshll.u32 %s261_s6, 3  ;;  %v1177_v6 = vld [vmem:[%s1403_s15 + $0x30] sm:$0xff]   ;;  %v1272_v8 = vmov 1966171168   ;;  %vm311_vm4 = vmor %vm309_vm1, %vm310_vm2  ;;  %vm314_vm5 = vsmask.f32 3340 }
  0x2a   : > { %s1409_s26 = scalar_lea.vmem %s1545_s3, %s939_s12  ;;  %s1414_s27 = scalar_lea.vmem %s1546_s4, %s939_s12  ;;  %1039 = vmatpush3.bf16.msra.mxu0 %v1174_v3  ;;  %1059 = vmatpush3.bf16.msra.mxu1 %v1175_v4  ;;  %v294_v9 = vunpack.c.l.s4 %v1272_v8  ;;  %v1178_v10 = vld [vmem:[%s1403_s15 + $0x68] sm:$0xff]   ;;  %v1427_v12 = vshrl.u32 %v296_v7, 7  ;;  %vm316_vm6 = vsmask.f32 4368  ;;  %vm313_vm7 = vmor %vm311_vm4, %vm312_vm3  ;;  %vm318_vm8 = vsmask.f32 5396 }
  0x2b   : > { %1040 = vmatprep.subr.bf16.mxu0 %v1270_v2  ;;  %1060 = vmatprep.subr.bf16.mxu1 %v1270_v2  ;;  %v1179_v11 = vld [vmem:[%s1403_s15 + $0x28] sm:$0xff]   ;;  %v1180_v14 = vld [vmem:[%s1403_s15 + $0x60] sm:$0xff]   ;;  %s937_s6 = sshll.u32 %s227_s29, 2  ;;  %vm320_vm9 = vsmask.f32 6424  ;;  %vm315_vm10 = vmor %vm313_vm7, %vm314_vm5 }
  0x2c   : > { %v295_v13 = vunpack.c.0.s8 %v294_v9  ;;  %v1181_v15 = vld [vmem:[%s1403_s15 + $0x20] sm:$0xff]   ;;  %v1182_v17 = vld [vmem:[%s1403_s15 + $0x58] sm:$0xff]   ;;  %s229_s17 = scalar_lea.vmem [#allocation3], %s937_s6  ;;  %vm317_vm11 = vmor %vm315_vm10, %vm316_vm6  ;;  %vm322_vm13 = vsmask.f32 7452 }
  0x2d   : > { %v1183_v18 = vld [vmem:[%s1403_s15 + $0x18] sm:$0xff]   ;;  %v269_v19 = vld [vmem:[%s229_s17] sm:$0x3]  ;;  %v270_v20 = vld [vmem:[%s229_s17 + $0x2] sm:$0x3] }
  0x2e   : > { %1041 = vmatpush3.bf16.msra.mxu0 %v1176_v5  ;;  %1061 = vmatpush3.bf16.msra.mxu1 %v1177_v6  ;;  %v1436_v16 = vsub.s32 %v295_v13, %v1427_v12  ;;  %vm319_vm12 = vmor %vm317_vm11, %vm318_vm8  ;;  %v1184_v23 = vld [vmem:[%s1403_s15 + $0x50] sm:$0xff]   ;;  %v1186_v31 = vld [vmem:[%s1403_s15 + $0x48] sm:$0xff]   ;;  %v466_v32 = vcombine.low %v269_v19, %v270_v20 }
  0x2f   : > { %1042 = vmatprep.subr.bf16.mxu0 %v1270_v2  ;;  %1062 = vmatprep.subr.bf16.mxu1 %v1270_v2  ;;  %vm321_vm14 = vmor %vm319_vm12, %vm320_vm9  ;;  %v1185_v24 = vld [vmem:[%s1403_s15 + $0x10] sm:$0xff]   ;;  %v1187_v33 = vld [vmem:[%s1403_s15 + $0x8] sm:$0xff]  }
  0x30   : > { %v1445_v21 = vrot.slane %v269_v19, %v1436_v16  ;;  %v1448_v22 = vrot.slane %v270_v20, %v1436_v16  ;;  %vm323_vm15 = vmor %vm321_vm14, %vm322_vm13  ;;  %v1188_v37 = vld [vmem:[%s1403_s15 + $0x40] sm:$0xff]   ;;  %v473_v39 = vrot.slane %v466_v32, %v1436_v16  ;;  %v1190_v43 = vld [vmem:[%s1403_s15 + $0xb8] sm:$0xff]  }
  0x31   : > { %v1189_v40 = vld [vmem:[%s1403_s15] sm:$0xff]   ;;  %v1191_v44 = vld [vmem:[%s1403_s15 + $0xb0] sm:$0xff]   ;;  %v1192_v45 = vld [vmem:[%s1403_s15 + $0xa8] sm:$0xff]  }
  0x32   : > { %1043 = vmatpush3.bf16.msra.mxu0 %v1178_v10  ;;  %1063 = vmatpush3.bf16.msra.mxu1 %v1179_v11  ;;  %v300_v25 = vcombine.high %v1445_v21, %v1445_v21  ;;  %v308_v26 = vcombine.high %v1448_v22, %v1448_v22  ;;  %v325_v27 = vshrl.u32 %v1445_v21, 16  ;;  %v334_v28 = vshrl.u32 %v1448_v22, 16  ;;  %v1193_v46 = vld [vmem:[%s1403_s15 + $0xa0] sm:$0xff]   ;;  %v1194_v47 = vld [vmem:[%s1403_s15 + $0x98] sm:$0xff]   ;;  %v1195_v48 = vld [vmem:[%s1403_s15 + $0x90] sm:$0xff]  }
  0x33   : > { %1044 = vmatprep.subr.bf16.mxu0 %v1270_v2  ;;  %1064 = vmatprep.subr.bf16.mxu1 %v1270_v2  ;;  %v480_v42 = vrot.slane %v473_v39, %v1436_v16  ;;  %v995_v49 = vcombine.high %v1445_v21, %v1448_v22  ;;  %v1196_v50 = vld [vmem:[%s1403_s15 + $0x88] sm:$0xff]   ;;  %v1197_v52 = vld [vmem:[%s1403_s15 + $0x80] sm:$0xff]  }
  0x34   : > { %v330_v29 = vshll.u32 %v300_v25, 16  ;;  %v339_v30 = vshll.u32 %v308_v26, 16 }
  0x35   : > { %v597_v51 = vrot.slane %v995_v49, %v1436_v16 }
  0x36   : > { %1045 = vmatpush3.bf16.msra.mxu0 %v1180_v14  ;;  %1065 = vmatpush3.bf16.msra.mxu1 %v1181_v15  ;;  %v332_v34 = vsel %vm323_vm15, %v325_v27, %v330_v29  ;;  %v341_v35 = vsel %vm323_vm15, %v334_v28, %v339_v30 }
  0x37   : > { %1046 = vmatprep.subr.bf16.mxu0 %v1270_v2  ;;  %1066 = vmatprep.subr.bf16.mxu1 %v1270_v2  ;;  %v362_v36 = vcombine.low %v332_v34, %v341_v35  ;;  %v604_v53 = vrot.slane %v597_v51, %v1436_v16 }
  0x39   : > { %v369_v38 = vrot.slane %v362_v36, %v1436_v16 }
  0x3a   : > { %1047 = vmatpush3.bf16.msra.mxu0 %v1182_v17  ;;  %1067 = vmatpush3.bf16.msra.mxu1 %v1183_v18 }
  0x3b   : > { %1048 = vmatprep.subr.bf16.mxu0 %v1270_v2  ;;  %1068 = vmatprep.subr.bf16.mxu1 %v1270_v2  ;;  %v376_v41 = vrot.slane %v369_v38, %v1436_v16 }
  0x3e   : > { %1049 = vmatpush3.bf16.msra.mxu0 %v1184_v23  ;;  %1069 = vmatpush3.bf16.msra.mxu1 %v1185_v24 }
  0x3f   : > { %1050 = vmatprep.subr.bf16.mxu0 %v1270_v2  ;;  %1070 = vmatprep.subr.bf16.mxu1 %v1270_v2 }
  0x42   : > { %1051 = vmatpush3.bf16.msra.mxu0 %v1186_v31  ;;  %1071 = vmatpush3.bf16.msra.mxu1 %v1187_v33 }
  0x43   : > { %1052 = vmatprep.subr.bf16.mxu0 %v1270_v2  ;;  %1072 = vmatprep.subr.bf16.mxu1 %v1270_v2 }
  0x46   : > { %1053 = vmatpush3.bf16.msra.mxu0 %v1188_v37  ;;  %1073 = vmatpush3.bf16.msra.mxu1 %v1189_v40 }
  0x47   : > { %1078 = vmatprep.subr.bf16.mxu0 %v1270_v2 }
  0x49   : > { %1055 = vmatmul.mubr.bf16.vlgmr.msra.gmra.mxu0 %v376_v41  ;;  %1075 = vmatmul.mubr.bf16.vlgmr.msra.gmra.mxu1 %v480_v42 }
  0x4a   : > { %1079 = vmatpush3.bf16.msra.mxu0 %v1190_v43  ;;  %1094 = vmatprep.mubr.msk.bf16.mxu0 %vm1271_vm0, %v1270_v2 }
  0x4b   : > { %1080 = vmatprep.subr.bf16.mxu0 %v1270_v2 }
  0x4e   : > { %1081 = vmatpush3.bf16.msra.mxu0 %v1191_v44 }
  0x4f   : > { %1082 = vmatprep.subr.bf16.mxu0 %v1270_v2 }
  0x52   : > { %1083 = vmatpush3.bf16.msra.mxu0 %v1192_v45 }
  0x53   : > { %1084 = vmatprep.subr.bf16.mxu0 %v1270_v2 }
  0x56   : > { %1085 = vmatpush3.bf16.msra.mxu0 %v1193_v46 }
  0x57   : > { %1086 = vmatprep.subr.bf16.mxu0 %v1270_v2 }
  0x5a   : > { %1087 = vmatpush3.bf16.msra.mxu0 %v1194_v47 }
  0x5b   : > { %1088 = vmatprep.subr.bf16.mxu0 %v1270_v2 }
  0x5e   : > { %1089 = vmatpush3.bf16.msra.mxu0 %v1195_v48 }
  0x5f   : > { %1090 = vmatprep.subr.bf16.mxu0 %v1270_v2 }
  0x62   : > { %1091 = vmatpush3.bf16.msra.mxu0 %v1196_v50 }
  0x63   : > { %1092 = vmatprep.subr.bf16.mxu0 %v1270_v2 }
  0x66   : > { %1093 = vmatpush3.bf16.msra.mxu0 %v1197_v52 }
  0x69   : > { %1095 = vmatmul.mubr.bf16.vlgmr.msra.gmra.mxu0 %v604_v53 }
 0x109   : > { %v460_v54 = vpop.f32.mrf.mxu0  ;;  %v564_v55 = vpop.f32.mrf.mxu1 }
 0x10a   : > { %v565_v62 = vadd.f32 %v564_v55, %v460_v54 }
 0x10b   : > { %v1056_v56 = vpop.f32.mrf.mxu0  ;;  %v1076_v57 = vpop.f32.mrf.mxu1 }
 0x10d   : > { %v463_v58 = vpop.f32.mrf.mxu0  ;;  %v567_v59 = vpop.f32.mrf.mxu1 }
 0x10f   : > { %v1057_v60 = vpop.f32.mrf.mxu0  ;;  %v1077_v61 = vpop.f32.mrf.mxu1 }
 0x129   : > { %v688_v63 = vpop.f32.mrf.mxu0 }
 0x12a   : > { %v694_v0 = vadd.f32 %v688_v63, %v565_v62 }
 0x12b   : > { %v1096_v1 = vpop.f32.mrf.mxu0  ;;  %698 = sbr.rel (%p1004_p1) target bundleno = 305 (0x131), region = 66 }
 0x12d   : > { %v691_v3 = vpop.f32.mrf.mxu0 }
 0x12f   : > { %v1097_v4 = vpop.f32.mrf.mxu0 }
 0x130   : > { %699 = vst [vmem:[#allocation2] sm:$0xf] %v694_v0 }
 0x131 PF: > { %p1005_p2 = scmp.le.s32.totalorder %s1252_s19, 0 }
 0x133   : > { %703 = sbr.rel (%p1005_p2) target bundleno = 316 (0x13c), region = 70 }
 0x138   : > { %v704_v2 = vld [vmem:[#allocation2] sm:$0xf] }
 0x139   : > { %v705_v5 = vadd.f32 %v704_v2, %v694_v0 }
 0x13b   : > { %706 = vst [vmem:[#allocation2] sm:$0xf] %v705_v5 }
 0x13c PF: > { %p1006_p3 = scmp.ne.s32.totalorder %s1252_s19, 2 }
 0x13e   : > { %710 = sbr.rel (%p1006_p3) target bundleno = 340 (0x154), region = 74 }
 0x143   : > { %v711_v6 = vld [vmem:[#allocation2] sm:$0xf]  ;;  %vm727_vm0 = vcmask 1043456   ;;  %v1273_v7 = vmov 1983009808  }
 0x144   : > { %v714_v8 = vunpack.c.l.s4 %v1273_v7  ;;  %v735_v9 = vmul.f32 %v711_v6, %v711_v6  ;;  %v728_v10 = vsel %vm727_vm0, %v711_v6, 0.0 }
 0x145   : > { %v729_v11 = vrot.slane %v728_v10, 4 }
 0x146   : > { %v715_v13 = vunpack.c.0.s8 %v714_v8  ;;  %v736_v14 = vsel %vm727_vm0, %v735_v9, 0.0 }
 0x147   : > { %v730_v15 = vadd.f32 %v729_v11, %v728_v10  ;;  %v737_v16 = vrot.slane %v736_v14, 4 }
 0x148   : > { %v718_v17 = vsub.s32 %v715_v13, %v1427_v12 }
 0x149   : > { %v731_v18 = vrot.slane %v730_v15, 2  ;;  %v738_v19 = vadd.f32 %v737_v16, %v736_v14 }
 0x14a   : > { %v719_v20 = vrot.slane %v711_v6, %v718_v17 }
 0x14b   : > { %v732_v21 = vadd.f32 %v731_v18, %v730_v15  ;;  %v739_v22 = vrot.slane %v738_v19, 2 }
 0x14c   : > { %v723_v23 = vpack.c.bf16 %v719_v20, %v719_v20  ;;  %v720_v24 = vcombine.high %v719_v20, %v719_v20 }
 0x14d   : > { %v733_v25 = vrot.slane %v732_v21, 1  ;;  %v740_v26 = vadd.f32 %v739_v22, %v738_v19 }
 0x14e   : > { %725 = vst [vmem:[%s1497_s7] sm:$0x1] %v723_v23  ;;  %v724_v27 = vpack.c.bf16 %v720_v24, %v720_v24 }
 0x14f   : > { %v734_v28 = vadd.f32 %v733_v25, %v732_v21  ;;  %v741_v29 = vrot.slane %v740_v26, 1 }
 0x150   : > { %726 = vst [vmem:[%s1497_s7 + $0x1] sm:$0x1] %v724_v27 }
 0x151   : > { %743 = vst [vmem:[%s1409_s26] sm:$0xff] %v734_v28  ;;  %v742_v30 = vadd.f32 %v741_v29, %v740_v26 }
 0x153   : > { %744 = vst [vmem:[%s1414_s27] sm:$0xff] %v742_v30 }
 0x154 PF: > { %759 = sbr.rel (!%p1369_p9) target bundleno = 345 (0x159), region = 78  ;;  %s760_s11 = scalar_lea.vmem (%p1369_p9), %s1544_s2, %s1256_s20 }
 0x155   : > { %v777_v12 = vld [vmem:[%s1497_s7] sm:$0x1] (%p1369_p9) }
 0x156   : > { %778 = vst [vmem:[%s760_s11] sm:$0x1] (%p1369_p9), %v777_v12 }
 0x157   : > { %v779_v31 = vld [vmem:[%s1497_s7 + $0x1] sm:$0x1] (%p1369_p9) }
 0x158   : > { %780 = vst [vmem:[%s760_s11 + $0x2] sm:$0x1] (%p1369_p9), %v779_v31 }
 0x159 PF: > { %s15_s23 = sadd.s32 1, %s1268_s23   ;;  %s1549_s15 = smov %s1240_s16 }
 0x15a   : > { %p12_p4 = scmp.ge.s32.totalorder %s15_s23, 8   ;;  %s1550_s16 = smov %s1374_s9 }
 0x15b   : > { %s1551_s17 = smov %s1248_s18  ;;  %s1552_s18 = smov %s1377_s10 }
 0x15c   : > { %s1553_s19 = smov %s1260_s21  ;;  %s1554_s20 = smov %s1264_s22 }
 0x15d   : > { %s1555_s21 = smov %s1558_s24  ;;  %s1556_s22 = smov %s1562_s25 }
 0x15e   :  { %14 = sbr.rel (!%p12_p4) target bundleno = 5 (0x5), region = 170 }

// kernel: _lambda_.41
= control target key start
LH: loop header
LB: loop body
LE: loop exit
PB: predicated region body
PF: predicated region fallthrough
CT: control target
= control target key end

     0   :  { %s73_s0 = inlined_call_operand.vmem [shape: bf16[2,256], index: 0, kind: input, shape index: {}]   ;;  %s74_s1 = inlined_call_operand.vmem [shape: f32[1,128], index: 1, kind: input, shape index: {}]   ;;  %s75_s2 = inlined_call_operand.vmem [shape: f32[1,128], index: 2, kind: input, shape index: {}]   ;;  %s76_s3 = inlined_call_operand.vmem [shape: bf16[2,128], index: 3, kind: output, shape index: {}]  }
   0x1   :  { %v14_v0 = vld [vmem:[%s73_s0] sm:$0x1] }
   0x2   :  { %v39_v1 = vld [vmem:[%s74_s1] ss:$0 sm:$0xff]  ;;  %v15_v2 = vunpack.c.l.bf16 %v14_v0 }
   0x3   :  { %v40_v3 = vld [vmem:[%s75_s2] ss:$0 sm:$0xff] }
   0x4   :  { %v23_v4 = vmul.f32 %v39_v1, %v15_v2 }
   0x6   :  { %v31_v5 = vadd.f32 %v40_v3, %v23_v4 }
   0x8   :  { %v32_v6 = vmax.f32 %v31_v5, 0.0 }
   0xa   :  { %v33_v7 = vpack.c.bf16 %v32_v6, %v32_v6 }
   0xc   :  { %34 = vst [vmem:[%s76_s3] sm:$0x1] %v33_v7 }

// kernel: _lambda_.40
= control target key start
LH: loop header
LB: loop body
LE: loop exit
PB: predicated region body
PF: predicated region fallthrough
CT: control target
= control target key end

     0   :  { %s1343_s15 = smov 0   ;;  %s1345_s16 = smov 0   ;;  %s1518_s0 = inlined_call_operand.vmem [shape: bf16[2,4,5,128], index: 0, kind: input, shape index: {}]   ;;  %s1519_s1 = inlined_call_operand.vmem [shape: bf16[9,128,256], index: 1, kind: input, shape index: {}]   ;;  %s1520_s2 = inlined_call_operand.vmem [shape: bf16[2,1,1,256], index: 2, kind: output, shape index: {0}]   ;;  %s1521_s3 = inlined_call_operand.vmem [shape: f32[1,8,256], index: 3, kind: output, shape index: {1}]   ;;  %s1522_s4 = inlined_call_operand.vmem [shape: f32[1,8,256], index: 4, kind: output, shape index: {2}]  }
   0x1   :  { %s1347_s17 = smov 0   ;;  %s1349_s18 = smov 0  }
   0x2   :  { %s1351_s19 = smov 0  }
   0x3 LB: > { %s24_s20 = sadd.s32 1, %s1308_s18  ;;  %p45_p1 = scmp.ne.s32.totalorder %s1300_s16, %s1296_s15  ;;  %s1312_s19 = sphi %s1351_s19, %s15_s19   ;;  %s1308_s18 = sphi %s1349_s18, %s1530_s18   ;;  %s1304_s17 = sphi %s1347_s17, %s1529_s17   ;;  %s1300_s16 = sphi %s1345_s16, %s1528_s16   ;;  %s1296_s15 = sphi %s1343_s15, %s1527_s15  }
   0x4   : > { %p25_p0 = scmp.ge.s32.totalorder %s24_s20, 3  ;;  %p46_p2 = scmp.eq.s32.totalorder %s1312_s19, 0 }
   0x5   : > { %s38_s22 = sadd.s32 1, %s1300_s16  ;;  %p1053_p5 = scmp.ge.s32.totalorder %s1312_s19, 3 }
   0x6   : > { %s1532_s20 = smov (%p25_p0, %s24_s20), 0  ;;  %p47_p3 = por %p46_p2, %p45_p1 }
   0x7   : > { %s35_s21 = ssub.s32 %s1308_s18, %s1532_s20  ;;  %173 = sbr.rel (%p1053_p5) target bundleno = 17 (0x11), region = 20 }
   0x8   : > { %p36_p4 = scmp.eq.s32.totalorder %s35_s21, 0 }
   0xa   : > { %s1378_s23 = scalar_select %p36_p4, %s1300_s16, %s38_s22  }
   0xc   : > { %176 = sbr.rel (!%p47_p3) target bundleno = 17 (0x11), region = 24  ;;  %s178_s24 = sand.u32 (%p47_p3), 1, %s1300_s16  }
   0xd   : > { %s1055_s25 = sshll.u32 (%p47_p3), %s1308_s18, 2  ;;  %s1054_s26 = sshll.u32 (%p47_p3), %s178_s24, 3 }
   0xe   : > { %s184_s29 = scalar_lea.vmem (%p47_p3), %s1518_s0, %s1055_s25  ;;  %s180_s30 = scalar_lea.vmem (%p47_p3), [#allocation3], %s1054_s26 }
   0xf   : > { %v201_v0 = vld [vmem:[%s184_s29] sm:$0xf] (%p47_p3)  ;;  %v203_v1 = vld [vmem:[%s184_s29 + $0x10] sm:$0xf] (%p47_p3) }
  0x10   : > { %202 = vst [vmem:[%s180_s30] sm:$0xf] (%p47_p3), %v201_v0  ;;  %204 = vst [vmem:[%s180_s30 + $0x4] sm:$0xf] (%p47_p3), %v203_v1 }
  0x11 PF: > { %p1056_p6 = scmp.ge.s32.totalorder %s1312_s19, 1  ;;  %p231_p7 = scmp.lt.s32.totalorder %s1312_s19, 4 }
  0x13   : > { %p232_p8 = pnand %p1056_p6, %p231_p7 }
  0x14   : > { %s1155_s5 = smul.u32 (!%p232_p8), 384, %s1304_s17  ;;  %s238_s9 = sand.u32 (!%p232_p8), 1, %s1296_s15  }
  0x15   : > { %235 = sbr.rel (%p232_p8) target bundleno = 347 (0x15b), region = 65  ;;  %s1057_s10 = sshll.u32 (!%p232_p8), %s238_s9, 3 }
  0x16   : > { %s1394_s8 = scalar_lea.vmem (!%p232_p8), %s1519_s1, %s1155_s5  ;;  %s240_s11 = scalar_lea.vmem (!%p232_p8), [#allocation3], %s1057_s10 }
  0x17   : > { %p1144_p9 = scmp.ne.s32.totalorder (!%p232_p8), %s1304_s17, 0 }
  0x1a   : > { %v1314_v2 = vmov 0   ;;  %v1200_v3 = vld [vmem:[%s1394_s8 + $0xf4] ss:$8 sps:$4 sm:$0xff]   ;;  %v1204_v5 = vld [vmem:[%s1394_s8 + $0xf0] ss:$8 sps:$4 sm:$0xff]   ;;  %vm340_vm0 = vcmask 1041409  }
  0x1b   : > { %456 = vmatprep.mubr.bf16.mxu0 %v1314_v2  ;;  %581 = vmatprep.mubr.bf16.mxu1 %v1314_v2  ;;  %v1202_v4 = vld [vmem:[%s1394_s8 + $0x74] ss:$8 sps:$4 sm:$0xff]   ;;  %v1205_v6 = vld [vmem:[%s1394_s8 + $0x70] ss:$8 sps:$4 sm:$0xff]   ;;  %v1206_v7 = vld [vmem:[%s1394_s8 + $0xe4] ss:$8 sps:$4 sm:$0xff]  }
  0x1c   : > { %424 = vmatprep.subr.bf16.mxu0 %v1200_v3  ;;  %549 = vmatprep.subr.bf16.mxu1 %v1202_v4  ;;  %v1208_v8 = vld [vmem:[%s1394_s8 + $0x64] ss:$8 sps:$4 sm:$0xff]   ;;  %v1210_v9 = vld [vmem:[%s1394_s8 + $0xe0] ss:$8 sps:$4 sm:$0xff]   ;;  %v1212_v11 = vld [vmem:[%s1394_s8 + $0xd4] ss:$8 sps:$4 sm:$0xff]  }
  0x1d   : > { %425 = vmatpush1.bf16.msra.mxu0 %v1204_v5  ;;  %550 = vmatpush1.bf16.msra.mxu1 %v1205_v6  ;;  %v1211_v10 = vld [vmem:[%s1394_s8 + $0x60] ss:$8 sps:$4 sm:$0xff]   ;;  %v1214_v12 = vld [vmem:[%s1394_s8 + $0x54] ss:$8 sps:$4 sm:$0xff]   ;;  %v1216_v13 = vld [vmem:[%s1394_s8 + $0xd0] ss:$8 sps:$4 sm:$0xff]  }
  0x1e   : > { %426 = vmatprep.subr.bf16.mxu0 %v1206_v7  ;;  %551 = vmatprep.subr.bf16.mxu1 %v1208_v8  ;;  %v1217_v14 = vld [vmem:[%s1394_s8 + $0x50] ss:$8 sps:$4 sm:$0xff]   ;;  %v1218_v15 = vld [vmem:[%s1394_s8 + $0xc4] ss:$8 sps:$4 sm:$0xff]   ;;  %v1222_v17 = vld [vmem:[%s1394_s8 + $0xc0] ss:$8 sps:$4 sm:$0xff]  }
  0x1f   : > { %v1220_v16 = vld [vmem:[%s1394_s8 + $0x44] ss:$8 sps:$4 sm:$0xff]   ;;  %v1223_v18 = vld [vmem:[%s1394_s8 + $0x40] ss:$8 sps:$4 sm:$0xff]   ;;  %v1224_v19 = vld [vmem:[%s1394_s8 + $0xb4] ss:$8 sps:$4 sm:$0xff]  }
  0x20   : > { %v1226_v20 = vld [vmem:[%s1394_s8 + $0x34] ss:$8 sps:$4 sm:$0xff]   ;;  %v1228_v21 = vld [vmem:[%s1394_s8 + $0xb0] ss:$8 sps:$4 sm:$0xff]   ;;  %v1230_v23 = vld [vmem:[%s1394_s8 + $0xa4] ss:$8 sps:$4 sm:$0xff]  }
  0x21   : > { %427 = vmatpush1.bf16.msra.mxu0 %v1210_v9  ;;  %552 = vmatpush1.bf16.msra.mxu1 %v1211_v10  ;;  %v1229_v22 = vld [vmem:[%s1394_s8 + $0x30] ss:$8 sps:$4 sm:$0xff]   ;;  %v1232_v24 = vld [vmem:[%s1394_s8 + $0x24] ss:$8 sps:$4 sm:$0xff]   ;;  %v1234_v25 = vld [vmem:[%s1394_s8 + $0xa0] ss:$8 sps:$4 sm:$0xff]  }
  0x22   : > { %428 = vmatprep.subr.bf16.mxu0 %v1212_v11  ;;  %553 = vmatprep.subr.bf16.mxu1 %v1214_v12  ;;  %v1235_v26 = vld [vmem:[%s1394_s8 + $0x20] ss:$8 sps:$4 sm:$0xff]   ;;  %v1236_v27 = vld [vmem:[%s1394_s8 + $0x94] ss:$8 sps:$4 sm:$0xff]   ;;  %v1240_v31 = vld [vmem:[%s1394_s8 + $0x90] ss:$8 sps:$4 sm:$0xff]  }
  0x23   : > { %v1238_v28 = vld [vmem:[%s1394_s8 + $0x14] ss:$8 sps:$4 sm:$0xff]   ;;  %v1248_v29 = vld [vmem:[%s240_s11] ss:$0 sps:$4 sm:$0x77]  }
  0x24   : > { %v1249_v30 = vld [vmem:[%s240_s11 + $0x4] ss:$0 sps:$4 sm:$0x77]   ;;  %v337_v33 = vunpack.c.l.b16 %v1248_v29  ;;  %v1242_v35 = vld [vmem:[%s1394_s8 + $0x84] ss:$8 sps:$4 sm:$0xff]  }
  0x25   : > { %429 = vmatpush1.bf16.msra.mxu0 %v1216_v13  ;;  %554 = vmatpush1.bf16.msra.mxu1 %v1217_v14  ;;  %v1241_v32 = vld [vmem:[%s1394_s8 + $0x10] ss:$8 sps:$4 sm:$0xff]   ;;  %v338_v34 = vunpack.c.l.b16 %v1249_v30  ;;  %v1244_v36 = vld [vmem:[%s1394_s8 + $0x4] ss:$8 sps:$4 sm:$0xff]   ;;  %v1246_v39 = vld [vmem:[%s1394_s8 + $0x80] ss:$8 sps:$4 sm:$0xff]  }
  0x26   : > { %430 = vmatprep.subr.bf16.mxu0 %v1218_v15  ;;  %555 = vmatprep.subr.bf16.mxu1 %v1220_v16  ;;  %v339_v37 = vrot.slane %v337_v33, 1  ;;  %v1247_v40 = vld [vmem:[%s1394_s8] ss:$8 sps:$4 sm:$0xff]   ;;  %v1252_v43 = vld [vmem:[%s1394_s8 + $0x174] ss:$8 sps:$4 sm:$0xff]   ;;  %v610_v59 = vrot.slane %v337_v33, 2 }
  0x27   : > { %v465_v38 = vrot.slane %v338_v34, 7  ;;  %v1250_v46 = vld [vmem:[%s1394_s8 + $0x170] ss:$8 sps:$4 sm:$0xff]   ;;  %v1255_v47 = vld [vmem:[%s1394_s8 + $0x164] ss:$8 sps:$4 sm:$0xff]   ;;  %v611_v60 = vrot.slane %v338_v34, 1 }
  0x28   : > { %v341_v41 = vsel %vm340_vm0, %v338_v34, %v339_v37  ;;  %v1253_v48 = vld [vmem:[%s1394_s8 + $0x160] ss:$8 sps:$4 sm:$0xff]   ;;  %v1258_v49 = vld [vmem:[%s1394_s8 + $0x154] ss:$8 sps:$4 sm:$0xff]   ;;  %v1256_v50 = vld [vmem:[%s1394_s8 + $0x150] ss:$8 sps:$4 sm:$0xff]  }
  0x29   : > { %431 = vmatpush1.bf16.msra.mxu0 %v1222_v17  ;;  %556 = vmatpush1.bf16.msra.mxu1 %v1223_v18  ;;  %v466_v42 = vsel %vm340_vm0, %v465_v38, %v337_v33  ;;  %v342_v44 = vpack.c.b16 %v341_v41, %v341_v41  ;;  %v1261_v51 = vld [vmem:[%s1394_s8 + $0x144] ss:$8 sps:$4 sm:$0xff]   ;;  %v1259_v52 = vld [vmem:[%s1394_s8 + $0x140] ss:$8 sps:$4 sm:$0xff]   ;;  %v1264_v53 = vld [vmem:[%s1394_s8 + $0x134] ss:$8 sps:$4 sm:$0xff]   ;;  %v612_v63 = vsel %vm340_vm0, %v611_v60, %v610_v59 }
  0x2a   : > { %432 = vmatprep.subr.bf16.mxu0 %v1224_v19  ;;  %557 = vmatprep.subr.bf16.mxu1 %v1226_v20  ;;  %v467_v45 = vpack.c.b16 %v466_v42, %v466_v42  ;;  %v1262_v54 = vld [vmem:[%s1394_s8 + $0x130] ss:$8 sps:$4 sm:$0xff]   ;;  %v1267_v55 = vld [vmem:[%s1394_s8 + $0x124] ss:$8 sps:$4 sm:$0xff]   ;;  %v1265_v56 = vld [vmem:[%s1394_s8 + $0x120] ss:$8 sps:$4 sm:$0xff]   ;;  %v613_v0 = vpack.c.b16 %v612_v63, %v612_v63 }
  0x2b   : > { %v1270_v57 = vld [vmem:[%s1394_s8 + $0x114] ss:$8 sps:$4 sm:$0xff]   ;;  %v1268_v58 = vld [vmem:[%s1394_s8 + $0x110] ss:$8 sps:$4 sm:$0xff]   ;;  %v1273_v61 = vld [vmem:[%s1394_s8 + $0x104] ss:$8 sps:$4 sm:$0xff]  }
  0x2c   : > { %v1271_v62 = vld [vmem:[%s1394_s8 + $0x100] ss:$8 sps:$4 sm:$0xff]  }
  0x2d   : > { %433 = vmatpush1.bf16.msra.mxu0 %v1228_v21  ;;  %558 = vmatpush1.bf16.msra.mxu1 %v1229_v22 }
  0x2e   : > { %434 = vmatprep.subr.bf16.mxu0 %v1230_v23  ;;  %559 = vmatprep.subr.bf16.mxu1 %v1232_v24 }
  0x31   : > { %435 = vmatpush1.bf16.msra.mxu0 %v1234_v25  ;;  %560 = vmatpush1.bf16.msra.mxu1 %v1235_v26 }
  0x32   : > { %436 = vmatprep.subr.bf16.mxu0 %v1236_v27  ;;  %561 = vmatprep.subr.bf16.mxu1 %v1238_v28 }
  0x35   : > { %437 = vmatpush1.bf16.msra.mxu0 %v1240_v31  ;;  %562 = vmatpush1.bf16.msra.mxu1 %v1241_v32 }
  0x36   : > { %438 = vmatprep.subr.bf16.mxu0 %v1242_v35  ;;  %563 = vmatprep.subr.bf16.mxu1 %v1244_v36 }
  0x39   : > { %439 = vmatpush1.bf16.msra.mxu0 %v1246_v39  ;;  %564 = vmatpush1.bf16.msra.mxu1 %v1247_v40 }
  0x3a   : > { %695 = vmatprep.subr.bf16.mxu0 %v1252_v43 }
  0x3c   : > { %457 = vmatmul.mubr.bf16.vlgmr.msra.gmra.mxu0 %v342_v44  ;;  %582 = vmatmul.mubr.bf16.vlgmr.msra.gmra.mxu1 %v467_v45 }
  0x3d   : > { %696 = vmatpush1.bf16.msra.mxu0 %v1250_v46  ;;  %727 = vmatprep.mubr.bf16.mxu0 %v1314_v2 }
  0x3e   : > { %697 = vmatprep.subr.bf16.mxu0 %v1255_v47 }
  0x41   : > { %698 = vmatpush1.bf16.msra.mxu0 %v1253_v48 }
  0x42   : > { %699 = vmatprep.subr.bf16.mxu0 %v1258_v49 }
  0x45   : > { %700 = vmatpush1.bf16.msra.mxu0 %v1256_v50 }
  0x46   : > { %701 = vmatprep.subr.bf16.mxu0 %v1261_v51 }
  0x49   : > { %702 = vmatpush1.bf16.msra.mxu0 %v1259_v52 }
  0x4a   : > { %703 = vmatprep.subr.bf16.mxu0 %v1264_v53 }
  0x4d   : > { %704 = vmatpush1.bf16.msra.mxu0 %v1262_v54 }
  0x4e   : > { %705 = vmatprep.subr.bf16.mxu0 %v1267_v55 }
  0x51   : > { %706 = vmatpush1.bf16.msra.mxu0 %v1265_v56 }
  0x52   : > { %707 = vmatprep.subr.bf16.mxu0 %v1270_v57 }
  0x55   : > { %708 = vmatpush1.bf16.msra.mxu0 %v1268_v58 }
  0x56   : > { %709 = vmatprep.subr.bf16.mxu0 %v1273_v61 }
  0x59   : > { %710 = vmatpush1.bf16.msra.mxu0 %v1271_v62 }
  0x5c   : > { %728 = vmatmul.mubr.bf16.vlgmr.msra.gmra.mxu0 %v613_v0 }
  0xfc   : > { %v458_v1 = vpop.f32.mrf.mxu0  ;;  %v583_v2 = vpop.f32.mrf.mxu1 }
  0xfd   : > { %v584_v9 = vadd.f32 %v583_v2, %v458_v1 }
  0xfe   : > { %v460_v3 = vpop.f32.mrf.mxu0  ;;  %v585_v4 = vpop.f32.mrf.mxu1 }
  0xff   : > { %v586_v11 = vadd.f32 %v585_v4, %v460_v3 }
 0x100   : > { %v462_v5 = vpop.f32.mrf.mxu0  ;;  %v587_v6 = vpop.f32.mrf.mxu1 }
 0x102   : > { %v463_v7 = vpop.f32.mrf.mxu0  ;;  %v588_v8 = vpop.f32.mrf.mxu1 }
 0x11c   : > { %v729_v10 = vpop.f32.mrf.mxu0 }
 0x11d   : > { %v736_v12 = vadd.f32 %v729_v10, %v584_v9 }
 0x11e   : > { %v731_v13 = vpop.f32.mrf.mxu0  ;;  %741 = sbr.rel (%p1144_p9) target bundleno = 294 (0x126), region = 73 }
 0x11f   : > { %v737_v14 = vadd.f32 %v731_v13, %v586_v11 }
 0x120   : > { %v733_v15 = vpop.f32.mrf.mxu0 }
 0x122   : > { %v734_v16 = vpop.f32.mrf.mxu0 }
 0x123   : > { %v744_v17 = vcombine.low %v736_v12, %v737_v14 }
 0x125   : > { %1145 = vst.sshfl [vmem:[#allocation2] sm:$0x33 pattern:$0x76325410] %v744_v17 }
 0x126 PF: > { %p1146_p10 = scmp.le.s32.totalorder %s1304_s17, 0 }
 0x128   : > { %757 = sbr.rel (%p1146_p10) target bundleno = 313 (0x139), region = 77 }
 0x12d   : > { %v765_v18 = vlaneseq  ;;  %v1315_v19 = vmov 1983009808   ;;  %v761_v22 = vcombine.low %v736_v12, %v737_v14  ;;  %v758_v25 = vld [vmem:[#allocation2] sm:$0xf] }
 0x12e   : > { %v763_v20 = vunpack.c.l.s4 %v1315_v19 }
 0x12f   : > { %v766_v21 = vshrl.u32 %v765_v18, 7 }
 0x130   : > { %v764_v23 = vunpack.c.0.s8 %v763_v20 }
 0x132   : > { %v767_v24 = vsub.s32 %v764_v23, %v766_v21 }
 0x134   : > { %v768_v26 = vrot.slane %v761_v22, %v767_v24 }
 0x136   : > { %v770_v27 = vadd.f32 %v768_v26, %v758_v25 }
 0x138   : > { %771 = vst [vmem:[#allocation2] sm:$0xf] %v770_v27 }
 0x139 PF: > { %p1147_p11 = scmp.ne.s32.totalorder %s1304_s17, 2 }
 0x13b   : > { %775 = sbr.rel (%p1147_p11) target bundleno = 347 (0x15b), region = 81 }
 0x140   : > { %v781_v28 = vlaneseq  ;;  %v1316_v29 = vmov 1966171168   ;;  %v776_v31 = vld [vmem:[#allocation2] sm:$0xf]  ;;  %v1317_v34 = vmov 1983009808  }
 0x141   : > { %v779_v30 = vunpack.c.l.s4 %v1316_v29  ;;  %v860_v35 = vunpack.c.l.s4 %v1317_v34  ;;  %v884_v40 = vmul.f32 %v776_v31, %v776_v31  ;;  %vm846_vm1 = vcmask 1040384   ;;  %v853_v61 = vld [vmem:[%s1520_s2] sm:$0x3]  ;;  %v856_v5 = vld [vmem:[%s1520_s2 + $0x2] sm:$0x3] }
 0x142   : > { %v782_v33 = vshrl.u32 %v781_v28, 7  ;;  %vm847_vm2 = vsmask.f32 256  ;;  %vm850_vm3 = vsmask.f32 1280  ;;  %vm869_vm4 = vcmask 1041408  }
 0x143   : > { %v780_v32 = vunpack.c.0.s8 %v779_v30  ;;  %v861_v39 = vunpack.c.0.s8 %v860_v35  ;;  %vm1452_vm5 = vmand %vm846_vm1, %vm847_vm2 }
 0x144   : > { %v788_v37 = vsub.s32 0, %v782_v33  ;;  %v792_v38 = vsub.s32 1, %v782_v33  ;;  %vm1457_vm6 = vmand %vm340_vm0, %vm850_vm3 }
 0x145   : > { %v783_v36 = vsub.s32 %v780_v32, %v782_v33  ;;  %v864_v42 = vsub.s32 %v861_v39, %v782_v33  ;;  %vm852_vm7 = vmor %vm1457_vm6, %vm1452_vm5 }
 0x147   : > { %v784_v41 = vrot.slane %v776_v31, %v783_v36  ;;  %v865_v46 = vrot.slane %v776_v31, %v864_v42  ;;  %v892_v48 = vrot.slane %v884_v40, %v864_v42 }
 0x149   : > { %v789_v43 = vrot.slane %v784_v41, %v788_v37  ;;  %v793_v44 = vrot.slane %v784_v41, %v792_v38  ;;  %v785_v45 = vcombine.high %v784_v41, %v784_v41  ;;  %v870_v53 = vsel %vm869_vm4, %v865_v46, 0.0 }
 0x14a   : > { %v871_v54 = vrot.slane %v870_v53, 4  ;;  %v866_v55 = vcombine.high %v865_v46, %v865_v46  ;;  %v896_v56 = vsel %vm869_vm4, %v892_v48, 0.0  ;;  %v893_v57 = vcombine.high %v892_v48, %v892_v48 }
 0x14b   : > { %v1148_v49 = vpack.c.bf16 %v793_v44, %v789_v43  ;;  %v797_v51 = vrot.slane %v785_v45, %v788_v37  ;;  %v801_v52 = vrot.slane %v785_v45, %v792_v38  ;;  %v897_v60 = vrot.slane %v896_v56, 4 }
 0x14c   : > { %v872_v62 = vadd.f32 %v871_v54, %v870_v53  ;;  %v877_v63 = vsel %vm869_vm4, %v866_v55, 0.0  ;;  %v903_v0 = vsel %vm869_vm4, %v893_v57, 0.0 }
 0x14d   : > { %v821_v58 = vrot.slane %v1148_v49, %v783_v36  ;;  %v1149_v59 = vpack.c.bf16 %v801_v52, %v797_v51  ;;  %v878_v3 = vrot.slane %v877_v63, 4  ;;  %v898_v4 = vadd.f32 %v897_v60, %v896_v56 }
 0x14e   : > { %v873_v6 = vrot.slane %v872_v62, 2  ;;  %v904_v7 = vrot.slane %v903_v0, 4 }
 0x14f   : > { %v828_v1 = vrot.slane %v821_v58, %v783_v36  ;;  %v836_v2 = vrot.slane %v1149_v59, %v783_v36  ;;  %v879_v10 = vadd.f32 %v878_v3, %v877_v63  ;;  %v899_v11 = vrot.slane %v898_v4, 2 }
 0x150   : > { %v874_v12 = vadd.f32 %v873_v6, %v872_v62  ;;  %v905_v13 = vadd.f32 %v904_v7, %v903_v0 }
 0x151   : > { %v854_v8 = vsel %vm852_vm7, %v828_v1, %v853_v61  ;;  %v843_v9 = vrot.slane %v836_v2, %v783_v36  ;;  %v880_v15 = vrot.slane %v879_v10, 2  ;;  %v900_v16 = vadd.f32 %v899_v11, %v898_v4 }
 0x152   : > { %855 = vst [vmem:[%s1520_s2] sm:$0x3] %v854_v8  ;;  %v875_v17 = vrot.slane %v874_v12, 1  ;;  %v906_v18 = vrot.slane %v905_v13, 2 }
 0x153   : > { %v857_v14 = vsel %vm852_vm7, %v843_v9, %v856_v5  ;;  %v881_v19 = vadd.f32 %v880_v15, %v879_v10  ;;  %v901_v20 = vrot.slane %v900_v16, 1 }
 0x154   : > { %858 = vst [vmem:[%s1520_s2 + $0x2] sm:$0x3] %v857_v14  ;;  %v876_v21 = vadd.f32 %v875_v17, %v874_v12  ;;  %v907_v22 = vadd.f32 %v906_v18, %v905_v13 }
 0x155   : > { %v882_v23 = vrot.slane %v881_v19, 1  ;;  %v902_v24 = vadd.f32 %v901_v20, %v900_v16 }
 0x156   : > { %910 = vst [vmem:[%s1521_s3] sm:$0xff] %v876_v21  ;;  %v908_v25 = vrot.slane %v907_v22, 1 }
 0x157   : > { %v883_v26 = vadd.f32 %v882_v23, %v881_v19  ;;  %912 = vst [vmem:[%s1522_s4] sm:$0xff] %v902_v24 }
 0x158   : > { %v909_v27 = vadd.f32 %v908_v25, %v907_v22 }
 0x159   : > { %911 = vst [vmem:[%s1521_s3 + $0x8] sm:$0xff] %v883_v26 }
 0x15a   : > { %913 = vst [vmem:[%s1522_s4 + $0x8] sm:$0xff] %v909_v27 }
 0x15b PF: > { %s15_s19 = sadd.s32 1, %s1312_s19   ;;  %s1527_s15 = smov %s1300_s16 }
 0x15c   : > { %p12_p12 = scmp.ge.s32.totalorder %s15_s19, 5   ;;  %s1528_s16 = smov %s1378_s23 }
 0x15d   : > { %s1529_s17 = smov %s1308_s18  ;;  %s1530_s18 = smov %s1532_s20 }
 0x15e   :  { %14 = sbr.rel (!%p12_p12) target bundleno = 3 (0x3), region = 143 }

// kernel: _lambda_.42
= control target key start
LH: loop header
LB: loop body
LE: loop exit
PB: predicated region body
PF: predicated region fallthrough
CT: control target
= control target key end

     0   :  { %s76_s0 = inlined_call_operand.vmem [shape: bf16[2,256], index: 0, kind: input, shape index: {}]   ;;  %s77_s1 = inlined_call_operand.vmem [shape: f32[1,128], index: 1, kind: input, shape index: {}]   ;;  %s78_s2 = inlined_call_operand.vmem [shape: f32[1,128], index: 2, kind: input, shape index: {}]   ;;  %s79_s3 = inlined_call_operand.vmem [shape: bf16[2,128], index: 3, kind: output, shape index: {}]  }
   0x1   :  { %v41_v0 = vld [vmem:[%s76_s0 + $0x1] sm:$0x1]  ;;  %v42_v1 = vld [vmem:[%s77_s1] ss:$0 sm:$0xff] }
   0x2   :  { %v18_v2 = vunpack.c.l.bf16 %v41_v0  ;;  %v43_v3 = vld [vmem:[%s78_s2] ss:$0 sm:$0xff] }
   0x4   :  { %v26_v4 = vmul.f32 %v42_v1, %v18_v2 }
   0x6   :  { %v34_v5 = vadd.f32 %v43_v3, %v26_v4 }
   0x8   :  { %v35_v6 = vpack.c.bf16 %v34_v5, %v34_v5 }
   0xa   :  { %36 = vst [vmem:[%s79_s3] sm:$0x1] %v35_v6 }

// kernel: _lambda_.44
= control target key start
LH: loop header
LB: loop body
LE: loop exit
PB: predicated region body
PF: predicated region fallthrough
CT: control target
= control target key end

     0   :  { %s87_s0 = inlined_call_operand.vmem [shape: bf16[2,128], index: 0, kind: input, shape index: {}]   ;;  %s88_s1 = inlined_call_operand.vmem [shape: f32[1,128], index: 1, kind: input, shape index: {}]   ;;  %s89_s2 = inlined_call_operand.vmem [shape: f32[1,128], index: 2, kind: input, shape index: {}]   ;;  %s90_s3 = inlined_call_operand.vmem [shape: bf16[2,128], index: 3, kind: input, shape index: {}]   ;;  %s91_s4 = inlined_call_operand.vmem [shape: bf16[2,128], index: 4, kind: output, shape index: {}]  }
   0x1   :  { %v17_v0 = vld [vmem:[%s87_s0] sm:$0x1] }
   0x2   :  { %v45_v1 = vld [vmem:[%s88_s1] ss:$0 sm:$0xff]  ;;  %v18_v2 = vunpack.c.l.bf16 %v17_v0 }
   0x3   :  { %v35_v3 = vld [vmem:[%s90_s3] sm:$0x1] }
   0x4   :  { %v46_v4 = vld [vmem:[%s89_s2] ss:$0 sm:$0xff]  ;;  %v26_v5 = vmul.f32 %v45_v1, %v18_v2  ;;  %v36_v6 = vunpack.c.l.bf16 %v35_v3 }
   0x6   :  { %v34_v7 = vadd.f32 %v46_v4, %v26_v5 }
   0x8   :  { %v37_v8 = vadd.f32 %v36_v6, %v34_v7 }
   0xa   :  { %v38_v9 = vmax.f32 %v37_v8, 0.0 }
   0xc   :  { %v39_v10 = vpack.c.bf16 %v38_v9, %v38_v9 }
   0xe   :  { %40 = vst [vmem:[%s91_s4] sm:$0x1] %v39_v10 }

// kernel: _lambda_.43
= control target key start
LH: loop header
LB: loop body
LE: loop exit
PB: predicated region body
PF: predicated region fallthrough
CT: control target
= control target key end

     0   :  { %s1127_s15 = smov 0   ;;  %s1129_s16 = smov 0   ;;  %s1272_s0 = inlined_call_operand.vmem [shape: bf16[2,3,3,128], index: 0, kind: input, shape index: {}]   ;;  %s1273_s1 = inlined_call_operand.vmem [shape: bf16[9,128,128], index: 1, kind: input, shape index: {}]   ;;  %s1274_s2 = inlined_call_operand.vmem [shape: bf16[2,1,1,128], index: 2, kind: output, shape index: {0}]   ;;  %s1275_s3 = inlined_call_operand.vmem [shape: f32[1,8,128], index: 3, kind: output, shape index: {1}]   ;;  %s1276_s4 = inlined_call_operand.vmem [shape: f32[1,8,128], index: 4, kind: output, shape index: {2}]  }
   0x1   :  { %s1131_s17 = smov 0   ;;  %s1133_s18 = smov 0  }
   0x2   :  { %s1135_s19 = smov 0  }
   0x3 LB: > { %s24_s20 = sadd.s32 1, %s1093_s18  ;;  %p43_p1 = scmp.ne.s32.totalorder %s1085_s16, %s1081_s15  ;;  %s1097_s19 = sphi %s1135_s19, %s15_s19   ;;  %s1093_s18 = sphi %s1133_s18, %s1280_s18   ;;  %s1089_s17 = sphi %s1131_s17, %s1279_s17   ;;  %s1085_s16 = sphi %s1129_s16, %s1278_s16   ;;  %s1081_s15 = sphi %s1127_s15, %s1277_s15  }
   0x4   : > { %p25_p0 = scmp.ge.s32.totalorder %s24_s20, 3  ;;  %p44_p2 = scmp.eq.s32.totalorder %s1097_s19, 0 }
   0x5   : > { %s36_s22 = sadd.s32 1, %s1085_s16  ;;  %p829_p5 = scmp.ge.s32.totalorder %s1097_s19, 3 }
   0x6   : > { %s1282_s20 = smov (%p25_p0, %s24_s20), 0  ;;  %p45_p3 = por %p44_p2, %p43_p1 }
   0x7   : > { %s33_s21 = ssub.s32 %s1093_s18, %s1282_s20  ;;  %171 = sbr.rel (%p829_p5) target bundleno = 17 (0x11), region = 20 }
   0x8   : > { %p34_p4 = scmp.eq.s32.totalorder %s33_s21, 0 }
   0xa   : > { %s1162_s23 = scalar_select %p34_p4, %s1085_s16, %s36_s22  }
   0xc   : > { %174 = sbr.rel (!%p45_p3) target bundleno = 17 (0x11), region = 24  ;;  %s176_s24 = sand.u32 (%p45_p3), 1, %s1085_s16  }
   0xd   : > { %s831_s25 = sshll.u32 (%p45_p3), %s1093_s18, 1  ;;  %s830_s26 = sshll.u32 (%p45_p3), %s176_s24, 2 }
   0xe   : > { %s181_s29 = scalar_lea.vmem (%p45_p3), %s1272_s0, %s831_s25  ;;  %s178_s30 = scalar_lea.vmem (%p45_p3), [#allocation3], %s830_s26 }
   0xf   : > { %v198_v0 = vld [vmem:[%s181_s29] sm:$0x3] (%p45_p3)  ;;  %v200_v1 = vld [vmem:[%s181_s29 + $0x6] sm:$0x3] (%p45_p3) }
  0x10   : > { %199 = vst [vmem:[%s178_s30] sm:$0x3] (%p45_p3), %v198_v0  ;;  %201 = vst [vmem:[%s178_s30 + $0x2] sm:$0x3] (%p45_p3), %v200_v1 }
  0x11 PF: > { %p832_p6 = scmp.ge.s32.totalorder %s1097_s19, 1  ;;  %p220_p7 = scmp.lt.s32.totalorder %s1097_s19, 4 }
  0x13   : > { %p221_p8 = pnand %p832_p6, %p220_p7 }
  0x14   : > { %s904_s5 = smul.u32 (!%p221_p8), 192, %s1089_s17  ;;  %s227_s9 = sand.u32 (!%p221_p8), 1, %s1081_s15  }
  0x15   : > { %224 = sbr.rel (%p221_p8) target bundleno = 327 (0x147), region = 58  ;;  %s833_s10 = sshll.u32 (!%p221_p8), %s227_s9, 2 }
  0x16   : > { %s1178_s8 = scalar_lea.vmem (!%p221_p8), %s1273_s1, %s904_s5  ;;  %s229_s11 = scalar_lea.vmem (!%p221_p8), [#allocation3], %s833_s10 }
  0x17   : > { %p896_p9 = scmp.ne.s32.totalorder (!%p221_p8), %s1089_s17, 0 }
  0x1a   : > { %v1099_v2 = vmov 0.0   ;;  %vm1100_vm0 = vmmov 0   ;;  %v1035_v3 = vld [vmem:[%s1178_s8 + $0x78] sm:$0xff]   ;;  %v1037_v5 = vld [vmem:[%s1178_s8 + $0x70] sm:$0xff]   ;;  %v1039_v7 = vld [vmem:[%s1178_s8 + $0x68] sm:$0xff]   ;;  %vm332_vm1 = vcmask 1041409  }
  0x1b   : > { %932 = vmatprep.subr.bf16.mxu0 %v1099_v2  ;;  %952 = vmatprep.subr.bf16.mxu1 %v1099_v2  ;;  %v1036_v4 = vld [vmem:[%s1178_s8 + $0x38] sm:$0xff]   ;;  %v1038_v6 = vld [vmem:[%s1178_s8 + $0x30] sm:$0xff]   ;;  %v1040_v8 = vld [vmem:[%s1178_s8 + $0x28] sm:$0xff]  }
  0x1c   : > { %948 = vmatprep.mubr.msk.bf16.mxu0 %vm1100_vm0, %v1099_v2  ;;  %968 = vmatprep.mubr.msk.bf16.mxu1 %vm1100_vm0, %v1099_v2  ;;  %v1041_v9 = vld [vmem:[%s1178_s8 + $0x60] sm:$0xff]   ;;  %v1043_v11 = vld [vmem:[%s1178_s8 + $0x58] sm:$0xff]   ;;  %v1045_v15 = vld [vmem:[%s1178_s8 + $0x50] sm:$0xff]  }
  0x1d   : > { %933 = vmatpush3.bf16.msra.mxu0 %v1035_v3  ;;  %953 = vmatpush3.bf16.msra.mxu1 %v1036_v4  ;;  %v1042_v10 = vld [vmem:[%s1178_s8 + $0x20] sm:$0xff]   ;;  %v1044_v12 = vld [vmem:[%s1178_s8 + $0x18] sm:$0xff]   ;;  %v1046_v17 = vld [vmem:[%s1178_s8 + $0x10] sm:$0xff]  }
  0x1e   : > { %934 = vmatprep.subr.bf16.mxu0 %v1099_v2  ;;  %954 = vmatprep.subr.bf16.mxu1 %v1099_v2  ;;  %v853_v13 = vld.sshfl [vmem:[%s229_s11] sm:$0x3 pattern:$0x76325410]  ;;  %v1047_v19 = vld [vmem:[%s1178_s8 + $0x48] sm:$0xff]   ;;  %v1051_v29 = vld [vmem:[%s1178_s8 + $0xb8] sm:$0xff]  }
  0x1f   : > { %v854_v14 = vld.sshfl [vmem:[%s229_s11 + $0x2] sm:$0x3 pattern:$0x76325410]  ;;  %v329_v16 = vunpack.c.l.b16 %v853_v13  ;;  %v1052_v30 = vld [vmem:[%s1178_s8 + $0xb0] sm:$0xff]   ;;  %v1055_v33 = vld [vmem:[%s1178_s8 + $0x98] sm:$0xff]  }
  0x20   : > { %v330_v18 = vunpack.c.l.b16 %v854_v14  ;;  %v1048_v21 = vld [vmem:[%s1178_s8 + $0x8] sm:$0xff]   ;;  %v1049_v23 = vld [vmem:[%s1178_s8 + $0x40] sm:$0xff]   ;;  %v1056_v34 = vld [vmem:[%s1178_s8 + $0x90] sm:$0xff]  }
  0x21   : > { %935 = vmatpush3.bf16.msra.mxu0 %v1037_v5  ;;  %955 = vmatpush3.bf16.msra.mxu1 %v1038_v6  ;;  %v331_v20 = vrot.slane %v329_v16, 1  ;;  %v1050_v25 = vld [vmem:[%s1178_s8] sm:$0xff]   ;;  %v1053_v31 = vld [vmem:[%s1178_s8 + $0xa8] sm:$0xff]   ;;  %v536_v36 = vrot.slane %v329_v16, 2 }
  0x22   : > { %936 = vmatprep.subr.bf16.mxu0 %v1099_v2  ;;  %956 = vmatprep.subr.bf16.mxu1 %v1099_v2  ;;  %v424_v22 = vrot.slane %v330_v18, 7  ;;  %v1054_v32 = vld [vmem:[%s1178_s8 + $0xa0] sm:$0xff]   ;;  %v1057_v35 = vld [vmem:[%s1178_s8 + $0x88] sm:$0xff]   ;;  %v537_v37 = vrot.slane %v330_v18, 1 }
  0x23   : > { %v333_v24 = vsel %vm332_vm1, %v330_v18, %v331_v20  ;;  %v1058_v38 = vld [vmem:[%s1178_s8 + $0x80] sm:$0xff]  }
  0x24   : > { %v425_v26 = vsel %vm332_vm1, %v424_v22, %v329_v16  ;;  %v334_v27 = vpack.c.b16 %v333_v24, %v333_v24  ;;  %v538_v39 = vsel %vm332_vm1, %v537_v37, %v536_v36 }
  0x25   : > { %937 = vmatpush3.bf16.msra.mxu0 %v1039_v7  ;;  %957 = vmatpush3.bf16.msra.mxu1 %v1040_v8  ;;  %v426_v28 = vpack.c.b16 %v425_v26, %v425_v26  ;;  %v539_v40 = vpack.c.b16 %v538_v39, %v538_v39 }
  0x26   : > { %938 = vmatprep.subr.bf16.mxu0 %v1099_v2  ;;  %958 = vmatprep.subr.bf16.mxu1 %v1099_v2 }
  0x29   : > { %939 = vmatpush3.bf16.msra.mxu0 %v1041_v9  ;;  %959 = vmatpush3.bf16.msra.mxu1 %v1042_v10 }
  0x2a   : > { %940 = vmatprep.subr.bf16.mxu0 %v1099_v2  ;;  %960 = vmatprep.subr.bf16.mxu1 %v1099_v2 }
  0x2d   : > { %941 = vmatpush3.bf16.msra.mxu0 %v1043_v11  ;;  %961 = vmatpush3.bf16.msra.mxu1 %v1044_v12 }
  0x2e   : > { %942 = vmatprep.subr.bf16.mxu0 %v1099_v2  ;;  %962 = vmatprep.subr.bf16.mxu1 %v1099_v2 }
  0x31   : > { %943 = vmatpush3.bf16.msra.mxu0 %v1045_v15  ;;  %963 = vmatpush3.bf16.msra.mxu1 %v1046_v17 }
  0x32   : > { %944 = vmatprep.subr.bf16.mxu0 %v1099_v2  ;;  %964 = vmatprep.subr.bf16.mxu1 %v1099_v2 }
  0x35   : > { %945 = vmatpush3.bf16.msra.mxu0 %v1047_v19  ;;  %965 = vmatpush3.bf16.msra.mxu1 %v1048_v21 }
  0x36   : > { %946 = vmatprep.subr.bf16.mxu0 %v1099_v2  ;;  %966 = vmatprep.subr.bf16.mxu1 %v1099_v2 }
  0x39   : > { %947 = vmatpush3.bf16.msra.mxu0 %v1049_v23  ;;  %967 = vmatpush3.bf16.msra.mxu1 %v1050_v25 }
  0x3a   : > { %972 = vmatprep.subr.bf16.mxu0 %v1099_v2 }
  0x3c   : > { %949 = vmatmul.mubr.bf16.vlgmr.msra.gmra.mxu0 %v334_v27  ;;  %969 = vmatmul.mubr.bf16.vlgmr.msra.gmra.mxu1 %v426_v28 }
  0x3d   : > { %973 = vmatpush3.bf16.msra.mxu0 %v1051_v29  ;;  %988 = vmatprep.mubr.msk.bf16.mxu0 %vm1100_vm0, %v1099_v2 }
  0x3e   : > { %974 = vmatprep.subr.bf16.mxu0 %v1099_v2 }
  0x41   : > { %975 = vmatpush3.bf16.msra.mxu0 %v1052_v30 }
  0x42   : > { %976 = vmatprep.subr.bf16.mxu0 %v1099_v2 }
  0x45   : > { %977 = vmatpush3.bf16.msra.mxu0 %v1053_v31 }
  0x46   : > { %978 = vmatprep.subr.bf16.mxu0 %v1099_v2 }
  0x49   : > { %979 = vmatpush3.bf16.msra.mxu0 %v1054_v32 }
  0x4a   : > { %980 = vmatprep.subr.bf16.mxu0 %v1099_v2 }
  0x4d   : > { %981 = vmatpush3.bf16.msra.mxu0 %v1055_v33 }
  0x4e   : > { %982 = vmatprep.subr.bf16.mxu0 %v1099_v2 }
  0x51   : > { %983 = vmatpush3.bf16.msra.mxu0 %v1056_v34 }
  0x52   : > { %984 = vmatprep.subr.bf16.mxu0 %v1099_v2 }
  0x55   : > { %985 = vmatpush3.bf16.msra.mxu0 %v1057_v35 }
  0x56   : > { %986 = vmatprep.subr.bf16.mxu0 %v1099_v2 }
  0x59   : > { %987 = vmatpush3.bf16.msra.mxu0 %v1058_v38 }
  0x5c   : > { %989 = vmatmul.mubr.bf16.vlgmr.msra.gmra.mxu0 %v539_v40 }
  0xfc   : > { %v418_v41 = vpop.f32.mrf.mxu0  ;;  %v510_v42 = vpop.f32.mrf.mxu1 }
  0xfd   : > { %v511_v49 = vadd.f32 %v510_v42, %v418_v41 }
  0xfe   : > { %v950_v43 = vpop.f32.mrf.mxu0  ;;  %v970_v44 = vpop.f32.mrf.mxu1 }
 0x100   : > { %v421_v45 = vpop.f32.mrf.mxu0  ;;  %v513_v46 = vpop.f32.mrf.mxu1 }
 0x102   : > { %v951_v47 = vpop.f32.mrf.mxu0  ;;  %v971_v48 = vpop.f32.mrf.mxu1 }
 0x11c   : > { %v623_v50 = vpop.f32.mrf.mxu0 }
 0x11d   : > { %v629_v51 = vadd.f32 %v623_v50, %v511_v49 }
 0x11e   : > { %v990_v52 = vpop.f32.mrf.mxu0  ;;  %633 = sbr.rel (%p896_p9) target bundleno = 292 (0x124), region = 66 }
 0x120   : > { %v626_v53 = vpop.f32.mrf.mxu0 }
 0x122   : > { %v991_v54 = vpop.f32.mrf.mxu0 }
 0x123   : > { %634 = vst [vmem:[#allocation2] sm:$0x3] %v629_v51 }
 0x124 PF: > { %p897_p10 = scmp.le.s32.totalorder %s1089_s17, 0 }
 0x126   : > { %638 = sbr.rel (%p897_p10) target bundleno = 303 (0x12f), region = 70 }
 0x12b   : > { %v639_v55 = vld [vmem:[#allocation2] sm:$0x3] }
 0x12c   : > { %v640_v56 = vadd.f32 %v639_v55, %v629_v51 }
 0x12e   : > { %641 = vst [vmem:[#allocation2] sm:$0x3] %v640_v56 }
 0x12f PF: > { %p898_p11 = scmp.ne.s32.totalorder %s1089_s17, 2 }
 0x131   : > { %645 = sbr.rel (%p898_p11) target bundleno = 327 (0x147), region = 74 }
 0x136   : > { %v646_v57 = vld [vmem:[#allocation2] sm:$0x3]  ;;  %v651_v58 = vlaneseq  ;;  %vm683_vm2 = vcmask 1041408   ;;  %v1101_v59 = vmov 1966171168   ;;  %vm674_vm3 = vcmask 1040384  }
 0x137   : > { %v649_v60 = vunpack.c.l.s4 %v1101_v59  ;;  %v691_v61 = vmul.f32 %v646_v57, %v646_v57  ;;  %v684_v63 = vsel %vm683_vm2, %v646_v57, 0.0  ;;  %vm675_vm4 = vsmask.f32 256  ;;  %v677_v13 = vld [vmem:[%s1274_s2] sm:$0x1] }
 0x138   : > { %v652_v62 = vshrl.u32 %v651_v58, 7  ;;  %v685_v1 = vrot.slane %v684_v63, 4  ;;  %vm676_vm5 = vmand %vm674_vm3, %vm675_vm4  ;;  %v680_v18 = vld [vmem:[%s1274_s2 + $0x1] sm:$0x1] }
 0x139   : > { %v650_v0 = vunpack.c.0.s8 %v649_v60  ;;  %v692_v2 = vsel %vm683_vm2, %v691_v61, 0.0 }
 0x13a   : > { %v693_v3 = vrot.slane %v692_v2, 4  ;;  %v686_v5 = vadd.f32 %v685_v1, %v684_v63 }
 0x13b   : > { %v653_v4 = vsub.s32 %v650_v0, %v652_v62 }
 0x13c   : > { %v694_v6 = vadd.f32 %v693_v3, %v692_v2  ;;  %v687_v8 = vrot.slane %v686_v5, 2 }
 0x13d   : > { %v654_v7 = vrot.slane %v646_v57, %v653_v4 }
 0x13e   : > { %v695_v9 = vrot.slane %v694_v6, 2  ;;  %v688_v12 = vadd.f32 %v687_v8, %v686_v5 }
 0x13f   : > { %v662_v10 = vrot.slane %v654_v7, %v653_v4  ;;  %v655_v11 = vcombine.high %v654_v7, %v654_v7 }
 0x140   : > { %v696_v14 = vadd.f32 %v695_v9, %v694_v6  ;;  %v689_v17 = vrot.slane %v688_v12, 1 }
 0x141   : > { %v672_v15 = vpack.c.bf16 %v662_v10, %v662_v10  ;;  %v669_v16 = vrot.slane %v655_v11, %v653_v4 }
 0x142   : > { %v697_v19 = vrot.slane %v696_v14, 1  ;;  %v690_v22 = vadd.f32 %v689_v17, %v688_v12 }
 0x143   : > { %v678_v20 = vsel %vm676_vm5, %v672_v15, %v677_v13  ;;  %v673_v21 = vpack.c.bf16 %v669_v16, %v669_v16 }
 0x144   : > { %679 = vst [vmem:[%s1274_s2] sm:$0x1] %v678_v20  ;;  %v698_v23 = vadd.f32 %v697_v19, %v696_v14  ;;  %699 = vst [vmem:[%s1275_s3] sm:$0xff] %v690_v22 }
 0x145   : > { %v681_v24 = vsel %vm676_vm5, %v673_v21, %v680_v18 }
 0x146   : > { %682 = vst [vmem:[%s1274_s2 + $0x1] sm:$0x1] %v681_v24  ;;  %700 = vst [vmem:[%s1276_s4] sm:$0xff] %v698_v23 }
 0x147 PF: > { %s15_s19 = sadd.s32 1, %s1097_s19   ;;  %s1277_s15 = smov %s1085_s16 }
 0x148   : > { %p12_p12 = scmp.ge.s32.totalorder %s15_s19, 5   ;;  %s1278_s16 = smov %s1162_s23 }
 0x149   : > { %s1279_s17 = smov %s1093_s18  ;;  %s1280_s18 = smov %s1282_s20 }
 0x14a   :  { %14 = sbr.rel (!%p12_p12) target bundleno = 3 (0x3), region = 136 }

// kernel: _lambda_.45
= control target key start
LH: loop header
LB: loop body
LE: loop exit
PB: predicated region body
PF: predicated region fallthrough
CT: control target
= control target key end

     0   :  { %v234_v1 = vmov 0.0   ;;  %vm235_vm0 = vmmov 0   ;;  %s293_s0 = inlined_call_operand.vmem [shape: bf16[2,1,128], index: 0, kind: input, shape index: {}]   ;;  %s294_s1 = inlined_call_operand.vmem [shape: bf16[128,128], index: 1, kind: input, shape index: {}]   ;;  %s295_s2 = inlined_call_operand.vmem [shape: f32[1,128], index: 2, kind: input, shape index: {}]   ;;  %s296_s3 = inlined_call_operand.hbm [shape: f32[2,128], index: 3, kind: output, shape index: {}]  }
   0x1   :  { %v202_v0 = vld [vmem:[%s294_s1 + $0x38] sm:$0xff]   ;;  %179 = vmatprep.subr.bf16.mxu0 %v234_v1  ;;  %v203_v2 = vld [vmem:[%s294_s1 + $0x30] sm:$0xff]   ;;  %195 = vmatprep.mubr.msk.bf16.mxu0 %vm235_vm0, %v234_v1  ;;  %v204_v3 = vld [vmem:[%s294_s1 + $0x28] sm:$0xff]  }
   0x2   :  { %180 = vmatpush3.bf16.msra.mxu0 %v202_v0  ;;  %v205_v4 = vld [vmem:[%s294_s1 + $0x20] sm:$0xff]  }
   0x3   :  { %181 = vmatprep.subr.bf16.mxu0 %v234_v1 }
   0x6   :  { %182 = vmatpush3.bf16.msra.mxu0 %v203_v2 }
   0x7   :  { %183 = vmatprep.subr.bf16.mxu0 %v234_v1 }
   0xa   :  { %184 = vmatpush3.bf16.msra.mxu0 %v204_v3 }
   0xb   :  { %8 = vsyncpa [#allocation3], 0  ;;  %185 = vmatprep.subr.bf16.mxu0 %v234_v1  ;;  %v206_v5 = vld [vmem:[%s294_s1 + $0x18] sm:$0xff]   ;;  %v211_v6 = vld [vmem:[%s293_s0 + $0x1] ss:$0 sps:$4 sm:$0x11]  }
   0xc   :  { %v207_v7 = vld [vmem:[%s294_s1 + $0x10] sm:$0xff]   ;;  %v210_v8 = vld [vmem:[%s293_s0] ss:$0 sps:$4 sm:$0x11]   ;;  %v50_v9 = vunpack.c.l.b16 %v211_v6  ;;  %v208_v10 = vld [vmem:[%s294_s1 + $0x8] sm:$0xff]   ;;  %vm52_vm1 = vcmask 1041409  }
   0xd   :  { %v49_v11 = vunpack.c.l.b16 %v210_v8  ;;  %v209_v13 = vld [vmem:[%s294_s1] sm:$0xff]   ;;  %s236_s6 = smov [#allocation2]  }
   0xe   :  { %186 = vmatpush3.bf16.msra.mxu0 %v205_v4  ;;  %v51_v12 = vrot.slane %v50_v9, 7  ;;  %v161_v16 = vld [vmem:[%s295_s2] ss:$0 sm:$0xff]  ;;  %s151_s7 = sshll.u32 %s236_s6, 4  ;;  %s152_s7 = int_to_ptr.vmem [resolvable:$true] %s151_s7 }
   0xf   :  { %187 = vmatprep.subr.bf16.mxu0 %v234_v1  ;;  %s212_s8 = scalar_lea.vmem %s152_s7, 32  ;;  %p217_p1 = scmp.lt.s32.totalorder %s152_s7, %s152_s7 }
  0x10   :  { %v53_v14 = vsel %vm52_vm1, %v51_v12, %v49_v11  ;;  %p213_p0 = scmp.ne.s32.totalorder %s152_s7, %s212_s8  ;;  %p218_p2 = scmp.lt.s32.totalorder %s212_s8, %s212_s8 }
  0x11   :  { %v54_v15 = vpack.c.b16 %v53_v14, %v53_v14 }
  0x12   :  { %188 = vmatpush3.bf16.msra.mxu0 %v206_v5  ;;  %p219_p3 = por %p218_p2, %p217_p1 }
  0x13   :  { %189 = vmatprep.subr.bf16.mxu0 %v234_v1 }
  0x14   :  { %p220_p4 = pnand %p219_p3, %p213_p0 }
  0x16   :  { %190 = vmatpush3.bf16.msra.mxu0 %v207_v7 }
  0x17   :  { %191 = vmatprep.subr.bf16.mxu0 %v234_v1 }
  0x1a   :  { %192 = vmatpush3.bf16.msra.mxu0 %v208_v10 }
  0x1b   :  { %193 = vmatprep.subr.bf16.mxu0 %v234_v1 }
  0x1e   :  { %194 = vmatpush3.bf16.msra.mxu0 %v209_v13 }
  0x21   :  { %196 = vmatmul.mubr.bf16.vlgmr.msra.gmra.mxu0 %v54_v15 }
  0xe1   :  { %v138_v17 = vpop.f32.mrf.mxu0 }
  0xe2   :  { %v139_v18 = vadd.f32 %v161_v16, %v138_v17 }
  0xe3   :  { %v197_v19 = vpop.f32.mrf.mxu0 }
  0xe4   :  { %144 = vst [vmem:[#allocation2] sm:$0x3] %v139_v18 }
  0xe5   :  { %v141_v20 = vpop.f32.mrf.mxu0 }
  0xe6   :  { %223 = shalt.err (!%p220_p4)
}
  0xe7   :  { %154 = dma.vmem_to_hbm [thread:$0]  %s152_s7, 32, %s296_s3, [#allocation3]   ;;  %v198_v21 = vpop.f32.mrf.mxu0 }
  0xe8   :  { %232 = dma.done.wait [#allocation3], 32  }
  0xe9   :  { %233 = vsyncadd [#allocation3], 4294967264 }
  0xea   :  { %158 = vsyncpa [#allocation3], 1 }

</bundles_post_ra>
